<compile_context>
chip_gen: v5e
topology: v5e:2x2
jax: 0.10.0
libtpu: 0.0.40
codegen_flags: <defaults>
</compile_context>

<pallas_src>
import math
from functools import partial

import jax
import jax.numpy as jnp
import numpy as np
from jax import lax
from jax.experimental import pallas as pl
from jax.experimental.pallas import tpu as pltpu


def _pick_row_tile(oh, ow, cout, row_tile=None, acc_budget_bytes=2 << 20):
    """Pick the output-row band height TH.

    Prefers TH = OH (single band => fewest grid steps; per-step overhead is
    ~0.35us).  Falls back to the largest divisor of OH whose f32 accumulator
    (Cout * TH * OW * 4 bytes) fits the budget.  `row_tile` forces a value
    (used by tests to exercise the multi-band path)."""
    if row_tile is not None:
        assert oh % row_tile == 0, "row_tile must divide OH"
        return row_tile
    for th in range(oh, 0, -1):          # th == oh is a candidate (fixes v2 off-by-one)
        if oh % th == 0 and cout * th * ow * 4 <= acc_budget_bytes:
            return th
    return oh


def _conv2d_kernel(x_ref, w_ref, b_ref, o_ref, xpad_ref, *,
                   kh_size, kw_size, th, ow, sh, sw, ph, pw, h, w, cin, cout):
    """One (batch, output-row-band) per grid step.

    x_ref:    (1, Cin, H, W)   full NCHW image for this batch (VMEM, resident)
    w_ref:    (Cout*Cin*KH*KW,) f32 weights in SMEM (scalar reads)
    b_ref:    (Cout,)           f32 bias in SMEM
    o_ref:    (1, Cout, TH, OW) NCHW output block
    xpad_ref: (Cin, Hp_a, Wp_a) VMEM scratch: zero-padded image (+stride margin)
    """
    t = pl.program_id(1)
    hp_a = xpad_ref.shape[1]
    wp_a = xpad_ref.shape[2]

    # Build the padded image in VMEM once per batch element.
    # NOTE(correctness): this reuse across t relies on (a) the row-band grid
    # axis being "arbitrary" (sequential per core), so t == 0 runs before the
    # other bands of the same batch, and (b) the input BlockSpec index being
    # constant in t.  Do not change either without revisiting this guard.
    @pl.when(t == 0)
    def _():
        # Zero only the halo (+ stride margin); the interior store below
        # overwrites everything else (no full-scratch memset).
        if ph > 0:
            xpad_ref[:, 0:ph, :] = jnp.zeros((cin, ph, wp_a), xpad_ref.dtype)
        if hp_a > ph + h:
            xpad_ref[:, ph + h:hp_a, :] = jnp.zeros(
                (cin, hp_a - ph - h, wp_a), xpad_ref.dtype)
        if pw > 0:
            xpad_ref[:, :, 0:pw] = jnp.zeros((cin, hp_a, pw), xpad_ref.dtype)
        if wp_a > pw + w:
            xpad_ref[:, :, pw + w:wp_a] = jnp.zeros(
                (cin, hp_a, wp_a - pw - w), xpad_ref.dtype)
        xpad_ref[:, ph:ph + h, pw:pw + w] = x_ref[0]

    row_base = pl.multiple_of(t * (th * sh), th * sh)

    # Dense (TH, OW) f32 accumulators, one per output channel: no transpose,
    # no skinny (TH*OW, Cout) vreg waste, direct NCHW store at the end.
    accs = [jnp.zeros((th, ow), jnp.float32) for _ in range(cout)]

    # Static unrolled shift-and-MAC over the KH*KW taps.
    for kh in range(kh_size):
        for kw in range(kw_size):
            # Contiguous window (no strided slice); stride handled below by
            # reshape-and-drop (cheap sublane/lane selects).
            slab = xpad_ref[:, pl.ds(row_base + kh, th * sh), kw:kw + ow * sw]
            if sh > 1 or sw > 1:
                slab = slab.reshape(cin, th, sh, ow, sw)[:, :, 0, :, 0]
            slab = slab.astype(jnp.float32)          # (Cin, TH, OW)
            for c in range(cin):
                xc = slab[c]                         # (TH, OW), free vreg select
                for o in range(cout):
                    widx = ((o * cin + c) * kh_size + kh) * kw_size + kw
                    accs[o] = accs[o] + w_ref[widx] * xc

    for o in range(cout):
        o_ref[0, o] = (accs[o] + b_ref[o]).astype(o_ref.dtype)


def output_channel_parallel_conv2d(x_nchw, weight_oihw, bias,
                                   stride=(1, 1), padding=(0, 0),
                                   row_tile=None):
    """Forward of OutputChannelParallelConv2d (world_size == 1).

    x_nchw:      (N, Cin, H, W)
    weight_oihw: (Cout, Cin, KH, KW)
    bias:        (Cout,) or None
    returns:     (N, Cout, OH, OW)
    """
    n, cin, h, w = x_nchw.shape
    cout, cin_w, kh, kw = weight_oihw.shape
    assert cin == cin_w
    sh, sw = stride
    ph, pw = padding

    oh = (h + 2 * ph - kh) // sh + 1
    ow = (w + 2 * pw - kw) // sw + 1
    # Padded scratch with (sh-1, sw-1) zero margins so the contiguous
    # reshape-and-drop stride loads never go out of bounds.
    hp_a = h + 2 * ph + (sh - 1)
    wp_a = w + 2 * pw + (sw - 1)

    th = _pick_row_tile(oh, ow, cout, row_tile)
    n_bands = oh // th
    # Perf note (visible, per review): stores are masked when OW % 128 != 0;
    # fine at toy sizes, production widths should be multiples of 128.

    # Weights/bias are tiny; keep them as f32 scalars in SMEM.
    w_flat = weight_oihw.astype(jnp.float32).reshape(-1)
    if bias is None:
        b_vec = jnp.zeros((cout,), dtype=jnp.float32)
    else:
        b_vec = bias.astype(jnp.float32)

    kernel = partial(_conv2d_kernel, kh_size=kh, kw_size=kw, th=th, ow=ow,
                     sh=sh, sw=sw, ph=ph, pw=pw, h=h, w=w, cin=cin, cout=cout)

    out = pl.pallas_call(
        kernel,
        out_shape=jax.ShapeDtypeStruct((n, cout, oh, ow), x_nchw.dtype),
        grid_spec=pltpu.PrefetchScalarGridSpec(
            num_scalar_prefetch=0,
            grid=(n, n_bands),
            in_specs=[
                # Whole NCHW image per batch; constant across row bands so it
                # stays resident (see TODO in header re: row-band blocks).
                pl.BlockSpec((1, cin, h, w), lambda b, t: (b, 0, 0, 0)),
                # Weight / bias: whole arrays in SMEM, scalar-indexed reads.
                pl.BlockSpec(memory_space=pltpu.MemorySpace.SMEM),
                pl.BlockSpec(memory_space=pltpu.MemorySpace.SMEM),
            ],
            out_specs=pl.BlockSpec((1, cout, th, ow), lambda b, t: (b, 0, t, 0)),
            scratch_shapes=[pltpu.VMEM((cin, hp_a, wp_a), x_nchw.dtype)],
        ),
        # Batch leading + parallel (v7x has 2 TCs); row bands sequential.
        # No vmem_limit_bytes override: actual usage here is well under 1 MiB.
        compiler_params=pltpu.CompilerParams(
            dimension_semantics=("parallel", "arbitrary")),
    )(x_nchw, w_flat, b_vec)
    return out


def _init_params(key, in_channels, out_channels, kernel_size, dtype=jnp.float32):
    """Deterministic init matching nn.Conv2d defaults (kaiming_uniform a=sqrt(5))."""
    kh, kw = kernel_size
    fan_in = in_channels * kh * kw
    bound = 1.0 / math.sqrt(fan_in)
    k_w, k_b = jax.random.split(key)
    weight = jax.random.uniform(
        k_w, (out_channels, in_channels, kh, kw), dtype=dtype,
        minval=-bound, maxval=bound)
    bias = jax.random.uniform(
        k_b, (out_channels,), dtype=dtype, minval=-bound, maxval=bound)
    return weight, bias


def _check(x, weight, bias, stride, padding, row_tile=None):
    out = output_channel_parallel_conv2d(x, weight, bias, stride, padding,
                                         row_tile=row_tile)
    out = jax.block_until_ready(out)
    ref = lax.conv_general_dilated(
        x, weight, window_strides=stride,
        padding=[(padding[0], padding[0]), (padding[1], padding[1])],
        dimension_numbers=("NCHW", "OIHW", "NCHW"))
    if bias is not None:
        ref = ref + bias.reshape(1, weight.shape[0], 1, 1)
    np.testing.assert_allclose(np.asarray(out), np.asarray(ref),
                               rtol=1e-5, atol=1e-5)


if __name__ == "__main__":
    key = jax.random.PRNGKey(0)
    k_x1, k_x2, k_p = jax.random.split(key, 3)

    N, CIN, COUT, KSIZE = 2, 4, 8, (3, 3)
    weight, bias = _init_params(k_p, CIN, COUT, KSIZE)

    x1 = jax.random.normal(k_x1, (N, CIN, 16, 16), dtype=jnp.float32)
    x2 = jax.random.normal(k_x2, (N, CIN, 18, 18), dtype=jnp.float32)

    # 1) stride 1, padding 1 (same-size output), single band.
    _check(x1, weight, bias, stride=(1, 1), padding=(1, 1))
    # 2) stride 1, no padding (pad == 0 path).
    _check(x2, weight, bias, stride=(1, 1), padding=(0, 0))
    # 3) stride 2 (exercises the reshape-and-drop strided path).
    _check(x1, weight, bias, stride=(2, 2), padding=(1, 1))
    # 4) no bias.
    _check(x1, weight, None, stride=(1, 1), padding=(1, 1))
    # 5) forced multi-band tiling (exercises t > 0 / padded-scratch reuse).
    _check(x1, weight, bias, stride=(1, 1), padding=(1, 1), row_tile=4)

    print("KERNEL_OK")
</pallas_src>

<mosaic_0001>
module attributes {stable_mosaic.version = 11 : i64} {
  func.func @_conv2d_kernel(%arg0: i32, %arg1: i32, %arg2: memref<1x4x16x16xf32, #tpu.memory_space<vmem>>, %arg3: memref<288xf32, #tpu.memory_space<smem>>, %arg4: memref<8xf32, #tpu.memory_space<smem>>, %arg5: memref<1x8x16x16xf32, #tpu.memory_space<vmem>>, %arg6: memref<4x18x18xf32, #tpu.memory_space<vmem>>) attributes {dimension_semantics = [#tpu.dimension_semantics<parallel>, #tpu.dimension_semantics<arbitrary>], iteration_bounds = array<i64: 2, 1>, scalar_prefetch = 0 : i64, scratch_operands = 1 : i64, tpu.core_type = #tpu.core_type<tc>, window_params = [{transform_indices = @transform_0, window_bounds = array<i64: 1, 4, 16, 16>}, {transform_indices = @transform_1, window_bounds = array<i64: 288>}, {transform_indices = @transform_2, window_bounds = array<i64: 8>}, {transform_indices = @transform_3, window_bounds = array<i64: 1, 8, 16, 16>}]} {
    %c0_i32 = arith.constant 0 : i32
    %0 = arith.cmpi eq, %arg1, %c0_i32 : i32
    %1 = arith.extui %0 : i1 to i32
    %c0_i32_0 = arith.constant 0 : i32
    %2 = arith.cmpi ne, %1, %c0_i32_0 : i32
    scf.if %2 {
      %cst_73 = arith.constant 0.000000e+00 : f32
      %1312 = vector.broadcast %cst_73 : f32 to vector<4x1x18xf32>
      %c0_74 = arith.constant 0 : index
      %c0_75 = arith.constant 0 : index
      %c0_76 = arith.constant 0 : index
      %1313 = vector.load %arg6[%c0_74, %c0_75, %c0_76] : memref<4x18x18xf32, #tpu.memory_space<vmem>>, vector<4x1x18xf32>
      tpu.vector_store %arg6[%c0_74, %c0_75, %c0_76], %1312 {strides = array<i32>} : memref<4x18x18xf32, #tpu.memory_space<vmem>>, vector<4x1x18xf32>,
      %cst_77 = arith.constant 0.000000e+00 : f32
      %1314 = vector.broadcast %cst_77 : f32 to vector<4x1x18xf32>
      %c0_78 = arith.constant 0 : index
      %c17_79 = arith.constant 17 : index
      %c0_80 = arith.constant 0 : index
      %1315 = vector.load %arg6[%c0_78, %c17_79, %c0_80] : memref<4x18x18xf32, #tpu.memory_space<vmem>>, vector<4x1x18xf32>
      tpu.vector_store %arg6[%c0_78, %c17_79, %c0_80], %1314 {strides = array<i32>} : memref<4x18x18xf32, #tpu.memory_space<vmem>>, vector<4x1x18xf32>,
      %cst_81 = arith.constant 0.000000e+00 : f32
      %1316 = vector.broadcast %cst_81 : f32 to vector<4x18x1xf32>
      %c0_82 = arith.constant 0 : index
      %c0_83 = arith.constant 0 : index
      %c0_84 = arith.constant 0 : index
      %1317 = vector.load %arg6[%c0_82, %c0_83, %c0_84] : memref<4x18x18xf32, #tpu.memory_space<vmem>>, vector<4x18x1xf32>
      tpu.vector_store %arg6[%c0_82, %c0_83, %c0_84], %1316 {strides = array<i32>} : memref<4x18x18xf32, #tpu.memory_space<vmem>>, vector<4x18x1xf32>,
      %cst_85 = arith.constant 0.000000e+00 : f32
      %1318 = vector.broadcast %cst_85 : f32 to vector<4x18x1xf32>
      %c0_86 = arith.constant 0 : index
      %c0_87 = arith.constant 0 : index
      %c17_88 = arith.constant 17 : index
      %1319 = vector.load %arg6[%c0_86, %c0_87, %c17_88] : memref<4x18x18xf32, #tpu.memory_space<vmem>>, vector<4x18x1xf32>
      tpu.vector_store %arg6[%c0_86, %c0_87, %c17_88], %1318 {strides = array<i32>} : memref<4x18x18xf32, #tpu.memory_space<vmem>>, vector<4x18x1xf32>,
      %c0_89 = arith.constant 0 : index
      %c0_90 = arith.constant 0 : index
      %c0_91 = arith.constant 0 : index
      %c0_92 = arith.constant 0 : index
      %1320 = vector.load %arg2[%c0_89, %c0_90, %c0_91, %c0_92] : memref<1x4x16x16xf32, #tpu.memory_space<vmem>>, vector<1x4x16x16xf32>
      %1321 = vector.shape_cast %1320 : vector<1x4x16x16xf32> to vector<4x16x16xf32>
      %c0_93 = arith.constant 0 : index
      %c1_94 = arith.constant 1 : index
      %c1_95 = arith.constant 1 : index
      %1322 = vector.load %arg6[%c0_93, %c1_94, %c1_95] : memref<4x18x18xf32, #tpu.memory_space<vmem>>, vector<4x16x16xf32>
      tpu.vector_store %arg6[%c0_93, %c1_94, %c1_95], %1321 {strides = array<i32>} : memref<4x18x18xf32, #tpu.memory_space<vmem>>, vector<4x16x16xf32>,
    } else {
    }
    %c16_i32 = arith.constant 16 : i32
    %3 = arith.muli %arg1, %c16_i32 : i32
    %4 = tpu.assume_multiple %3, 16 : i32
    %cst = arith.constant 0.000000e+00 : f32
    %5 = vector.broadcast %cst : f32 to vector<16x16xf32>
    %cst_1 = arith.constant 0.000000e+00 : f32
    %6 = vector.broadcast %cst_1 : f32 to vector<16x16xf32>
    %cst_2 = arith.constant 0.000000e+00 : f32
    %7 = vector.broadcast %cst_2 : f32 to vector<16x16xf32>
    %cst_3 = arith.constant 0.000000e+00 : f32
    %8 = vector.broadcast %cst_3 : f32 to vector<16x16xf32>
    %cst_4 = arith.constant 0.000000e+00 : f32
    %9 = vector.broadcast %cst_4 : f32 to vector<16x16xf32>
    %cst_5 = arith.constant 0.000000e+00 : f32
    %10 = vector.broadcast %cst_5 : f32 to vector<16x16xf32>
    %cst_6 = arith.constant 0.000000e+00 : f32
    %11 = vector.broadcast %cst_6 : f32 to vector<16x16xf32>
    %cst_7 = arith.constant 0.000000e+00 : f32
    %12 = vector.broadcast %cst_7 : f32 to vector<16x16xf32>
    %c0_i32_8 = arith.constant 0 : i32
    %13 = arith.addi %4, %c0_i32_8 : i32
    %c0 = arith.constant 0 : index
    %14 = arith.index_cast %13 : i32 to index
    %c0_9 = arith.constant 0 : index
    %15 = vector.load %arg6[%c0, %14, %c0_9] : memref<4x18x18xf32, #tpu.memory_space<vmem>>, vector<4x16x16xf32>
    %16 = vector.extract_strided_slice %15 {offsets = [0, 0, 0], sizes = [1, 16, 16], strides = [1, 1, 1]} : vector<4x16x16xf32> to vector<1x16x16xf32>
    %17 = vector.shape_cast %16 : vector<1x16x16xf32> to vector<16x16xf32>
    %c0_10 = arith.constant 0 : index
    %18 = memref.load %arg3[%c0_10] : memref<288xf32, #tpu.memory_space<smem>>
    %19 = vector.broadcast %18 : f32 to vector<16x16xf32>
    %20 = arith.mulf %19, %17 : vector<16x16xf32>
    %21 = arith.addf %5, %20 : vector<16x16xf32>
    %c36 = arith.constant 36 : index
    %22 = memref.load %arg3[%c36] : memref<288xf32, #tpu.memory_space<smem>>
    %23 = vector.broadcast %22 : f32 to vector<16x16xf32>
    %24 = arith.mulf %23, %17 : vector<16x16xf32>
    %25 = arith.addf %6, %24 : vector<16x16xf32>
    %c72 = arith.constant 72 : index
    %26 = memref.load %arg3[%c72] : memref<288xf32, #tpu.memory_space<smem>>
    %27 = vector.broadcast %26 : f32 to vector<16x16xf32>
    %28 = arith.mulf %27, %17 : vector<16x16xf32>
    %29 = arith.addf %7, %28 : vector<16x16xf32>
    %c108 = arith.constant 108 : index
    %30 = memref.load %arg3[%c108] : memref<288xf32, #tpu.memory_space<smem>>
    %31 = vector.broadcast %30 : f32 to vector<16x16xf32>
    %32 = arith.mulf %31, %17 : vector<16x16xf32>
    %33 = arith.addf %8, %32 : vector<16x16xf32>
    %c144 = arith.constant 144 : index
    %34 = memref.load %arg3[%c144] : memref<288xf32, #tpu.memory_space<smem>>
    %35 = vector.broadcast %34 : f32 to vector<16x16xf32>
    %36 = arith.mulf %35, %17 : vector<16x16xf32>
    %37 = arith.addf %9, %36 : vector<16x16xf32>
    %c180 = arith.constant 180 : index
    %38 = memref.load %arg3[%c180] : memref<288xf32, #tpu.memory_space<smem>>
    %39 = vector.broadcast %38 : f32 to vector<16x16xf32>
    %40 = arith.mulf %39, %17 : vector<16x16xf32>
    %41 = arith.addf %10, %40 : vector<16x16xf32>
    %c216 = arith.constant 216 : index
    %42 = memref.load %arg3[%c216] : memref<288xf32, #tpu.memory_space<smem>>
    %43 = vector.broadcast %42 : f32 to vector<16x16xf32>
    %44 = arith.mulf %43, %17 : vector<16x16xf32>
    %45 = arith.addf %11, %44 : vector<16x16xf32>
    %c252 = arith.constant 252 : index
    %46 = memref.load %arg3[%c252] : memref<288xf32, #tpu.memory_space<smem>>
    %47 = vector.broadcast %46 : f32 to vector<16x16xf32>
    %48 = arith.mulf %47, %17 : vector<16x16xf32>
    %49 = arith.addf %12, %48 : vector<16x16xf32>
    %50 = vector.extract_strided_slice %15 {offsets = [1, 0, 0], sizes = [1, 16, 16], strides = [1, 1, 1]} : vector<4x16x16xf32> to vector<1x16x16xf32>
    %51 = vector.shape_cast %50 : vector<1x16x16xf32> to vector<16x16xf32>
    %c9 = arith.constant 9 : index
    %52 = memref.load %arg3[%c9] : memref<288xf32, #tpu.memory_space<smem>>
    %53 = vector.broadcast %52 : f32 to vector<16x16xf32>
    %54 = arith.mulf %53, %51 : vector<16x16xf32>
    %55 = arith.addf %21, %54 : vector<16x16xf32>
    %c45 = arith.constant 45 : index
    %56 = memref.load %arg3[%c45] : memref<288xf32, #tpu.memory_space<smem>>
    %57 = vector.broadcast %56 : f32 to vector<16x16xf32>
    %58 = arith.mulf %57, %51 : vector<16x16xf32>
    %59 = arith.addf %25, %58 : vector<16x16xf32>
    %c81 = arith.constant 81 : index
    %60 = memref.load %arg3[%c81] : memref<288xf32, #tpu.memory_space<smem>>
    %61 = vector.broadcast %60 : f32 to vector<16x16xf32>
    %62 = arith.mulf %61, %51 : vector<16x16xf32>
    %63 = arith.addf %29, %62 : vector<16x16xf32>
    %c117 = arith.constant 117 : index
    %64 = memref.load %arg3[%c117] : memref<288xf32, #tpu.memory_space<smem>>
    %65 = vector.broadcast %64 : f32 to vector<16x16xf32>
    %66 = arith.mulf %65, %51 : vector<16x16xf32>
    %67 = arith.addf %33, %66 : vector<16x16xf32>
    %c153 = arith.constant 153 : index
    %68 = memref.load %arg3[%c153] : memref<288xf32, #tpu.memory_space<smem>>
    %69 = vector.broadcast %68 : f32 to vector<16x16xf32>
    %70 = arith.mulf %69, %51 : vector<16x16xf32>
    %71 = arith.addf %37, %70 : vector<16x16xf32>
    %c189 = arith.constant 189 : index
    %72 = memref.load %arg3[%c189] : memref<288xf32, #tpu.memory_space<smem>>
    %73 = vector.broadcast %72 : f32 to vector<16x16xf32>
    %74 = arith.mulf %73, %51 : vector<16x16xf32>
    %75 = arith.addf %41, %74 : vector<16x16xf32>
    %c225 = arith.constant 225 : index
    %76 = memref.load %arg3[%c225] : memref<288xf32, #tpu.memory_space<smem>>
    %77 = vector.broadcast %76 : f32 to vector<16x16xf32>
    %78 = arith.mulf %77, %51 : vector<16x16xf32>
    %79 = arith.addf %45, %78 : vector<16x16xf32>
    %c261 = arith.constant 261 : index
    %80 = memref.load %arg3[%c261] : memref<288xf32, #tpu.memory_space<smem>>
    %81 = vector.broadcast %80 : f32 to vector<16x16xf32>
    %82 = arith.mulf %81, %51 : vector<16x16xf32>
    %83 = arith.addf %49, %82 : vector<16x16xf32>
    %84 = vector.extract_strided_slice %15 {offsets = [2, 0, 0], sizes = [1, 16, 16], strides = [1, 1, 1]} : vector<4x16x16xf32> to vector<1x16x16xf32>
    %85 = vector.shape_cast %84 : vector<1x16x16xf32> to vector<16x16xf32>
    %c18 = arith.constant 18 : index
    %86 = memref.load %arg3[%c18] : memref<288xf32, #tpu.memory_space<smem>>
    %87 = vector.broadcast %86 : f32 to vector<16x16xf32>
    %88 = arith.mulf %87, %85 : vector<16x16xf32>
    %89 = arith.addf %55, %88 : vector<16x16xf32>
    %c54 = arith.constant 54 : index
    %90 = memref.load %arg3[%c54] : memref<288xf32, #tpu.memory_space<smem>>
    %91 = vector.broadcast %90 : f32 to vector<16x16xf32>
    %92 = arith.mulf %91, %85 : vector<16x16xf32>
    %93 = arith.addf %59, %92 : vector<16x16xf32>
    %c90 = arith.constant 90 : index
    %94 = memref.load %arg3[%c90] : memref<288xf32, #tpu.memory_space<smem>>
    %95 = vector.broadcast %94 : f32 to vector<16x16xf32>
    %96 = arith.mulf %95, %85 : vector<16x16xf32>
    %97 = arith.addf %63, %96 : vector<16x16xf32>
    %c126 = arith.constant 126 : index
    %98 = memref.load %arg3[%c126] : memref<288xf32, #tpu.memory_space<smem>>
    %99 = vector.broadcast %98 : f32 to vector<16x16xf32>
    %100 = arith.mulf %99, %85 : vector<16x16xf32>
    %101 = arith.addf %67, %100 : vector<16x16xf32>
    %c162 = arith.constant 162 : index
    %102 = memref.load %arg3[%c162] : memref<288xf32, #tpu.memory_space<smem>>
    %103 = vector.broadcast %102 : f32 to vector<16x16xf32>
    %104 = arith.mulf %103, %85 : vector<16x16xf32>
    %105 = arith.addf %71, %104 : vector<16x16xf32>
    %c198 = arith.constant 198 : index
    %106 = memref.load %arg3[%c198] : memref<288xf32, #tpu.memory_space<smem>>
    %107 = vector.broadcast %106 : f32 to vector<16x16xf32>
    %108 = arith.mulf %107, %85 : vector<16x16xf32>
    %109 = arith.addf %75, %108 : vector<16x16xf32>
    %c234 = arith.constant 234 : index
    %110 = memref.load %arg3[%c234] : memref<288xf32, #tpu.memory_space<smem>>
    %111 = vector.broadcast %110 : f32 to vector<16x16xf32>
    %112 = arith.mulf %111, %85 : vector<16x16xf32>
    %113 = arith.addf %79, %112 : vector<16x16xf32>
    %c270 = arith.constant 270 : index
    %114 = memref.load %arg3[%c270] : memref<288xf32, #tpu.memory_space<smem>>
    %115 = vector.broadcast %114 : f32 to vector<16x16xf32>
    %116 = arith.mulf %115, %85 : vector<16x16xf32>
    %117 = arith.addf %83, %116 : vector<16x16xf32>
    %118 = vector.extract_strided_slice %15 {offsets = [3, 0, 0], sizes = [1, 16, 16], strides = [1, 1, 1]} : vector<4x16x16xf32> to vector<1x16x16xf32>
    %119 = vector.shape_cast %118 : vector<1x16x16xf32> to vector<16x16xf32>
    %c27 = arith.constant 27 : index
    %120 = memref.load %arg3[%c27] : memref<288xf32, #tpu.memory_space<smem>>
    %121 = vector.broadcast %120 : f32 to vector<16x16xf32>
    %122 = arith.mulf %121, %119 : vector<16x16xf32>
    %123 = arith.addf %89, %122 : vector<16x16xf32>
    %c63 = arith.constant 63 : index
    %124 = memref.load %arg3[%c63] : memref<288xf32, #tpu.memory_space<smem>>
    %125 = vector.broadcast %124 : f32 to vector<16x16xf32>
    %126 = arith.mulf %125, %119 : vector<16x16xf32>
    %127 = arith.addf %93, %126 : vector<16x16xf32>
    %c99 = arith.constant 99 : index
    %128 = memref.load %arg3[%c99] : memref<288xf32, #tpu.memory_space<smem>>
    %129 = vector.broadcast %128 : f32 to vector<16x16xf32>
    %130 = arith.mulf %129, %119 : vector<16x16xf32>
    %131 = arith.addf %97, %130 : vector<16x16xf32>
    %c135 = arith.constant 135 : index
    %132 = memref.load %arg3[%c135] : memref<288xf32, #tpu.memory_space<smem>>
    %133 = vector.broadcast %132 : f32 to vector<16x16xf32>
    %134 = arith.mulf %133, %119 : vector<16x16xf32>
    %135 = arith.addf %101, %134 : vector<16x16xf32>
    %c171 = arith.constant 171 : index
    %136 = memref.load %arg3[%c171] : memref<288xf32, #tpu.memory_space<smem>>
    %137 = vector.broadcast %136 : f32 to vector<16x16xf32>
    %138 = arith.mulf %137, %119 : vector<16x16xf32>
    %139 = arith.addf %105, %138 : vector<16x16xf32>
    %c207 = arith.constant 207 : index
    %140 = memref.load %arg3[%c207] : memref<288xf32, #tpu.memory_space<smem>>
    %141 = vector.broadcast %140 : f32 to vector<16x16xf32>
    %142 = arith.mulf %141, %119 : vector<16x16xf32>
    %143 = arith.addf %109, %142 : vector<16x16xf32>
    %c243 = arith.constant 243 : index
    %144 = memref.load %arg3[%c243] : memref<288xf32, #tpu.memory_space<smem>>
    %145 = vector.broadcast %144 : f32 to vector<16x16xf32>
    %146 = arith.mulf %145, %119 : vector<16x16xf32>
    %147 = arith.addf %113, %146 : vector<16x16xf32>
    %c279 = arith.constant 279 : index
    %148 = memref.load %arg3[%c279] : memref<288xf32, #tpu.memory_space<smem>>
    %149 = vector.broadcast %148 : f32 to vector<16x16xf32>
    %150 = arith.mulf %149, %119 : vector<16x16xf32>
    %151 = arith.addf %117, %150 : vector<16x16xf32>
    %c0_i32_11 = arith.constant 0 : i32
    %152 = arith.addi %4, %c0_i32_11 : i32
    %c0_12 = arith.constant 0 : index
    %153 = arith.index_cast %152 : i32 to index
    %c1 = arith.constant 1 : index
    %154 = vector.load %arg6[%c0_12, %153, %c1] : memref<4x18x18xf32, #tpu.memory_space<vmem>>, vector<4x16x16xf32>
    %155 = vector.extract_strided_slice %154 {offsets = [0, 0, 0], sizes = [1, 16, 16], strides = [1, 1, 1]} : vector<4x16x16xf32> to vector<1x16x16xf32>
    %156 = vector.shape_cast %155 : vector<1x16x16xf32> to vector<16x16xf32>
    %c1_13 = arith.constant 1 : index
    %157 = memref.load %arg3[%c1_13] : memref<288xf32, #tpu.memory_space<smem>>
    %158 = vector.broadcast %157 : f32 to vector<16x16xf32>
    %159 = arith.mulf %158, %156 : vector<16x16xf32>
    %160 = arith.addf %123, %159 : vector<16x16xf32>
    %c37 = arith.constant 37 : index
    %161 = memref.load %arg3[%c37] : memref<288xf32, #tpu.memory_space<smem>>
    %162 = vector.broadcast %161 : f32 to vector<16x16xf32>
    %163 = arith.mulf %162, %156 : vector<16x16xf32>
    %164 = arith.addf %127, %163 : vector<16x16xf32>
    %c73 = arith.constant 73 : index
    %165 = memref.load %arg3[%c73] : memref<288xf32, #tpu.memory_space<smem>>
    %166 = vector.broadcast %165 : f32 to vector<16x16xf32>
    %167 = arith.mulf %166, %156 : vector<16x16xf32>
    %168 = arith.addf %131, %167 : vector<16x16xf32>
    %c109 = arith.constant 109 : index
    %169 = memref.load %arg3[%c109] : memref<288xf32, #tpu.memory_space<smem>>
    %170 = vector.broadcast %169 : f32 to vector<16x16xf32>
    %171 = arith.mulf %170, %156 : vector<16x16xf32>
    %172 = arith.addf %135, %171 : vector<16x16xf32>
    %c145 = arith.constant 145 : index
    %173 = memref.load %arg3[%c145] : memref<288xf32, #tpu.memory_space<smem>>
    %174 = vector.broadcast %173 : f32 to vector<16x16xf32>
    %175 = arith.mulf %174, %156 : vector<16x16xf32>
    %176 = arith.addf %139, %175 : vector<16x16xf32>
    %c181 = arith.constant 181 : index
    %177 = memref.load %arg3[%c181] : memref<288xf32, #tpu.memory_space<smem>>
    %178 = vector.broadcast %177 : f32 to vector<16x16xf32>
    %179 = arith.mulf %178, %156 : vector<16x16xf32>
    %180 = arith.addf %143, %179 : vector<16x16xf32>
    %c217 = arith.constant 217 : index
    %181 = memref.load %arg3[%c217] : memref<288xf32, #tpu.memory_space<smem>>
    %182 = vector.broadcast %181 : f32 to vector<16x16xf32>
    %183 = arith.mulf %182, %156 : vector<16x16xf32>
    %184 = arith.addf %147, %183 : vector<16x16xf32>
    %c253 = arith.constant 253 : index
    %185 = memref.load %arg3[%c253] : memref<288xf32, #tpu.memory_space<smem>>
    %186 = vector.broadcast %185 : f32 to vector<16x16xf32>
    %187 = arith.mulf %186, %156 : vector<16x16xf32>
    %188 = arith.addf %151, %187 : vector<16x16xf32>
    %189 = vector.extract_strided_slice %154 {offsets = [1, 0, 0], sizes = [1, 16, 16], strides = [1, 1, 1]} : vector<4x16x16xf32> to vector<1x16x16xf32>
    %190 = vector.shape_cast %189 : vector<1x16x16xf32> to vector<16x16xf32>
    %c10 = arith.constant 10 : index
    %191 = memref.load %arg3[%c10] : memref<288xf32, #tpu.memory_space<smem>>
    %192 = vector.broadcast %191 : f32 to vector<16x16xf32>
    %193 = arith.mulf %192, %190 : vector<16x16xf32>
    %194 = arith.addf %160, %193 : vector<16x16xf32>
    %c46 = arith.constant 46 : index
    %195 = memref.load %arg3[%c46] : memref<288xf32, #tpu.memory_space<smem>>
    %196 = vector.broadcast %195 : f32 to vector<16x16xf32>
    %197 = arith.mulf %196, %190 : vector<16x16xf32>
    %198 = arith.addf %164, %197 : vector<16x16xf32>
    %c82 = arith.constant 82 : index
    %199 = memref.load %arg3[%c82] : memref<288xf32, #tpu.memory_space<smem>>
    %200 = vector.broadcast %199 : f32 to vector<16x16xf32>
    %201 = arith.mulf %200, %190 : vector<16x16xf32>
    %202 = arith.addf %168, %201 : vector<16x16xf32>
    %c118 = arith.constant 118 : index
    %203 = memref.load %arg3[%c118] : memref<288xf32, #tpu.memory_space<smem>>
    %204 = vector.broadcast %203 : f32 to vector<16x16xf32>
    %205 = arith.mulf %204, %190 : vector<16x16xf32>
    %206 = arith.addf %172, %205 : vector<16x16xf32>
    %c154 = arith.constant 154 : index
    %207 = memref.load %arg3[%c154] : memref<288xf32, #tpu.memory_space<smem>>
    %208 = vector.broadcast %207 : f32 to vector<16x16xf32>
    %209 = arith.mulf %208, %190 : vector<16x16xf32>
    %210 = arith.addf %176, %209 : vector<16x16xf32>
    %c190 = arith.constant 190 : index
    %211 = memref.load %arg3[%c190] : memref<288xf32, #tpu.memory_space<smem>>
    %212 = vector.broadcast %211 : f32 to vector<16x16xf32>
    %213 = arith.mulf %212, %190 : vector<16x16xf32>
    %214 = arith.addf %180, %213 : vector<16x16xf32>
    %c226 = arith.constant 226 : index
    %215 = memref.load %arg3[%c226] : memref<288xf32, #tpu.memory_space<smem>>
    %216 = vector.broadcast %215 : f32 to vector<16x16xf32>
    %217 = arith.mulf %216, %190 : vector<16x16xf32>
    %218 = arith.addf %184, %217 : vector<16x16xf32>
    %c262 = arith.constant 262 : index
    %219 = memref.load %arg3[%c262] : memref<288xf32, #tpu.memory_space<smem>>
    %220 = vector.broadcast %219 : f32 to vector<16x16xf32>
    %221 = arith.mulf %220, %190 : vector<16x16xf32>
    %222 = arith.addf %188, %221 : vector<16x16xf32>
    %223 = vector.extract_strided_slice %154 {offsets = [2, 0, 0], sizes = [1, 16, 16], strides = [1, 1, 1]} : vector<4x16x16xf32> to vector<1x16x16xf32>
    %224 = vector.shape_cast %223 : vector<1x16x16xf32> to vector<16x16xf32>
    %c19 = arith.constant 19 : index
    %225 = memref.load %arg3[%c19] : memref<288xf32, #tpu.memory_space<smem>>
    %226 = vector.broadcast %225 : f32 to vector<16x16xf32>
    %227 = arith.mulf %226, %224 : vector<16x16xf32>
    %228 = arith.addf %194, %227 : vector<16x16xf32>
    %c55 = arith.constant 55 : index
    %229 = memref.load %arg3[%c55] : memref<288xf32, #tpu.memory_space<smem>>
    %230 = vector.broadcast %229 : f32 to vector<16x16xf32>
    %231 = arith.mulf %230, %224 : vector<16x16xf32>
    %232 = arith.addf %198, %231 : vector<16x16xf32>
    %c91 = arith.constant 91 : index
    %233 = memref.load %arg3[%c91] : memref<288xf32, #tpu.memory_space<smem>>
    %234 = vector.broadcast %233 : f32 to vector<16x16xf32>
    %235 = arith.mulf %234, %224 : vector<16x16xf32>
    %236 = arith.addf %202, %235 : vector<16x16xf32>
    %c127 = arith.constant 127 : index
    %237 = memref.load %arg3[%c127] : memref<288xf32, #tpu.memory_space<smem>>
    %238 = vector.broadcast %237 : f32 to vector<16x16xf32>
    %239 = arith.mulf %238, %224 : vector<16x16xf32>
    %240 = arith.addf %206, %239 : vector<16x16xf32>
    %c163 = arith.constant 163 : index
    %241 = memref.load %arg3[%c163] : memref<288xf32, #tpu.memory_space<smem>>
    %242 = vector.broadcast %241 : f32 to vector<16x16xf32>
    %243 = arith.mulf %242, %224 : vector<16x16xf32>
    %244 = arith.addf %210, %243 : vector<16x16xf32>
    %c199 = arith.constant 199 : index
    %245 = memref.load %arg3[%c199] : memref<288xf32, #tpu.memory_space<smem>>
    %246 = vector.broadcast %245 : f32 to vector<16x16xf32>
    %247 = arith.mulf %246, %224 : vector<16x16xf32>
    %248 = arith.addf %214, %247 : vector<16x16xf32>
    %c235 = arith.constant 235 : index
    %249 = memref.load %arg3[%c235] : memref<288xf32, #tpu.memory_space<smem>>
    %250 = vector.broadcast %249 : f32 to vector<16x16xf32>
    %251 = arith.mulf %250, %224 : vector<16x16xf32>
    %252 = arith.addf %218, %251 : vector<16x16xf32>
    %c271 = arith.constant 271 : index
    %253 = memref.load %arg3[%c271] : memref<288xf32, #tpu.memory_space<smem>>
    %254 = vector.broadcast %253 : f32 to vector<16x16xf32>
    %255 = arith.mulf %254, %224 : vector<16x16xf32>
    %256 = arith.addf %222, %255 : vector<16x16xf32>
    %257 = vector.extract_strided_slice %154 {offsets = [3, 0, 0], sizes = [1, 16, 16], strides = [1, 1, 1]} : vector<4x16x16xf32> to vector<1x16x16xf32>
    %258 = vector.shape_cast %257 : vector<1x16x16xf32> to vector<16x16xf32>
    %c28 = arith.constant 28 : index
    %259 = memref.load %arg3[%c28] : memref<288xf32, #tpu.memory_space<smem>>
    %260 = vector.broadcast %259 : f32 to vector<16x16xf32>
    %261 = arith.mulf %260, %258 : vector<16x16xf32>
    %262 = arith.addf %228, %261 : vector<16x16xf32>
    %c64 = arith.constant 64 : index
    %263 = memref.load %arg3[%c64] : memref<288xf32, #tpu.memory_space<smem>>
    %264 = vector.broadcast %263 : f32 to vector<16x16xf32>
    %265 = arith.mulf %264, %258 : vector<16x16xf32>
    %266 = arith.addf %232, %265 : vector<16x16xf32>
    %c100 = arith.constant 100 : index
    %267 = memref.load %arg3[%c100] : memref<288xf32, #tpu.memory_space<smem>>
    %268 = vector.broadcast %267 : f32 to vector<16x16xf32>
    %269 = arith.mulf %268, %258 : vector<16x16xf32>
    %270 = arith.addf %236, %269 : vector<16x16xf32>
    %c136 = arith.constant 136 : index
    %271 = memref.load %arg3[%c136] : memref<288xf32, #tpu.memory_space<smem>>
    %272 = vector.broadcast %271 : f32 to vector<16x16xf32>
    %273 = arith.mulf %272, %258 : vector<16x16xf32>
    %274 = arith.addf %240, %273 : vector<16x16xf32>
    %c172 = arith.constant 172 : index
    %275 = memref.load %arg3[%c172] : memref<288xf32, #tpu.memory_space<smem>>
    %276 = vector.broadcast %275 : f32 to vector<16x16xf32>
    %277 = arith.mulf %276, %258 : vector<16x16xf32>
    %278 = arith.addf %244, %277 : vector<16x16xf32>
    %c208 = arith.constant 208 : index
    %279 = memref.load %arg3[%c208] : memref<288xf32, #tpu.memory_space<smem>>
    %280 = vector.broadcast %279 : f32 to vector<16x16xf32>
    %281 = arith.mulf %280, %258 : vector<16x16xf32>
    %282 = arith.addf %248, %281 : vector<16x16xf32>
    %c244 = arith.constant 244 : index
    %283 = memref.load %arg3[%c244] : memref<288xf32, #tpu.memory_space<smem>>
    %284 = vector.broadcast %283 : f32 to vector<16x16xf32>
    %285 = arith.mulf %284, %258 : vector<16x16xf32>
    %286 = arith.addf %252, %285 : vector<16x16xf32>
    %c280 = arith.constant 280 : index
    %287 = memref.load %arg3[%c280] : memref<288xf32, #tpu.memory_space<smem>>
    %288 = vector.broadcast %287 : f32 to vector<16x16xf32>
    %289 = arith.mulf %288, %258 : vector<16x16xf32>
    %290 = arith.addf %256, %289 : vector<16x16xf32>
    %c0_i32_14 = arith.constant 0 : i32
    %291 = arith.addi %4, %c0_i32_14 : i32
    %c0_15 = arith.constant 0 : index
    %292 = arith.index_cast %291 : i32 to index
    %c2 = arith.constant 2 : index
    %293 = vector.load %arg6[%c0_15, %292, %c2] : memref<4x18x18xf32, #tpu.memory_space<vmem>>, vector<4x16x16xf32>
    %294 = vector.extract_strided_slice %293 {offsets = [0, 0, 0], sizes = [1, 16, 16], strides = [1, 1, 1]} : vector<4x16x16xf32> to vector<1x16x16xf32>
    %295 = vector.shape_cast %294 : vector<1x16x16xf32> to vector<16x16xf32>
    %c2_16 = arith.constant 2 : index
    %296 = memref.load %arg3[%c2_16] : memref<288xf32, #tpu.memory_space<smem>>
    %297 = vector.broadcast %296 : f32 to vector<16x16xf32>
    %298 = arith.mulf %297, %295 : vector<16x16xf32>
    %299 = arith.addf %262, %298 : vector<16x16xf32>
    %c38 = arith.constant 38 : index
    %300 = memref.load %arg3[%c38] : memref<288xf32, #tpu.memory_space<smem>>
    %301 = vector.broadcast %300 : f32 to vector<16x16xf32>
    %302 = arith.mulf %301, %295 : vector<16x16xf32>
    %303 = arith.addf %266, %302 : vector<16x16xf32>
    %c74 = arith.constant 74 : index
    %304 = memref.load %arg3[%c74] : memref<288xf32, #tpu.memory_space<smem>>
    %305 = vector.broadcast %304 : f32 to vector<16x16xf32>
    %306 = arith.mulf %305, %295 : vector<16x16xf32>
    %307 = arith.addf %270, %306 : vector<16x16xf32>
    %c110 = arith.constant 110 : index
    %308 = memref.load %arg3[%c110] : memref<288xf32, #tpu.memory_space<smem>>
    %309 = vector.broadcast %308 : f32 to vector<16x16xf32>
    %310 = arith.mulf %309, %295 : vector<16x16xf32>
    %311 = arith.addf %274, %310 : vector<16x16xf32>
    %c146 = arith.constant 146 : index
    %312 = memref.load %arg3[%c146] : memref<288xf32, #tpu.memory_space<smem>>
    %313 = vector.broadcast %312 : f32 to vector<16x16xf32>
    %314 = arith.mulf %313, %295 : vector<16x16xf32>
    %315 = arith.addf %278, %314 : vector<16x16xf32>
    %c182 = arith.constant 182 : index
    %316 = memref.load %arg3[%c182] : memref<288xf32, #tpu.memory_space<smem>>
    %317 = vector.broadcast %316 : f32 to vector<16x16xf32>
    %318 = arith.mulf %317, %295 : vector<16x16xf32>
    %319 = arith.addf %282, %318 : vector<16x16xf32>
    %c218 = arith.constant 218 : index
    %320 = memref.load %arg3[%c218] : memref<288xf32, #tpu.memory_space<smem>>
    %321 = vector.broadcast %320 : f32 to vector<16x16xf32>
    %322 = arith.mulf %321, %295 : vector<16x16xf32>
    %323 = arith.addf %286, %322 : vector<16x16xf32>
    %c254 = arith.constant 254 : index
    %324 = memref.load %arg3[%c254] : memref<288xf32, #tpu.memory_space<smem>>
    %325 = vector.broadcast %324 : f32 to vector<16x16xf32>
    %326 = arith.mulf %325, %295 : vector<16x16xf32>
    %327 = arith.addf %290, %326 : vector<16x16xf32>
    %328 = vector.extract_strided_slice %293 {offsets = [1, 0, 0], sizes = [1, 16, 16], strides = [1, 1, 1]} : vector<4x16x16xf32> to vector<1x16x16xf32>
    %329 = vector.shape_cast %328 : vector<1x16x16xf32> to vector<16x16xf32>
    %c11 = arith.constant 11 : index
    %330 = memref.load %arg3[%c11] : memref<288xf32, #tpu.memory_space<smem>>
    %331 = vector.broadcast %330 : f32 to vector<16x16xf32>
    %332 = arith.mulf %331, %329 : vector<16x16xf32>
    %333 = arith.addf %299, %332 : vector<16x16xf32>
    %c47 = arith.constant 47 : index
    %334 = memref.load %arg3[%c47] : memref<288xf32, #tpu.memory_space<smem>>
    %335 = vector.broadcast %334 : f32 to vector<16x16xf32>
    %336 = arith.mulf %335, %329 : vector<16x16xf32>
    %337 = arith.addf %303, %336 : vector<16x16xf32>
    %c83 = arith.constant 83 : index
    %338 = memref.load %arg3[%c83] : memref<288xf32, #tpu.memory_space<smem>>
    %339 = vector.broadcast %338 : f32 to vector<16x16xf32>
    %340 = arith.mulf %339, %329 : vector<16x16xf32>
    %341 = arith.addf %307, %340 : vector<16x16xf32>
    %c119 = arith.constant 119 : index
    %342 = memref.load %arg3[%c119] : memref<288xf32, #tpu.memory_space<smem>>
    %343 = vector.broadcast %342 : f32 to vector<16x16xf32>
    %344 = arith.mulf %343, %329 : vector<16x16xf32>
    %345 = arith.addf %311, %344 : vector<16x16xf32>
    %c155 = arith.constant 155 : index
    %346 = memref.load %arg3[%c155] : memref<288xf32, #tpu.memory_space<smem>>
    %347 = vector.broadcast %346 : f32 to vector<16x16xf32>
    %348 = arith.mulf %347, %329 : vector<16x16xf32>
    %349 = arith.addf %315, %348 : vector<16x16xf32>
    %c191 = arith.constant 191 : index
    %350 = memref.load %arg3[%c191] : memref<288xf32, #tpu.memory_space<smem>>
    %351 = vector.broadcast %350 : f32 to vector<16x16xf32>
    %352 = arith.mulf %351, %329 : vector<16x16xf32>
    %353 = arith.addf %319, %352 : vector<16x16xf32>
    %c227 = arith.constant 227 : index
    %354 = memref.load %arg3[%c227] : memref<288xf32, #tpu.memory_space<smem>>
    %355 = vector.broadcast %354 : f32 to vector<16x16xf32>
    %356 = arith.mulf %355, %329 : vector<16x16xf32>
    %357 = arith.addf %323, %356 : vector<16x16xf32>
    %c263 = arith.constant 263 : index
    %358 = memref.load %arg3[%c263] : memref<288xf32, #tpu.memory_space<smem>>
    %359 = vector.broadcast %358 : f32 to vector<16x16xf32>
    %360 = arith.mulf %359, %329 : vector<16x16xf32>
    %361 = arith.addf %327, %360 : vector<16x16xf32>
    %362 = vector.extract_strided_slice %293 {offsets = [2, 0, 0], sizes = [1, 16, 16], strides = [1, 1, 1]} : vector<4x16x16xf32> to vector<1x16x16xf32>
    %363 = vector.shape_cast %362 : vector<1x16x16xf32> to vector<16x16xf32>
    %c20 = arith.constant 20 : index
    %364 = memref.load %arg3[%c20] : memref<288xf32, #tpu.memory_space<smem>>
    %365 = vector.broadcast %364 : f32 to vector<16x16xf32>
    %366 = arith.mulf %365, %363 : vector<16x16xf32>
    %367 = arith.addf %333, %366 : vector<16x16xf32>
    %c56 = arith.constant 56 : index
    %368 = memref.load %arg3[%c56] : memref<288xf32, #tpu.memory_space<smem>>
    %369 = vector.broadcast %368 : f32 to vector<16x16xf32>
    %370 = arith.mulf %369, %363 : vector<16x16xf32>
    %371 = arith.addf %337, %370 : vector<16x16xf32>
    %c92 = arith.constant 92 : index
    %372 = memref.load %arg3[%c92] : memref<288xf32, #tpu.memory_space<smem>>
    %373 = vector.broadcast %372 : f32 to vector<16x16xf32>
    %374 = arith.mulf %373, %363 : vector<16x16xf32>
    %375 = arith.addf %341, %374 : vector<16x16xf32>
    %c128 = arith.constant 128 : index
    %376 = memref.load %arg3[%c128] : memref<288xf32, #tpu.memory_space<smem>>
    %377 = vector.broadcast %376 : f32 to vector<16x16xf32>
    %378 = arith.mulf %377, %363 : vector<16x16xf32>
    %379 = arith.addf %345, %378 : vector<16x16xf32>
    %c164 = arith.constant 164 : index
    %380 = memref.load %arg3[%c164] : memref<288xf32, #tpu.memory_space<smem>>
    %381 = vector.broadcast %380 : f32 to vector<16x16xf32>
    %382 = arith.mulf %381, %363 : vector<16x16xf32>
    %383 = arith.addf %349, %382 : vector<16x16xf32>
    %c200 = arith.constant 200 : index
    %384 = memref.load %arg3[%c200] : memref<288xf32, #tpu.memory_space<smem>>
    %385 = vector.broadcast %384 : f32 to vector<16x16xf32>
    %386 = arith.mulf %385, %363 : vector<16x16xf32>
    %387 = arith.addf %353, %386 : vector<16x16xf32>
    %c236 = arith.constant 236 : index
    %388 = memref.load %arg3[%c236] : memref<288xf32, #tpu.memory_space<smem>>
    %389 = vector.broadcast %388 : f32 to vector<16x16xf32>
    %390 = arith.mulf %389, %363 : vector<16x16xf32>
    %391 = arith.addf %357, %390 : vector<16x16xf32>
    %c272 = arith.constant 272 : index
    %392 = memref.load %arg3[%c272] : memref<288xf32, #tpu.memory_space<smem>>
    %393 = vector.broadcast %392 : f32 to vector<16x16xf32>
    %394 = arith.mulf %393, %363 : vector<16x16xf32>
    %395 = arith.addf %361, %394 : vector<16x16xf32>
    %396 = vector.extract_strided_slice %293 {offsets = [3, 0, 0], sizes = [1, 16, 16], strides = [1, 1, 1]} : vector<4x16x16xf32> to vector<1x16x16xf32>
    %397 = vector.shape_cast %396 : vector<1x16x16xf32> to vector<16x16xf32>
    %c29 = arith.constant 29 : index
    %398 = memref.load %arg3[%c29] : memref<288xf32, #tpu.memory_space<smem>>
    %399 = vector.broadcast %398 : f32 to vector<16x16xf32>
    %400 = arith.mulf %399, %397 : vector<16x16xf32>
    %401 = arith.addf %367, %400 : vector<16x16xf32>
    %c65 = arith.constant 65 : index
    %402 = memref.load %arg3[%c65] : memref<288xf32, #tpu.memory_space<smem>>
    %403 = vector.broadcast %402 : f32 to vector<16x16xf32>
    %404 = arith.mulf %403, %397 : vector<16x16xf32>
    %405 = arith.addf %371, %404 : vector<16x16xf32>
    %c101 = arith.constant 101 : index
    %406 = memref.load %arg3[%c101] : memref<288xf32, #tpu.memory_space<smem>>
    %407 = vector.broadcast %406 : f32 to vector<16x16xf32>
    %408 = arith.mulf %407, %397 : vector<16x16xf32>
    %409 = arith.addf %375, %408 : vector<16x16xf32>
    %c137 = arith.constant 137 : index
    %410 = memref.load %arg3[%c137] : memref<288xf32, #tpu.memory_space<smem>>
    %411 = vector.broadcast %410 : f32 to vector<16x16xf32>
    %412 = arith.mulf %411, %397 : vector<16x16xf32>
    %413 = arith.addf %379, %412 : vector<16x16xf32>
    %c173 = arith.constant 173 : index
    %414 = memref.load %arg3[%c173] : memref<288xf32, #tpu.memory_space<smem>>
    %415 = vector.broadcast %414 : f32 to vector<16x16xf32>
    %416 = arith.mulf %415, %397 : vector<16x16xf32>
    %417 = arith.addf %383, %416 : vector<16x16xf32>
    %c209 = arith.constant 209 : index
    %418 = memref.load %arg3[%c209] : memref<288xf32, #tpu.memory_space<smem>>
    %419 = vector.broadcast %418 : f32 to vector<16x16xf32>
    %420 = arith.mulf %419, %397 : vector<16x16xf32>
    %421 = arith.addf %387, %420 : vector<16x16xf32>
    %c245 = arith.constant 245 : index
    %422 = memref.load %arg3[%c245] : memref<288xf32, #tpu.memory_space<smem>>
    %423 = vector.broadcast %422 : f32 to vector<16x16xf32>
    %424 = arith.mulf %423, %397 : vector<16x16xf32>
    %425 = arith.addf %391, %424 : vector<16x16xf32>
    %c281 = arith.constant 281 : index
    %426 = memref.load %arg3[%c281] : memref<288xf32, #tpu.memory_space<smem>>
    %427 = vector.broadcast %426 : f32 to vector<16x16xf32>
    %428 = arith.mulf %427, %397 : vector<16x16xf32>
    %429 = arith.addf %395, %428 : vector<16x16xf32>
    %c1_i32 = arith.constant 1 : i32
    %430 = arith.addi %4, %c1_i32 : i32
    %c0_17 = arith.constant 0 : index
    %431 = arith.index_cast %430 : i32 to index
    %c0_18 = arith.constant 0 : index
    %432 = vector.load %arg6[%c0_17, %431, %c0_18] : memref<4x18x18xf32, #tpu.memory_space<vmem>>, vector<4x16x16xf32>
    %433 = vector.extract_strided_slice %432 {offsets = [0, 0, 0], sizes = [1, 16, 16], strides = [1, 1, 1]} : vector<4x16x16xf32> to vector<1x16x16xf32>
    %434 = vector.shape_cast %433 : vector<1x16x16xf32> to vector<16x16xf32>
    %c3 = arith.constant 3 : index
    %435 = memref.load %arg3[%c3] : memref<288xf32, #tpu.memory_space<smem>>
    %436 = vector.broadcast %435 : f32 to vector<16x16xf32>
    %437 = arith.mulf %436, %434 : vector<16x16xf32>
    %438 = arith.addf %401, %437 : vector<16x16xf32>
    %c39 = arith.constant 39 : index
    %439 = memref.load %arg3[%c39] : memref<288xf32, #tpu.memory_space<smem>>
    %440 = vector.broadcast %439 : f32 to vector<16x16xf32>
    %441 = arith.mulf %440, %434 : vector<16x16xf32>
    %442 = arith.addf %405, %441 : vector<16x16xf32>
    %c75 = arith.constant 75 : index
    %443 = memref.load %arg3[%c75] : memref<288xf32, #tpu.memory_space<smem>>
    %444 = vector.broadcast %443 : f32 to vector<16x16xf32>
    %445 = arith.mulf %444, %434 : vector<16x16xf32>
    %446 = arith.addf %409, %445 : vector<16x16xf32>
    %c111 = arith.constant 111 : index
    %447 = memref.load %arg3[%c111] : memref<288xf32, #tpu.memory_space<smem>>
    %448 = vector.broadcast %447 : f32 to vector<16x16xf32>
    %449 = arith.mulf %448, %434 : vector<16x16xf32>
    %450 = arith.addf %413, %449 : vector<16x16xf32>
    %c147 = arith.constant 147 : index
    %451 = memref.load %arg3[%c147] : memref<288xf32, #tpu.memory_space<smem>>
    %452 = vector.broadcast %451 : f32 to vector<16x16xf32>
    %453 = arith.mulf %452, %434 : vector<16x16xf32>
    %454 = arith.addf %417, %453 : vector<16x16xf32>
    %c183 = arith.constant 183 : index
    %455 = memref.load %arg3[%c183] : memref<288xf32, #tpu.memory_space<smem>>
    %456 = vector.broadcast %455 : f32 to vector<16x16xf32>
    %457 = arith.mulf %456, %434 : vector<16x16xf32>
    %458 = arith.addf %421, %457 : vector<16x16xf32>
    %c219 = arith.constant 219 : index
    %459 = memref.load %arg3[%c219] : memref<288xf32, #tpu.memory_space<smem>>
    %460 = vector.broadcast %459 : f32 to vector<16x16xf32>
    %461 = arith.mulf %460, %434 : vector<16x16xf32>
    %462 = arith.addf %425, %461 : vector<16x16xf32>
    %c255 = arith.constant 255 : index
    %463 = memref.load %arg3[%c255] : memref<288xf32, #tpu.memory_space<smem>>
    %464 = vector.broadcast %463 : f32 to vector<16x16xf32>
    %465 = arith.mulf %464, %434 : vector<16x16xf32>
    %466 = arith.addf %429, %465 : vector<16x16xf32>
    %467 = vector.extract_strided_slice %432 {offsets = [1, 0, 0], sizes = [1, 16, 16], strides = [1, 1, 1]} : vector<4x16x16xf32> to vector<1x16x16xf32>
    %468 = vector.shape_cast %467 : vector<1x16x16xf32> to vector<16x16xf32>
    %c12 = arith.constant 12 : index
    %469 = memref.load %arg3[%c12] : memref<288xf32, #tpu.memory_space<smem>>
    %470 = vector.broadcast %469 : f32 to vector<16x16xf32>
    %471 = arith.mulf %470, %468 : vector<16x16xf32>
    %472 = arith.addf %438, %471 : vector<16x16xf32>
    %c48 = arith.constant 48 : index
    %473 = memref.load %arg3[%c48] : memref<288xf32, #tpu.memory_space<smem>>
    %474 = vector.broadcast %473 : f32 to vector<16x16xf32>
    %475 = arith.mulf %474, %468 : vector<16x16xf32>
    %476 = arith.addf %442, %475 : vector<16x16xf32>
    %c84 = arith.constant 84 : index
    %477 = memref.load %arg3[%c84] : memref<288xf32, #tpu.memory_space<smem>>
    %478 = vector.broadcast %477 : f32 to vector<16x16xf32>
    %479 = arith.mulf %478, %468 : vector<16x16xf32>
    %480 = arith.addf %446, %479 : vector<16x16xf32>
    %c120 = arith.constant 120 : index
    %481 = memref.load %arg3[%c120] : memref<288xf32, #tpu.memory_space<smem>>
    %482 = vector.broadcast %481 : f32 to vector<16x16xf32>
    %483 = arith.mulf %482, %468 : vector<16x16xf32>
    %484 = arith.addf %450, %483 : vector<16x16xf32>
    %c156 = arith.constant 156 : index
    %485 = memref.load %arg3[%c156] : memref<288xf32, #tpu.memory_space<smem>>
    %486 = vector.broadcast %485 : f32 to vector<16x16xf32>
    %487 = arith.mulf %486, %468 : vector<16x16xf32>
    %488 = arith.addf %454, %487 : vector<16x16xf32>
    %c192 = arith.constant 192 : index
    %489 = memref.load %arg3[%c192] : memref<288xf32, #tpu.memory_space<smem>>
    %490 = vector.broadcast %489 : f32 to vector<16x16xf32>
    %491 = arith.mulf %490, %468 : vector<16x16xf32>
    %492 = arith.addf %458, %491 : vector<16x16xf32>
    %c228 = arith.constant 228 : index
    %493 = memref.load %arg3[%c228] : memref<288xf32, #tpu.memory_space<smem>>
    %494 = vector.broadcast %493 : f32 to vector<16x16xf32>
    %495 = arith.mulf %494, %468 : vector<16x16xf32>
    %496 = arith.addf %462, %495 : vector<16x16xf32>
    %c264 = arith.constant 264 : index
    %497 = memref.load %arg3[%c264] : memref<288xf32, #tpu.memory_space<smem>>
    %498 = vector.broadcast %497 : f32 to vector<16x16xf32>
    %499 = arith.mulf %498, %468 : vector<16x16xf32>
    %500 = arith.addf %466, %499 : vector<16x16xf32>
    %501 = vector.extract_strided_slice %432 {offsets = [2, 0, 0], sizes = [1, 16, 16], strides = [1, 1, 1]} : vector<4x16x16xf32> to vector<1x16x16xf32>
    %502 = vector.shape_cast %501 : vector<1x16x16xf32> to vector<16x16xf32>
    %c21 = arith.constant 21 : index
    %503 = memref.load %arg3[%c21] : memref<288xf32, #tpu.memory_space<smem>>
    %504 = vector.broadcast %503 : f32 to vector<16x16xf32>
    %505 = arith.mulf %504, %502 : vector<16x16xf32>
    %506 = arith.addf %472, %505 : vector<16x16xf32>
    %c57 = arith.constant 57 : index
    %507 = memref.load %arg3[%c57] : memref<288xf32, #tpu.memory_space<smem>>
    %508 = vector.broadcast %507 : f32 to vector<16x16xf32>
    %509 = arith.mulf %508, %502 : vector<16x16xf32>
    %510 = arith.addf %476, %509 : vector<16x16xf32>
    %c93 = arith.constant 93 : index
    %511 = memref.load %arg3[%c93] : memref<288xf32, #tpu.memory_space<smem>>
    %512 = vector.broadcast %511 : f32 to vector<16x16xf32>
    %513 = arith.mulf %512, %502 : vector<16x16xf32>
    %514 = arith.addf %480, %513 : vector<16x16xf32>
    %c129 = arith.constant 129 : index
    %515 = memref.load %arg3[%c129] : memref<288xf32, #tpu.memory_space<smem>>
    %516 = vector.broadcast %515 : f32 to vector<16x16xf32>
    %517 = arith.mulf %516, %502 : vector<16x16xf32>
    %518 = arith.addf %484, %517 : vector<16x16xf32>
    %c165 = arith.constant 165 : index
    %519 = memref.load %arg3[%c165] : memref<288xf32, #tpu.memory_space<smem>>
    %520 = vector.broadcast %519 : f32 to vector<16x16xf32>
    %521 = arith.mulf %520, %502 : vector<16x16xf32>
    %522 = arith.addf %488, %521 : vector<16x16xf32>
    %c201 = arith.constant 201 : index
    %523 = memref.load %arg3[%c201] : memref<288xf32, #tpu.memory_space<smem>>
    %524 = vector.broadcast %523 : f32 to vector<16x16xf32>
    %525 = arith.mulf %524, %502 : vector<16x16xf32>
    %526 = arith.addf %492, %525 : vector<16x16xf32>
    %c237 = arith.constant 237 : index
    %527 = memref.load %arg3[%c237] : memref<288xf32, #tpu.memory_space<smem>>
    %528 = vector.broadcast %527 : f32 to vector<16x16xf32>
    %529 = arith.mulf %528, %502 : vector<16x16xf32>
    %530 = arith.addf %496, %529 : vector<16x16xf32>
    %c273 = arith.constant 273 : index
    %531 = memref.load %arg3[%c273] : memref<288xf32, #tpu.memory_space<smem>>
    %532 = vector.broadcast %531 : f32 to vector<16x16xf32>
    %533 = arith.mulf %532, %502 : vector<16x16xf32>
    %534 = arith.addf %500, %533 : vector<16x16xf32>
    %535 = vector.extract_strided_slice %432 {offsets = [3, 0, 0], sizes = [1, 16, 16], strides = [1, 1, 1]} : vector<4x16x16xf32> to vector<1x16x16xf32>
    %536 = vector.shape_cast %535 : vector<1x16x16xf32> to vector<16x16xf32>
    %c30 = arith.constant 30 : index
    %537 = memref.load %arg3[%c30] : memref<288xf32, #tpu.memory_space<smem>>
    %538 = vector.broadcast %537 : f32 to vector<16x16xf32>
    %539 = arith.mulf %538, %536 : vector<16x16xf32>
    %540 = arith.addf %506, %539 : vector<16x16xf32>
    %c66 = arith.constant 66 : index
    %541 = memref.load %arg3[%c66] : memref<288xf32, #tpu.memory_space<smem>>
    %542 = vector.broadcast %541 : f32 to vector<16x16xf32>
    %543 = arith.mulf %542, %536 : vector<16x16xf32>
    %544 = arith.addf %510, %543 : vector<16x16xf32>
    %c102 = arith.constant 102 : index
    %545 = memref.load %arg3[%c102] : memref<288xf32, #tpu.memory_space<smem>>
    %546 = vector.broadcast %545 : f32 to vector<16x16xf32>
    %547 = arith.mulf %546, %536 : vector<16x16xf32>
    %548 = arith.addf %514, %547 : vector<16x16xf32>
    %c138 = arith.constant 138 : index
    %549 = memref.load %arg3[%c138] : memref<288xf32, #tpu.memory_space<smem>>
    %550 = vector.broadcast %549 : f32 to vector<16x16xf32>
    %551 = arith.mulf %550, %536 : vector<16x16xf32>
    %552 = arith.addf %518, %551 : vector<16x16xf32>
    %c174 = arith.constant 174 : index
    %553 = memref.load %arg3[%c174] : memref<288xf32, #tpu.memory_space<smem>>
    %554 = vector.broadcast %553 : f32 to vector<16x16xf32>
    %555 = arith.mulf %554, %536 : vector<16x16xf32>
    %556 = arith.addf %522, %555 : vector<16x16xf32>
    %c210 = arith.constant 210 : index
    %557 = memref.load %arg3[%c210] : memref<288xf32, #tpu.memory_space<smem>>
    %558 = vector.broadcast %557 : f32 to vector<16x16xf32>
    %559 = arith.mulf %558, %536 : vector<16x16xf32>
    %560 = arith.addf %526, %559 : vector<16x16xf32>
    %c246 = arith.constant 246 : index
    %561 = memref.load %arg3[%c246] : memref<288xf32, #tpu.memory_space<smem>>
    %562 = vector.broadcast %561 : f32 to vector<16x16xf32>
    %563 = arith.mulf %562, %536 : vector<16x16xf32>
    %564 = arith.addf %530, %563 : vector<16x16xf32>
    %c282 = arith.constant 282 : index
    %565 = memref.load %arg3[%c282] : memref<288xf32, #tpu.memory_space<smem>>
    %566 = vector.broadcast %565 : f32 to vector<16x16xf32>
    %567 = arith.mulf %566, %536 : vector<16x16xf32>
    %568 = arith.addf %534, %567 : vector<16x16xf32>
    %c1_i32_19 = arith.constant 1 : i32
    %569 = arith.addi %4, %c1_i32_19 : i32
    %c0_20 = arith.constant 0 : index
    %570 = arith.index_cast %569 : i32 to index
    %c1_21 = arith.constant 1 : index
    %571 = vector.load %arg6[%c0_20, %570, %c1_21] : memref<4x18x18xf32, #tpu.memory_space<vmem>>, vector<4x16x16xf32>
    %572 = vector.extract_strided_slice %571 {offsets = [0, 0, 0], sizes = [1, 16, 16], strides = [1, 1, 1]} : vector<4x16x16xf32> to vector<1x16x16xf32>
    %573 = vector.shape_cast %572 : vector<1x16x16xf32> to vector<16x16xf32>
    %c4 = arith.constant 4 : index
    %574 = memref.load %arg3[%c4] : memref<288xf32, #tpu.memory_space<smem>>
    %575 = vector.broadcast %574 : f32 to vector<16x16xf32>
    %576 = arith.mulf %575, %573 : vector<16x16xf32>
    %577 = arith.addf %540, %576 : vector<16x16xf32>
    %c40 = arith.constant 40 : index
    %578 = memref.load %arg3[%c40] : memref<288xf32, #tpu.memory_space<smem>>
    %579 = vector.broadcast %578 : f32 to vector<16x16xf32>
    %580 = arith.mulf %579, %573 : vector<16x16xf32>
    %581 = arith.addf %544, %580 : vector<16x16xf32>
    %c76 = arith.constant 76 : index
    %582 = memref.load %arg3[%c76] : memref<288xf32, #tpu.memory_space<smem>>
    %583 = vector.broadcast %582 : f32 to vector<16x16xf32>
    %584 = arith.mulf %583, %573 : vector<16x16xf32>
    %585 = arith.addf %548, %584 : vector<16x16xf32>
    %c112 = arith.constant 112 : index
    %586 = memref.load %arg3[%c112] : memref<288xf32, #tpu.memory_space<smem>>
    %587 = vector.broadcast %586 : f32 to vector<16x16xf32>
    %588 = arith.mulf %587, %573 : vector<16x16xf32>
    %589 = arith.addf %552, %588 : vector<16x16xf32>
    %c148 = arith.constant 148 : index
    %590 = memref.load %arg3[%c148] : memref<288xf32, #tpu.memory_space<smem>>
    %591 = vector.broadcast %590 : f32 to vector<16x16xf32>
    %592 = arith.mulf %591, %573 : vector<16x16xf32>
    %593 = arith.addf %556, %592 : vector<16x16xf32>
    %c184 = arith.constant 184 : index
    %594 = memref.load %arg3[%c184] : memref<288xf32, #tpu.memory_space<smem>>
    %595 = vector.broadcast %594 : f32 to vector<16x16xf32>
    %596 = arith.mulf %595, %573 : vector<16x16xf32>
    %597 = arith.addf %560, %596 : vector<16x16xf32>
    %c220 = arith.constant 220 : index
    %598 = memref.load %arg3[%c220] : memref<288xf32, #tpu.memory_space<smem>>
    %599 = vector.broadcast %598 : f32 to vector<16x16xf32>
    %600 = arith.mulf %599, %573 : vector<16x16xf32>
    %601 = arith.addf %564, %600 : vector<16x16xf32>
    %c256 = arith.constant 256 : index
    %602 = memref.load %arg3[%c256] : memref<288xf32, #tpu.memory_space<smem>>
    %603 = vector.broadcast %602 : f32 to vector<16x16xf32>
    %604 = arith.mulf %603, %573 : vector<16x16xf32>
    %605 = arith.addf %568, %604 : vector<16x16xf32>
    %606 = vector.extract_strided_slice %571 {offsets = [1, 0, 0], sizes = [1, 16, 16], strides = [1, 1, 1]} : vector<4x16x16xf32> to vector<1x16x16xf32>
    %607 = vector.shape_cast %606 : vector<1x16x16xf32> to vector<16x16xf32>
    %c13 = arith.constant 13 : index
    %608 = memref.load %arg3[%c13] : memref<288xf32, #tpu.memory_space<smem>>
    %609 = vector.broadcast %608 : f32 to vector<16x16xf32>
    %610 = arith.mulf %609, %607 : vector<16x16xf32>
    %611 = arith.addf %577, %610 : vector<16x16xf32>
    %c49 = arith.constant 49 : index
    %612 = memref.load %arg3[%c49] : memref<288xf32, #tpu.memory_space<smem>>
    %613 = vector.broadcast %612 : f32 to vector<16x16xf32>
    %614 = arith.mulf %613, %607 : vector<16x16xf32>
    %615 = arith.addf %581, %614 : vector<16x16xf32>
    %c85 = arith.constant 85 : index
    %616 = memref.load %arg3[%c85] : memref<288xf32, #tpu.memory_space<smem>>
    %617 = vector.broadcast %616 : f32 to vector<16x16xf32>
    %618 = arith.mulf %617, %607 : vector<16x16xf32>
    %619 = arith.addf %585, %618 : vector<16x16xf32>
    %c121 = arith.constant 121 : index
    %620 = memref.load %arg3[%c121] : memref<288xf32, #tpu.memory_space<smem>>
    %621 = vector.broadcast %620 : f32 to vector<16x16xf32>
    %622 = arith.mulf %621, %607 : vector<16x16xf32>
    %623 = arith.addf %589, %622 : vector<16x16xf32>
    %c157 = arith.constant 157 : index
    %624 = memref.load %arg3[%c157] : memref<288xf32, #tpu.memory_space<smem>>
    %625 = vector.broadcast %624 : f32 to vector<16x16xf32>
    %626 = arith.mulf %625, %607 : vector<16x16xf32>
    %627 = arith.addf %593, %626 : vector<16x16xf32>
    %c193 = arith.constant 193 : index
    %628 = memref.load %arg3[%c193] : memref<288xf32, #tpu.memory_space<smem>>
    %629 = vector.broadcast %628 : f32 to vector<16x16xf32>
    %630 = arith.mulf %629, %607 : vector<16x16xf32>
    %631 = arith.addf %597, %630 : vector<16x16xf32>
    %c229 = arith.constant 229 : index
    %632 = memref.load %arg3[%c229] : memref<288xf32, #tpu.memory_space<smem>>
    %633 = vector.broadcast %632 : f32 to vector<16x16xf32>
    %634 = arith.mulf %633, %607 : vector<16x16xf32>
    %635 = arith.addf %601, %634 : vector<16x16xf32>
    %c265 = arith.constant 265 : index
    %636 = memref.load %arg3[%c265] : memref<288xf32, #tpu.memory_space<smem>>
    %637 = vector.broadcast %636 : f32 to vector<16x16xf32>
    %638 = arith.mulf %637, %607 : vector<16x16xf32>
    %639 = arith.addf %605, %638 : vector<16x16xf32>
    %640 = vector.extract_strided_slice %571 {offsets = [2, 0, 0], sizes = [1, 16, 16], strides = [1, 1, 1]} : vector<4x16x16xf32> to vector<1x16x16xf32>
    %641 = vector.shape_cast %640 : vector<1x16x16xf32> to vector<16x16xf32>
    %c22 = arith.constant 22 : index
    %642 = memref.load %arg3[%c22] : memref<288xf32, #tpu.memory_space<smem>>
    %643 = vector.broadcast %642 : f32 to vector<16x16xf32>
    %644 = arith.mulf %643, %641 : vector<16x16xf32>
    %645 = arith.addf %611, %644 : vector<16x16xf32>
    %c58 = arith.constant 58 : index
    %646 = memref.load %arg3[%c58] : memref<288xf32, #tpu.memory_space<smem>>
    %647 = vector.broadcast %646 : f32 to vector<16x16xf32>
    %648 = arith.mulf %647, %641 : vector<16x16xf32>
    %649 = arith.addf %615, %648 : vector<16x16xf32>
    %c94 = arith.constant 94 : index
    %650 = memref.load %arg3[%c94] : memref<288xf32, #tpu.memory_space<smem>>
    %651 = vector.broadcast %650 : f32 to vector<16x16xf32>
    %652 = arith.mulf %651, %641 : vector<16x16xf32>
    %653 = arith.addf %619, %652 : vector<16x16xf32>
    %c130 = arith.constant 130 : index
    %654 = memref.load %arg3[%c130] : memref<288xf32, #tpu.memory_space<smem>>
    %655 = vector.broadcast %654 : f32 to vector<16x16xf32>
    %656 = arith.mulf %655, %641 : vector<16x16xf32>
    %657 = arith.addf %623, %656 : vector<16x16xf32>
    %c166 = arith.constant 166 : index
    %658 = memref.load %arg3[%c166] : memref<288xf32, #tpu.memory_space<smem>>
    %659 = vector.broadcast %658 : f32 to vector<16x16xf32>
    %660 = arith.mulf %659, %641 : vector<16x16xf32>
    %661 = arith.addf %627, %660 : vector<16x16xf32>
    %c202 = arith.constant 202 : index
    %662 = memref.load %arg3[%c202] : memref<288xf32, #tpu.memory_space<smem>>
    %663 = vector.broadcast %662 : f32 to vector<16x16xf32>
    %664 = arith.mulf %663, %641 : vector<16x16xf32>
    %665 = arith.addf %631, %664 : vector<16x16xf32>
    %c238 = arith.constant 238 : index
    %666 = memref.load %arg3[%c238] : memref<288xf32, #tpu.memory_space<smem>>
    %667 = vector.broadcast %666 : f32 to vector<16x16xf32>
    %668 = arith.mulf %667, %641 : vector<16x16xf32>
    %669 = arith.addf %635, %668 : vector<16x16xf32>
    %c274 = arith.constant 274 : index
    %670 = memref.load %arg3[%c274] : memref<288xf32, #tpu.memory_space<smem>>
    %671 = vector.broadcast %670 : f32 to vector<16x16xf32>
    %672 = arith.mulf %671, %641 : vector<16x16xf32>
    %673 = arith.addf %639, %672 : vector<16x16xf32>
    %674 = vector.extract_strided_slice %571 {offsets = [3, 0, 0], sizes = [1, 16, 16], strides = [1, 1, 1]} : vector<4x16x16xf32> to vector<1x16x16xf32>
    %675 = vector.shape_cast %674 : vector<1x16x16xf32> to vector<16x16xf32>
    %c31 = arith.constant 31 : index
    %676 = memref.load %arg3[%c31] : memref<288xf32, #tpu.memory_space<smem>>
    %677 = vector.broadcast %676 : f32 to vector<16x16xf32>
    %678 = arith.mulf %677, %675 : vector<16x16xf32>
    %679 = arith.addf %645, %678 : vector<16x16xf32>
    %c67 = arith.constant 67 : index
    %680 = memref.load %arg3[%c67] : memref<288xf32, #tpu.memory_space<smem>>
    %681 = vector.broadcast %680 : f32 to vector<16x16xf32>
    %682 = arith.mulf %681, %675 : vector<16x16xf32>
    %683 = arith.addf %649, %682 : vector<16x16xf32>
    %c103 = arith.constant 103 : index
    %684 = memref.load %arg3[%c103] : memref<288xf32, #tpu.memory_space<smem>>
    %685 = vector.broadcast %684 : f32 to vector<16x16xf32>
    %686 = arith.mulf %685, %675 : vector<16x16xf32>
    %687 = arith.addf %653, %686 : vector<16x16xf32>
    %c139 = arith.constant 139 : index
    %688 = memref.load %arg3[%c139] : memref<288xf32, #tpu.memory_space<smem>>
    %689 = vector.broadcast %688 : f32 to vector<16x16xf32>
    %690 = arith.mulf %689, %675 : vector<16x16xf32>
    %691 = arith.addf %657, %690 : vector<16x16xf32>
    %c175 = arith.constant 175 : index
    %692 = memref.load %arg3[%c175] : memref<288xf32, #tpu.memory_space<smem>>
    %693 = vector.broadcast %692 : f32 to vector<16x16xf32>
    %694 = arith.mulf %693, %675 : vector<16x16xf32>
    %695 = arith.addf %661, %694 : vector<16x16xf32>
    %c211 = arith.constant 211 : index
    %696 = memref.load %arg3[%c211] : memref<288xf32, #tpu.memory_space<smem>>
    %697 = vector.broadcast %696 : f32 to vector<16x16xf32>
    %698 = arith.mulf %697, %675 : vector<16x16xf32>
    %699 = arith.addf %665, %698 : vector<16x16xf32>
    %c247 = arith.constant 247 : index
    %700 = memref.load %arg3[%c247] : memref<288xf32, #tpu.memory_space<smem>>
    %701 = vector.broadcast %700 : f32 to vector<16x16xf32>
    %702 = arith.mulf %701, %675 : vector<16x16xf32>
    %703 = arith.addf %669, %702 : vector<16x16xf32>
    %c283 = arith.constant 283 : index
    %704 = memref.load %arg3[%c283] : memref<288xf32, #tpu.memory_space<smem>>
    %705 = vector.broadcast %704 : f32 to vector<16x16xf32>
    %706 = arith.mulf %705, %675 : vector<16x16xf32>
    %707 = arith.addf %673, %706 : vector<16x16xf32>
    %c1_i32_22 = arith.constant 1 : i32
    %708 = arith.addi %4, %c1_i32_22 : i32
    %c0_23 = arith.constant 0 : index
    %709 = arith.index_cast %708 : i32 to index
    %c2_24 = arith.constant 2 : index
    %710 = vector.load %arg6[%c0_23, %709, %c2_24] : memref<4x18x18xf32, #tpu.memory_space<vmem>>, vector<4x16x16xf32>
    %711 = vector.extract_strided_slice %710 {offsets = [0, 0, 0], sizes = [1, 16, 16], strides = [1, 1, 1]} : vector<4x16x16xf32> to vector<1x16x16xf32>
    %712 = vector.shape_cast %711 : vector<1x16x16xf32> to vector<16x16xf32>
    %c5 = arith.constant 5 : index
    %713 = memref.load %arg3[%c5] : memref<288xf32, #tpu.memory_space<smem>>
    %714 = vector.broadcast %713 : f32 to vector<16x16xf32>
    %715 = arith.mulf %714, %712 : vector<16x16xf32>
    %716 = arith.addf %679, %715 : vector<16x16xf32>
    %c41 = arith.constant 41 : index
    %717 = memref.load %arg3[%c41] : memref<288xf32, #tpu.memory_space<smem>>
    %718 = vector.broadcast %717 : f32 to vector<16x16xf32>
    %719 = arith.mulf %718, %712 : vector<16x16xf32>
    %720 = arith.addf %683, %719 : vector<16x16xf32>
    %c77 = arith.constant 77 : index
    %721 = memref.load %arg3[%c77] : memref<288xf32, #tpu.memory_space<smem>>
    %722 = vector.broadcast %721 : f32 to vector<16x16xf32>
    %723 = arith.mulf %722, %712 : vector<16x16xf32>
    %724 = arith.addf %687, %723 : vector<16x16xf32>
    %c113 = arith.constant 113 : index
    %725 = memref.load %arg3[%c113] : memref<288xf32, #tpu.memory_space<smem>>
    %726 = vector.broadcast %725 : f32 to vector<16x16xf32>
    %727 = arith.mulf %726, %712 : vector<16x16xf32>
    %728 = arith.addf %691, %727 : vector<16x16xf32>
    %c149 = arith.constant 149 : index
    %729 = memref.load %arg3[%c149] : memref<288xf32, #tpu.memory_space<smem>>
    %730 = vector.broadcast %729 : f32 to vector<16x16xf32>
    %731 = arith.mulf %730, %712 : vector<16x16xf32>
    %732 = arith.addf %695, %731 : vector<16x16xf32>
    %c185 = arith.constant 185 : index
    %733 = memref.load %arg3[%c185] : memref<288xf32, #tpu.memory_space<smem>>
    %734 = vector.broadcast %733 : f32 to vector<16x16xf32>
    %735 = arith.mulf %734, %712 : vector<16x16xf32>
    %736 = arith.addf %699, %735 : vector<16x16xf32>
    %c221 = arith.constant 221 : index
    %737 = memref.load %arg3[%c221] : memref<288xf32, #tpu.memory_space<smem>>
    %738 = vector.broadcast %737 : f32 to vector<16x16xf32>
    %739 = arith.mulf %738, %712 : vector<16x16xf32>
    %740 = arith.addf %703, %739 : vector<16x16xf32>
    %c257 = arith.constant 257 : index
    %741 = memref.load %arg3[%c257] : memref<288xf32, #tpu.memory_space<smem>>
    %742 = vector.broadcast %741 : f32 to vector<16x16xf32>
    %743 = arith.mulf %742, %712 : vector<16x16xf32>
    %744 = arith.addf %707, %743 : vector<16x16xf32>
    %745 = vector.extract_strided_slice %710 {offsets = [1, 0, 0], sizes = [1, 16, 16], strides = [1, 1, 1]} : vector<4x16x16xf32> to vector<1x16x16xf32>
    %746 = vector.shape_cast %745 : vector<1x16x16xf32> to vector<16x16xf32>
    %c14 = arith.constant 14 : index
    %747 = memref.load %arg3[%c14] : memref<288xf32, #tpu.memory_space<smem>>
    %748 = vector.broadcast %747 : f32 to vector<16x16xf32>
    %749 = arith.mulf %748, %746 : vector<16x16xf32>
    %750 = arith.addf %716, %749 : vector<16x16xf32>
    %c50 = arith.constant 50 : index
    %751 = memref.load %arg3[%c50] : memref<288xf32, #tpu.memory_space<smem>>
    %752 = vector.broadcast %751 : f32 to vector<16x16xf32>
    %753 = arith.mulf %752, %746 : vector<16x16xf32>
    %754 = arith.addf %720, %753 : vector<16x16xf32>
    %c86 = arith.constant 86 : index
    %755 = memref.load %arg3[%c86] : memref<288xf32, #tpu.memory_space<smem>>
    %756 = vector.broadcast %755 : f32 to vector<16x16xf32>
    %757 = arith.mulf %756, %746 : vector<16x16xf32>
    %758 = arith.addf %724, %757 : vector<16x16xf32>
    %c122 = arith.constant 122 : index
    %759 = memref.load %arg3[%c122] : memref<288xf32, #tpu.memory_space<smem>>
    %760 = vector.broadcast %759 : f32 to vector<16x16xf32>
    %761 = arith.mulf %760, %746 : vector<16x16xf32>
    %762 = arith.addf %728, %761 : vector<16x16xf32>
    %c158 = arith.constant 158 : index
    %763 = memref.load %arg3[%c158] : memref<288xf32, #tpu.memory_space<smem>>
    %764 = vector.broadcast %763 : f32 to vector<16x16xf32>
    %765 = arith.mulf %764, %746 : vector<16x16xf32>
    %766 = arith.addf %732, %765 : vector<16x16xf32>
    %c194 = arith.constant 194 : index
    %767 = memref.load %arg3[%c194] : memref<288xf32, #tpu.memory_space<smem>>
    %768 = vector.broadcast %767 : f32 to vector<16x16xf32>
    %769 = arith.mulf %768, %746 : vector<16x16xf32>
    %770 = arith.addf %736, %769 : vector<16x16xf32>
    %c230 = arith.constant 230 : index
    %771 = memref.load %arg3[%c230] : memref<288xf32, #tpu.memory_space<smem>>
    %772 = vector.broadcast %771 : f32 to vector<16x16xf32>
    %773 = arith.mulf %772, %746 : vector<16x16xf32>
    %774 = arith.addf %740, %773 : vector<16x16xf32>
    %c266 = arith.constant 266 : index
    %775 = memref.load %arg3[%c266] : memref<288xf32, #tpu.memory_space<smem>>
    %776 = vector.broadcast %775 : f32 to vector<16x16xf32>
    %777 = arith.mulf %776, %746 : vector<16x16xf32>
    %778 = arith.addf %744, %777 : vector<16x16xf32>
    %779 = vector.extract_strided_slice %710 {offsets = [2, 0, 0], sizes = [1, 16, 16], strides = [1, 1, 1]} : vector<4x16x16xf32> to vector<1x16x16xf32>
    %780 = vector.shape_cast %779 : vector<1x16x16xf32> to vector<16x16xf32>
    %c23 = arith.constant 23 : index
    %781 = memref.load %arg3[%c23] : memref<288xf32, #tpu.memory_space<smem>>
    %782 = vector.broadcast %781 : f32 to vector<16x16xf32>
    %783 = arith.mulf %782, %780 : vector<16x16xf32>
    %784 = arith.addf %750, %783 : vector<16x16xf32>
    %c59 = arith.constant 59 : index
    %785 = memref.load %arg3[%c59] : memref<288xf32, #tpu.memory_space<smem>>
    %786 = vector.broadcast %785 : f32 to vector<16x16xf32>
    %787 = arith.mulf %786, %780 : vector<16x16xf32>
    %788 = arith.addf %754, %787 : vector<16x16xf32>
    %c95 = arith.constant 95 : index
    %789 = memref.load %arg3[%c95] : memref<288xf32, #tpu.memory_space<smem>>
    %790 = vector.broadcast %789 : f32 to vector<16x16xf32>
    %791 = arith.mulf %790, %780 : vector<16x16xf32>
    %792 = arith.addf %758, %791 : vector<16x16xf32>
    %c131 = arith.constant 131 : index
    %793 = memref.load %arg3[%c131] : memref<288xf32, #tpu.memory_space<smem>>
    %794 = vector.broadcast %793 : f32 to vector<16x16xf32>
    %795 = arith.mulf %794, %780 : vector<16x16xf32>
    %796 = arith.addf %762, %795 : vector<16x16xf32>
    %c167 = arith.constant 167 : index
    %797 = memref.load %arg3[%c167] : memref<288xf32, #tpu.memory_space<smem>>
    %798 = vector.broadcast %797 : f32 to vector<16x16xf32>
    %799 = arith.mulf %798, %780 : vector<16x16xf32>
    %800 = arith.addf %766, %799 : vector<16x16xf32>
    %c203 = arith.constant 203 : index
    %801 = memref.load %arg3[%c203] : memref<288xf32, #tpu.memory_space<smem>>
    %802 = vector.broadcast %801 : f32 to vector<16x16xf32>
    %803 = arith.mulf %802, %780 : vector<16x16xf32>
    %804 = arith.addf %770, %803 : vector<16x16xf32>
    %c239 = arith.constant 239 : index
    %805 = memref.load %arg3[%c239] : memref<288xf32, #tpu.memory_space<smem>>
    %806 = vector.broadcast %805 : f32 to vector<16x16xf32>
    %807 = arith.mulf %806, %780 : vector<16x16xf32>
    %808 = arith.addf %774, %807 : vector<16x16xf32>
    %c275 = arith.constant 275 : index
    %809 = memref.load %arg3[%c275] : memref<288xf32, #tpu.memory_space<smem>>
    %810 = vector.broadcast %809 : f32 to vector<16x16xf32>
    %811 = arith.mulf %810, %780 : vector<16x16xf32>
    %812 = arith.addf %778, %811 : vector<16x16xf32>
    %813 = vector.extract_strided_slice %710 {offsets = [3, 0, 0], sizes = [1, 16, 16], strides = [1, 1, 1]} : vector<4x16x16xf32> to vector<1x16x16xf32>
    %814 = vector.shape_cast %813 : vector<1x16x16xf32> to vector<16x16xf32>
    %c32 = arith.constant 32 : index
    %815 = memref.load %arg3[%c32] : memref<288xf32, #tpu.memory_space<smem>>
    %816 = vector.broadcast %815 : f32 to vector<16x16xf32>
    %817 = arith.mulf %816, %814 : vector<16x16xf32>
    %818 = arith.addf %784, %817 : vector<16x16xf32>
    %c68 = arith.constant 68 : index
    %819 = memref.load %arg3[%c68] : memref<288xf32, #tpu.memory_space<smem>>
    %820 = vector.broadcast %819 : f32 to vector<16x16xf32>
    %821 = arith.mulf %820, %814 : vector<16x16xf32>
    %822 = arith.addf %788, %821 : vector<16x16xf32>
    %c104 = arith.constant 104 : index
    %823 = memref.load %arg3[%c104] : memref<288xf32, #tpu.memory_space<smem>>
    %824 = vector.broadcast %823 : f32 to vector<16x16xf32>
    %825 = arith.mulf %824, %814 : vector<16x16xf32>
    %826 = arith.addf %792, %825 : vector<16x16xf32>
    %c140 = arith.constant 140 : index
    %827 = memref.load %arg3[%c140] : memref<288xf32, #tpu.memory_space<smem>>
    %828 = vector.broadcast %827 : f32 to vector<16x16xf32>
    %829 = arith.mulf %828, %814 : vector<16x16xf32>
    %830 = arith.addf %796, %829 : vector<16x16xf32>
    %c176 = arith.constant 176 : index
    %831 = memref.load %arg3[%c176] : memref<288xf32, #tpu.memory_space<smem>>
    %832 = vector.broadcast %831 : f32 to vector<16x16xf32>
    %833 = arith.mulf %832, %814 : vector<16x16xf32>
    %834 = arith.addf %800, %833 : vector<16x16xf32>
    %c212 = arith.constant 212 : index
    %835 = memref.load %arg3[%c212] : memref<288xf32, #tpu.memory_space<smem>>
    %836 = vector.broadcast %835 : f32 to vector<16x16xf32>
    %837 = arith.mulf %836, %814 : vector<16x16xf32>
    %838 = arith.addf %804, %837 : vector<16x16xf32>
    %c248 = arith.constant 248 : index
    %839 = memref.load %arg3[%c248] : memref<288xf32, #tpu.memory_space<smem>>
    %840 = vector.broadcast %839 : f32 to vector<16x16xf32>
    %841 = arith.mulf %840, %814 : vector<16x16xf32>
    %842 = arith.addf %808, %841 : vector<16x16xf32>
    %c284 = arith.constant 284 : index
    %843 = memref.load %arg3[%c284] : memref<288xf32, #tpu.memory_space<smem>>
    %844 = vector.broadcast %843 : f32 to vector<16x16xf32>
    %845 = arith.mulf %844, %814 : vector<16x16xf32>
    %846 = arith.addf %812, %845 : vector<16x16xf32>
    %c2_i32 = arith.constant 2 : i32
    %847 = arith.addi %4, %c2_i32 : i32
    %c0_25 = arith.constant 0 : index
    %848 = arith.index_cast %847 : i32 to index
    %c0_26 = arith.constant 0 : index
    %849 = vector.load %arg6[%c0_25, %848, %c0_26] : memref<4x18x18xf32, #tpu.memory_space<vmem>>, vector<4x16x16xf32>
    %850 = vector.extract_strided_slice %849 {offsets = [0, 0, 0], sizes = [1, 16, 16], strides = [1, 1, 1]} : vector<4x16x16xf32> to vector<1x16x16xf32>
    %851 = vector.shape_cast %850 : vector<1x16x16xf32> to vector<16x16xf32>
    %c6 = arith.constant 6 : index
    %852 = memref.load %arg3[%c6] : memref<288xf32, #tpu.memory_space<smem>>
    %853 = vector.broadcast %852 : f32 to vector<16x16xf32>
    %854 = arith.mulf %853, %851 : vector<16x16xf32>
    %855 = arith.addf %818, %854 : vector<16x16xf32>
    %c42 = arith.constant 42 : index
    %856 = memref.load %arg3[%c42] : memref<288xf32, #tpu.memory_space<smem>>
    %857 = vector.broadcast %856 : f32 to vector<16x16xf32>
    %858 = arith.mulf %857, %851 : vector<16x16xf32>
    %859 = arith.addf %822, %858 : vector<16x16xf32>
    %c78 = arith.constant 78 : index
    %860 = memref.load %arg3[%c78] : memref<288xf32, #tpu.memory_space<smem>>
    %861 = vector.broadcast %860 : f32 to vector<16x16xf32>
    %862 = arith.mulf %861, %851 : vector<16x16xf32>
    %863 = arith.addf %826, %862 : vector<16x16xf32>
    %c114 = arith.constant 114 : index
    %864 = memref.load %arg3[%c114] : memref<288xf32, #tpu.memory_space<smem>>
    %865 = vector.broadcast %864 : f32 to vector<16x16xf32>
    %866 = arith.mulf %865, %851 : vector<16x16xf32>
    %867 = arith.addf %830, %866 : vector<16x16xf32>
    %c150 = arith.constant 150 : index
    %868 = memref.load %arg3[%c150] : memref<288xf32, #tpu.memory_space<smem>>
    %869 = vector.broadcast %868 : f32 to vector<16x16xf32>
    %870 = arith.mulf %869, %851 : vector<16x16xf32>
    %871 = arith.addf %834, %870 : vector<16x16xf32>
    %c186 = arith.constant 186 : index
    %872 = memref.load %arg3[%c186] : memref<288xf32, #tpu.memory_space<smem>>
    %873 = vector.broadcast %872 : f32 to vector<16x16xf32>
    %874 = arith.mulf %873, %851 : vector<16x16xf32>
    %875 = arith.addf %838, %874 : vector<16x16xf32>
    %c222 = arith.constant 222 : index
    %876 = memref.load %arg3[%c222] : memref<288xf32, #tpu.memory_space<smem>>
    %877 = vector.broadcast %876 : f32 to vector<16x16xf32>
    %878 = arith.mulf %877, %851 : vector<16x16xf32>
    %879 = arith.addf %842, %878 : vector<16x16xf32>
    %c258 = arith.constant 258 : index
    %880 = memref.load %arg3[%c258] : memref<288xf32, #tpu.memory_space<smem>>
    %881 = vector.broadcast %880 : f32 to vector<16x16xf32>
    %882 = arith.mulf %881, %851 : vector<16x16xf32>
    %883 = arith.addf %846, %882 : vector<16x16xf32>
    %884 = vector.extract_strided_slice %849 {offsets = [1, 0, 0], sizes = [1, 16, 16], strides = [1, 1, 1]} : vector<4x16x16xf32> to vector<1x16x16xf32>
    %885 = vector.shape_cast %884 : vector<1x16x16xf32> to vector<16x16xf32>
    %c15 = arith.constant 15 : index
    %886 = memref.load %arg3[%c15] : memref<288xf32, #tpu.memory_space<smem>>
    %887 = vector.broadcast %886 : f32 to vector<16x16xf32>
    %888 = arith.mulf %887, %885 : vector<16x16xf32>
    %889 = arith.addf %855, %888 : vector<16x16xf32>
    %c51 = arith.constant 51 : index
    %890 = memref.load %arg3[%c51] : memref<288xf32, #tpu.memory_space<smem>>
    %891 = vector.broadcast %890 : f32 to vector<16x16xf32>
    %892 = arith.mulf %891, %885 : vector<16x16xf32>
    %893 = arith.addf %859, %892 : vector<16x16xf32>
    %c87 = arith.constant 87 : index
    %894 = memref.load %arg3[%c87] : memref<288xf32, #tpu.memory_space<smem>>
    %895 = vector.broadcast %894 : f32 to vector<16x16xf32>
    %896 = arith.mulf %895, %885 : vector<16x16xf32>
    %897 = arith.addf %863, %896 : vector<16x16xf32>
    %c123 = arith.constant 123 : index
    %898 = memref.load %arg3[%c123] : memref<288xf32, #tpu.memory_space<smem>>
    %899 = vector.broadcast %898 : f32 to vector<16x16xf32>
    %900 = arith.mulf %899, %885 : vector<16x16xf32>
    %901 = arith.addf %867, %900 : vector<16x16xf32>
    %c159 = arith.constant 159 : index
    %902 = memref.load %arg3[%c159] : memref<288xf32, #tpu.memory_space<smem>>
    %903 = vector.broadcast %902 : f32 to vector<16x16xf32>
    %904 = arith.mulf %903, %885 : vector<16x16xf32>
    %905 = arith.addf %871, %904 : vector<16x16xf32>
    %c195 = arith.constant 195 : index
    %906 = memref.load %arg3[%c195] : memref<288xf32, #tpu.memory_space<smem>>
    %907 = vector.broadcast %906 : f32 to vector<16x16xf32>
    %908 = arith.mulf %907, %885 : vector<16x16xf32>
    %909 = arith.addf %875, %908 : vector<16x16xf32>
    %c231 = arith.constant 231 : index
    %910 = memref.load %arg3[%c231] : memref<288xf32, #tpu.memory_space<smem>>
    %911 = vector.broadcast %910 : f32 to vector<16x16xf32>
    %912 = arith.mulf %911, %885 : vector<16x16xf32>
    %913 = arith.addf %879, %912 : vector<16x16xf32>
    %c267 = arith.constant 267 : index
    %914 = memref.load %arg3[%c267] : memref<288xf32, #tpu.memory_space<smem>>
    %915 = vector.broadcast %914 : f32 to vector<16x16xf32>
    %916 = arith.mulf %915, %885 : vector<16x16xf32>
    %917 = arith.addf %883, %916 : vector<16x16xf32>
    %918 = vector.extract_strided_slice %849 {offsets = [2, 0, 0], sizes = [1, 16, 16], strides = [1, 1, 1]} : vector<4x16x16xf32> to vector<1x16x16xf32>
    %919 = vector.shape_cast %918 : vector<1x16x16xf32> to vector<16x16xf32>
    %c24 = arith.constant 24 : index
    %920 = memref.load %arg3[%c24] : memref<288xf32, #tpu.memory_space<smem>>
    %921 = vector.broadcast %920 : f32 to vector<16x16xf32>
    %922 = arith.mulf %921, %919 : vector<16x16xf32>
    %923 = arith.addf %889, %922 : vector<16x16xf32>
    %c60 = arith.constant 60 : index
    %924 = memref.load %arg3[%c60] : memref<288xf32, #tpu.memory_space<smem>>
    %925 = vector.broadcast %924 : f32 to vector<16x16xf32>
    %926 = arith.mulf %925, %919 : vector<16x16xf32>
    %927 = arith.addf %893, %926 : vector<16x16xf32>
    %c96 = arith.constant 96 : index
    %928 = memref.load %arg3[%c96] : memref<288xf32, #tpu.memory_space<smem>>
    %929 = vector.broadcast %928 : f32 to vector<16x16xf32>
    %930 = arith.mulf %929, %919 : vector<16x16xf32>
    %931 = arith.addf %897, %930 : vector<16x16xf32>
    %c132 = arith.constant 132 : index
    %932 = memref.load %arg3[%c132] : memref<288xf32, #tpu.memory_space<smem>>
    %933 = vector.broadcast %932 : f32 to vector<16x16xf32>
    %934 = arith.mulf %933, %919 : vector<16x16xf32>
    %935 = arith.addf %901, %934 : vector<16x16xf32>
    %c168 = arith.constant 168 : index
    %936 = memref.load %arg3[%c168] : memref<288xf32, #tpu.memory_space<smem>>
    %937 = vector.broadcast %936 : f32 to vector<16x16xf32>
    %938 = arith.mulf %937, %919 : vector<16x16xf32>
    %939 = arith.addf %905, %938 : vector<16x16xf32>
    %c204 = arith.constant 204 : index
    %940 = memref.load %arg3[%c204] : memref<288xf32, #tpu.memory_space<smem>>
    %941 = vector.broadcast %940 : f32 to vector<16x16xf32>
    %942 = arith.mulf %941, %919 : vector<16x16xf32>
    %943 = arith.addf %909, %942 : vector<16x16xf32>
    %c240 = arith.constant 240 : index
    %944 = memref.load %arg3[%c240] : memref<288xf32, #tpu.memory_space<smem>>
    %945 = vector.broadcast %944 : f32 to vector<16x16xf32>
    %946 = arith.mulf %945, %919 : vector<16x16xf32>
    %947 = arith.addf %913, %946 : vector<16x16xf32>
    %c276 = arith.constant 276 : index
    %948 = memref.load %arg3[%c276] : memref<288xf32, #tpu.memory_space<smem>>
    %949 = vector.broadcast %948 : f32 to vector<16x16xf32>
    %950 = arith.mulf %949, %919 : vector<16x16xf32>
    %951 = arith.addf %917, %950 : vector<16x16xf32>
    %952 = vector.extract_strided_slice %849 {offsets = [3, 0, 0], sizes = [1, 16, 16], strides = [1, 1, 1]} : vector<4x16x16xf32> to vector<1x16x16xf32>
    %953 = vector.shape_cast %952 : vector<1x16x16xf32> to vector<16x16xf32>
    %c33 = arith.constant 33 : index
    %954 = memref.load %arg3[%c33] : memref<288xf32, #tpu.memory_space<smem>>
    %955 = vector.broadcast %954 : f32 to vector<16x16xf32>
    %956 = arith.mulf %955, %953 : vector<16x16xf32>
    %957 = arith.addf %923, %956 : vector<16x16xf32>
    %c69 = arith.constant 69 : index
    %958 = memref.load %arg3[%c69] : memref<288xf32, #tpu.memory_space<smem>>
    %959 = vector.broadcast %958 : f32 to vector<16x16xf32>
    %960 = arith.mulf %959, %953 : vector<16x16xf32>
    %961 = arith.addf %927, %960 : vector<16x16xf32>
    %c105 = arith.constant 105 : index
    %962 = memref.load %arg3[%c105] : memref<288xf32, #tpu.memory_space<smem>>
    %963 = vector.broadcast %962 : f32 to vector<16x16xf32>
    %964 = arith.mulf %963, %953 : vector<16x16xf32>
    %965 = arith.addf %931, %964 : vector<16x16xf32>
    %c141 = arith.constant 141 : index
    %966 = memref.load %arg3[%c141] : memref<288xf32, #tpu.memory_space<smem>>
    %967 = vector.broadcast %966 : f32 to vector<16x16xf32>
    %968 = arith.mulf %967, %953 : vector<16x16xf32>
    %969 = arith.addf %935, %968 : vector<16x16xf32>
    %c177 = arith.constant 177 : index
    %970 = memref.load %arg3[%c177] : memref<288xf32, #tpu.memory_space<smem>>
    %971 = vector.broadcast %970 : f32 to vector<16x16xf32>
    %972 = arith.mulf %971, %953 : vector<16x16xf32>
    %973 = arith.addf %939, %972 : vector<16x16xf32>
    %c213 = arith.constant 213 : index
    %974 = memref.load %arg3[%c213] : memref<288xf32, #tpu.memory_space<smem>>
    %975 = vector.broadcast %974 : f32 to vector<16x16xf32>
    %976 = arith.mulf %975, %953 : vector<16x16xf32>
    %977 = arith.addf %943, %976 : vector<16x16xf32>
    %c249 = arith.constant 249 : index
    %978 = memref.load %arg3[%c249] : memref<288xf32, #tpu.memory_space<smem>>
    %979 = vector.broadcast %978 : f32 to vector<16x16xf32>
    %980 = arith.mulf %979, %953 : vector<16x16xf32>
    %981 = arith.addf %947, %980 : vector<16x16xf32>
    %c285 = arith.constant 285 : index
    %982 = memref.load %arg3[%c285] : memref<288xf32, #tpu.memory_space<smem>>
    %983 = vector.broadcast %982 : f32 to vector<16x16xf32>
    %984 = arith.mulf %983, %953 : vector<16x16xf32>
    %985 = arith.addf %951, %984 : vector<16x16xf32>
    %c2_i32_27 = arith.constant 2 : i32
    %986 = arith.addi %4, %c2_i32_27 : i32
    %c0_28 = arith.constant 0 : index
    %987 = arith.index_cast %986 : i32 to index
    %c1_29 = arith.constant 1 : index
    %988 = vector.load %arg6[%c0_28, %987, %c1_29] : memref<4x18x18xf32, #tpu.memory_space<vmem>>, vector<4x16x16xf32>
    %989 = vector.extract_strided_slice %988 {offsets = [0, 0, 0], sizes = [1, 16, 16], strides = [1, 1, 1]} : vector<4x16x16xf32> to vector<1x16x16xf32>
    %990 = vector.shape_cast %989 : vector<1x16x16xf32> to vector<16x16xf32>
    %c7 = arith.constant 7 : index
    %991 = memref.load %arg3[%c7] : memref<288xf32, #tpu.memory_space<smem>>
    %992 = vector.broadcast %991 : f32 to vector<16x16xf32>
    %993 = arith.mulf %992, %990 : vector<16x16xf32>
    %994 = arith.addf %957, %993 : vector<16x16xf32>
    %c43 = arith.constant 43 : index
    %995 = memref.load %arg3[%c43] : memref<288xf32, #tpu.memory_space<smem>>
    %996 = vector.broadcast %995 : f32 to vector<16x16xf32>
    %997 = arith.mulf %996, %990 : vector<16x16xf32>
    %998 = arith.addf %961, %997 : vector<16x16xf32>
    %c79 = arith.constant 79 : index
    %999 = memref.load %arg3[%c79] : memref<288xf32, #tpu.memory_space<smem>>
    %1000 = vector.broadcast %999 : f32 to vector<16x16xf32>
    %1001 = arith.mulf %1000, %990 : vector<16x16xf32>
    %1002 = arith.addf %965, %1001 : vector<16x16xf32>
    %c115 = arith.constant 115 : index
    %1003 = memref.load %arg3[%c115] : memref<288xf32, #tpu.memory_space<smem>>
    %1004 = vector.broadcast %1003 : f32 to vector<16x16xf32>
    %1005 = arith.mulf %1004, %990 : vector<16x16xf32>
    %1006 = arith.addf %969, %1005 : vector<16x16xf32>
    %c151 = arith.constant 151 : index
    %1007 = memref.load %arg3[%c151] : memref<288xf32, #tpu.memory_space<smem>>
    %1008 = vector.broadcast %1007 : f32 to vector<16x16xf32>
    %1009 = arith.mulf %1008, %990 : vector<16x16xf32>
    %1010 = arith.addf %973, %1009 : vector<16x16xf32>
    %c187 = arith.constant 187 : index
    %1011 = memref.load %arg3[%c187] : memref<288xf32, #tpu.memory_space<smem>>
    %1012 = vector.broadcast %1011 : f32 to vector<16x16xf32>
    %1013 = arith.mulf %1012, %990 : vector<16x16xf32>
    %1014 = arith.addf %977, %1013 : vector<16x16xf32>
    %c223 = arith.constant 223 : index
    %1015 = memref.load %arg3[%c223] : memref<288xf32, #tpu.memory_space<smem>>
    %1016 = vector.broadcast %1015 : f32 to vector<16x16xf32>
    %1017 = arith.mulf %1016, %990 : vector<16x16xf32>
    %1018 = arith.addf %981, %1017 : vector<16x16xf32>
    %c259 = arith.constant 259 : index
    %1019 = memref.load %arg3[%c259] : memref<288xf32, #tpu.memory_space<smem>>
    %1020 = vector.broadcast %1019 : f32 to vector<16x16xf32>
    %1021 = arith.mulf %1020, %990 : vector<16x16xf32>
    %1022 = arith.addf %985, %1021 : vector<16x16xf32>
    %1023 = vector.extract_strided_slice %988 {offsets = [1, 0, 0], sizes = [1, 16, 16], strides = [1, 1, 1]} : vector<4x16x16xf32> to vector<1x16x16xf32>
    %1024 = vector.shape_cast %1023 : vector<1x16x16xf32> to vector<16x16xf32>
    %c16 = arith.constant 16 : index
    %1025 = memref.load %arg3[%c16] : memref<288xf32, #tpu.memory_space<smem>>
    %1026 = vector.broadcast %1025 : f32 to vector<16x16xf32>
    %1027 = arith.mulf %1026, %1024 : vector<16x16xf32>
    %1028 = arith.addf %994, %1027 : vector<16x16xf32>
    %c52 = arith.constant 52 : index
    %1029 = memref.load %arg3[%c52] : memref<288xf32, #tpu.memory_space<smem>>
    %1030 = vector.broadcast %1029 : f32 to vector<16x16xf32>
    %1031 = arith.mulf %1030, %1024 : vector<16x16xf32>
    %1032 = arith.addf %998, %1031 : vector<16x16xf32>
    %c88 = arith.constant 88 : index
    %1033 = memref.load %arg3[%c88] : memref<288xf32, #tpu.memory_space<smem>>
    %1034 = vector.broadcast %1033 : f32 to vector<16x16xf32>
    %1035 = arith.mulf %1034, %1024 : vector<16x16xf32>
    %1036 = arith.addf %1002, %1035 : vector<16x16xf32>
    %c124 = arith.constant 124 : index
    %1037 = memref.load %arg3[%c124] : memref<288xf32, #tpu.memory_space<smem>>
    %1038 = vector.broadcast %1037 : f32 to vector<16x16xf32>
    %1039 = arith.mulf %1038, %1024 : vector<16x16xf32>
    %1040 = arith.addf %1006, %1039 : vector<16x16xf32>
    %c160 = arith.constant 160 : index
    %1041 = memref.load %arg3[%c160] : memref<288xf32, #tpu.memory_space<smem>>
    %1042 = vector.broadcast %1041 : f32 to vector<16x16xf32>
    %1043 = arith.mulf %1042, %1024 : vector<16x16xf32>
    %1044 = arith.addf %1010, %1043 : vector<16x16xf32>
    %c196 = arith.constant 196 : index
    %1045 = memref.load %arg3[%c196] : memref<288xf32, #tpu.memory_space<smem>>
    %1046 = vector.broadcast %1045 : f32 to vector<16x16xf32>
    %1047 = arith.mulf %1046, %1024 : vector<16x16xf32>
    %1048 = arith.addf %1014, %1047 : vector<16x16xf32>
    %c232 = arith.constant 232 : index
    %1049 = memref.load %arg3[%c232] : memref<288xf32, #tpu.memory_space<smem>>
    %1050 = vector.broadcast %1049 : f32 to vector<16x16xf32>
    %1051 = arith.mulf %1050, %1024 : vector<16x16xf32>
    %1052 = arith.addf %1018, %1051 : vector<16x16xf32>
    %c268 = arith.constant 268 : index
    %1053 = memref.load %arg3[%c268] : memref<288xf32, #tpu.memory_space<smem>>
    %1054 = vector.broadcast %1053 : f32 to vector<16x16xf32>
    %1055 = arith.mulf %1054, %1024 : vector<16x16xf32>
    %1056 = arith.addf %1022, %1055 : vector<16x16xf32>
    %1057 = vector.extract_strided_slice %988 {offsets = [2, 0, 0], sizes = [1, 16, 16], strides = [1, 1, 1]} : vector<4x16x16xf32> to vector<1x16x16xf32>
    %1058 = vector.shape_cast %1057 : vector<1x16x16xf32> to vector<16x16xf32>
    %c25 = arith.constant 25 : index
    %1059 = memref.load %arg3[%c25] : memref<288xf32, #tpu.memory_space<smem>>
    %1060 = vector.broadcast %1059 : f32 to vector<16x16xf32>
    %1061 = arith.mulf %1060, %1058 : vector<16x16xf32>
    %1062 = arith.addf %1028, %1061 : vector<16x16xf32>
    %c61 = arith.constant 61 : index
    %1063 = memref.load %arg3[%c61] : memref<288xf32, #tpu.memory_space<smem>>
    %1064 = vector.broadcast %1063 : f32 to vector<16x16xf32>
    %1065 = arith.mulf %1064, %1058 : vector<16x16xf32>
    %1066 = arith.addf %1032, %1065 : vector<16x16xf32>
    %c97 = arith.constant 97 : index
    %1067 = memref.load %arg3[%c97] : memref<288xf32, #tpu.memory_space<smem>>
    %1068 = vector.broadcast %1067 : f32 to vector<16x16xf32>
    %1069 = arith.mulf %1068, %1058 : vector<16x16xf32>
    %1070 = arith.addf %1036, %1069 : vector<16x16xf32>
    %c133 = arith.constant 133 : index
    %1071 = memref.load %arg3[%c133] : memref<288xf32, #tpu.memory_space<smem>>
    %1072 = vector.broadcast %1071 : f32 to vector<16x16xf32>
    %1073 = arith.mulf %1072, %1058 : vector<16x16xf32>
    %1074 = arith.addf %1040, %1073 : vector<16x16xf32>
    %c169 = arith.constant 169 : index
    %1075 = memref.load %arg3[%c169] : memref<288xf32, #tpu.memory_space<smem>>
    %1076 = vector.broadcast %1075 : f32 to vector<16x16xf32>
    %1077 = arith.mulf %1076, %1058 : vector<16x16xf32>
    %1078 = arith.addf %1044, %1077 : vector<16x16xf32>
    %c205 = arith.constant 205 : index
    %1079 = memref.load %arg3[%c205] : memref<288xf32, #tpu.memory_space<smem>>
    %1080 = vector.broadcast %1079 : f32 to vector<16x16xf32>
    %1081 = arith.mulf %1080, %1058 : vector<16x16xf32>
    %1082 = arith.addf %1048, %1081 : vector<16x16xf32>
    %c241 = arith.constant 241 : index
    %1083 = memref.load %arg3[%c241] : memref<288xf32, #tpu.memory_space<smem>>
    %1084 = vector.broadcast %1083 : f32 to vector<16x16xf32>
    %1085 = arith.mulf %1084, %1058 : vector<16x16xf32>
    %1086 = arith.addf %1052, %1085 : vector<16x16xf32>
    %c277 = arith.constant 277 : index
    %1087 = memref.load %arg3[%c277] : memref<288xf32, #tpu.memory_space<smem>>
    %1088 = vector.broadcast %1087 : f32 to vector<16x16xf32>
    %1089 = arith.mulf %1088, %1058 : vector<16x16xf32>
    %1090 = arith.addf %1056, %1089 : vector<16x16xf32>
    %1091 = vector.extract_strided_slice %988 {offsets = [3, 0, 0], sizes = [1, 16, 16], strides = [1, 1, 1]} : vector<4x16x16xf32> to vector<1x16x16xf32>
    %1092 = vector.shape_cast %1091 : vector<1x16x16xf32> to vector<16x16xf32>
    %c34 = arith.constant 34 : index
    %1093 = memref.load %arg3[%c34] : memref<288xf32, #tpu.memory_space<smem>>
    %1094 = vector.broadcast %1093 : f32 to vector<16x16xf32>
    %1095 = arith.mulf %1094, %1092 : vector<16x16xf32>
    %1096 = arith.addf %1062, %1095 : vector<16x16xf32>
    %c70 = arith.constant 70 : index
    %1097 = memref.load %arg3[%c70] : memref<288xf32, #tpu.memory_space<smem>>
    %1098 = vector.broadcast %1097 : f32 to vector<16x16xf32>
    %1099 = arith.mulf %1098, %1092 : vector<16x16xf32>
    %1100 = arith.addf %1066, %1099 : vector<16x16xf32>
    %c106 = arith.constant 106 : index
    %1101 = memref.load %arg3[%c106] : memref<288xf32, #tpu.memory_space<smem>>
    %1102 = vector.broadcast %1101 : f32 to vector<16x16xf32>
    %1103 = arith.mulf %1102, %1092 : vector<16x16xf32>
    %1104 = arith.addf %1070, %1103 : vector<16x16xf32>
    %c142 = arith.constant 142 : index
    %1105 = memref.load %arg3[%c142] : memref<288xf32, #tpu.memory_space<smem>>
    %1106 = vector.broadcast %1105 : f32 to vector<16x16xf32>
    %1107 = arith.mulf %1106, %1092 : vector<16x16xf32>
    %1108 = arith.addf %1074, %1107 : vector<16x16xf32>
    %c178 = arith.constant 178 : index
    %1109 = memref.load %arg3[%c178] : memref<288xf32, #tpu.memory_space<smem>>
    %1110 = vector.broadcast %1109 : f32 to vector<16x16xf32>
    %1111 = arith.mulf %1110, %1092 : vector<16x16xf32>
    %1112 = arith.addf %1078, %1111 : vector<16x16xf32>
    %c214 = arith.constant 214 : index
    %1113 = memref.load %arg3[%c214] : memref<288xf32, #tpu.memory_space<smem>>
    %1114 = vector.broadcast %1113 : f32 to vector<16x16xf32>
    %1115 = arith.mulf %1114, %1092 : vector<16x16xf32>
    %1116 = arith.addf %1082, %1115 : vector<16x16xf32>
    %c250 = arith.constant 250 : index
    %1117 = memref.load %arg3[%c250] : memref<288xf32, #tpu.memory_space<smem>>
    %1118 = vector.broadcast %1117 : f32 to vector<16x16xf32>
    %1119 = arith.mulf %1118, %1092 : vector<16x16xf32>
    %1120 = arith.addf %1086, %1119 : vector<16x16xf32>
    %c286 = arith.constant 286 : index
    %1121 = memref.load %arg3[%c286] : memref<288xf32, #tpu.memory_space<smem>>
    %1122 = vector.broadcast %1121 : f32 to vector<16x16xf32>
    %1123 = arith.mulf %1122, %1092 : vector<16x16xf32>
    %1124 = arith.addf %1090, %1123 : vector<16x16xf32>
    %c2_i32_30 = arith.constant 2 : i32
    %1125 = arith.addi %4, %c2_i32_30 : i32
    %c0_31 = arith.constant 0 : index
    %1126 = arith.index_cast %1125 : i32 to index
    %c2_32 = arith.constant 2 : index
    %1127 = vector.load %arg6[%c0_31, %1126, %c2_32] : memref<4x18x18xf32, #tpu.memory_space<vmem>>, vector<4x16x16xf32>
    %1128 = vector.extract_strided_slice %1127 {offsets = [0, 0, 0], sizes = [1, 16, 16], strides = [1, 1, 1]} : vector<4x16x16xf32> to vector<1x16x16xf32>
    %1129 = vector.shape_cast %1128 : vector<1x16x16xf32> to vector<16x16xf32>
    %c8 = arith.constant 8 : index
    %1130 = memref.load %arg3[%c8] : memref<288xf32, #tpu.memory_space<smem>>
    %1131 = vector.broadcast %1130 : f32 to vector<16x16xf32>
    %1132 = arith.mulf %1131, %1129 : vector<16x16xf32>
    %1133 = arith.addf %1096, %1132 : vector<16x16xf32>
    %c44 = arith.constant 44 : index
    %1134 = memref.load %arg3[%c44] : memref<288xf32, #tpu.memory_space<smem>>
    %1135 = vector.broadcast %1134 : f32 to vector<16x16xf32>
    %1136 = arith.mulf %1135, %1129 : vector<16x16xf32>
    %1137 = arith.addf %1100, %1136 : vector<16x16xf32>
    %c80 = arith.constant 80 : index
    %1138 = memref.load %arg3[%c80] : memref<288xf32, #tpu.memory_space<smem>>
    %1139 = vector.broadcast %1138 : f32 to vector<16x16xf32>
    %1140 = arith.mulf %1139, %1129 : vector<16x16xf32>
    %1141 = arith.addf %1104, %1140 : vector<16x16xf32>
    %c116 = arith.constant 116 : index
    %1142 = memref.load %arg3[%c116] : memref<288xf32, #tpu.memory_space<smem>>
    %1143 = vector.broadcast %1142 : f32 to vector<16x16xf32>
    %1144 = arith.mulf %1143, %1129 : vector<16x16xf32>
    %1145 = arith.addf %1108, %1144 : vector<16x16xf32>
    %c152 = arith.constant 152 : index
    %1146 = memref.load %arg3[%c152] : memref<288xf32, #tpu.memory_space<smem>>
    %1147 = vector.broadcast %1146 : f32 to vector<16x16xf32>
    %1148 = arith.mulf %1147, %1129 : vector<16x16xf32>
    %1149 = arith.addf %1112, %1148 : vector<16x16xf32>
    %c188 = arith.constant 188 : index
    %1150 = memref.load %arg3[%c188] : memref<288xf32, #tpu.memory_space<smem>>
    %1151 = vector.broadcast %1150 : f32 to vector<16x16xf32>
    %1152 = arith.mulf %1151, %1129 : vector<16x16xf32>
    %1153 = arith.addf %1116, %1152 : vector<16x16xf32>
    %c224 = arith.constant 224 : index
    %1154 = memref.load %arg3[%c224] : memref<288xf32, #tpu.memory_space<smem>>
    %1155 = vector.broadcast %1154 : f32 to vector<16x16xf32>
    %1156 = arith.mulf %1155, %1129 : vector<16x16xf32>
    %1157 = arith.addf %1120, %1156 : vector<16x16xf32>
    %c260 = arith.constant 260 : index
    %1158 = memref.load %arg3[%c260] : memref<288xf32, #tpu.memory_space<smem>>
    %1159 = vector.broadcast %1158 : f32 to vector<16x16xf32>
    %1160 = arith.mulf %1159, %1129 : vector<16x16xf32>
    %1161 = arith.addf %1124, %1160 : vector<16x16xf32>
    %1162 = vector.extract_strided_slice %1127 {offsets = [1, 0, 0], sizes = [1, 16, 16], strides = [1, 1, 1]} : vector<4x16x16xf32> to vector<1x16x16xf32>
    %1163 = vector.shape_cast %1162 : vector<1x16x16xf32> to vector<16x16xf32>
    %c17 = arith.constant 17 : index
    %1164 = memref.load %arg3[%c17] : memref<288xf32, #tpu.memory_space<smem>>
    %1165 = vector.broadcast %1164 : f32 to vector<16x16xf32>
    %1166 = arith.mulf %1165, %1163 : vector<16x16xf32>
    %1167 = arith.addf %1133, %1166 : vector<16x16xf32>
    %c53 = arith.constant 53 : index
    %1168 = memref.load %arg3[%c53] : memref<288xf32, #tpu.memory_space<smem>>
    %1169 = vector.broadcast %1168 : f32 to vector<16x16xf32>
    %1170 = arith.mulf %1169, %1163 : vector<16x16xf32>
    %1171 = arith.addf %1137, %1170 : vector<16x16xf32>
    %c89 = arith.constant 89 : index
    %1172 = memref.load %arg3[%c89] : memref<288xf32, #tpu.memory_space<smem>>
    %1173 = vector.broadcast %1172 : f32 to vector<16x16xf32>
    %1174 = arith.mulf %1173, %1163 : vector<16x16xf32>
    %1175 = arith.addf %1141, %1174 : vector<16x16xf32>
    %c125 = arith.constant 125 : index
    %1176 = memref.load %arg3[%c125] : memref<288xf32, #tpu.memory_space<smem>>
    %1177 = vector.broadcast %1176 : f32 to vector<16x16xf32>
    %1178 = arith.mulf %1177, %1163 : vector<16x16xf32>
    %1179 = arith.addf %1145, %1178 : vector<16x16xf32>
    %c161 = arith.constant 161 : index
    %1180 = memref.load %arg3[%c161] : memref<288xf32, #tpu.memory_space<smem>>
    %1181 = vector.broadcast %1180 : f32 to vector<16x16xf32>
    %1182 = arith.mulf %1181, %1163 : vector<16x16xf32>
    %1183 = arith.addf %1149, %1182 : vector<16x16xf32>
    %c197 = arith.constant 197 : index
    %1184 = memref.load %arg3[%c197] : memref<288xf32, #tpu.memory_space<smem>>
    %1185 = vector.broadcast %1184 : f32 to vector<16x16xf32>
    %1186 = arith.mulf %1185, %1163 : vector<16x16xf32>
    %1187 = arith.addf %1153, %1186 : vector<16x16xf32>
    %c233 = arith.constant 233 : index
    %1188 = memref.load %arg3[%c233] : memref<288xf32, #tpu.memory_space<smem>>
    %1189 = vector.broadcast %1188 : f32 to vector<16x16xf32>
    %1190 = arith.mulf %1189, %1163 : vector<16x16xf32>
    %1191 = arith.addf %1157, %1190 : vector<16x16xf32>
    %c269 = arith.constant 269 : index
    %1192 = memref.load %arg3[%c269] : memref<288xf32, #tpu.memory_space<smem>>
    %1193 = vector.broadcast %1192 : f32 to vector<16x16xf32>
    %1194 = arith.mulf %1193, %1163 : vector<16x16xf32>
    %1195 = arith.addf %1161, %1194 : vector<16x16xf32>
    %1196 = vector.extract_strided_slice %1127 {offsets = [2, 0, 0], sizes = [1, 16, 16], strides = [1, 1, 1]} : vector<4x16x16xf32> to vector<1x16x16xf32>
    %1197 = vector.shape_cast %1196 : vector<1x16x16xf32> to vector<16x16xf32>
    %c26 = arith.constant 26 : index
    %1198 = memref.load %arg3[%c26] : memref<288xf32, #tpu.memory_space<smem>>
    %1199 = vector.broadcast %1198 : f32 to vector<16x16xf32>
    %1200 = arith.mulf %1199, %1197 : vector<16x16xf32>
    %1201 = arith.addf %1167, %1200 : vector<16x16xf32>
    %c62 = arith.constant 62 : index
    %1202 = memref.load %arg3[%c62] : memref<288xf32, #tpu.memory_space<smem>>
    %1203 = vector.broadcast %1202 : f32 to vector<16x16xf32>
    %1204 = arith.mulf %1203, %1197 : vector<16x16xf32>
    %1205 = arith.addf %1171, %1204 : vector<16x16xf32>
    %c98 = arith.constant 98 : index
    %1206 = memref.load %arg3[%c98] : memref<288xf32, #tpu.memory_space<smem>>
    %1207 = vector.broadcast %1206 : f32 to vector<16x16xf32>
    %1208 = arith.mulf %1207, %1197 : vector<16x16xf32>
    %1209 = arith.addf %1175, %1208 : vector<16x16xf32>
    %c134 = arith.constant 134 : index
    %1210 = memref.load %arg3[%c134] : memref<288xf32, #tpu.memory_space<smem>>
    %1211 = vector.broadcast %1210 : f32 to vector<16x16xf32>
    %1212 = arith.mulf %1211, %1197 : vector<16x16xf32>
    %1213 = arith.addf %1179, %1212 : vector<16x16xf32>
    %c170 = arith.constant 170 : index
    %1214 = memref.load %arg3[%c170] : memref<288xf32, #tpu.memory_space<smem>>
    %1215 = vector.broadcast %1214 : f32 to vector<16x16xf32>
    %1216 = arith.mulf %1215, %1197 : vector<16x16xf32>
    %1217 = arith.addf %1183, %1216 : vector<16x16xf32>
    %c206 = arith.constant 206 : index
    %1218 = memref.load %arg3[%c206] : memref<288xf32, #tpu.memory_space<smem>>
    %1219 = vector.broadcast %1218 : f32 to vector<16x16xf32>
    %1220 = arith.mulf %1219, %1197 : vector<16x16xf32>
    %1221 = arith.addf %1187, %1220 : vector<16x16xf32>
    %c242 = arith.constant 242 : index
    %1222 = memref.load %arg3[%c242] : memref<288xf32, #tpu.memory_space<smem>>
    %1223 = vector.broadcast %1222 : f32 to vector<16x16xf32>
    %1224 = arith.mulf %1223, %1197 : vector<16x16xf32>
    %1225 = arith.addf %1191, %1224 : vector<16x16xf32>
    %c278 = arith.constant 278 : index
    %1226 = memref.load %arg3[%c278] : memref<288xf32, #tpu.memory_space<smem>>
    %1227 = vector.broadcast %1226 : f32 to vector<16x16xf32>
    %1228 = arith.mulf %1227, %1197 : vector<16x16xf32>
    %1229 = arith.addf %1195, %1228 : vector<16x16xf32>
    %1230 = vector.extract_strided_slice %1127 {offsets = [3, 0, 0], sizes = [1, 16, 16], strides = [1, 1, 1]} : vector<4x16x16xf32> to vector<1x16x16xf32>
    %1231 = vector.shape_cast %1230 : vector<1x16x16xf32> to vector<16x16xf32>
    %c35 = arith.constant 35 : index
    %1232 = memref.load %arg3[%c35] : memref<288xf32, #tpu.memory_space<smem>>
    %1233 = vector.broadcast %1232 : f32 to vector<16x16xf32>
    %1234 = arith.mulf %1233, %1231 : vector<16x16xf32>
    %1235 = arith.addf %1201, %1234 : vector<16x16xf32>
    %c71 = arith.constant 71 : index
    %1236 = memref.load %arg3[%c71] : memref<288xf32, #tpu.memory_space<smem>>
    %1237 = vector.broadcast %1236 : f32 to vector<16x16xf32>
    %1238 = arith.mulf %1237, %1231 : vector<16x16xf32>
    %1239 = arith.addf %1205, %1238 : vector<16x16xf32>
    %c107 = arith.constant 107 : index
    %1240 = memref.load %arg3[%c107] : memref<288xf32, #tpu.memory_space<smem>>
    %1241 = vector.broadcast %1240 : f32 to vector<16x16xf32>
    %1242 = arith.mulf %1241, %1231 : vector<16x16xf32>
    %1243 = arith.addf %1209, %1242 : vector<16x16xf32>
    %c143 = arith.constant 143 : index
    %1244 = memref.load %arg3[%c143] : memref<288xf32, #tpu.memory_space<smem>>
    %1245 = vector.broadcast %1244 : f32 to vector<16x16xf32>
    %1246 = arith.mulf %1245, %1231 : vector<16x16xf32>
    %1247 = arith.addf %1213, %1246 : vector<16x16xf32>
    %c179 = arith.constant 179 : index
    %1248 = memref.load %arg3[%c179] : memref<288xf32, #tpu.memory_space<smem>>
    %1249 = vector.broadcast %1248 : f32 to vector<16x16xf32>
    %1250 = arith.mulf %1249, %1231 : vector<16x16xf32>
    %1251 = arith.addf %1217, %1250 : vector<16x16xf32>
    %c215 = arith.constant 215 : index
    %1252 = memref.load %arg3[%c215] : memref<288xf32, #tpu.memory_space<smem>>
    %1253 = vector.broadcast %1252 : f32 to vector<16x16xf32>
    %1254 = arith.mulf %1253, %1231 : vector<16x16xf32>
    %1255 = arith.addf %1221, %1254 : vector<16x16xf32>
    %c251 = arith.constant 251 : index
    %1256 = memref.load %arg3[%c251] : memref<288xf32, #tpu.memory_space<smem>>
    %1257 = vector.broadcast %1256 : f32 to vector<16x16xf32>
    %1258 = arith.mulf %1257, %1231 : vector<16x16xf32>
    %1259 = arith.addf %1225, %1258 : vector<16x16xf32>
    %c287 = arith.constant 287 : index
    %1260 = memref.load %arg3[%c287] : memref<288xf32, #tpu.memory_space<smem>>
    %1261 = vector.broadcast %1260 : f32 to vector<16x16xf32>
    %1262 = arith.mulf %1261, %1231 : vector<16x16xf32>
    %1263 = arith.addf %1229, %1262 : vector<16x16xf32>
    %c0_33 = arith.constant 0 : index
    %1264 = memref.load %arg4[%c0_33] : memref<8xf32, #tpu.memory_space<smem>>
    %1265 = vector.broadcast %1264 : f32 to vector<16x16xf32>
    %1266 = arith.addf %1235, %1265 : vector<16x16xf32>
    %c0_34 = arith.constant 0 : index
    %c0_35 = arith.constant 0 : index
    %c0_36 = arith.constant 0 : index
    %c0_37 = arith.constant 0 : index
    %1267 = vector.load %arg5[%c0_34, %c0_35, %c0_36, %c0_37] : memref<1x8x16x16xf32, #tpu.memory_space<vmem>>, vector<1x1x16x16xf32>
    %1268 = vector.shape_cast %1267 : vector<1x1x16x16xf32> to vector<16x16xf32>
    %1269 = vector.shape_cast %1266 : vector<16x16xf32> to vector<1x1x16x16xf32>
    tpu.vector_store %arg5[%c0_34, %c0_35, %c0_36, %c0_37], %1269 {strides = array<i32>} : memref<1x8x16x16xf32, #tpu.memory_space<vmem>>, vector<1x1x16x16xf32>,
    %c1_38 = arith.constant 1 : index
    %1270 = memref.load %arg4[%c1_38] : memref<8xf32, #tpu.memory_space<smem>>
    %1271 = vector.broadcast %1270 : f32 to vector<16x16xf32>
    %1272 = arith.addf %1239, %1271 : vector<16x16xf32>
    %c0_39 = arith.constant 0 : index
    %c1_40 = arith.constant 1 : index
    %c0_41 = arith.constant 0 : index
    %c0_42 = arith.constant 0 : index
    %1273 = vector.load %arg5[%c0_39, %c1_40, %c0_41, %c0_42] : memref<1x8x16x16xf32, #tpu.memory_space<vmem>>, vector<1x1x16x16xf32>
    %1274 = vector.shape_cast %1273 : vector<1x1x16x16xf32> to vector<16x16xf32>
    %1275 = vector.shape_cast %1272 : vector<16x16xf32> to vector<1x1x16x16xf32>
    tpu.vector_store %arg5[%c0_39, %c1_40, %c0_41, %c0_42], %1275 {strides = array<i32>} : memref<1x8x16x16xf32, #tpu.memory_space<vmem>>, vector<1x1x16x16xf32>,
    %c2_43 = arith.constant 2 : index
    %1276 = memref.load %arg4[%c2_43] : memref<8xf32, #tpu.memory_space<smem>>
    %1277 = vector.broadcast %1276 : f32 to vector<16x16xf32>
    %1278 = arith.addf %1243, %1277 : vector<16x16xf32>
    %c0_44 = arith.constant 0 : index
    %c2_45 = arith.constant 2 : index
    %c0_46 = arith.constant 0 : index
    %c0_47 = arith.constant 0 : index
    %1279 = vector.load %arg5[%c0_44, %c2_45, %c0_46, %c0_47] : memref<1x8x16x16xf32, #tpu.memory_space<vmem>>, vector<1x1x16x16xf32>
    %1280 = vector.shape_cast %1279 : vector<1x1x16x16xf32> to vector<16x16xf32>
    %1281 = vector.shape_cast %1278 : vector<16x16xf32> to vector<1x1x16x16xf32>
    tpu.vector_store %arg5[%c0_44, %c2_45, %c0_46, %c0_47], %1281 {strides = array<i32>} : memref<1x8x16x16xf32, #tpu.memory_space<vmem>>, vector<1x1x16x16xf32>,
    %c3_48 = arith.constant 3 : index
    %1282 = memref.load %arg4[%c3_48] : memref<8xf32, #tpu.memory_space<smem>>
    %1283 = vector.broadcast %1282 : f32 to vector<16x16xf32>
    %1284 = arith.addf %1247, %1283 : vector<16x16xf32>
    %c0_49 = arith.constant 0 : index
    %c3_50 = arith.constant 3 : index
    %c0_51 = arith.constant 0 : index
    %c0_52 = arith.constant 0 : index
    %1285 = vector.load %arg5[%c0_49, %c3_50, %c0_51, %c0_52] : memref<1x8x16x16xf32, #tpu.memory_space<vmem>>, vector<1x1x16x16xf32>
    %1286 = vector.shape_cast %1285 : vector<1x1x16x16xf32> to vector<16x16xf32>
    %1287 = vector.shape_cast %1284 : vector<16x16xf32> to vector<1x1x16x16xf32>
    tpu.vector_store %arg5[%c0_49, %c3_50, %c0_51, %c0_52], %1287 {strides = array<i32>} : memref<1x8x16x16xf32, #tpu.memory_space<vmem>>, vector<1x1x16x16xf32>,
    %c4_53 = arith.constant 4 : index
    %1288 = memref.load %arg4[%c4_53] : memref<8xf32, #tpu.memory_space<smem>>
    %1289 = vector.broadcast %1288 : f32 to vector<16x16xf32>
    %1290 = arith.addf %1251, %1289 : vector<16x16xf32>
    %c0_54 = arith.constant 0 : index
    %c4_55 = arith.constant 4 : index
    %c0_56 = arith.constant 0 : index
    %c0_57 = arith.constant 0 : index
    %1291 = vector.load %arg5[%c0_54, %c4_55, %c0_56, %c0_57] : memref<1x8x16x16xf32, #tpu.memory_space<vmem>>, vector<1x1x16x16xf32>
    %1292 = vector.shape_cast %1291 : vector<1x1x16x16xf32> to vector<16x16xf32>
    %1293 = vector.shape_cast %1290 : vector<16x16xf32> to vector<1x1x16x16xf32>
    tpu.vector_store %arg5[%c0_54, %c4_55, %c0_56, %c0_57], %1293 {strides = array<i32>} : memref<1x8x16x16xf32, #tpu.memory_space<vmem>>, vector<1x1x16x16xf32>,
    %c5_58 = arith.constant 5 : index
    %1294 = memref.load %arg4[%c5_58] : memref<8xf32, #tpu.memory_space<smem>>
    %1295 = vector.broadcast %1294 : f32 to vector<16x16xf32>
    %1296 = arith.addf %1255, %1295 : vector<16x16xf32>
    %c0_59 = arith.constant 0 : index
    %c5_60 = arith.constant 5 : index
    %c0_61 = arith.constant 0 : index
    %c0_62 = arith.constant 0 : index
    %1297 = vector.load %arg5[%c0_59, %c5_60, %c0_61, %c0_62] : memref<1x8x16x16xf32, #tpu.memory_space<vmem>>, vector<1x1x16x16xf32>
    %1298 = vector.shape_cast %1297 : vector<1x1x16x16xf32> to vector<16x16xf32>
    %1299 = vector.shape_cast %1296 : vector<16x16xf32> to vector<1x1x16x16xf32>
    tpu.vector_store %arg5[%c0_59, %c5_60, %c0_61, %c0_62], %1299 {strides = array<i32>} : memref<1x8x16x16xf32, #tpu.memory_space<vmem>>, vector<1x1x16x16xf32>,
    %c6_63 = arith.constant 6 : index
    %1300 = memref.load %arg4[%c6_63] : memref<8xf32, #tpu.memory_space<smem>>
    %1301 = vector.broadcast %1300 : f32 to vector<16x16xf32>
    %1302 = arith.addf %1259, %1301 : vector<16x16xf32>
    %c0_64 = arith.constant 0 : index
    %c6_65 = arith.constant 6 : index
    %c0_66 = arith.constant 0 : index
    %c0_67 = arith.constant 0 : index
    %1303 = vector.load %arg5[%c0_64, %c6_65, %c0_66, %c0_67] : memref<1x8x16x16xf32, #tpu.memory_space<vmem>>, vector<1x1x16x16xf32>
    %1304 = vector.shape_cast %1303 : vector<1x1x16x16xf32> to vector<16x16xf32>
    %1305 = vector.shape_cast %1302 : vector<16x16xf32> to vector<1x1x16x16xf32>
    tpu.vector_store %arg5[%c0_64, %c6_65, %c0_66, %c0_67], %1305 {strides = array<i32>} : memref<1x8x16x16xf32, #tpu.memory_space<vmem>>, vector<1x1x16x16xf32>,
    %c7_68 = arith.constant 7 : index
    %1306 = memref.load %arg4[%c7_68] : memref<8xf32, #tpu.memory_space<smem>>
    %1307 = vector.broadcast %1306 : f32 to vector<16x16xf32>
    %1308 = arith.addf %1263, %1307 : vector<16x16xf32>
    %c0_69 = arith.constant 0 : index
    %c7_70 = arith.constant 7 : index
    %c0_71 = arith.constant 0 : index
    %c0_72 = arith.constant 0 : index
    %1309 = vector.load %arg5[%c0_69, %c7_70, %c0_71, %c0_72] : memref<1x8x16x16xf32, #tpu.memory_space<vmem>>, vector<1x1x16x16xf32>
    %1310 = vector.shape_cast %1309 : vector<1x1x16x16xf32> to vector<16x16xf32>
    %1311 = vector.shape_cast %1308 : vector<16x16xf32> to vector<1x1x16x16xf32>
    tpu.vector_store %arg5[%c0_69, %c7_70, %c0_71, %c0_72], %1311 {strides = array<i32>} : memref<1x8x16x16xf32, #tpu.memory_space<vmem>>, vector<1x1x16x16xf32>,
    return
  }
  func.func @transform_0(%arg0: i32, %arg1: i32) -> (i32, i32, i32, i32) {
    %c0_i32 = arith.constant 0 : i32
    %c0_i32_0 = arith.constant 0 : i32
    %c0_i32_1 = arith.constant 0 : i32
    %c0_i32_2 = arith.constant 0 : i32
    return %arg0, %c0_i32, %c0_i32_0, %c0_i32_1 : i32, i32, i32, i32
  }
  func.func @transform_1(%arg0: i32, %arg1: i32) -> i32 {
    %c0_i32 = arith.constant 0 : i32
    %c0_i32_0 = arith.constant 0 : i32
    return %c0_i32 : i32
  }
  func.func @transform_2(%arg0: i32, %arg1: i32) -> i32 {
    %c0_i32 = arith.constant 0 : i32
    %c0_i32_0 = arith.constant 0 : i32
    return %c0_i32 : i32
  }
  func.func @transform_3(%arg0: i32, %arg1: i32) -> (i32, i32, i32, i32) {
    %c0_i32 = arith.constant 0 : i32
    %c0_i32_0 = arith.constant 0 : i32
    %c0_i32_1 = arith.constant 0 : i32
    return %arg0, %c0_i32, %arg1, %c0_i32_0 : i32, i32, i32, i32
  }
}

</mosaic_0001>

<bundles_post_ra>
// kernel: tpu_custom_call.1
= control target key start
LH: loop header
LB: loop body
LE: loop exit
PB: predicated region body
PF: predicated region fallthrough
CT: control target
= control target key end

     0   :  { %s7766_s0 = inlined_call_operand.hbm [shape: f32[2,4,16,16], index: 0, kind: input, shape index: {}]   ;;  %s7767_s1 = inlined_call_operand.hbm [shape: f32[288], index: 1, kind: input, shape index: {}]   ;;  %s7768_s2 = inlined_call_operand.vmem [shape: f32[8], index: 2, kind: input, shape index: {}]   ;;  %s7769_s3 = inlined_call_operand.hbm [shape: f32[2,8,16,16], index: 3, kind: output, shape index: {}]  }
   0x1   :  { %7802 = sst [smem:[#allocation122_spill]] %s7766_s0 }
   0x2   :  { %7803 = sst [smem:[#allocation123_spill]] %s7767_s1 }
   0x3   :  { %7804 = sst [smem:[#allocation124_spill]] %s7768_s2 }
   0x4   :  { %8 = vsyncpa [#allocation4], 0 }
   0x5   :  { %10 = vsyncpa [#allocation4 + $0x1], 0 }
   0x6   :  { %11 = vsyncpa [#allocation6], 0 }
   0x7   :  { %12 = vsyncpa [#allocation7], 0 }
   0x8   :  { %13 = vsyncpa [#allocation5], 0 }
   0x9   :  { %15 = vsyncpa [#allocation5 + $0x1], 0  ;;  %s4442_s12 = smov 0   ;;  %s4444_s13 = smov 0  }
   0xa   :  { %s4446_s14 = smov 0   ;;  %s4448_s15 = smov 0  }
   0xb   :  { %s4450_s16 = smov 0   ;;  %s4452_s17 = smov 0  }
   0xc LB: > { %s3807_s18 = sadd.s32 4294967295, %s4410_s17   ;;  %s3808_s19 = sadd.s32 4294967294, %s4410_s17   ;;  %s4410_s17 = sphi %s4452_s17, %s21_s17   ;;  %s4406_s16 = sphi %s4450_s16, %s8257_s16   ;;  %s4402_s15 = sphi %s4448_s15, %s8256_s15   ;;  %s4398_s14 = sphi %s4446_s14, %s8255_s14   ;;  %s4394_s13 = sphi %s4444_s13, %s8254_s13   ;;  %s4390_s12 = sphi %s4442_s12, %s8253_s12  }
   0xd   : > { %s40_s20 = sadd.s32 1, %s4398_s14  ;;  %p47_p0 = scmp.ne.s32.totalorder %s4398_s14, %s4394_s13 }
   0xe   : > { %p48_p1 = scmp.eq.s32.totalorder %s4410_s17, 0  ;;  %p53_p2 = scmp.ne.s32.totalorder %s4394_s13, %s4390_s12 }
   0xf   : > { %p4480_p3 = scmp.eq.s32.totalorder %s3807_s18, 0  ;;  %p121_p4 = scmp.eq.s32.totalorder %s3807_s18, 1 }
  0x10   : > { %p4484_p5 = por %p48_p1, %p47_p0  ;;  %p127_p6 = scmp.eq.s32.totalorder %s3808_s19, 1 }
  0x11   : > { %p4490_p7 = por %p4480_p3, %p53_p2  ;;  %p4494_p8 = por %p121_p4, %p47_p0 }
  0x12   : > { %p4498_p9 = por %p127_p6, %p53_p2  ;;  %p3809_p10 = scmp.ge.s32.totalorder %s4410_s17, 1 }
  0x13   : > { %p134_p11 = scmp.lt.s32.totalorder %s4410_s17, 3  ;;  %s7810_s1 = sld [smem:[#allocation123_spill]] }
  0x14   : > { %p3812_p13 = scmp.ge.s32.totalorder %s4410_s17, 2  ;;  %p4181_p0 = scmp.lt.s32.totalorder %s4410_s17, 2 }
  0x15   : > { %p4507_p12 = pnand %p3809_p10, %p134_p11  ;;  %s7812_s2 = sld [smem:[#allocation124_spill]] }
  0x16   : > { %p4520_p2 = pnand %p4181_p0, %p4484_p5  ;;  %s4412_s7 = smov [#allocation8]  }
  0x17   : > { %p4164_p1 = pneg %p4507_p12  ;;  %s4413_s8 = smov [#allocation9]  }
  0x18   : > { %s33_s9 = sadd.s32 1, %s4406_s16  ;;  %s167_s10 = sand.u32 1, %s4398_s14  }
  0x19   : > { %s146_s28 = sshll.u32 %s7810_s1, 4  ;;  %p4165_p4 = pnand %p4164_p1, %p4480_p3  ;;  %s147_s28 = int_to_ptr.hbm [resolvable:$true] %s146_s28 }
  0x1a   : > { %p35_p6 = scmp.ge.s32.totalorder %s33_s9, 2  ;;  %s3813_s11 = sshll.u32 %s167_s10, 6 }
  0x1b   : > { %s156_s5 = sshll.u32 %s7812_s2, 4  ;;  %s4150_s18 = sshll.u32 %s4406_s16, 6  ;;  %s157_s5 = int_to_ptr.vmem [resolvable:$true] %s156_s5 }
  0x1c   : > { %4167 = dma.hbm_to_smem (!%p4165_p4), %s147_s28, 48, %s4412_s7, [#allocation6]  }
  0x1d   : > { %4170 = dma.vmem_to_smem (!%p4165_p4), %s157_s5, 16, %s4413_s8, [#allocation7]  }
  0x1e   : > { %s8259_s9 = smov (%p35_p6, %s33_s9), 0  ;;  %s7814_s0 = sld [smem:[#allocation122_spill]] }
  0x1f   : > { %s37_s27 = ssub.s32 %s4406_s16, %s8259_s9  ;;  %s171_s28 = scalar_lea.vmem [#allocation3], %s3813_s11 }
  0x20   : > { %p38_p5 = scmp.eq.s32.totalorder %s37_s27, 0  ;;  %s179_s4 = sshll.u32 %s171_s28, 4  ;;  %s180_s4 = int_to_ptr.vmem [resolvable:$true] %s179_s4 }
  0x21   : > { %s168_s7 = scalar_lea.sflag [#allocation4], %s167_s10  ;;  %s4414_s8 = smov 128  }
  0x22   : > { %s4539_s5 = scalar_select %p38_p5, %s4398_s14, %s40_s20  }
  0x23   : > { %s4415_s1 = smov 8   ;;  %191 = sbr.rel (%p4507_p12) target bundleno = 1326 (0x52e), region = 32 }
  0x24   : > { %s176_s26 = scalar_lea.hbm %s7814_s0, %s4150_s18 }
  0x25   : > { %s177_s30 = sshll.u32 %s176_s26, 4  ;;  %s178_s30 = int_to_ptr.hbm [resolvable:$true] %s177_s30 }
  0x26   : > { %4174 = dma.hbm_to_vmem [thread:$0]  (!%p4520_p2), %s178_s30, 1024, %s180_s4, %s168_s7, %s4414_s8, %s4414_s8, %s4415_s1  }
  0x28   : > { %s4546_s18 = sand.u32 1, %s4394_s13  }
  0x29   : > { %s3817_s11 = sshll.u32 %s4546_s18, 6  ;;  %s194_s19 = scalar_lea.sflag [#allocation4], %s4546_s18 }
  0x2a   : > { %s197_s22 = scalar_lea.vmem [#allocation3], %s3817_s11 }
  0x2b   : > { %4373 = dma.done.wait (%p4490_p7), %s194_s19, 1024  }
  0x2c   : > { %4375 = vsyncadd (%p4490_p7), %s194_s19, 4294966272 }
  0x2d   : > { %4377 = dma.done.wait (%p4480_p3), [#allocation6], 48  }
  0x2e   : > { %4379 = vsyncadd (%p4480_p3), [#allocation6], 4294967248 }
  0x2f   : > { %4381 = dma.done.wait (%p4480_p3), [#allocation7], 16  }
  0x30   : > { %4383 = vsyncadd (%p4480_p3), [#allocation7], 4294967280 }
  0x31   : > { %213 = sfence }
  0x32   : > { %v276_v0 = vld [vmem:[%s197_s22 + $0x10] sm:$0xff]  ;;  %v274_v1 = vld [vmem:[%s197_s22] sm:$0xff]  ;;  %s4416_s1 = smov 1   ;;  %v277_v3 = vld [vmem:[%s197_s22 + $0x18] sm:$0xff]  ;;  %vm237_vm0 = vcmask 139264   ;;  %v4417_v8 = vmov 0.0  }
  0x33   : > { %294 = vrot.lane.b32.xlu1 %v276_v0, %s4416_s1  ;;  %290 = vrot.lane.b32.xlu0 %v274_v1, %s4416_s1  ;;  %v278_v2 = vld [vmem:[%s197_s22 + $0x20] sm:$0xff]  ;;  %v275_v4 = vld [vmem:[%s197_s22 + $0x8] sm:$0xff]  ;;  %239 = vst.msk [vmem:[#allocation2 + $0x18] sm:$0x1] %vm237_vm0, %v4417_v8  ;;  %vm246_vm1 = vcmask 7168   ;;  %vm260_vm2 = vcmask 146568  }
  0x34   : > { %298 = vrot.lane.b32.xlu2 %v278_v2, %s4416_s1  ;;  %v279_v5 = vld [vmem:[%s197_s22 + $0x28] sm:$0xff]  ;;  %v281_v6 = vld [vmem:[%s197_s22 + $0x38] sm:$0xff]  ;;  %v280_v7 = vld [vmem:[%s197_s22 + $0x30] sm:$0xff]  ;;  %251 = vst.msk [vmem:[#allocation2 + $0x18] sm:$0xff] %vm246_vm1, %v4417_v8  ;;  %vm314_vm3 = vcmask 138248   ;;  %vm249_vm4 = vcmask 1024  }
  0x35   : > { %252 = vst.msk [vmem:[#allocation2 + $0x20] sm:$0xff] %vm246_vm1, %v4417_v8  ;;  %vm263_vm5 = vcmask 140424   ;;  %s4578_s20 = sld [smem:[#allocation8 + $0x25]]  ;;  %s7772_s22 = smov 127   ;;  %vm3621_vm6 = vcmask 130048  }
  0x36   : > { %265 = vst.msk [vmem:[#allocation2 + $0x18] sm:$0xff] %vm260_vm2, %v4417_v8  ;;  %s4581_s21 = sld [smem:[#allocation8 + $0x1]] }
  0x37   : > { %266 = vst.msk [vmem:[#allocation2 + $0x20] sm:$0xff] %vm260_vm2, %v4417_v8  ;;  %s4583_s23 = sld [smem:[#allocation8]] }
  0x38   : > { %238 = vst.msk [vmem:[#allocation2] sm:$0x1] %vm237_vm0, %v4417_v8  ;;  %s4586_s29 = sld [smem:[#allocation8 + $0x9]] }
  0x39   : > { %240 = vst.msk [vmem:[#allocation2 + $0x30] sm:$0x1] %vm237_vm0, %v4417_v8  ;;  %s4588_s6 = sld [smem:[#allocation8 + $0x24]] }
  0x3a   : > { %241 = vst.msk [vmem:[#allocation2 + $0x48] sm:$0x1] %vm237_vm0, %v4417_v8  ;;  %s4590_s10 = sld [smem:[#allocation8 + $0x2d]] }
  0x3b   : > { %296 = vrot.lane.b32.xlu1 %v277_v3, %s4416_s1  ;;  %292 = vrot.lane.b32.xlu0 %v275_v4, %s4416_s1  ;;  %242 = vst.msk [vmem:[#allocation2 + $0x11] sm:$0x1] %vm237_vm0, %v4417_v8  ;;  %s4592_s26 = sld [smem:[#allocation8 + $0x6c]]  ;;  %v540_v13 = vstv %s4578_s20 }
  0x3c   : > { %300 = vrot.lane.b32.xlu2 %v279_v5, %s4416_s1  ;;  %243 = vst.msk [vmem:[#allocation2 + $0x29] sm:$0x1] %vm237_vm0, %v4417_v8  ;;  %s4595_s27 = sld [smem:[#allocation8 + $0x75]]  ;;  %v526_v15 = vstv %s4581_s21 }
  0x3d   : > { %244 = vst.msk [vmem:[#allocation2 + $0x41] sm:$0x1] %vm237_vm0, %v4417_v8  ;;  %s4598_s30 = sld [smem:[#allocation8 + $0x99]]  ;;  %v334_v16 = vstv %s4583_s23 }
  0x3e   : > { %245 = vst.msk [vmem:[#allocation2 + $0x59] sm:$0x1] %vm237_vm0, %v4417_v8  ;;  %s4601_s28 = sld [smem:[#allocation8 + $0x48]]  ;;  %v382_v14 = vstv %s4586_s29 }
  0x3f   : > { %248 = vst.msk [vmem:[#allocation2 + $0x8] sm:$0xff] %vm246_vm1, %v4417_v8  ;;  %s4604_s4 = sld [smem:[#allocation8 + $0x51]]  ;;  %v340_v22 = vstv %s4588_s6 }
  0x40   : > { %255 = vst.msk [vmem:[#allocation2 + $0x38] sm:$0xff] %vm246_vm1, %v4417_v8  ;;  %s4606_s7 = sld [smem:[#allocation8 + $0xe1]]  ;;  %v388_v17 = vstv %s4590_s10 }
  0x41   : > { %258 = vst.msk [vmem:[#allocation2 + $0x50] sm:$0xff] %vm246_vm1, %v4417_v8  ;;  %s4609_s8 = sld [smem:[#allocation8 + $0xd8]]  ;;  %v352_v23 = vstv %s4592_s26 }
  0x42   : > { %247 = vst.msk [vmem:[#allocation2] sm:$0xff] %vm246_vm1, %v4417_v8  ;;  %s4612_s11 = sld [smem:[#allocation8 + $0x90]]  ;;  %v400_v18 = vstv %s4595_s27 }
  0x43   : > { %304 = vrot.lane.b32.xlu1 %v281_v6, %s4416_s1  ;;  %302 = vrot.lane.b32.xlu0 %v280_v7, %s4416_s1  ;;  %261 = vst.msk [vmem:[#allocation2] sm:$0xff] %vm260_vm2, %v4417_v8  ;;  %v406_v24 = vstv %s4598_s30  ;;  %s4629_s19 = sld [smem:[#allocation8 + $0x49]] }
  0x44   : > { %262 = vst.msk [vmem:[#allocation2 + $0x8] sm:$0xff] %vm260_vm2, %v4417_v8  ;;  %v346_v28 = vstv %s4601_s28  ;;  %s4672_s1 = sld [smem:[#allocation8 + $0x91]] }
  0x45   : > { %254 = vst.msk [vmem:[#allocation2 + $0x30] sm:$0xff] %vm246_vm1, %v4417_v8  ;;  %v394_v29 = vstv %s4604_s4  ;;  %s4678_s20 = sld [smem:[#allocation8 + $0x6d]] }
  0x46   : > { %257 = vst.msk [vmem:[#allocation2 + $0x48] sm:$0xff] %vm246_vm1, %v4417_v8  ;;  %v418_v25 = vstv %s4606_s7  ;;  %s4695_s21 = sld [smem:[#allocation8 + $0xb5]] }
  0x47   : > { %269 = vst.msk [vmem:[#allocation2 + $0x38] sm:$0xff] %vm260_vm2, %v4417_v8  ;;  %v370_v30 = vstv %s4609_s8  ;;  %s4698_s6 = sld [smem:[#allocation8 + $0xfc]] }
  0x48   : > { %272 = vst.msk [vmem:[#allocation2 + $0x50] sm:$0xff] %vm260_vm2, %v4417_v8  ;;  %v358_v35 = vstv %s4612_s11  ;;  %s4702_s10 = sld [smem:[#allocation8 + $0x105]] }
  0x49   : > { %268 = vst.msk [vmem:[#allocation2 + $0x30] sm:$0xff] %vm260_vm2, %v4417_v8  ;;  %v554_v54 = vstv %s4629_s19  ;;  %s4705_s30 = sld [smem:[#allocation8 + $0xbd]] }
  0x4a   : > { %271 = vst.msk [vmem:[#allocation2 + $0x48] sm:$0xff] %vm260_vm2, %v4417_v8  ;;  %v582_v59 = vstv %s4672_s1  ;;  %s4716_s4 = sld [smem:[#allocation8 + $0xb4]] }
  0x4b   : > { %253 = vst.msk [vmem:[#allocation2 + $0x28] sm:$0x3] %vm249_vm4, %v4417_v8  ;;  %v568_v60 = vstv %s4678_s20  ;;  %s4731_s29 = sld [smem:[#allocation8 + $0xfd]] }
  0x4c   : > { %267 = vst.msk [vmem:[#allocation2 + $0x28] sm:$0x3] %vm263_vm5, %v4417_v8  ;;  %s4737_s11 = sld [smem:[#allocation8 + $0xd9]] }
  0x4d   : > { %250 = vst.msk [vmem:[#allocation2 + $0x10] sm:$0x3] %vm249_vm4, %v4417_v8  ;;  %s4761_s23 = sld [smem:[#allocation8 + $0xa]] }
  0x4e   : > { %256 = vst.msk [vmem:[#allocation2 + $0x40] sm:$0x3] %vm249_vm4, %v4417_v8  ;;  %s3862_s26 = sld [smem:[#allocation8 + $0x52]] }
  0x4f   : > { %259 = vst.msk [vmem:[#allocation2 + $0x58] sm:$0x3] %vm249_vm4, %v4417_v8  ;;  %s3861_s27 = sld [smem:[#allocation8 + $0x2e]] }
  0x50   : > { %264 = vst.msk [vmem:[#allocation2 + $0x10] sm:$0x3] %vm263_vm5, %v4417_v8  ;;  %s3863_s28 = sld [smem:[#allocation8 + $0x76]] }
  0x51   : > { %270 = vst.msk [vmem:[#allocation2 + $0x40] sm:$0x3] %vm263_vm5, %v4417_v8  ;;  %s3865_s7 = sld [smem:[#allocation8 + $0xbe]] }
  0x52   : > { %273 = vst.msk [vmem:[#allocation2 + $0x58] sm:$0x3] %vm263_vm5, %v4417_v8  ;;  %s3864_s8 = sld [smem:[#allocation8 + $0x9a]] }
  0x53   : > { %s3866_s19 = sld [smem:[#allocation8 + $0xe2]] }
  0x54   : > { %s3868_s1 = sld [smem:[#allocation8 + $0x13]] }
  0x55   : > { %s3867_s20 = sld [smem:[#allocation8 + $0x106]] }
  0x56   : > { %s5464_s0 = sld [smem:[#allocation8 + $0xc1]] }
  0x57   : > { %s5485_s2 = sld [smem:[#allocation8 + $0x109]] }
  0x8e   : > { %v299_v9 = vpop.permute.xlu2 %298 }
  0x8f   : > { %319 = vst.msk [vmem:[#allocation2 + $0x31] sm:$0xff] %vm314_vm3, %v299_v9 }
  0x96   : > { %v301_v10 = vpop.permute.xlu2 %300 }
  0x97   : > { %320 = vst.msk [vmem:[#allocation2 + $0x39] sm:$0xff] %vm314_vm3, %v301_v10 }
  0xa5   : > { %v295_v11 = vpop.permute.xlu1 %294  ;;  %v291_v12 = vpop.permute.xlu0 %290 }
  0xa6   : > { %317 = vst.msk [vmem:[#allocation2 + $0x19] sm:$0xff] %vm314_vm3, %v295_v11 }
  0xa7   : > { %315 = vst.msk [vmem:[#allocation2 + $0x1] sm:$0xff] %vm314_vm3, %v291_v12  ;;  %v596_v12 = vstv %s4695_s21  ;;  %s3869_s21 = sld [smem:[#allocation8 + $0x37]] }
  0xad   : > { %v4620_v19 = vld [vmem:[#allocation2 + $0x18] sm:$0xff]  ;;  %v297_v20 = vpop.permute.xlu1 %296  ;;  %v293_v21 = vpop.permute.xlu0 %292 }
  0xae   : > { %v4626_v26 = vld [vmem:[#allocation2] sm:$0xff]  ;;  %318 = vst.msk [vmem:[#allocation2 + $0x21] sm:$0xff] %vm314_vm3, %v297_v20  ;;  %v383_v27 = vmul.f32 %v382_v14, %v4620_v19  ;;  %v401_v33 = vmul.f32 %v400_v18, %v4620_v19  ;;  %v389_v34 = vmul.f32 %v388_v17, %v4620_v19  ;;  %v419_v36 = vmul.f32 %v418_v25, %v4620_v19 }
  0xaf   : > { %316 = vst.msk [vmem:[#allocation2 + $0x9] sm:$0xff] %vm314_vm3, %v293_v21  ;;  %v541_v31 = vmul.f32 %v540_v13, %v4626_v26  ;;  %v527_v32 = vmul.f32 %v526_v15, %v4626_v26  ;;  %v335_v37 = vmul.f32 %v334_v16, %v4626_v26  ;;  %v353_v38 = vmul.f32 %v352_v23, %v4626_v26 }
  0xb0   : > { %v341_v39 = vmul.f32 %v340_v22, %v4626_v26  ;;  %v371_v40 = vmul.f32 %v370_v30, %v4626_v26  ;;  %v395_v41 = vmul.f32 %v394_v29, %v4620_v19  ;;  %v347_v42 = vmul.f32 %v346_v28, %v4626_v26 }
  0xb1   : > { %545 = vrot.lane.b32.xlu1 %v541_v31, %s7772_s22  ;;  %531 = vrot.lane.b32.xlu2 %v527_v32, %s7772_s22  ;;  %v407_v43 = vmul.f32 %v406_v24, %v4620_v19  ;;  %v4665_v44 = vadd.f32 %v383_v27, %v335_v37  ;;  %v4667_v45 = vadd.f32 %v401_v33, %v353_v38  ;;  %v364_v27 = vstv %s4716_s4  ;;  %s3874_s4 = sld [smem:[#allocation8 + $0xeb]] }
  0xb2   : > { %v4669_v46 = vadd.f32 %v389_v34, %v341_v39  ;;  %v359_v47 = vmul.f32 %v358_v35, %v4626_v26  ;;  %v4674_v48 = vadd.f32 %v419_v36, %v371_v40  ;;  %v4676_v49 = vadd.f32 %v395_v41, %v347_v42 }
  0xb3   : > { %v555_v63 = vmul.f32 %v554_v54, %v4626_v26  ;;  %v583_v0 = vmul.f32 %v582_v59, %v4626_v26  ;;  %v569_v2 = vmul.f32 %v568_v60, %v4626_v26  ;;  %v365_v34 = vmul.f32 %v364_v27, %v4626_v26 }
  0xb4   : > { %v4680_v52 = vadd.f32 %v407_v43, %v359_v47  ;;  %v624_v36 = vstv %s4731_s29  ;;  %v610_v39 = vstv %s4737_s11  ;;  %v597_v43 = vmul.f32 %v596_v12, %v4626_v26  ;;  %s3873_s29 = sld [smem:[#allocation8 + $0xc7]] }
  0xb5   : > { %v305_v50 = vpop.permute.xlu1 %304  ;;  %v303_v51 = vpop.permute.xlu0 %302  ;;  %v4692_v58 = vld [vmem:[#allocation2 + $0x20] sm:$0xff]  ;;  %v625_v47 = vmul.f32 %v624_v36, %v4626_v26  ;;  %s3875_s11 = sld [smem:[#allocation8 + $0x10f]] }
  0xb6   : > { %v4682_v53 = vld [vmem:[#allocation2 + $0x8] sm:$0xff]  ;;  %322 = vst.msk [vmem:[#allocation2 + $0x51] sm:$0xff] %vm314_vm3, %v305_v50  ;;  %v390_v61 = vmul.f32 %v388_v17, %v4692_v58  ;;  %v408_v62 = vmul.f32 %v406_v24, %v4692_v58  ;;  %v384_v4 = vmul.f32 %v382_v14, %v4692_v58  ;;  %v396_v5 = vmul.f32 %v394_v29, %v4692_v58 }
  0xb7   : > { %321 = vst.msk [vmem:[#allocation2 + $0x49] sm:$0xff] %vm314_vm3, %v303_v51  ;;  %v528_v55 = vmul.f32 %v526_v15, %v4682_v53  ;;  %v556_v56 = vmul.f32 %v554_v54, %v4682_v53  ;;  %v542_v57 = vmul.f32 %v540_v13, %v4682_v53  ;;  %v342_v1 = vmul.f32 %v340_v22, %v4682_v53 }
  0xb8   : > { %v360_v3 = vmul.f32 %v358_v35, %v4682_v53  ;;  %v336_v8 = vmul.f32 %v334_v16, %v4682_v53  ;;  %v348_v9 = vmul.f32 %v346_v28, %v4682_v53  ;;  %v376_v13 = vstv %s4698_s6  ;;  %s3871_s6 = sld [smem:[#allocation8 + $0x7f]] }
  0xb9   : > { %533 = vrot.lane.b32.xlu0 %v528_v55, %s7772_s22  ;;  %561 = vrot.lane.b32.xlu1 %v556_v56, %s7772_s22  ;;  %v4720_v6 = vadd.f32 %v390_v61, %v342_v1  ;;  %v424_v14 = vstv %s4702_s10  ;;  %v412_v15 = vstv %s4705_s30  ;;  %v570_v17 = vmul.f32 %v568_v60, %v4682_v53  ;;  %s3870_s10 = sld [smem:[#allocation8 + $0x5b]] }
  0xba   : > { %547 = vrot.lane.b32.xlu2 %v542_v57, %s7772_s22  ;;  %v4723_v7 = vadd.f32 %v408_v62, %v360_v3  ;;  %v4733_v10 = vadd.f32 %v384_v4, %v336_v8  ;;  %v4735_v11 = vadd.f32 %v396_v5, %v348_v9  ;;  %v598_v16 = vmul.f32 %v596_v12, %v4682_v53  ;;  %s3872_s30 = sld [smem:[#allocation8 + $0xa3]] }
  0xbb   : > { %v378_v20 = vmul.f32 %v376_v13, %v4682_v53  ;;  %v426_v21 = vmul.f32 %v424_v14, %v4692_v58  ;;  %v584_v22 = vmul.f32 %v582_v59, %v4682_v53  ;;  %v354_v24 = vmul.f32 %v352_v23, %v4682_v53 }
  0xbc   : > { %v402_v29 = vmul.f32 %v400_v18, %v4692_v58  ;;  %v413_v31 = vmul.f32 %v412_v15, %v4620_v19  ;;  %v366_v23 = vmul.f32 %v364_v27, %v4682_v53  ;;  %v414_v32 = vmul.f32 %v412_v15, %v4692_v58  ;;  %v4831_v27 = vld [vmem:[#allocation2 + $0x38] sm:$0xff] }
  0xbd   : > { %v4754_v28 = vadd.f32 %v426_v21, %v378_v20  ;;  %v425_v35 = vmul.f32 %v424_v14, %v4620_v19  ;;  %v377_v18 = vmul.f32 %v376_v13, %v4626_v26  ;;  %v372_v38 = vmul.f32 %v370_v30, %v4682_v53 }
  0xbe   : > { %v4765_v33 = vadd.f32 %v402_v29, %v354_v24  ;;  %v4770_v37 = vadd.f32 %v414_v32, %v366_v23  ;;  %v4777_v40 = vadd.f32 %v413_v31, %v365_v34  ;;  %v420_v41 = vmul.f32 %v418_v25, %v4692_v58 }
  0xbf   : > { %v4782_v42 = vadd.f32 %v425_v35, %v377_v18  ;;  %v611_v51 = vmul.f32 %v610_v39, %v4626_v26  ;;  %v638_v30 = vstv %s4761_s23  ;;  %v612_v54 = vmul.f32 %v610_v39, %v4682_v53  ;;  %s3877_s23 = sld [smem:[#allocation8 + $0x40]] }
  0xc0   : > { %v4786_v50 = vadd.f32 %v420_v41, %v372_v38  ;;  %v640_v25 = vmul.f32 %v638_v30, %v4692_v58  ;;  %v626_v55 = vmul.f32 %v624_v36, %v4682_v53  ;;  %v666_v56 = vstv %s3862_s26  ;;  %s3876_s26 = sld [smem:[#allocation8 + $0x1c]] }
  0xc1   : > { %559 = vrot.lane.b32.xlu0 %v555_v63, %s7772_s22  ;;  %587 = vrot.lane.b32.xlu1 %v583_v0, %s7772_s22  ;;  %v652_v57 = vstv %s3861_s27  ;;  %v639_v59 = vmul.f32 %v638_v30, %v4620_v19  ;;  %v667_v60 = vmul.f32 %v666_v56, %v4620_v19  ;;  %v680_v62 = vstv %s3863_s28  ;;  %s3878_s27 = sld [smem:[#allocation8 + $0x64]] }
  0xc2   : > { %573 = vrot.lane.b32.xlu2 %v569_v2, %s7772_s22  ;;  %v653_v61 = vmul.f32 %v652_v57, %v4620_v19  ;;  %v654_v63 = vmul.f32 %v652_v57, %v4692_v58  ;;  %v682_v0 = vmul.f32 %v680_v62, %v4692_v58  ;;  %v668_v1 = vmul.f32 %v666_v56, %v4692_v58  ;;  %s3880_s28 = sld [smem:[#allocation8 + $0xac]] }
  0xc3   : > { %v708_v2 = vstv %s3865_s7  ;;  %v694_v3 = vstv %s3864_s8  ;;  %v681_v4 = vmul.f32 %v680_v62, %v4620_v19  ;;  %v722_v9 = vstv %s3866_s19  ;;  %s3879_s7 = sld [smem:[#allocation8 + $0x88]] }
  0xc4   : > { %v709_v5 = vmul.f32 %v708_v2, %v4620_v19  ;;  %v695_v8 = vmul.f32 %v694_v3, %v4620_v19  ;;  %v696_v12 = vmul.f32 %v694_v3, %v4692_v58  ;;  %v724_v13 = vmul.f32 %v722_v9, %v4692_v58  ;;  %s3881_s8 = sld [smem:[#allocation8 + $0xd0]] }
  0xc5   : > { %v710_v14 = vmul.f32 %v708_v2, %v4692_v58  ;;  %v750_v15 = vstv %s3868_s1  ;;  %v736_v20 = vstv %s3867_s20  ;;  %v723_v21 = vmul.f32 %v722_v9, %v4620_v19  ;;  %s3883_s19 = sld [smem:[#allocation8 + $0x118]] }
  0xc6   : > { %v764_v24 = vstv %s3869_s21  ;;  %v752_v31 = vmul.f32 %v750_v15, %v4831_v27  ;;  %v738_v23 = vmul.f32 %v736_v20, %v4692_v58  ;;  %v792_v34 = vstv %s3871_s6  ;;  %s3882_s1 = sld [smem:[#allocation8 + $0xf4]] }
  0xc7   : > { %v766_v29 = vmul.f32 %v764_v24, %v4831_v27  ;;  %v778_v35 = vstv %s3870_s10  ;;  %v806_v41 = vstv %s3872_s30  ;;  %s3884_s20 = sld [smem:[#allocation8 + $0x2]]  ;;  %s7770_s10 = smov 126  }
  0xc8   : > { %s3886_s21 = sld [smem:[#allocation8 + $0x4a]] }
  0xc9   : > { %575 = vrot.lane.b32.xlu0 %v570_v17, %s7772_s22  ;;  %603 = vrot.lane.b32.xlu1 %v598_v16, %s7772_s22  ;;  %v4823_v17 = vld [vmem:[#allocation2 + $0x30] sm:$0xff]  ;;  %s3885_s6 = sld [smem:[#allocation8 + $0x26]] }
  0xca   : > { %589 = vrot.lane.b32.xlu2 %v584_v22, %s7772_s22  ;;  %v751_v16 = vmul.f32 %v750_v15, %v4823_v17  ;;  %v737_v22 = vmul.f32 %v736_v20, %v4620_v19  ;;  %v765_v36 = vmul.f32 %v764_v24, %v4823_v17  ;;  %v793_v18 = vmul.f32 %v792_v34, %v4823_v17  ;;  %s3887_s30 = sld [smem:[#allocation8 + $0x6e]] }
  0xcb   : > { %v779_v38 = vmul.f32 %v778_v35, %v4823_v17  ;;  %v890_v20 = vstv %s3878_s27  ;;  %s3893_s27 = sld [smem:[#allocation8 + $0x2f]] }
  0xd1   : > { %601 = vrot.lane.b32.xlu0 %v597_v43, %s7772_s22  ;;  %629 = vrot.lane.b32.xlu1 %v625_v47, %s7772_s22  ;;  %v780_v43 = vmul.f32 %v778_v35, %v4831_v27  ;;  %v808_v47 = vmul.f32 %v806_v41, %v4831_v27  ;;  %v918_v35 = vstv %s3880_s28  ;;  %s3895_s28 = sld [smem:[#allocation8 + $0x77]] }
  0xd2   : > { %615 = vrot.lane.b32.xlu2 %v611_v51, %s7772_s22  ;;  %v794_v51 = vmul.f32 %v792_v34, %v4831_v27 }
  0xd9   : > { %617 = vrot.lane.b32.xlu0 %v612_v54, %s7772_s22  ;;  %645 = vrot.lane.b32.xlu1 %v640_v25, %s7772_s22  ;;  %v834_v25 = vstv %s3874_s4  ;;  %v820_v54 = vstv %s3873_s29  ;;  %s3889_s4 = sld [smem:[#allocation8 + $0xb6]] }
  0xda   : > { %631 = vrot.lane.b32.xlu2 %v626_v55, %s7772_s22  ;;  %v807_v55 = vmul.f32 %v806_v41, %v4823_v17  ;;  %v835_v56 = vmul.f32 %v834_v25, %v4823_v17  ;;  %v821_v57 = vmul.f32 %v820_v54, %v4823_v17  ;;  %v822_v62 = vmul.f32 %v820_v54, %v4831_v27  ;;  %s3888_s29 = sld [smem:[#allocation8 + $0x92]] }
  0xe1   : > { %643 = vrot.lane.b32.xlu0 %v639_v59, %s7772_s22  ;;  %671 = vrot.lane.b32.xlu1 %v667_v60, %s7772_s22 }
  0xe2   : > { %657 = vrot.lane.b32.xlu2 %v653_v61, %s7772_s22  ;;  %v848_v61 = vstv %s3875_s11  ;;  %s3890_s11 = sld [smem:[#allocation8 + $0xda]] }
  0xe3   : > { %v849_v9 = vmul.f32 %v848_v61, %v4823_v17 }
  0xe9   : > { %659 = vrot.lane.b32.xlu0 %v654_v63, %s7772_s22  ;;  %687 = vrot.lane.b32.xlu1 %v682_v0, %s7772_s22  ;;  %v850_v63 = vmul.f32 %v848_v61, %v4831_v27  ;;  %v836_v0 = vmul.f32 %v834_v25, %v4831_v27  ;;  %v932_v25 = vstv %s3881_s8  ;;  %s3896_s8 = sld [smem:[#allocation8 + $0x9b]] }
  0xea   : > { %673 = vrot.lane.b32.xlu2 %v668_v1, %s7772_s22 }
  0xf1   : > { %685 = vrot.lane.b32.xlu0 %v681_v4, %s7772_s22  ;;  %713 = vrot.lane.b32.xlu1 %v709_v5, %s7772_s22  ;;  %v876_v4 = vstv %s3877_s23  ;;  %v862_v5 = vstv %s3876_s26  ;;  %s3892_s23 = sld [smem:[#allocation8 + $0xb]] }
  0xf2   : > { %699 = vrot.lane.b32.xlu2 %v695_v8, %s7772_s22  ;;  %v4879_v8 = vld [vmem:[#allocation2 + $0x48] sm:$0xff]  ;;  %s3891_s26 = sld [smem:[#allocation8 + $0xfe]] }
  0xf9   : > { %701 = vrot.lane.b32.xlu0 %v696_v12, %s7772_s22  ;;  %729 = vrot.lane.b32.xlu1 %v724_v13, %s7772_s22  ;;  %v877_v12 = vmul.f32 %v876_v4, %v4879_v8  ;;  %v863_v13 = vmul.f32 %v862_v5, %v4879_v8 }
  0xfa   : > { %715 = vrot.lane.b32.xlu2 %v710_v14, %s7772_s22 }
 0x101   : > { %727 = vrot.lane.b32.xlu0 %v723_v21, %s7772_s22  ;;  %755 = vrot.lane.b32.xlu1 %v751_v16, %s7772_s22  ;;  %v4893_v21 = vld [vmem:[#allocation2 + $0x50] sm:$0xff] }
 0x102   : > { %741 = vrot.lane.b32.xlu2 %v737_v22, %s7772_s22  ;;  %v864_v22 = vmul.f32 %v862_v5, %v4893_v21  ;;  %v892_v24 = vmul.f32 %v890_v20, %v4893_v21 }
 0x109   : > { %743 = vrot.lane.b32.xlu0 %v738_v23, %s7772_s22  ;;  %771 = vrot.lane.b32.xlu1 %v766_v29, %s7772_s22  ;;  %v878_v29 = vmul.f32 %v876_v4, %v4893_v21  ;;  %v933_v4 = vmul.f32 %v932_v25, %v4879_v8 }
 0x10a   : > { %757 = vrot.lane.b32.xlu2 %v752_v31, %s7772_s22 }
 0x10b   : > { %v4839_v32 = vpop.permute.xlu2 %531 }
 0x111   : > { %769 = vrot.lane.b32.xlu0 %v765_v36, %s7772_s22  ;;  %797 = vrot.lane.b32.xlu1 %v793_v18, %s7772_s22  ;;  %v904_v36 = vstv %s3879_s7  ;;  %v891_v18 = vmul.f32 %v890_v20, %v4879_v8  ;;  %s3894_s7 = sld [smem:[#allocation8 + $0x53]] }
 0x112   : > { %783 = vrot.lane.b32.xlu2 %v779_v38, %s7772_s22  ;;  %v919_v38 = vmul.f32 %v918_v35, %v4879_v8  ;;  %v905_v41 = vmul.f32 %v904_v36, %v4879_v8  ;;  %v906_v54 = vmul.f32 %v904_v36, %v4893_v21 }
 0x114   : > { %v4847_v39 = vpop.permute.xlu2 %547 }
 0x115   : > { %7815 = vst [vmem:[#allocation15_spill] sm:$0xff] %v4847_v39 }
 0x119   : > { %785 = vrot.lane.b32.xlu0 %v780_v43, %s7772_s22  ;;  %813 = vrot.lane.b32.xlu1 %v808_v47, %s7772_s22 }
 0x11a   : > { %799 = vrot.lane.b32.xlu2 %v794_v51, %s7772_s22 }
 0x11c   : > { %v4855_v30 = vpop.permute.xlu2 %573 }
 0x11d   : > { %7816 = vst [vmem:[#allocation16_spill] sm:$0xff] %v4855_v30 }
 0x121   : > { %811 = vrot.lane.b32.xlu0 %v807_v55, %s7772_s22  ;;  %839 = vrot.lane.b32.xlu1 %v835_v56, %s7772_s22  ;;  %v934_v55 = vmul.f32 %v932_v25, %v4893_v21  ;;  %v920_v56 = vmul.f32 %v918_v35, %v4893_v21  ;;  %v988_v25 = vstv %s3885_s6  ;;  %s3900_s6 = sld [smem:[#allocation8 + $0x14]] }
 0x122   : > { %825 = vrot.lane.b32.xlu2 %v821_v57, %s7772_s22 }
 0x123   : > { %v4863_v59 = vpop.permute.xlu1 %545 }
 0x124   : > { %v4865_v60 = vpop.permute.xlu2 %589 }
 0x125   : > { %7817 = vst [vmem:[#allocation17_spill] sm:$0xff] %v4865_v60 }
 0x129   : > { %827 = vrot.lane.b32.xlu0 %v822_v62, %s7772_s22  ;;  %855 = vrot.lane.b32.xlu1 %v850_v63, %s7772_s22  ;;  %v960_v63 = vstv %s3883_s19  ;;  %s3898_s19 = sld [smem:[#allocation8 + $0xe3]] }
 0x12a   : > { %841 = vrot.lane.b32.xlu2 %v836_v0, %s7772_s22  ;;  %v946_v0 = vstv %s3882_s1  ;;  %v961_v5 = vmul.f32 %v960_v63, %v4879_v8  ;;  %v962_v35 = vmul.f32 %v960_v63, %v4893_v21  ;;  %s3897_s1 = sld [smem:[#allocation8 + $0xbf]] }
 0x12b   : > { %v4873_v1 = vpop.permute.xlu0 %533  ;;  %v4875_v2 = vpop.permute.xlu1 %561 }
 0x12c   : > { %7818 = vst [vmem:[#allocation18_spill] sm:$0xff] %v4873_v1  ;;  %v4877_v3 = vpop.permute.xlu2 %615 }
 0x12d   : > { %7819 = vst [vmem:[#allocation19_spill] sm:$0xff] %v4877_v3  ;;  %v1058_v3 = vstv %s3890_s11  ;;  %s3905_s11 = sld [smem:[#allocation8 + $0xc8]] }
 0x131   : > { %853 = vrot.lane.b32.xlu0 %v849_v9, %s7772_s22  ;;  %881 = vrot.lane.b32.xlu1 %v877_v12, %s7772_s22  ;;  %v947_v9 = vmul.f32 %v946_v0, %v4879_v8 }
 0x132   : > { %867 = vrot.lane.b32.xlu2 %v863_v13, %s7772_s22 }
 0x133   : > { %v4887_v14 = vpop.permute.xlu0 %559  ;;  %v4889_v15 = vpop.permute.xlu1 %587 }
 0x134   : > { %7820 = vst [vmem:[#allocation20_spill] sm:$0xff] %v4887_v14  ;;  %v4891_v16 = vpop.permute.xlu2 %631 }
 0x135   : > { %7821 = vst [vmem:[#allocation21_spill] sm:$0xff] %v4889_v15 }
 0x136   : > { %7822 = vst [vmem:[#allocation22_spill] sm:$0xff] %v4891_v16 }
 0x139   : > { %869 = vrot.lane.b32.xlu0 %v864_v22, %s7772_s22  ;;  %897 = vrot.lane.b32.xlu1 %v892_v24, %s7772_s22  ;;  %v974_v22 = vstv %s3884_s20  ;;  %v948_v24 = vmul.f32 %v946_v0, %v4893_v21  ;;  %s3899_s20 = sld [smem:[#allocation8 + $0x107]] }
 0x13a   : > { %883 = vrot.lane.b32.xlu2 %v878_v29, %s7772_s22  ;;  %v976_v29 = vmul.f32 %v974_v22, %v4682_v53 }
 0x13b   : > { %v4901_v31 = vpop.permute.xlu0 %575  ;;  %v4903_v23 = vpop.permute.xlu1 %603 }
 0x13c   : > { %7823 = vst [vmem:[#allocation23_spill] sm:$0xff] %v4901_v31  ;;  %v4905_v34 = vpop.permute.xlu2 %657 }
 0x13d   : > { %7824 = vst [vmem:[#allocation24_spill] sm:$0xff] %v4903_v23 }
 0x141   : > { %895 = vrot.lane.b32.xlu0 %v891_v18, %s7772_s22  ;;  %923 = vrot.lane.b32.xlu1 %v919_v38, %s7772_s22 }
 0x142   : > { %909 = vrot.lane.b32.xlu2 %v905_v41, %s7772_s22  ;;  %v1002_v41 = vstv %s3886_s21  ;;  %s3901_s21 = sld [smem:[#allocation8 + $0x38]] }
 0x143   : > { %v4913_v43 = vpop.permute.xlu0 %601  ;;  %v4915_v47 = vpop.permute.xlu1 %629 }
 0x144   : > { %7825 = vst [vmem:[#allocation25_spill] sm:$0xff] %v4913_v43  ;;  %v4917_v51 = vpop.permute.xlu2 %673 }
 0x145   : > { %7826 = vst [vmem:[#allocation26_spill] sm:$0xff] %v4915_v47 }
 0x149   : > { %911 = vrot.lane.b32.xlu0 %v906_v54, %s7772_s22  ;;  %939 = vrot.lane.b32.xlu1 %v934_v55, %s7772_s22  ;;  %v975_v54 = vmul.f32 %v974_v22, %v4626_v26  ;;  %v1003_v55 = vmul.f32 %v1002_v41, %v4626_v26 }
 0x14a   : > { %925 = vrot.lane.b32.xlu2 %v920_v56, %s7772_s22  ;;  %v989_v56 = vmul.f32 %v988_v25, %v4626_v26 }
 0x14b   : > { %v4925_v57 = vpop.permute.xlu0 %617  ;;  %v4927_v61 = vpop.permute.xlu1 %645 }
 0x14c   : > { %7827 = vst [vmem:[#allocation27_spill] sm:$0xff] %v4925_v57  ;;  %v4929_v62 = vpop.permute.xlu2 %699  ;;  %v1072_v57 = vstv %s3891_s26  ;;  %s3906_s26 = sld [smem:[#allocation8 + $0xec]] }
 0x14d   : > { %7828 = vst [vmem:[#allocation28_spill] sm:$0xff] %v4927_v61 }
 0x14e   : > { %7829 = vst [vmem:[#allocation29_spill] sm:$0xff] %v4929_v62 }
 0x151   : > { %937 = vrot.lane.b32.xlu0 %v933_v4, %s7772_s22  ;;  %965 = vrot.lane.b32.xlu1 %v961_v5, %s7772_s22  ;;  %v1016_v5 = vstv %s3887_s30  ;;  %s3902_s30 = sld [smem:[#allocation8 + $0x5c]] }
 0x152   : > { %951 = vrot.lane.b32.xlu2 %v947_v9, %s7772_s22  ;;  %v990_v9 = vmul.f32 %v988_v25, %v4682_v53  ;;  %v1018_v22 = vmul.f32 %v1016_v5, %v4682_v53  ;;  %v1017_v25 = vmul.f32 %v1016_v5, %v4626_v26 }
 0x153   : > { %v4937_v12 = vpop.permute.xlu0 %643  ;;  %v4939_v13 = vpop.permute.xlu1 %671 }
 0x154   : > { %7830 = vst [vmem:[#allocation30_spill] sm:$0xff] %v4937_v12  ;;  %v4941_v20 = vpop.permute.xlu2 %715 }
 0x155   : > { %7831 = vst [vmem:[#allocation31_spill] sm:$0xff] %v4939_v13 }
 0x156   : > { %7832 = vst [vmem:[#allocation32_spill] sm:$0xff] %v4941_v20 }
 0x159   : > { %953 = vrot.lane.b32.xlu0 %v948_v24, %s7772_s22  ;;  %981 = vrot.lane.b32.xlu1 %v976_v29, %s7770_s10  ;;  %v1004_v24 = vmul.f32 %v1002_v41, %v4682_v53 }
 0x15a   : > { %967 = vrot.lane.b32.xlu2 %v962_v35, %s7772_s22 }
 0x15b   : > { %v4949_v36 = vpop.permute.xlu0 %659  ;;  %v4951_v18 = vpop.permute.xlu1 %687 }
 0x15c   : > { %7833 = vst [vmem:[#allocation33_spill] sm:$0xff] %v4949_v36  ;;  %v4953_v38 = vpop.permute.xlu2 %741 }
 0x15d   : > { %7834 = vst [vmem:[#allocation34_spill] sm:$0xff] %v4951_v18 }
 0x15e   : > { %7835 = vst [vmem:[#allocation35_spill] sm:$0xff] %v4953_v38 }
 0x161   : > { %979 = vrot.lane.b32.xlu0 %v975_v54, %s7770_s10  ;;  %1007 = vrot.lane.b32.xlu1 %v1003_v55, %s7770_s10  ;;  %v1044_v55 = vstv %s3889_s4  ;;  %s3904_s4 = sld [smem:[#allocation8 + $0xa4]] }
 0x162   : > { %993 = vrot.lane.b32.xlu2 %v989_v56, %s7770_s10  ;;  %v1030_v56 = vstv %s3888_s29  ;;  %v1045_v16 = vmul.f32 %v1044_v55, %v4626_v26  ;;  %s3903_s29 = sld [smem:[#allocation8 + $0x80]] }
 0x163   : > { %v4961_v63 = vpop.permute.xlu0 %685  ;;  %v4963_v0 = vpop.permute.xlu1 %713  ;;  %v1031_v41 = vmul.f32 %v1030_v56, %v4626_v26  ;;  %v1032_v5 = vmul.f32 %v1030_v56, %v4682_v53  ;;  %v1059_v56 = vmul.f32 %v1058_v3, %v4626_v26 }
 0x164   : > { %7836 = vst [vmem:[#allocation36_spill] sm:$0xff] %v4961_v63  ;;  %v4965_v4 = vpop.permute.xlu2 %757 }
 0x165   : > { %7837 = vst [vmem:[#allocation37_spill] sm:$0xff] %v4963_v0 }
 0x166   : > { %7838 = vst [vmem:[#allocation38_spill] sm:$0xff] %v4965_v4 }
 0x168   : > { %v1240_v36 = vstv %s3903_s29  ;;  %s5212_s29 = sld [smem:[#allocation8 + $0x1b]] }
 0x169   : > { %995 = vrot.lane.b32.xlu0 %v990_v9, %s7770_s10  ;;  %1023 = vrot.lane.b32.xlu1 %v1018_v22, %s7770_s10 }
 0x16a   : > { %1009 = vrot.lane.b32.xlu2 %v1004_v24, %s7770_s10 }
 0x16b   : > { %v4973_v29 = vpop.permute.xlu0 %701  ;;  %v4975_v35 = vpop.permute.xlu1 %729 }
 0x16c   : > { %7839 = vst [vmem:[#allocation39_spill] sm:$0xff] %v4973_v29  ;;  %v4977_v54 = vpop.permute.xlu2 %783  ;;  %v1046_v29 = vmul.f32 %v1044_v55, %v4682_v53  ;;  %v1073_v55 = vmul.f32 %v1072_v57, %v4626_v26 }
 0x16d   : > { %7840 = vst [vmem:[#allocation40_spill] sm:$0xff] %v4975_v35  ;;  %v1060_v35 = vmul.f32 %v1058_v3, %v4682_v53  ;;  %v1074_v3 = vmul.f32 %v1072_v57, %v4682_v53 }
 0x16e   : > { %7841 = vst [vmem:[#allocation41_spill] sm:$0xff] %v4977_v54 }
 0x171   : > { %1021 = vrot.lane.b32.xlu0 %v1017_v25, %s7770_s10  ;;  %1049 = vrot.lane.b32.xlu1 %v1045_v16, %s7770_s10 }
 0x172   : > { %1035 = vrot.lane.b32.xlu2 %v1031_v41, %s7770_s10 }
 0x173   : > { %v4985_v9 = vpop.permute.xlu0 %727  ;;  %v4987_v22 = vpop.permute.xlu1 %755 }
 0x174   : > { %7842 = vst [vmem:[#allocation42_spill] sm:$0xff] %v4985_v9  ;;  %v4989_v24 = vpop.permute.xlu2 %799  ;;  %v1086_v9 = vstv %s3892_s23  ;;  %s3907_s23 = sld [smem:[#allocation8 + $0x110]] }
 0x175   : > { %7843 = vst [vmem:[#allocation43_spill] sm:$0xff] %v4987_v22  ;;  %v1087_v63 = vmul.f32 %v1086_v9, %v4620_v19  ;;  %v1088_v26 = vmul.f32 %v1086_v9, %v4692_v58 }
 0x176   : > { %7844 = vst [vmem:[#allocation44_spill] sm:$0xff] %v4989_v24 }
 0x179   : > { %1037 = vrot.lane.b32.xlu0 %v1032_v5, %s7770_s10  ;;  %1065 = vrot.lane.b32.xlu1 %v1060_v35, %s7770_s10 }
 0x17a   : > { %1051 = vrot.lane.b32.xlu2 %v1046_v29, %s7770_s10 }
 0x17b   : > { %v4997_v16 = vpop.permute.xlu0 %743  ;;  %v4999_v25 = vpop.permute.xlu1 %771 }
 0x17c   : > { %7845 = vst [vmem:[#allocation45_spill] sm:$0xff] %v4997_v16  ;;  %v5001_v41 = vpop.permute.xlu2 %825  ;;  %v1100_v16 = vstv %s3893_s27  ;;  %s3908_s27 = sld [smem:[#allocation8 + $0x1d]] }
 0x17d   : > { %7846 = vst [vmem:[#allocation46_spill] sm:$0xff] %v4999_v25  ;;  %v1101_v53 = vmul.f32 %v1100_v16, %v4620_v19 }
 0x17e   : > { %7847 = vst [vmem:[#allocation47_spill] sm:$0xff] %v5001_v41  ;;  %v1102_v41 = vmul.f32 %v1100_v16, %v4692_v58 }
 0x181   : > { %1063 = vrot.lane.b32.xlu0 %v1059_v56, %s7770_s10  ;;  %1091 = vrot.lane.b32.xlu1 %v1087_v63, %s7770_s10 }
 0x182   : > { %1077 = vrot.lane.b32.xlu2 %v1073_v55, %s7770_s10 }
 0x183   : > { %v5009_v29 = vpop.permute.xlu0 %769  ;;  %v5011_v35 = vpop.permute.xlu1 %797 }
 0x184   : > { %7848 = vst [vmem:[#allocation48_spill] sm:$0xff] %v5011_v35  ;;  %v5013_v5 = vpop.permute.xlu2 %841  ;;  %v1114_v35 = vstv %s3894_s7  ;;  %s3909_s7 = sld [smem:[#allocation8 + $0x41]] }
 0x185   : > { %7849 = vst [vmem:[#allocation49_spill] sm:$0xff] %v5013_v5  ;;  %v1128_v5 = vstv %s3895_s28  ;;  %v1115_v9 = vmul.f32 %v1114_v35, %v4620_v19  ;;  %v1116_v16 = vmul.f32 %v1114_v35, %v4692_v58  ;;  %s3910_s28 = sld [smem:[#allocation8 + $0x65]] }
 0x186   : > { %v1129_v57 = vmul.f32 %v1128_v5, %v4620_v19  ;;  %v1130_v24 = vmul.f32 %v1128_v5, %v4692_v58 }
 0x189   : > { %1079 = vrot.lane.b32.xlu0 %v1074_v3, %s7770_s10  ;;  %1107 = vrot.lane.b32.xlu1 %v1102_v41, %s7770_s10 }
 0x18a   : > { %1093 = vrot.lane.b32.xlu2 %v1088_v26, %s7770_s10 }
 0x18b   : > { %v5021_v63 = vpop.permute.xlu0 %785  ;;  %v5023_v56 = vpop.permute.xlu1 %813 }
 0x18c   : > { %7850 = vst [vmem:[#allocation50_spill] sm:$0xff] %v5023_v56  ;;  %v5025_v55 = vpop.permute.xlu2 %867  ;;  %v1142_v56 = vstv %s3896_s8  ;;  %s3911_s8 = sld [smem:[#allocation8 + $0x89]] }
 0x18d   : > { %7851 = vst [vmem:[#allocation51_spill] sm:$0xff] %v5025_v55  ;;  %v1144_v0 = vmul.f32 %v1142_v56, %v4692_v58  ;;  %v1143_v35 = vmul.f32 %v1142_v56, %v4620_v19 }
 0x191   : > { %1105 = vrot.lane.b32.xlu0 %v1101_v53, %s7770_s10  ;;  %1133 = vrot.lane.b32.xlu1 %v1129_v57, %s7770_s10 }
 0x192   : > { %1119 = vrot.lane.b32.xlu2 %v1115_v9, %s7770_s10 }
 0x193   : > { %v5033_v41 = vpop.permute.xlu0 %811  ;;  %v5035_v3 = vpop.permute.xlu1 %839 }
 0x194   : > { %7852 = vst [vmem:[#allocation52_spill] sm:$0xff] %v5033_v41  ;;  %v5037_v26 = vpop.permute.xlu2 %883 }
 0x195   : > { %7853 = vst [vmem:[#allocation53_spill] sm:$0xff] %v5035_v3  ;;  %v1170_v3 = vstv %s3898_s19  ;;  %s3913_s19 = sld [smem:[#allocation8 + $0xd1]] }
 0x196   : > { %7854 = vst [vmem:[#allocation54_spill] sm:$0xff] %v5037_v26  ;;  %v1156_v26 = vstv %s3897_s1  ;;  %v1171_v25 = vmul.f32 %v1170_v3, %v4620_v19  ;;  %v1172_v38 = vmul.f32 %v1170_v3, %v4692_v58  ;;  %s3912_s1 = sld [smem:[#allocation8 + $0xad]] }
 0x197   : > { %v1157_v5 = vmul.f32 %v1156_v26, %v4620_v19  ;;  %v1158_v56 = vmul.f32 %v1156_v26, %v4692_v58 }
 0x199   : > { %1121 = vrot.lane.b32.xlu0 %v1116_v16, %s7770_s10  ;;  %1149 = vrot.lane.b32.xlu1 %v1144_v0, %s7770_s10 }
 0x19a   : > { %1135 = vrot.lane.b32.xlu2 %v1130_v24, %s7770_s10 }
 0x19b   : > { %v5045_v53 = vpop.permute.xlu0 %827  ;;  %v5047_v57 = vpop.permute.xlu1 %855 }
 0x19c   : > { %7855 = vst [vmem:[#allocation55_spill] sm:$0xff] %v5045_v53  ;;  %v5049_v9 = vpop.permute.xlu2 %909 }
 0x19d   : > { %7856 = vst [vmem:[#allocation56_spill] sm:$0xff] %v5047_v57  ;;  %v1184_v57 = vstv %s3899_s20  ;;  %s3914_s20 = sld [smem:[#allocation8 + $0xf5]] }
 0x19e   : > { %7857 = vst [vmem:[#allocation57_spill] sm:$0xff] %v5049_v9  ;;  %v1186_v9 = vmul.f32 %v1184_v57, %v4692_v58  ;;  %v1185_v26 = vmul.f32 %v1184_v57, %v4620_v19 }
 0x1a1   : > { %1147 = vrot.lane.b32.xlu0 %v1143_v35, %s7770_s10  ;;  %1175 = vrot.lane.b32.xlu1 %v1171_v25, %s7770_s10 }
 0x1a2   : > { %1161 = vrot.lane.b32.xlu2 %v1157_v5, %s7770_s10 }
 0x1a3   : > { %v5057_v0 = vpop.permute.xlu0 %853  ;;  %v5059_v24 = vpop.permute.xlu1 %881 }
 0x1a4   : > { %7858 = vst [vmem:[#allocation58_spill] sm:$0xff] %v5057_v0  ;;  %v5061_v16 = vpop.permute.xlu2 %925  ;;  %v1198_v0 = vstv %s3900_s6  ;;  %s5185_s6 = sld [smem:[#allocation8 + $0x119]] }
 0x1a5   : > { %7859 = vst [vmem:[#allocation59_spill] sm:$0xff] %v5061_v16  ;;  %v1212_v16 = vstv %s3901_s21  ;;  %v1199_v58 = vmul.f32 %v1198_v0, %v4823_v17  ;;  %v1200_v19 = vmul.f32 %v1198_v0, %v4831_v27  ;;  %s5183_s21 = sld [smem:[#allocation8 + $0x4]] }
 0x1a6   : > { %v1213_v18 = vmul.f32 %v1212_v16, %v4823_v17 }
 0x1a9   : > { %1163 = vrot.lane.b32.xlu0 %v1158_v56, %s7770_s10  ;;  %1191 = vrot.lane.b32.xlu1 %v1186_v9, %s7770_s10  ;;  %v1226_v56 = vstv %s3902_s30  ;;  %s5203_s30 = sld [smem:[#allocation8 + $0x28]] }
 0x1aa   : > { %1177 = vrot.lane.b32.xlu2 %v1172_v38, %s7770_s10  ;;  %v1228_v57 = vmul.f32 %v1226_v56, %v4831_v27  ;;  %v1227_v0 = vmul.f32 %v1226_v56, %v4823_v17  ;;  %v1242_v56 = vmul.f32 %v1240_v36, %v4831_v27 }
 0x1ab   : > { %v5069_v25 = vpop.permute.xlu0 %869  ;;  %v5071_v35 = vpop.permute.xlu1 %897 }
 0x1ac   : > { %7860 = vst [vmem:[#allocation60_spill] sm:$0xff] %v5069_v25  ;;  %v5073_v5 = vpop.permute.xlu2 %951 }
 0x1ad   : > { %7861 = vst [vmem:[#allocation61_spill] sm:$0xff] %v5073_v5  ;;  %v1214_v5 = vmul.f32 %v1212_v16, %v4831_v27  ;;  %v1241_v16 = vmul.f32 %v1240_v36, %v4823_v17 }
 0x1b1   : > { %1189 = vrot.lane.b32.xlu0 %v1185_v26, %s7770_s10  ;;  %1217 = vrot.lane.b32.xlu1 %v1213_v18, %s7770_s10 }
 0x1b2   : > { %1203 = vrot.lane.b32.xlu2 %v1199_v58, %s7770_s10 }
 0x1b3   : > { %v5081_v38 = vpop.permute.xlu0 %895  ;;  %v5083_v3 = vpop.permute.xlu1 %923 }
 0x1b4   : > { %7862 = vst [vmem:[#allocation62_spill] sm:$0xff] %v5081_v38  ;;  %v5085_v9 = vpop.permute.xlu2 %967 }
 0x1b5   : > { %7863 = vst [vmem:[#allocation63_spill] sm:$0xff] %v5083_v3 }
 0x1b6   : > { %7864 = vst [vmem:[#allocation64_spill] sm:$0xff] %v5085_v9  ;;  %v1254_v9 = vstv %s3904_s4  ;;  %s5208_s4 = sld [smem:[#allocation8 + $0x12]] }
 0x1b7   : > { %v1255_v47 = vmul.f32 %v1254_v9, %v4823_v17  ;;  %v1256_v38 = vmul.f32 %v1254_v9, %v4831_v27 }
 0x1b9   : > { %1205 = vrot.lane.b32.xlu0 %v1200_v19, %s7770_s10  ;;  %1233 = vrot.lane.b32.xlu1 %v1228_v57, %s7770_s10 }
 0x1ba   : > { %1219 = vrot.lane.b32.xlu2 %v1214_v5, %s7770_s10 }
 0x1bb   : > { %v5093_v18 = vpop.permute.xlu0 %911  ;;  %v5095_v26 = vpop.permute.xlu1 %939 }
 0x1bc   : > { %7865 = vst [vmem:[#allocation65_spill] sm:$0xff] %v5093_v18  ;;  %v5097_v58 = vpop.permute.xlu2 %993  ;;  %v1268_v18 = vstv %s3905_s11  ;;  %s5215_s11 = sld [smem:[#allocation8 + $0x36]] }
 0x1bd   : > { %7866 = vst [vmem:[#allocation66_spill] sm:$0xff] %v5095_v26  ;;  %v1270_v26 = vmul.f32 %v1268_v18, %v4831_v27  ;;  %v1269_v36 = vmul.f32 %v1268_v18, %v4823_v17 }
 0x1c1   : > { %1231 = vrot.lane.b32.xlu0 %v1227_v0, %s7770_s10  ;;  %1259 = vrot.lane.b32.xlu1 %v1255_v47, %s7770_s10 }
 0x1c2   : > { %1245 = vrot.lane.b32.xlu2 %v1241_v16, %s7770_s10 }
 0x1c3   : > { %v5105_v5 = vpop.permute.xlu0 %937  ;;  %v5107_v19 = vpop.permute.xlu1 %965 }
 0x1c4   : > { %7867 = vst [vmem:[#allocation67_spill] sm:$0xff] %v5105_v5  ;;  %v5109_v57 = vpop.permute.xlu2 %1009  ;;  %v1296_v5 = vstv %s3907_s23  ;;  %s5225_s23 = sld [smem:[#allocation8 + $0x70]] }
 0x1c5   : > { %7868 = vst [vmem:[#allocation68_spill] sm:$0xff] %v5107_v19  ;;  %v1282_v19 = vstv %s3906_s26  ;;  %v1297_v55 = vmul.f32 %v1296_v5, %v4823_v17  ;;  %v1298_v53 = vmul.f32 %v1296_v5, %v4831_v27  ;;  %s5227_s26 = sld [smem:[#allocation8 + $0x4c]] }
 0x1c6   : > { %7869 = vst [vmem:[#allocation69_spill] sm:$0xff] %v5109_v57  ;;  %v1283_v9 = vmul.f32 %v1282_v19, %v4823_v17  ;;  %v1284_v18 = vmul.f32 %v1282_v19, %v4831_v27 }
 0x1c9   : > { %1247 = vrot.lane.b32.xlu0 %v1242_v56, %s7770_s10  ;;  %1275 = vrot.lane.b32.xlu1 %v1270_v26, %s7770_s10 }
 0x1ca   : > { %1261 = vrot.lane.b32.xlu2 %v1256_v38, %s7770_s10 }
 0x1cb   : > { %v5117_v47 = vpop.permute.xlu0 %953  ;;  %v5119_v0 = vpop.permute.xlu1 %981 }
 0x1cc   : > { %7870 = vst [vmem:[#allocation70_spill] sm:$0xff] %v5117_v47  ;;  %v5121_v16 = vpop.permute.xlu2 %1035  ;;  %v1310_v47 = vstv %s3908_s27  ;;  %s5229_s27 = sld [smem:[#allocation8 + $0x3f]] }
 0x1cd   : > { %7871 = vst [vmem:[#allocation71_spill] sm:$0xff] %v5119_v0  ;;  %v1312_v43 = vmul.f32 %v1310_v47, %v4893_v21  ;;  %v1311_v19 = vmul.f32 %v1310_v47, %v4879_v8 }
 0x1ce   : > { %7872 = vst [vmem:[#allocation72_spill] sm:$0xff] %v5121_v16 }
 0x1d1   : > { %1273 = vrot.lane.b32.xlu0 %v1269_v36, %s7770_s10  ;;  %1301 = vrot.lane.b32.xlu1 %v1297_v55, %s7770_s10 }
 0x1d2   : > { %1287 = vrot.lane.b32.xlu2 %v1283_v9, %s7770_s10  ;;  %v484_v14 = vstv %s5229_s27  ;;  %s5322_s27 = sld [smem:[#allocation8 + $0x100]] }
 0x1d3   : > { %v5129_v38 = vpop.permute.xlu0 %979  ;;  %v5131_v26 = vpop.permute.xlu1 %1007 }
 0x1d4   : > { %7873 = vst [vmem:[#allocation73_spill] sm:$0xff] %v5129_v38  ;;  %v5133_v56 = vpop.permute.xlu2 %1051 }
 0x1d5   : > { %7874 = vst [vmem:[#allocation74_spill] sm:$0xff] %v5131_v26  ;;  %v1324_v26 = vstv %s3909_s7  ;;  %s5236_s7 = sld [smem:[#allocation8 + $0xa2]] }
 0x1d6   : > { %7875 = vst [vmem:[#allocation75_spill] sm:$0xff] %v5133_v56  ;;  %v1338_v56 = vstv %s3910_s28  ;;  %v1325_v5 = vmul.f32 %v1324_v26, %v4879_v8  ;;  %v1326_v47 = vmul.f32 %v1324_v26, %v4893_v21  ;;  %s5232_s28 = sld [smem:[#allocation8 + $0x7e]] }
 0x1d7   : > { %v1339_v38 = vmul.f32 %v1338_v56, %v4879_v8 }
 0x1d9   : > { %1289 = vrot.lane.b32.xlu0 %v1284_v18, %s7770_s10  ;;  %1317 = vrot.lane.b32.xlu1 %v1312_v43, %s7770_s10 }
 0x1da   : > { %1303 = vrot.lane.b32.xlu2 %v1298_v53, %s7770_s10 }
 0x1db   : > { %v5141_v55 = vpop.permute.xlu0 %995  ;;  %v5143_v36 = vpop.permute.xlu1 %1023  ;;  %v454_v54 = vstv %s5236_s7  ;;  %s5355_s7 = sld [smem:[#allocation8 + $0x3]] }
 0x1dc   : > { %7876 = vst [vmem:[#allocation76_spill] sm:$0xff] %v5141_v55  ;;  %v5145_v9 = vpop.permute.xlu2 %1077  ;;  %v1340_v55 = vmul.f32 %v1338_v56, %v4893_v21  ;;  %v448_v22 = vstv %s5232_s28  ;;  %v456_v62 = vmul.f32 %v454_v54, %v4831_v27  ;;  %s5330_s28 = sld [smem:[#allocation8 + $0x27]] }
 0x1dd   : > { %7877 = vst [vmem:[#allocation77_spill] sm:$0xff] %v5143_v36  ;;  %v449_v16 = vmul.f32 %v448_v22, %v4823_v17  ;;  %v5338_v1 = vmul.f32 %v448_v22, %v4831_v27 }
 0x1de   : > { %7878 = vst [vmem:[#allocation78_spill] sm:$0xff] %v5145_v9  ;;  %v1352_v9 = vstv %s3911_s8  ;;  %s5239_s8 = sld [smem:[#allocation8 + $0x5a]] }
 0x1df   : > { %v1354_v36 = vmul.f32 %v1352_v9, %v4893_v21  ;;  %v1353_v26 = vmul.f32 %v1352_v9, %v4879_v8  ;;  %v451_v22 = vadd.f32 %v449_v16, %v4667_v45 }
 0x1e1   : > { %1315 = vrot.lane.b32.xlu0 %v1311_v19, %s7770_s10  ;;  %1343 = vrot.lane.b32.xlu1 %v1339_v38, %s7770_s10 }
 0x1e2   : > { %1329 = vrot.lane.b32.xlu2 %v1325_v5, %s7770_s10 }
 0x1e3   : > { %v5153_v43 = vpop.permute.xlu0 %1021  ;;  %v5155_v53 = vpop.permute.xlu1 %1049 }
 0x1e4   : > { %7879 = vst [vmem:[#allocation79_spill] sm:$0xff] %v5153_v43  ;;  %v5157_v18 = vpop.permute.xlu2 %1093  ;;  %v1366_v43 = vstv %s3912_s1  ;;  %s5246_s1 = sld [smem:[#allocation8 + $0xc6]]  ;;  %v442_v20 = vstv %s5239_s8 }
 0x1e5   : > { %7880 = vst [vmem:[#allocation80_spill] sm:$0xff] %v5155_v53  ;;  %v1380_v53 = vstv %s3913_s19  ;;  %v1367_v56 = vmul.f32 %v1366_v43, %v4879_v8  ;;  %v1368_v9 = vmul.f32 %v1366_v43, %v4893_v21  ;;  %v1408_v43 = vstv %s5185_s6  ;;  %s5243_s19 = sld [smem:[#allocation8 + $0xea]] }
 0x1e6   : > { %7881 = vst [vmem:[#allocation81_spill] sm:$0xff] %v5157_v18  ;;  %v1381_v31 = vmul.f32 %v1380_v53, %v4879_v8  ;;  %s5260_s6 = sld [smem:[#allocation8 + $0x94]]  ;;  %v444_v57 = vmul.f32 %v442_v20, %v4831_v27 }
 0x1e7   : > { %s5363_s8 = sld [smem:[#allocation8 + $0x31]] }
 0x1e9   : > { %1331 = vrot.lane.b32.xlu0 %v1326_v47, %s7770_s10  ;;  %1359 = vrot.lane.b32.xlu1 %v1354_v36, %s7770_s10 }
 0x1ea   : > { %1345 = vrot.lane.b32.xlu2 %v1340_v55, %s7770_s10  ;;  %v460_v18 = vstv %s5246_s1  ;;  %s5370_s1 = sld [smem:[#allocation8 + $0xd]] }
 0x1eb   : > { %v5165_v38 = vpop.permute.xlu0 %1037  ;;  %v5167_v19 = vpop.permute.xlu1 %1065  ;;  %v7899_v23 = vstv %s5243_s19 }
 0x1ec   : > { %7882 = vst [vmem:[#allocation82_spill] sm:$0xff] %v5165_v38  ;;  %v5169_v5 = vpop.permute.xlu2 %1119  ;;  %v5197_v38 = vld [vmem:[#allocation2 + $0x1] sm:$0xff]  ;;  %v467_v0 = vmul.f32 %v7899_v23, %v4823_v17  ;;  %v1680_v25 = vstv %s5260_s6  ;;  %s5388_s6 = sld [smem:[#allocation8 + $0x30]] }
 0x1ed   : > { %7883 = vst [vmem:[#allocation83_spill] sm:$0xff] %v5167_v19  ;;  %v1394_v19 = vstv %s3914_s20  ;;  %s5252_s20 = sld [smem:[#allocation8 + $0x87]] }
 0x1ee   : > { %7884 = vst [vmem:[#allocation84_spill] sm:$0xff] %v5169_v5  ;;  %v436_v5 = vstv %s5215_s11  ;;  %s5292_s11 = sld [smem:[#allocation8 + $0xdc]] }
 0x1f1   : > { %1357 = vrot.lane.b32.xlu0 %v1353_v26, %s7770_s10  ;;  %1385 = vrot.lane.b32.xlu1 %v1381_v31, %s7770_s10  ;;  %v1396_v26 = vmul.f32 %v1394_v19, %v4893_v21  ;;  %v1382_v31 = vmul.f32 %v1380_v53, %v4893_v21  ;;  %v1395_v53 = vmul.f32 %v1394_v19, %v4879_v8 }
 0x1f2   : > { %1371 = vrot.lane.b32.xlu2 %v1367_v56, %s7770_s10 }
 0x1f3   : > { %v5177_v55 = vpop.permute.xlu0 %1063  ;;  %v5179_v36 = vpop.permute.xlu1 %1091 }
 0x1f4   : > { %7885 = vst [vmem:[#allocation85_spill] sm:$0xff] %v5177_v55  ;;  %v5181_v47 = vpop.permute.xlu2 %1135 }
 0x1f5   : > { %7886 = vst [vmem:[#allocation86_spill] sm:$0xff] %v5179_v36  ;;  %v1624_v36 = vstv %s5183_s21  ;;  %s5257_s21 = sld [smem:[#allocation8 + $0x10e]] }
 0x1f6   : > { %7887 = vst [vmem:[#allocation87_spill] sm:$0xff] %v5181_v47 }
 0x1f9   : > { %1373 = vrot.lane.b32.xlu0 %v1368_v9, %s7770_s10  ;;  %1401 = vrot.lane.b32.xlu1 %v1396_v26, %s7770_s10  ;;  %v1625_v9 = vmul.f32 %v5197_v38, %v1624_v36  ;;  %v1409_v26 = vmul.f32 %v1408_v43, %v4879_v8 }
 0x1fa   : > { %1387 = vrot.lane.b32.xlu2 %v1382_v31, %s7770_s10 }
 0x1fb   : > { %v5193_v56 = vpop.permute.xlu0 %1079  ;;  %v5195_v55 = vpop.permute.xlu1 %1107  ;;  %v472_v3 = vstv %s5257_s21  ;;  %s5380_s21 = sld [smem:[#allocation8 + $0x55]] }
 0x1fc   : > { %7888 = vst [vmem:[#allocation88_spill] sm:$0xff] %v5193_v56  ;;  %v5199_v47 = vpop.permute.xlu2 %1161  ;;  %v5221_v56 = vld [vmem:[#allocation2 + $0x9] sm:$0xff] }
 0x1fd   : > { %7889 = vst [vmem:[#allocation89_spill] sm:$0xff] %v5195_v55  ;;  %v430_v55 = vstv %s5208_s4  ;;  %s5280_s4 = sld [smem:[#allocation8 + $0x117]]  ;;  %v1682_v4 = vmul.f32 %v5221_v56, %v1680_v25 }
 0x1fe   : > { %7890 = vst [vmem:[#allocation90_spill] sm:$0xff] %v5199_v47  ;;  %v432_v39 = vmul.f32 %v430_v55, %v4831_v27 }
 0x201   : > { %1399 = vrot.lane.b32.xlu0 %v1395_v53, %s7770_s10  ;;  %1629 = vrot.lane.b32.xlu1 %v1625_v9, %s7772_s22  ;;  %v1638_v53 = vstv %s5203_s30  ;;  %v1410_v9 = vmul.f32 %v1408_v43, %v4893_v21  ;;  %s5262_s30 = sld [smem:[#allocation8 + $0xab]] }
 0x202   : > { %1413 = vrot.lane.b32.xlu2 %v1409_v26, %s7770_s10  ;;  %v1640_v26 = vmul.f32 %v5221_v56, %v1638_v53 }
 0x203   : > { %v5217_v31 = vpop.permute.xlu0 %1105  ;;  %v5219_v19 = vpop.permute.xlu1 %1133 }
 0x204   : > { %7891 = vst [vmem:[#allocation91_spill] sm:$0xff] %v5219_v19  ;;  %v5223_v47 = vpop.permute.xlu2 %1177  ;;  %v1626_v19 = vmul.f32 %v5221_v56, %v1624_v36 }
 0x205   : > { %7892 = vst [vmem:[#allocation92_spill] sm:$0xff] %v5223_v47 }
 0x207   : > { %v502_v60 = vstv %s5262_s30  ;;  %s5394_s30 = sld [smem:[#allocation8 + $0x9d]] }
 0x209   : > { %1415 = vrot.lane.b32.xlu0 %v1410_v9, %s7770_s10  ;;  %1645 = vrot.lane.b32.xlu1 %v1640_v26, %s7772_s22  ;;  %v1666_v9 = vstv %s5225_s23  ;;  %v1652_v26 = vstv %s5227_s26  ;;  %s5267_s10 = sld [smem:[#allocation8 + $0x63]] }
 0x20a   : > { %1631 = vrot.lane.b32.xlu2 %v1626_v19, %s7772_s22  ;;  %v1639_v19 = vmul.f32 %v5197_v38, %v1638_v53  ;;  %s5272_s23 = sld [smem:[#allocation8 + $0xf3]]  ;;  %v1654_v23 = vmul.f32 %v5221_v56, %v1652_v26  ;;  %v1668_v30 = vmul.f32 %v5221_v56, %v1666_v9 }
 0x20b   : > { %v5248_v43 = vpop.permute.xlu0 %1121  ;;  %v5250_v47 = vpop.permute.xlu1 %1149  ;;  %s5304_s26 = sld [smem:[#allocation8 + $0xb8]] }
 0x20c   : > { %7893 = vst [vmem:[#allocation93_spill] sm:$0xff] %v5248_v43  ;;  %v5254_v36 = vpop.permute.xlu2 %1203  ;;  %v438_v43 = vmul.f32 %v436_v5, %v4831_v27 }
 0x20d   : > { %7894 = vst [vmem:[#allocation94_spill] sm:$0xff] %v5250_v47  ;;  %v1667_v47 = vmul.f32 %v5197_v38, %v1666_v9  ;;  %v485_v9 = vmul.f32 %v484_v14, %v4879_v8 }
 0x20e   : > { %7895 = vst [vmem:[#allocation95_spill] sm:$0xff] %v5254_v36  ;;  %v1653_v36 = vmul.f32 %v5197_v38, %v1652_v26  ;;  %v474_v26 = vmul.f32 %v472_v3, %v4831_v27 }
 0x20f   : > { %v490_v61 = vstv %s5267_s10  ;;  %s5341_s10 = sld [smem:[#allocation8 + $0x4b]] }
 0x210   : > { %v7903_v16 = vstv %s5272_s23 }
 0x211   : > { %1643 = vrot.lane.b32.xlu0 %v1639_v19, %s7772_s22  ;;  %1671 = vrot.lane.b32.xlu1 %v1667_v47, %s7772_s22  ;;  %v431_v19 = vmul.f32 %v430_v55, %v4823_v17  ;;  %v478_v47 = vstv %s5212_s29  ;;  %s5314_s29 = sld [smem:[#allocation8 + $0xcf]]  ;;  %v5346_v55 = vmul.f32 %v460_v18, %v4831_v27  ;;  %v1708_v27 = vstv %s5292_s11 }
 0x212   : > { %1657 = vrot.lane.b32.xlu2 %v1653_v36, %s7772_s22  ;;  %v437_v36 = vmul.f32 %v436_v5, %v4823_v17  ;;  %v479_v41 = vmul.f32 %v478_v47, %v4879_v8  ;;  %s5494_s11 = sld [smem:[#allocation8 + $0xe5]] }
 0x213   : > { %v5283_v13 = vpop.permute.xlu0 %1147  ;;  %v5285_v12 = vpop.permute.xlu1 %1175 }
 0x214   : > { %7896 = vst [vmem:[#allocation96_spill] sm:$0xff] %v5283_v13  ;;  %v5290_v53 = vpop.permute.xlu2 %1219  ;;  %v5299_v13 = vmul.f32 %v442_v20, %v4823_v17  ;;  %v433_v20 = vadd.f32 %v431_v19, %v4665_v44  ;;  %v439_v44 = vadd.f32 %v437_v36, %v4669_v46  ;;  %v515_v36 = vmul.f32 %v7903_v16, %v4879_v8 }
 0x215   : > { %7897 = vst [vmem:[#allocation97_spill] sm:$0xff] %v5285_v12  ;;  %v5302_v12 = vmul.f32 %v454_v54, %v4823_v17  ;;  %v7900_v54 = vstv %s5252_s20  ;;  %v452_v16 = vadd.f32 %v5338_v1, %v4765_v33 }
 0x216   : > { %7898 = vst [vmem:[#allocation98_spill] sm:$0xff] %v5290_v53  ;;  %v5309_v53 = vmul.f32 %v460_v18, %v4823_v17  ;;  %v497_v5 = vmul.f32 %v7900_v54, %v4879_v8  ;;  %v480_v18 = vmul.f32 %v478_v47, %v4893_v21  ;;  %v5375_v46 = vadd.f32 %v485_v9, %v439_v44 }
 0x217   : > { %v1681_v47 = vmul.f32 %v5197_v38, %v1680_v25  ;;  %v445_v25 = vadd.f32 %v5299_v13, %v4676_v49  ;;  %v508_v44 = vstv %s5314_s29  ;;  %s5428_s29 = sld [smem:[#allocation8 + $0x6f]] }
 0x218   : > { %v5373_v45 = vadd.f32 %v497_v5, %v451_v22  ;;  %v503_v5 = vmul.f32 %v502_v60, %v4879_v8  ;;  %v463_v1 = vadd.f32 %v5309_v53, %v4777_v40  ;;  %v1438_v53 = vstv %s5330_s28  ;;  %s5503_s28 = sld [smem:[#allocation8 + $0xc]] }
 0x219   : > { %1659 = vrot.lane.b32.xlu0 %v1654_v23, %s7772_s22  ;;  %1687 = vrot.lane.b32.xlu1 %v1682_v4, %s7772_s22  ;;  %v520_v4 = vstv %s5280_s4  ;;  %v5349_v23 = vmul.f32 %v472_v3, %v4823_v17  ;;  %v5365_v17 = vadd.f32 %v479_v41, %v433_v20  ;;  %v504_v3 = vmul.f32 %v502_v60, %v4893_v21  ;;  %s5404_s4 = sld [smem:[#allocation8 + $0x79]] }
 0x21a   : > { %1673 = vrot.lane.b32.xlu2 %v1668_v30, %s7772_s22  ;;  %v486_v30 = vmul.f32 %v484_v14, %v4893_v21  ;;  %v440_v14 = vadd.f32 %v438_v43, %v4720_v6  ;;  %v492_v41 = vmul.f32 %v490_v61, %v4893_v21  ;;  %v491_v20 = vmul.f32 %v490_v61, %v4879_v8 }
 0x21b   : > { %v5351_v54 = vpop.permute.xlu0 %1163  ;;  %v5353_v15 = vpop.permute.xlu1 %1191  ;;  %v458_v6 = vadd.f32 %v456_v62, %v4723_v7  ;;  %v469_v43 = vadd.f32 %v467_v0, %v4674_v48  ;;  %v434_v61 = vadd.f32 %v432_v39, %v4733_v10  ;;  %v446_v48 = vadd.f32 %v444_v57, %v4735_v11 }
 0x21c   : > { %7901 = vst [vmem:[#allocation99_spill] sm:$0xff] %v5353_v15  ;;  %v5360_v19 = vpop.permute.xlu2 %1245  ;;  %v1694_v15 = vstv %s5304_s26  ;;  %v5396_v22 = vadd.f32 %v486_v30, %v440_v14  ;;  %v457_v60 = vadd.f32 %v5302_v12, %v4680_v52  ;;  %v522_v10 = vmul.f32 %v520_v4, %v4893_v21  ;;  %s5413_s26 = sld [smem:[#allocation8 + $0x93]] }
 0x21d   : > { %7902 = vst [vmem:[#allocation100_spill] sm:$0xff] %v5360_v19  ;;  %v1709_v19 = vmul.f32 %v5197_v38, %v1708_v27  ;;  %v1695_v9 = vmul.f32 %v5197_v38, %v1694_v15  ;;  %v5407_v7 = vadd.f32 %v515_v36, %v469_v43  ;;  %v5415_v49 = vadd.f32 %v504_v3, %v458_v6 }
 0x21e   : > { %v5417_v39 = vadd.f32 %v480_v18, %v434_v61  ;;  %v5419_v62 = vadd.f32 %v491_v20, %v445_v25  ;;  %v7905_v11 = vstv %s5252_s20  ;;  %v5430_v52 = vadd.f32 %v492_v41, %v446_v48  ;;  %s5439_s20 = sld [smem:[#allocation8 + $0xff]] }
 0x21f   : > { %7904 = vst [vmem:[#allocation101_spill] sm:$0xff] %v5407_v7  ;;  %v498_v13 = vmul.f32 %v7905_v11, %v4893_v21  ;;  %v5432_v12 = vadd.f32 %v503_v5, %v457_v60  ;;  %v476_v30 = vadd.f32 %v474_v26, %v4754_v28  ;;  %v7907_v3 = vstv %s5243_s19  ;;  %s5456_s19 = sld [smem:[#allocation8 + $0x54]] }
 0x220   : > { %v510_v36 = vmul.f32 %v508_v44, %v4893_v21  ;;  %v509_v20 = vmul.f32 %v508_v44, %v4879_v8  ;;  %v521_v41 = vmul.f32 %v520_v4, %v4879_v8  ;;  %v464_v26 = vadd.f32 %v5346_v55, %v4770_v37  ;;  %v5466_v37 = vld [vmem:[#allocation2 + $0x19] sm:$0xff] }
 0x221   : > { %1685 = vrot.lane.b32.xlu0 %v1681_v47, %s7772_s22  ;;  %1713 = vrot.lane.b32.xlu1 %v1709_v19, %s7772_s22  ;;  %v4243_v19 = vld [vmem:[#allocation2 + $0x38] sm:$0xff]  ;;  %v5448_v28 = vadd.f32 %v522_v10, %v476_v30  ;;  %v7910_v47 = vstv %s5272_s23  ;;  %v1722_v43 = vstv %s5322_s27  ;;  %v5458_v33 = vadd.f32 %v498_v13, %v452_v16  ;;  %7911 = vst [vmem:[#allocation105_spill] sm:$0xff] %v5466_v37  ;;  %s5475_s23 = sld [smem:[#allocation8 + $0x9c]]  ;;  %s7912_s27 = smov 127  }
 0x222   : > { %1699 = vrot.lane.b32.xlu2 %v1695_v9, %s7772_s22  ;;  %v468_v18 = vmul.f32 %v4243_v19, %v7907_v3  ;;  %s5446_s22 = sld [smem:[#allocation8 + $0xb7]]  ;;  %v516_v6 = vmul.f32 %v7910_v47, %v4893_v21  ;;  %v1696_v8 = vmul.f32 %v5221_v56, %v1694_v15  ;;  %v1724_v4 = vmul.f32 %v5221_v56, %v1722_v43 }
 0x223   : > { %v5424_v57 = vpop.permute.xlu0 %1189  ;;  %v5426_v0 = vpop.permute.xlu1 %1217  ;;  %7909 = vst [vmem:[#allocation104_spill] sm:$0xff] %v5448_v28  ;;  %v475_v21 = vadd.f32 %v5349_v23, %v4782_v42  ;;  %v1710_v5 = vmul.f32 %v5221_v56, %v1708_v27  ;;  %v1750_v9 = vstv %s5363_s8  ;;  %v5477_v40 = vadd.f32 %v510_v36, %v464_v26  ;;  %v5526_v26 = vld [vmem:[#allocation2 + $0x21] sm:$0xff]  ;;  %s5571_s8 = sld [smem:[#allocation8 + $0xdb]] }
 0x224   : > { %7906 = vst [vmem:[#allocation102_spill] sm:$0xff] %v5424_v57  ;;  %v5437_v14 = vpop.permute.xlu2 %1261  ;;  %v470_v55 = vadd.f32 %v468_v18, %v4786_v50  ;;  %v5479_v15 = vadd.f32 %v509_v20, %v463_v1  ;;  %v1736_v42 = vstv %s5370_s1  ;;  %v1723_v27 = vmul.f32 %v5197_v38, %v1722_v43  ;;  %s5628_s1 = sld [smem:[#allocation8 + $0x5e]] }
 0x225   : > { %7908 = vst [vmem:[#allocation103_spill] sm:$0xff] %v5437_v14  ;;  %v5487_v50 = vadd.f32 %v521_v41, %v475_v21  ;;  %v1444_v61 = vstv %s5341_s10  ;;  %v1751_v48 = vmul.f32 %v5466_v37, %v1750_v9  ;;  %v1764_v60 = vstv %s5380_s21  ;;  %s5524_s10 = sld [smem:[#allocation8 + $0xc0]] }
 0x226   : > { %v5489_v23 = vadd.f32 %v516_v6, %v470_v55  ;;  %v1432_v10 = vstv %s5355_s7  ;;  %v7775_v11 = vstv %s5413_s26  ;;  %v1737_v30 = vmul.f32 %v5466_v37, %v1736_v42  ;;  %7915 = vst [vmem:[#allocation108_spill] sm:$0xff] %v5526_v26  ;;  %s5542_s7 = sld [smem:[#allocation8 + $0x78]] }
 0x227   : > { %v5510_v19 = vmul.f32 %v5197_v38, %v1438_v53  ;;  %v1450_v3 = vstv %s5428_s29  ;;  %v7774_v18 = vstv %s5439_s20  ;;  %v5515_v16 = vmul.f32 %v5221_v56, %v1444_v61  ;;  %s5634_s21 = sld [smem:[#allocation8 + $0x3a]] }
 0x228   : > { %7913 = vst [vmem:[#allocation106_spill] sm:$0xff] %v5489_v23  ;;  %v5518_v36 = vmul.f32 %v5221_v56, %v1432_v10  ;;  %v5521_v20 = vmul.f32 %v5197_v38, %v1444_v61  ;;  %v1462_v41 = vstv %s5446_s22  ;;  %v5531_v47 = vmul.f32 %v5197_v38, %v7775_v11  ;;  %s5554_s22 = sld [smem:[#allocation8 + $0x108]] }
 0x229   : > { %1701 = vrot.lane.b32.xlu0 %v1696_v8, %s7912_s27  ;;  %1729 = vrot.lane.b32.xlu1 %v1724_v4, %s7912_s27  ;;  %v5534_v6 = vmul.f32 %v5197_v38, %v1432_v10  ;;  %v5537_v43 = vmul.f32 %v5221_v56, %v1462_v41  ;;  %v5540_v1 = vmul.f32 %v5221_v56, %v1438_v53  ;;  %v1792_v53 = vstv %s5394_s30  ;;  %s5661_s30 = sld [smem:[#allocation8 + $0x5d]] }
 0x22a   : > { %1715 = vrot.lane.b32.xlu2 %v1710_v5, %s7912_s27  ;;  %v551_v8 = vadd.f32 %v4863_v59, %v5375_v46  ;;  %v5547_v4 = vmul.f32 %v5221_v56, %v1450_v3  ;;  %v5552_v21 = vmul.f32 %v5197_v38, %v7774_v18  ;;  %v5557_v55 = vmul.f32 %v5197_v38, %v1450_v3  ;;  %s5758_s29 = sld [smem:[#allocation8 + $0x39]] }
 0x22b   : > { %v5496_v25 = vpop.permute.xlu0 %1205  ;;  %v5498_v44 = vpop.permute.xlu1 %1233  ;;  %7916 = vst [vmem:[#allocation109_spill] sm:$0xff] %v5540_v1  ;;  %v7776_v5 = vstv %s5388_s6  ;;  %v1778_v61 = vstv %s5404_s4  ;;  %v5563_v59 = vmul.f32 %v5197_v38, %v1462_v41  ;;  %v1738_v10 = vmul.f32 %v5526_v26, %v1736_v42  ;;  %s5678_s4 = sld [smem:[#allocation8 + $0x15]] }
 0x22c   : > { %v5506_v13 = vpop.permute.xlu2 %1287  ;;  %7917 = vst [vmem:[#allocation110_spill] sm:$0xff] %v5547_v4  ;;  %v663_v46 = vadd.f32 %v4905_v34, %v551_v8  ;;  %v1766_v3 = vmul.f32 %v5526_v26, %v1764_v60  ;;  %v1752_v38 = vmul.f32 %v5526_v26, %v1750_v9  ;;  %v1806_v41 = vstv %s5464_s0  ;;  %s5606_s0 = sld [smem:[#allocation8 + $0xe4]] }
 0x22d   : > { %7914 = vst [vmem:[#allocation107_spill] sm:$0xff] %v5506_v13  ;;  %v1834_v34 = vstv %s5485_s2  ;;  %v1820_v8 = vstv %s5494_s11  ;;  %v5586_v42 = vmul.f32 %v5466_v37, %v7776_v5  ;;  %v1492_v18 = vstv %s5456_s19  ;;  %s5618_s2 = sld [smem:[#allocation8 + $0x16]] }
 0x22e   : > { %7918 = vst [vmem:[#allocation111_spill] sm:$0xff] %v5552_v21  ;;  %v1480_v13 = vstv %s5503_s28  ;;  %v5593_v9 = vmul.f32 %v5466_v37, %v1764_v60  ;;  %v5596_v28 = vmul.f32 %v5466_v37, %v1792_v53  ;;  %v5613_v60 = vmul.f32 %v5466_v37, %v1834_v34  ;;  %s5770_s19 = sld [smem:[#allocation8 + $0x1e]] }
 0x22f   : > { %7919 = vst [vmem:[#allocation112_spill] sm:$0xff] %v5557_v55  ;;  %v5621_v55 = vmul.f32 %v5466_v37, %v1480_v13  ;;  %v1510_v7 = vstv %s5524_s10  ;;  %v1498_v21 = vstv %s5542_s7  ;;  %v7777_v4 = vstv %s5554_s22  ;;  %s5837_s11 = sld [smem:[#allocation8 + $0xca]] }
 0x230   : > { %7920 = vst [vmem:[#allocation113_spill] sm:$0xff] %v5563_v59  ;;  %v5616_v59 = vmul.f32 %v5466_v37, %v1820_v8  ;;  %v7925_v1 = vstv %s5413_s26  ;;  %v5642_v57 = vmul.f32 %v5526_v26, %v1492_v18  ;;  %s5692_s26 = sld [smem:[#allocation8 + $0x82]] }
 0x231   : > { %1727 = vrot.lane.b32.xlu0 %v1723_v27, %s7912_s27  ;;  %1755 = vrot.lane.b32.xlu1 %v1751_v48, %s7912_s27  ;;  %v775_v27 = vadd.f32 %v5009_v29, %v663_v46  ;;  %v5599_v29 = vmul.f32 %v5466_v37, %v1778_v61  ;;  %v7922_v46 = vstv %s5475_s23  ;;  %7923 = vst [vmem:[#allocation115_spill] sm:$0xff] %v5621_v55  ;;  %s5892_s28 = sld [smem:[#allocation8 + $0x8a]] }
 0x232   : > { %1741 = vrot.lane.b32.xlu2 %v1737_v30, %s7912_s27  ;;  %v5604_v5 = vmul.f32 %v5466_v37, %v7922_v46  ;;  %v5624_v46 = vmul.f32 %v5466_v37, %v1492_v18  ;;  %v5639_v23 = vmul.f32 %v5221_v56, %v7925_v1  ;;  %v5648_v55 = vmul.f32 %v5526_v26, %v1806_v41  ;;  %s5906_s10 = sld [smem:[#allocation8 + $0x42]] }
 0x233   : > { %v5579_v11 = vpop.permute.xlu0 %1231  ;;  %v5581_v48 = vpop.permute.xlu1 %1259  ;;  %v887_v14 = vadd.f32 %v5059_v24, %v775_v27  ;;  %v566_v24 = vadd.f32 %v4875_v2, %v5430_v52  ;;  %v5651_v2 = vmul.f32 %v5526_v26, %v1792_v53  ;;  %v7779_v18 = vstv %s5571_s8  ;;  %s5937_s7 = sld [smem:[#allocation8 + $0xc9]] }
 0x234   : > { %v5590_v30 = vpop.permute.xlu2 %1303  ;;  %7924 = vst [vmem:[#allocation116_spill] sm:$0xff] %v5624_v46  ;;  %v5645_v46 = vmul.f32 %v5526_v26, %v1778_v61  ;;  %v5665_v1 = vmul.f32 %v5526_v26, %v1510_v7 }
 0x235   : > { %7921 = vst [vmem:[#allocation114_spill] sm:$0xff] %v5590_v30  ;;  %v5610_v30 = vmul.f32 %v5466_v37, %v1806_v41  ;;  %v999_v27 = vadd.f32 %v5097_v58, %v887_v14  ;;  %v678_v58 = vadd.f32 %v4917_v51, %v566_v24  ;;  %v5658_v14 = vmul.f32 %v5526_v26, %v1480_v13 }
 0x236   : > { %7926 = vst [vmem:[#allocation117_spill] sm:$0xff] %v5639_v23  ;;  %v5670_v51 = vmul.f32 %v5466_v37, %v7777_v4  ;;  %v5676_v13 = vmul.f32 %v5466_v37, %v1510_v7  ;;  %v5690_v7 = vmul.f32 %v5526_v26, %v1834_v34  ;;  %v7929_v24 = vstv %s5388_s6  ;;  %s5727_s6 = sld [smem:[#allocation8 + $0x81]] }
 0x237   : > { %v1111_v52 = vadd.f32 %v5217_v31, %v999_v27  ;;  %v5673_v31 = vmul.f32 %v5466_v37, %v1498_v21  ;;  %v790_v53 = vadd.f32 %v5021_v63, %v678_v58  ;;  %v5697_v63 = vmul.f32 %v5526_v26, %v7929_v24  ;;  %v5708_v58 = vld [vmem:[#allocation2 + $0x31] sm:$0xff] }
 0x238   : > { %7928 = vst [vmem:[#allocation119_spill] sm:$0xff] %v5676_v13  ;;  %v5705_v27 = vmul.f32 %v5221_v56, %v7779_v18  ;;  %v1848_v4 = vstv %s5618_s2  ;;  %v7931_v37 = vstv %s5475_s23  ;;  %v7933_v24 = vld [vmem:[#allocation18_spill] sm:$0xff]  ;;  %v1862_v18 = vstv %s5634_s21  ;;  %s5810_s23 = sld [smem:[#allocation8 + $0x66]] }
 0x239   : > { %1743 = vrot.lane.b32.xlu0 %v1738_v10, %s7912_s27  ;;  %1771 = vrot.lane.b32.xlu1 %v1766_v3, %s7912_s27  ;;  %7927 = vst [vmem:[#allocation118_spill] sm:$0xff] %v5673_v31  ;;  %v1223_v61 = vadd.f32 %v5426_v0, %v1111_v52  ;;  %v5700_v0 = vmul.f32 %v5526_v26, %v1498_v21  ;;  %v1876_v31 = vstv %s5628_s1  ;;  %s5958_s2 = sld [smem:[#allocation8 + $0xd2]] }
 0x23a   : > { %1757 = vrot.lane.b32.xlu2 %v1752_v38, %s7912_s27  ;;  %v5687_v38 = vmul.f32 %v5526_v26, %v1820_v8  ;;  %7930 = vst [vmem:[#allocation120_spill] sm:$0xff] %v5705_v27  ;;  %v7780_v8 = vstv %s5606_s0  ;;  %v902_v34 = vadd.f32 %v5071_v35, %v790_v53  ;;  %v5715_v23 = vmul.f32 %v5526_v26, %v7931_v37  ;;  %v7935_v35 = vld [vmem:[#allocation21_spill] sm:$0xff]  ;;  %v7953_v27 = vld [vmem:[#allocation71_spill] sm:$0xff]  ;;  %s5985_s1 = sld [smem:[#allocation8 + $0xa6]] }
 0x23b   : > { %v5682_v10 = vpop.permute.xlu0 %1247  ;;  %v5684_v3 = vpop.permute.xlu1 %1275  ;;  %v537_v21 = vadd.f32 %v4839_v32, %v5365_v17  ;;  %v538_v13 = vadd.f32 %v7933_v24, %v5417_v39  ;;  %v5725_v56 = vmul.f32 %v5526_v26, %v7780_v8  ;;  %v593_v53 = vadd.f32 %v7935_v35, %v5432_v12  ;;  %v7937_v32 = vld [vmem:[#allocation15_spill] sm:$0xff]  ;;  %v7938_v39 = vld [vmem:[#allocation16_spill] sm:$0xff]  ;;  %s5998_s21 = sld [smem:[#allocation8 + $0xed]] }
 0x23c   : > { %v1330_v41 = vpop.permute.xlu2 %1329  ;;  %7932 = vst [vmem:[#allocation121_spill] sm:$0xff] %v5715_v23  ;;  %v5736_v17 = vadd.f32 %v7937_v32, %v5396_v22  ;;  %v5740_v24 = vadd.f32 %v7938_v39, %v5373_v45  ;;  %v7939_v8 = vld [vmem:[#allocation28_spill] sm:$0xff]  ;;  %v5746_v12 = vld [vmem:[#allocation2 + $0x39] sm:$0xff]  ;;  %v7782_v39 = vstv %s5692_s26 }
 0x23d   : > { %v1335_v52 = vadd.f32 %v1330_v41, %v1223_v61  ;;  %7934 = vst [vmem:[#allocation18_spill] sm:$0xff] %v5725_v56  ;;  %v7936_v61 = vld [vmem:[#allocation69_spill] sm:$0xff]  ;;  %v650_v26 = vadd.f32 %v7939_v8, %v538_v13  ;;  %v5744_v56 = vmul.f32 %v5708_v58, %v1848_v4  ;;  %v7943_v22 = vld [vmem:[#allocation38_spill] sm:$0xff]  ;;  %v5764_v8 = vmul.f32 %v5708_v58, %v1876_v31 }
 0x23e   : > { %v1014_v37 = vadd.f32 %v7936_v61, %v902_v34  ;;  %v7940_v34 = vld [vmem:[#allocation29_spill] sm:$0xff]  ;;  %v5785_v45 = vmul.f32 %v5746_v12, %v1848_v4  ;;  %v7952_v4 = vld [vmem:[#allocation20_spill] sm:$0xff] }
 0x23f   : > { %v1441_v41 = vadd.f32 %v5510_v19, %v1335_v52  ;;  %v705_v35 = vadd.f32 %v7940_v34, %v593_v53  ;;  %v7941_v19 = vld [vmem:[#allocation93_spill] sm:$0xff]  ;;  %v762_v13 = vadd.f32 %v7943_v22, %v650_v26  ;;  %v1528_v53 = vstv %s5678_s4  ;;  %v7947_v34 = vld [vmem:[#allocation60_spill] sm:$0xff]  ;;  %s6006_s4 = sld [smem:[#allocation8 + $0xa5]] }
 0x240   : > { %v1126_v52 = vadd.f32 %v7941_v19, %v1014_v37  ;;  %v7946_v37 = vld [vmem:[#allocation52_spill] sm:$0xff]  ;;  %v5788_v23 = vmul.f32 %v5746_v12, %v1528_v53 }
 0x241   : > { %v5751_v61 = vadd.f32 %v5586_v42, %v1441_v41  ;;  %1769 = vrot.lane.b32.xlu0 %v5593_v9, %s7912_s27  ;;  %1797 = vrot.lane.b32.xlu1 %v5596_v28, %s7912_s27  ;;  %v5767_v42 = vmul.f32 %v5708_v58, %v1862_v18  ;;  %v7945_v28 = vld [vmem:[#allocation17_spill] sm:$0xff]  ;;  %v817_v26 = vadd.f32 %v7946_v37, %v705_v35 }
 0x242   : > { %1783 = vrot.lane.b32.xlu2 %v5599_v29, %s7912_s27  ;;  %v5774_v9 = vadd.f32 %v7945_v28, %v5415_v49  ;;  %v1238_v41 = vadd.f32 %v5498_v44, %v1126_v52  ;;  %v874_v19 = vadd.f32 %v7947_v34, %v762_v13  ;;  %v7948_v49 = vstv %s5661_s30  ;;  %v7949_v44 = vld [vmem:[#allocation63_spill] sm:$0xff] }
 0x243   : > { %7942 = vst [vmem:[#allocation21_spill] sm:$0xff] %v5751_v61  ;;  %v5778_v32 = vpop.permute.xlu0 %1273  ;;  %v5780_v29 = vpop.permute.xlu1 %1301  ;;  %v5793_v35 = vmul.f32 %v5708_v58, %v7948_v49  ;;  %v929_v52 = vadd.f32 %v7949_v44, %v817_v26  ;;  %v5797_v37 = vmul.f32 %v5746_v12, %v1862_v18  ;;  %v5802_v13 = vmul.f32 %v5746_v12, %v7782_v39 }
 0x244   : > { %7944 = vst [vmem:[#allocation69_spill] sm:$0xff] %v5767_v42  ;;  %v1346_v22 = vpop.permute.xlu2 %1345  ;;  %v565_v34 = vadd.f32 %v7952_v4, %v5419_v62  ;;  %v986_v61 = vadd.f32 %v7953_v27, %v874_v19  ;;  %v5808_v42 = vmul.f32 %v5746_v12, %v1876_v31  ;;  %v7783_v26 = vstv %s5727_s6  ;;  %v7957_v62 = vld [vmem:[#allocation30_spill] sm:$0xff]  ;;  %v7958_v27 = vld [vmem:[#allocation31_spill] sm:$0xff]  ;;  %v7959_v19 = vld [vmem:[#allocation81_spill] sm:$0xff] }
 0x245   : > { %v1350_v28 = vadd.f32 %v1346_v22, %v1238_v41  ;;  %7950 = vst [vmem:[#allocation15_spill] sm:$0xff] %v5797_v37  ;;  %v7955_v41 = vld [vmem:[#allocation24_spill] sm:$0xff]  ;;  %v5818_v39 = vmul.f32 %v5708_v58, %v1528_v53  ;;  %v649_v4 = vadd.f32 %v7957_v62, %v537_v21  ;;  %v7784_v21 = vstv %s5758_s29  ;;  %v7963_v53 = vld [vmem:[#allocation41_spill] sm:$0xff] }
 0x246   : > { %7951 = vst [vmem:[#allocation16_spill] sm:$0xff] %v5802_v13  ;;  %v608_v18 = vadd.f32 %v7955_v41, %v5477_v40  ;;  %v7956_v22 = vld [vmem:[#allocation72_spill] sm:$0xff]  ;;  %v677_v31 = vadd.f32 %v7958_v27, %v565_v34  ;;  %v5826_v13 = vmul.f32 %v5746_v12, %v7783_v26  ;;  %v7973_v26 = vld [vmem:[#allocation73_spill] sm:$0xff] }
 0x247   : > { %7954 = vst [vmem:[#allocation28_spill] sm:$0xff] %v5808_v42  ;;  %v1041_v49 = vadd.f32 %v7956_v22, %v929_v52  ;;  %v1448_v44 = vadd.f32 %v5515_v16, %v1350_v28  ;;  %v1098_v42 = vadd.f32 %v7959_v19, %v986_v61  ;;  %v7960_v37 = vld [vmem:[#allocation32_spill] sm:$0xff]  ;;  %v5840_v61 = vld [vmem:[#allocation2 + $0x51] sm:$0xff] }
 0x248   : > { %v720_v40 = vadd.f32 %v7960_v37, %v608_v18  ;;  %v7961_v41 = vld [vmem:[#allocation96_spill] sm:$0xff]  ;;  %v789_v28 = vadd.f32 %v7963_v53, %v677_v31  ;;  %v7964_v37 = vld [vmem:[#allocation43_spill] sm:$0xff]  ;;  %v7970_v19 = vld [vmem:[#allocation62_spill] sm:$0xff] }
 0x249   : > { %v1153_v52 = vadd.f32 %v7961_v41, %v1041_v49  ;;  %v5831_v16 = vadd.f32 %v5642_v57, %v1448_v44  ;;  %1785 = vrot.lane.b32.xlu0 %v5645_v46, %s7912_s27  ;;  %1813 = vrot.lane.b32.xlu1 %v5648_v55, %s7912_s27  ;;  %v761_v34 = vadd.f32 %v7964_v37, %v649_v4  ;;  %v1576_v57 = vstv %s5770_s19  ;;  %v7965_v46 = vld [vmem:[#allocation23_spill] sm:$0xff]  ;;  %s6022_s19 = sld [smem:[#allocation8 + $0xae]] }
 0x24a   : > { %v1210_v18 = vadd.f32 %v5496_v25, %v1098_v42  ;;  %1799 = vrot.lane.b32.xlu2 %v5651_v2, %s7912_s27  ;;  %v580_v22 = vadd.f32 %v7965_v46, %v5458_v33  ;;  %v7966_v49 = vld [vmem:[#allocation55_spill] sm:$0xff]  ;;  %v5857_v4 = vmul.f32 %v5746_v12, %v7784_v21  ;;  %v7968_v25 = vld [vmem:[#allocation25_spill] sm:$0xff]  ;;  %v901_v41 = vadd.f32 %v7970_v19, %v789_v28 }
 0x24b   : > { %7962 = vst [vmem:[#allocation29_spill] sm:$0xff] %v5831_v16  ;;  %v832_v55 = vadd.f32 %v7966_v49, %v720_v40  ;;  %v1265_v44 = vadd.f32 %v5581_v48, %v1153_v52  ;;  %v5852_v62 = vpop.permute.xlu0 %1289  ;;  %v1318_v27 = vpop.permute.xlu1 %1317  ;;  %v607_v42 = vadd.f32 %v7968_v25, %v5479_v15  ;;  %v7969_v2 = vld [vmem:[#allocation51_spill] sm:$0xff]  ;;  %v7971_v40 = vld [vmem:[#allocation26_spill] sm:$0xff]  ;;  %v1578_v49 = vmul.f32 %v5840_v61, %v1576_v57  ;;  %v7975_v28 = vld [vmem:[#allocation33_spill] sm:$0xff] }
 0x24c   : > { %7967 = vst [vmem:[#allocation93_spill] sm:$0xff] %v5852_v62  ;;  %v873_v31 = vadd.f32 %v7969_v2, %v761_v34  ;;  %v1322_v33 = vadd.f32 %v1318_v27, %v1210_v18  ;;  %v1372_v53 = vpop.permute.xlu2 %1371  ;;  %v635_v48 = vadd.f32 %v7971_v40, %v5487_v50  ;;  %v7972_v52 = vld [vmem:[#allocation66_spill] sm:$0xff]  ;;  %v1588_v34 = vstv %s5810_s23  ;;  %v7977_v2 = vld [vmem:[#allocation75_spill] sm:$0xff]  ;;  %s6131_s23 = sld [smem:[#allocation8 + $0x11a]] }
 0x24d   : > { %v944_v37 = vadd.f32 %v7972_v52, %v832_v55  ;;  %v1377_v46 = vadd.f32 %v1372_v53, %v1265_v44  ;;  %v7974_v16 = vld [vmem:[#allocation74_spill] sm:$0xff]  ;;  %v664_v18 = vadd.f32 %v7975_v28, %v5736_v17  ;;  %v5876_v44 = vld [vmem:[#allocation2 + $0x49] sm:$0xff]  ;;  %v7978_v19 = vld [vmem:[#allocation35_spill] sm:$0xff] }
 0x24e   : > { %v985_v21 = vadd.f32 %v7973_v26, %v873_v31  ;;  %v1013_v62 = vadd.f32 %v7974_v16, %v901_v41  ;;  %v1436_v15 = vadd.f32 %v5518_v36, %v1322_v33  ;;  %v7976_v27 = vld [vmem:[#allocation34_spill] sm:$0xff]  ;;  %v747_v53 = vadd.f32 %v7978_v19, %v635_v48  ;;  %v7979_v26 = vld [vmem:[#allocation84_spill] sm:$0xff] }
 0x24f   : > { %v692_v25 = vadd.f32 %v7976_v27, %v580_v22  ;;  %v1056_v50 = vadd.f32 %v7977_v2, %v944_v37  ;;  %v1459_v55 = vadd.f32 %v5531_v47, %v1377_v46  ;;  %v7980_v16 = vld [vmem:[#allocation86_spill] sm:$0xff]  ;;  %v1918_v47 = vstv %s5837_s11  ;;  %v7986_v27 = vld [vmem:[#allocation65_spill] sm:$0xff]  ;;  %v7989_v19 = vld [vmem:[#allocation68_spill] sm:$0xff]  ;;  %s3984_s11 = sld [smem:[#allocation8 + $0xaf]] }
 0x250   : > { %v1125_v31 = vadd.f32 %v7979_v26, %v1013_v62  ;;  %v1097_v41 = vadd.f32 %v7980_v16, %v985_v21  ;;  %v1484_v36 = vadd.f32 %v5658_v14, %v1436_v15  ;;  %v7981_v33 = vld [vmem:[#allocation46_spill] sm:$0xff]  ;;  %v7982_v21 = vld [vmem:[#allocation44_spill] sm:$0xff]  ;;  %v7983_v14 = vld [vmem:[#allocation95_spill] sm:$0xff] }
 0x251   : > { %v776_v40 = vadd.f32 %v7981_v33, %v664_v18  ;;  %v1168_v17 = vadd.f32 %v5351_v54, %v1056_v50  ;;  %v5885_v22 = vadd.f32 %v5604_v5, %v1459_v55  ;;  %1811 = vrot.lane.b32.xlu0 %v5610_v30, %s7912_s27  ;;  %1839 = vrot.lane.b32.xlu1 %v5613_v60, %s7912_s27  ;;  %v7984_v5 = vld [vmem:[#allocation54_spill] sm:$0xff] }
 0x252   : > { %v804_v62 = vadd.f32 %v7982_v21, %v692_v25  ;;  %v1209_v48 = vadd.f32 %v7983_v14, %v1097_v41  ;;  %v1237_v52 = vadd.f32 %v5579_v11, %v1125_v31  ;;  %1825 = vrot.lane.b32.xlu2 %v5616_v59, %s7912_s27  ;;  %v1532_v54 = vadd.f32 %v5788_v23, %v1484_v36  ;;  %v7985_v30 = vld [vmem:[#allocation58_spill] sm:$0xff]  ;;  %v7988_v23 = vld [vmem:[#allocation37_spill] sm:$0xff]  ;;  %v7990_v31 = vld [vmem:[#allocation76_spill] sm:$0xff] }
 0x253   : > { %v888_v37 = vadd.f32 %v7984_v5, %v776_v40  ;;  %v859_v46 = vadd.f32 %v7985_v30, %v747_v53  ;;  %v1280_v60 = vadd.f32 %v5684_v3, %v1168_v17  ;;  %v1316_v15 = vpop.permute.xlu0 %1315  ;;  %v1344_v28 = vpop.permute.xlu1 %1343  ;;  %v1589_v18 = vmul.f32 %v5876_v44, %v1588_v34  ;;  %v7991_v41 = vld [vmem:[#allocation77_spill] sm:$0xff]  ;;  %v7992_v17 = vld [vmem:[#allocation36_spill] sm:$0xff]  ;;  %v7993_v21 = vld [vmem:[#allocation47_spill] sm:$0xff] }
 0x254   : > { %v916_v11 = vadd.f32 %v7986_v27, %v804_v62  ;;  %v1321_v25 = vadd.f32 %v1316_v15, %v1209_v48  ;;  %v1349_v2 = vadd.f32 %v1344_v28, %v1237_v52  ;;  %v1388_v59 = vpop.permute.xlu2 %1387  ;;  %v5909_v50 = vadd.f32 %v1578_v49, %v1532_v54  ;;  %v7995_v52 = vld [vmem:[#allocation87_spill] sm:$0xff]  ;;  %v7996_v54 = vld [vmem:[#allocation89_spill] sm:$0xff]  ;;  %v8001_v27 = vld [vmem:[#allocation98_spill] sm:$0xff] }
 0x255   : > { %v719_v55 = vadd.f32 %v7988_v23, %v607_v42  ;;  %v971_v53 = vadd.f32 %v7989_v19, %v859_v46  ;;  %v1392_v26 = vadd.f32 %v1388_v59, %v1280_v60  ;;  %v1577_v3 = vmul.f32 %v5876_v44, %v1576_v57  ;;  %v7994_v42 = vld [vmem:[#allocation78_spill] sm:$0xff]  ;;  %v7998_v46 = vld [vmem:[#allocation116_spill] sm:$0xff]  ;;  %v8002_v59 = vld [vmem:[#allocation57_spill] sm:$0xff] }
 0x256   : > { %7987 = vst [vmem:[#allocation38_spill] sm:$0xff] %v5909_v50  ;;  %v1000_v16 = vadd.f32 %v7990_v31, %v888_v37  ;;  %v1028_v36 = vadd.f32 %v7991_v41, %v916_v11  ;;  %v1435_v33 = vadd.f32 %v5534_v6, %v1321_v25  ;;  %v1447_v40 = vadd.f32 %v5521_v20, %v1349_v2  ;;  %v7997_v37 = vld [vmem:[#allocation115_spill] sm:$0xff]  ;;  %v7999_v6 = vld [vmem:[#allocation48_spill] sm:$0xff]  ;;  %v8000_v20 = vld [vmem:[#allocation102_spill] sm:$0xff] }
 0x257   : > { %v691_v49 = vadd.f32 %v7992_v17, %v5740_v24  ;;  %v831_v62 = vadd.f32 %v7993_v21, %v719_v55  ;;  %v1083_v14 = vadd.f32 %v7994_v42, %v971_v53  ;;  %v1466_v48 = vadd.f32 %v5537_v43, %v1392_v26  ;;  %v8003_v23 = vld [vmem:[#allocation67_spill] sm:$0xff] }
 0x258   : > { %v1140_v57 = vadd.f32 %v7995_v52, %v1028_v36  ;;  %v1112_v5 = vadd.f32 %v7996_v54, %v1000_v16  ;;  %v1483_v30 = vadd.f32 %v7997_v37, %v1435_v33  ;;  %v1495_v60 = vadd.f32 %v7998_v46, %v1447_v40  ;;  %v8006_v36 = vld [vmem:[#allocation27_spill] sm:$0xff]  ;;  %v8013_v54 = vld [vmem:[#allocation40_spill] sm:$0xff] }
 0x259   : > { %v803_v15 = vadd.f32 %v7999_v6, %v691_v49  ;;  %v1195_v28 = vadd.f32 %v8000_v20, %v1083_v14  ;;  %v5930_v24 = vadd.f32 %v5665_v1, %v1466_v48  ;;  %1827 = vrot.lane.b32.xlu0 %v5687_v38, %s7912_s27  ;;  %1855 = vrot.lane.b32.xlu1 %v5785_v45, %s7912_s27  ;;  %v1594_v43 = vstv %s5892_s28  ;;  %v8008_v49 = vld [vmem:[#allocation79_spill] sm:$0xff]  ;;  %s3986_s28 = sld [smem:[#allocation8 + $0xf7]] }
 0x25a   : > { %v1224_v11 = vadd.f32 %v8001_v27, %v1112_v5  ;;  %v1252_v25 = vadd.f32 %v5682_v10, %v1140_v57  ;;  %1841 = vrot.lane.b32.xlu2 %v5690_v7, %s7912_s27  ;;  %v1543_v1 = vadd.f32 %v5793_v35, %v1495_v60  ;;  %v1531_v2 = vadd.f32 %v5818_v39, %v1483_v30  ;;  %v8005_v35 = vld [vmem:[#allocation106_spill] sm:$0xff]  ;;  %v8012_v52 = vld [vmem:[#allocation39_spill] sm:$0xff] }
 0x25b   : > { %v915_v38 = vadd.f32 %v8002_v59, %v803_v15  ;;  %v943_v45 = vadd.f32 %v8003_v23, %v831_v62  ;;  %v1307_v55 = vadd.f32 %v5780_v29, %v1195_v28  ;;  %v1332_v19 = vpop.permute.xlu0 %1331  ;;  %v1360_v53 = vpop.permute.xlu1 %1359  ;;  %v1582_v26 = vstv %s5906_s10  ;;  %v8009_v62 = vld [vmem:[#allocation80_spill] sm:$0xff]  ;;  %v8014_v37 = vld [vmem:[#allocation111_spill] sm:$0xff]  ;;  %v8015_v60 = vld [vmem:[#allocation90_spill] sm:$0xff]  ;;  %s3985_s10 = sld [smem:[#allocation8 + $0xd3]] }
 0x25c   : > { %v1336_v31 = vadd.f32 %v1332_v19, %v1224_v11  ;;  %v1364_v10 = vadd.f32 %v1360_v53, %v1252_v25  ;;  %v1414_v16 = vpop.permute.xlu2 %1413  ;;  %v5949_v41 = vadd.f32 %v1589_v18, %v1543_v1  ;;  %v5951_v7 = vadd.f32 %v1577_v3, %v1531_v2  ;;  %v8010_v18 = vld [vmem:[#allocation109_spill] sm:$0xff]  ;;  %v8011_v3 = vld [vmem:[#allocation110_spill] sm:$0xff]  ;;  %v8016_v15 = vld [vmem:[#allocation91_spill] sm:$0xff] }
 0x25d   : > { %v622_v39 = vadd.f32 %v8006_v36, %v8005_v35  ;;  %v1419_v33 = vadd.f32 %v1414_v16, %v1307_v55  ;;  %v1596_v40 = vmul.f32 %v5840_v61, %v1594_v43  ;;  %v8007_v29 = vstv %s5758_s29  ;;  %v8017_v11 = vld [vmem:[#allocation49_spill] sm:$0xff]  ;;  %v8018_v1 = vld [vmem:[#allocation50_spill] sm:$0xff]  ;;  %v8021_v55 = vld [vmem:[#allocation59_spill] sm:$0xff]  ;;  %s6016_s29 = sld [smem:[#allocation8 + $0xf6]] }
 0x25e   : > { %8004 = vst [vmem:[#allocation17_spill] sm:$0xff] %v5949_v41  ;;  %v1535_v17 = vmul.f32 %v5708_v58, %v8007_v29  ;;  %v1027_v21 = vadd.f32 %v8008_v49, %v915_v38  ;;  %v1055_v42 = vadd.f32 %v8009_v62, %v943_v45  ;;  %v1442_v14 = vadd.f32 %v8010_v18, %v1336_v31  ;;  %v8019_v38 = vld [vmem:[#allocation100_spill] sm:$0xff]  ;;  %v8020_v23 = vld [vmem:[#allocation69_spill] sm:$0xff]  ;;  %v8022_v19 = vld [vmem:[#allocation70_spill] sm:$0xff] }
 0x25f   : > { %v1454_v48 = vadd.f32 %v8011_v3, %v1364_v10  ;;  %v706_v57 = vadd.f32 %v8012_v52, %v5774_v9  ;;  %v734_v5 = vadd.f32 %v8013_v54, %v622_v39  ;;  %v1477_v30 = vadd.f32 %v8014_v37, %v1419_v33  ;;  %v8023_v16 = vld [vmem:[#allocation21_spill] sm:$0xff]  ;;  %v8027_v29 = vld [vmem:[#allocation19_spill] sm:$0xff]  ;;  %v8031_v3 = vld [vmem:[#allocation112_spill] sm:$0xff] }
 0x260   : > { %v1584_v46 = vmul.f32 %v5840_v61, %v1582_v26  ;;  %v1167_v6 = vadd.f32 %v8015_v60, %v1055_v42  ;;  %v1139_v20 = vadd.f32 %v8016_v15, %v1027_v21  ;;  %v1490_v28 = vadd.f32 %v5697_v63, %v1442_v14  ;;  %v8026_v33 = vld [vmem:[#allocation101_spill] sm:$0xff]  ;;  %v8029_v42 = vld [vmem:[#allocation82_spill] sm:$0xff]  ;;  %v8036_v15 = vld [vmem:[#allocation92_spill] sm:$0xff] }
 0x261   : > { %v1502_v27 = vadd.f32 %v5700_v0, %v1454_v48  ;;  %v846_v25 = vadd.f32 %v8017_v11, %v734_v5  ;;  %v818_v2 = vadd.f32 %v8018_v1, %v706_v57  ;;  %v5979_v9 = vadd.f32 %v5670_v51, %v1477_v30  ;;  %1853 = vrot.lane.b32.xlu0 %v5744_v56, %s7912_s27  ;;  %v8032_v52 = vld [vmem:[#allocation113_spill] sm:$0xff]  ;;  %v8033_v54 = vld [vmem:[#allocation42_spill] sm:$0xff]  ;;  %v8039_v1 = vld [vmem:[#allocation119_spill] sm:$0xff] }
 0x262   : > { %1881 = vrot.lane.b32.xlu1 %v5764_v8, %s7912_s27  ;;  %v1558_v59 = vstv %s5937_s7  ;;  %v1251_v63 = vadd.f32 %v8019_v38, %v1139_v20  ;;  %v1279_v0 = vadd.f32 %v5778_v32, %v1167_v6  ;;  %1867 = vrot.lane.b32.xlu2 %v8020_v23, %s7912_s27  ;;  %v1538_v51 = vadd.f32 %v5857_v4, %v1490_v28  ;;  %v8037_v28 = vld [vmem:[#allocation94_spill] sm:$0xff]  ;;  %v8040_v38 = vld [vmem:[#allocation53_spill] sm:$0xff]  ;;  %v8042_v23 = vld [vmem:[#allocation16_spill] sm:$0xff]  ;;  %s3987_s7 = sld [smem:[#allocation8 + $0x11b]] }
 0x263   : > { %v1550_v45 = vadd.f32 %v5826_v13, %v1502_v27  ;;  %v930_v56 = vadd.f32 %v8021_v55, %v818_v2  ;;  %v958_v8 = vadd.f32 %v8022_v19, %v846_v25  ;;  %v1358_v53 = vpop.permute.xlu0 %1357  ;;  %v1386_v31 = vpop.permute.xlu1 %1385  ;;  %v1583_v10 = vmul.f32 %v5876_v44, %v1582_v26  ;;  %v8038_v11 = vld [vmem:[#allocation118_spill] sm:$0xff] }
 0x264   : > { %v1537_v35 = vadd.f32 %v1535_v17, %v8023_v16  ;;  %v1363_v32 = vadd.f32 %v1358_v53, %v1251_v63  ;;  %v1391_v36 = vadd.f32 %v1386_v31, %v1279_v0  ;;  %v6000_v13 = vpop.permute.xlu2 %1631  ;;  %v6004_v39 = vadd.f32 %v1584_v46, %v1538_v51  ;;  %v8041_v0 = vld [vmem:[#allocation15_spill] sm:$0xff]  ;;  %v8045_v31 = vld [vmem:[#allocation28_spill] sm:$0xff] }
 0x265   : > { %8024 = vst [vmem:[#allocation52_spill] sm:$0xff] %v6000_v13  ;;  %v6002_v4 = vadd.f32 %v1596_v40, %v1550_v45  ;;  %v621_v26 = vadd.f32 %v8027_v29, %v8026_v33  ;;  %v8028_v49 = vstv %s5692_s26  ;;  %v1606_v21 = vstv %s5958_s2  ;;  %v8030_v40 = vld [vmem:[#allocation83_spill] sm:$0xff]  ;;  %v8048_v33 = vld [vmem:[#allocation61_spill] sm:$0xff]  ;;  %s6110_s26 = sld [smem:[#allocation8 + $0x1f]] }
 0x266   : > { %v1891_v17 = vmul.f32 %v5708_v58, %v8028_v49  ;;  %v6014_v62 = vadd.f32 %v1583_v10, %v1537_v35  ;;  %v1042_v18 = vadd.f32 %v8029_v42, %v930_v56  ;;  %v1070_v14 = vadd.f32 %v8030_v40, %v958_v8  ;;  %v8043_v56 = vld [vmem:[#allocation103_spill] sm:$0xff]  ;;  %v8044_v8 = vld [vmem:[#allocation93_spill] sm:$0xff]  ;;  %v8046_v35 = vld [vmem:[#allocation104_spill] sm:$0xff]  ;;  %s3989_s2 = sld [smem:[#allocation8 + $0x29]] }
 0x267   : > { %8025 = vst [vmem:[#allocation60_spill] sm:$0xff] %v6002_v4  ;;  %v1453_v48 = vadd.f32 %v8031_v3, %v1363_v32  ;;  %v1465_v57 = vadd.f32 %v8032_v52, %v1391_v36  ;;  %v733_v5 = vadd.f32 %v8033_v54, %v621_v26  ;;  %v1559_v37 = vmul.f32 %v5708_v58, %v1558_v59  ;;  %v8047_v32 = vld [vmem:[#allocation22_spill] sm:$0xff]  ;;  %v8049_v42 = vld [vmem:[#allocation29_spill] sm:$0xff] }
 0x268   : > { %v8034_v30 = vstv %s5727_s6  ;;  %v8035_v60 = vstv %s5661_s30  ;;  %v1182_v20 = vadd.f32 %v8036_v15, %v1070_v14  ;;  %v1154_v27 = vadd.f32 %v8037_v28, %v1042_v18  ;;  %v8055_v15 = vld [vmem:[#allocation120_spill] sm:$0xff]  ;;  %s6075_s30 = sld [smem:[#allocation8 + $0xee]] }
 0x269   : > { %v1547_v46 = vmul.f32 %v5708_v58, %v8034_v30  ;;  %v1542_v6 = vmul.f32 %v5746_v12, %v8035_v60  ;;  %v1501_v25 = vadd.f32 %v8038_v11, %v1453_v48  ;;  %v1513_v2 = vadd.f32 %v8039_v1, %v1465_v57  ;;  %1869 = vrot.lane.b32.xlu0 %v8041_v0, %s7912_s27  ;;  %v8053_v30 = vld [vmem:[#allocation85_spill] sm:$0xff]  ;;  %s6125_s6 = sld [smem:[#allocation8 + $0x111]] }
 0x26a   : > { %v845_v63 = vadd.f32 %v8040_v38, %v733_v5  ;;  %1897 = vrot.lane.b32.xlu1 %v8042_v23, %s7912_s27  ;;  %v1904_v45 = vstv %s5985_s1  ;;  %v1607_v51 = vmul.f32 %v5876_v44, %v1606_v21  ;;  %v1595_v55 = vmul.f32 %v5876_v44, %v1594_v43  ;;  %1883 = vrot.lane.b32.xlu2 %v8045_v31, %s7912_s27  ;;  %v8056_v1 = vld [vmem:[#allocation45_spill] sm:$0xff]  ;;  %s3988_s1 = sld [smem:[#allocation8 + $0x5]] }
 0x26b   : > { %v1266_v19 = vadd.f32 %v8043_v56, %v1154_v27  ;;  %v1294_v53 = vadd.f32 %v8044_v8, %v1182_v20  ;;  %v1561_v10 = vadd.f32 %v1559_v37, %v1513_v2  ;;  %v1549_v16 = vadd.f32 %v1547_v46, %v1501_v25  ;;  %v1374_v26 = vpop.permute.xlu0 %1373  ;;  %v1402_v49 = vpop.permute.xlu1 %1401  ;;  %v8057_v38 = vld [vmem:[#allocation97_spill] sm:$0xff] }
 0x26c   : > { %v636_v36 = vadd.f32 %v8047_v32, %v8046_v35  ;;  %v957_v29 = vadd.f32 %v8048_v33, %v845_v63  ;;  %v1590_v43 = vmul.f32 %v5840_v61, %v1588_v34  ;;  %v1544_v18 = vadd.f32 %v1542_v6, %v8049_v42  ;;  %v6061_v3 = vpop.permute.xlu2 %1657  ;;  %v8054_v34 = vld [vmem:[#allocation117_spill] sm:$0xff]  ;;  %v8063_v42 = vld [vmem:[#allocation64_spill] sm:$0xff] }
 0x26d   : > { %v1378_v40 = vadd.f32 %v1374_v26, %v1266_v19  ;;  %v1406_v14 = vadd.f32 %v1402_v49, %v1294_v53  ;;  %8050 = vst [vmem:[#allocation63_spill] sm:$0xff] %v6061_v3  ;;  %v6063_v48 = vadd.f32 %v1607_v51, %v1561_v10  ;;  %v6065_v52 = vadd.f32 %v1595_v55, %v1549_v16  ;;  %v8058_v0 = vld [vmem:[#allocation121_spill] sm:$0xff]  ;;  %v8059_v51 = vld [vmem:[#allocation18_spill] sm:$0xff]  ;;  %v8060_v53 = vld [vmem:[#allocation56_spill] sm:$0xff] }
 0x26e   : > { %v1564_v57 = vstv %s5998_s21  ;;  %v1612_v54 = vstv %s6016_s29  ;;  %v6069_v5 = vadd.f32 %v1590_v43, %v1544_v18  ;;  %v1552_v37 = vstv %s6006_s4  ;;  %v8061_v10 = vld [vmem:[#allocation107_spill] sm:$0xff]  ;;  %s3990_s21 = sld [smem:[#allocation8 + $0x4d]]  ;;  %s8084_s4 = smov 126  }
 0x26f   : > { %8051 = vst [vmem:[#allocation20_spill] sm:$0xff] %v6063_v48  ;;  %v1069_v46 = vadd.f32 %v8053_v30, %v957_v29  ;;  %v1460_v60 = vadd.f32 %v8054_v34, %v1378_v40  ;;  %v1472_v6 = vadd.f32 %v8055_v15, %v1406_v14  ;;  %v1600_v20 = vstv %s6022_s19  ;;  %v8066_v34 = vld [vmem:[#allocation88_spill] sm:$0xff]  ;;  %v8068_v15 = vld [vmem:[#allocation105_spill] sm:$0xff]  ;;  %s3992_s29 = sld [smem:[#allocation8 + $0x95]] }
 0x270   : > { %8052 = vst [vmem:[#allocation71_spill] sm:$0xff] %v6069_v5  ;;  %v1919_v28 = vmul.f32 %v5708_v58, %v1918_v47  ;;  %v1905_v27 = vmul.f32 %v5708_v58, %v1904_v45  ;;  %v1566_v11 = vmul.f32 %v5746_v12, %v1564_v57  ;;  %v1554_v25 = vmul.f32 %v5746_v12, %v1552_v37  ;;  %s3991_s19 = sld [smem:[#allocation8 + $0x71]] }
 0x271   : > { %v748_v2 = vadd.f32 %v8056_v1, %v636_v36  ;;  %v1181_v63 = vadd.f32 %v8057_v38, %v1069_v46  ;;  %v1508_v23 = vadd.f32 %v8058_v0, %v1460_v60  ;;  %v1520_v55 = vadd.f32 %v8059_v51, %v1472_v6  ;;  %1895 = vrot.lane.b32.xlu0 %v1891_v17, %s7912_s27  ;;  %v6098_v36 = vld [vmem:[#allocation2 + $0x1] sm:$0xff]  ;;  %v8070_v0 = vld [vmem:[#allocation114_spill] sm:$0xff] }
 0x272   : > { %1923 = vrot.lane.b32.xlu1 %v1919_v28, %s7912_s27  ;;  %v1614_v56 = vmul.f32 %v5840_v61, %v1612_v54  ;;  %v1602_v19 = vmul.f32 %v5840_v61, %v1600_v20  ;;  %v1553_v8 = vmul.f32 %v5708_v58, %v1552_v37  ;;  %1909 = vrot.lane.b32.xlu2 %v1905_v27, %s7912_s27  ;;  %v8062_v17 = vstv %s5571_s8  ;;  %s6116_s8 = sld [smem:[#allocation8 + $0x112]] }
 0x273   : > { %v860_v31 = vadd.f32 %v8060_v53, %v748_v2  ;;  %v1293_v16 = vadd.f32 %v8061_v10, %v1181_v63  ;;  %v1568_v35 = vadd.f32 %v1566_v11, %v1520_v55  ;;  %v1556_v32 = vadd.f32 %v1554_v25, %v1508_v23  ;;  %v1400_v29 = vpop.permute.xlu0 %1399  ;;  %v6103_v26 = vpop.permute.xlu1 %1629  ;;  %v8069_v25 = vld [vmem:[#allocation99_spill] sm:$0xff] }
 0x274   : > { %v1469_v33 = vmul.f32 %v6098_v36, %v8062_v17  ;;  %v1601_v49 = vmul.f32 %v5876_v44, %v1600_v20  ;;  %v1555_v43 = vadd.f32 %v1553_v8, %v5885_v22  ;;  %v6108_v14 = vpop.permute.xlu2 %1673  ;;  %v8067_v22 = vstv %s5606_s0  ;;  %s6160_s0 = sld [smem:[#allocation8 + $0x43]]  ;;  %v8076_v17 = vld [vmem:[#allocation108_spill] sm:$0xff] }
 0x275   : > { %v972_v18 = vadd.f32 %v8063_v42, %v860_v31  ;;  %v1405_v40 = vadd.f32 %v1400_v29, %v1293_v16  ;;  %8064 = vst [vmem:[#allocation24_spill] sm:$0xff] %v6108_v14  ;;  %v6112_v37 = vadd.f32 %v1614_v56, %v1568_v35  ;;  %v6114_v30 = vadd.f32 %v1602_v19, %v1556_v32 }
 0x276   : > { %v6118_v46 = vadd.f32 %v1601_v49, %v1555_v43  ;;  %v1517_v6 = vmul.f32 %v8068_v15, %v8067_v22  ;;  %v1932_v28 = vstv %s6075_s30  ;;  %v1906_v27 = vmul.f32 %v5746_v12, %v1904_v45  ;;  %s3993_s30 = sld [smem:[#allocation8 + $0xb9]] }
 0x277   : > { %v1084_v60 = vadd.f32 %v8066_v34, %v972_v18  ;;  %v1471_v20 = vadd.f32 %v1469_v33, %v1405_v40  ;;  %v1934_v11 = vmul.f32 %v5746_v12, %v1932_v28  ;;  %v1920_v38 = vmul.f32 %v5746_v12, %v1918_v47 }
 0x278   : > { %8065 = vst [vmem:[#allocation72_spill] sm:$0xff] %v6118_v46  ;;  %v1565_v63 = vmul.f32 %v5708_v58, %v1564_v57  ;;  %v1560_v45 = vmul.f32 %v5746_v12, %v1558_v59  ;;  %v1613_v51 = vmul.f32 %v5876_v44, %v1612_v54  ;;  %v1608_v56 = vmul.f32 %v5840_v61, %v1606_v21  ;;  %v6152_v59 = vld [vmem:[#allocation2 + $0x9] sm:$0xff]  ;;  %v4249_v46 = vld [vmem:[#allocation2 + $0x39] sm:$0xff] }
 0x279   : > { %v1196_v1 = vadd.f32 %v8069_v25, %v1084_v60  ;;  %v1519_v2 = vadd.f32 %v1517_v6, %v1471_v20  ;;  %1911 = vrot.lane.b32.xlu0 %v1906_v27, %s7912_s27  ;;  %v8071_v8 = vstv %s5439_s20  ;;  %v1960_v54 = vstv %s6110_s26  ;;  %s3983_s20 = sld [smem:[#allocation8 + $0x8b]] }
 0x27a   : > { %1939 = vrot.lane.b32.xlu1 %v1934_v11, %s7912_s27  ;;  %1925 = vrot.lane.b32.xlu2 %v1920_v38, %s7912_s27  ;;  %v1562_v19 = vadd.f32 %v1560_v45, %v5930_v24  ;;  %v1476_v53 = vmul.f32 %v6152_v59, %v8071_v8  ;;  %v1946_v35 = vstv %s6116_s8  ;;  %v8075_v21 = vstv %s5554_s22  ;;  %s3982_s22 = sld [smem:[#allocation8 + $0x67]] }
 0x27b   : > { %v1308_v23 = vadd.f32 %v8070_v0, %v1196_v1  ;;  %v1567_v55 = vadd.f32 %v1565_v63, %v1519_v2  ;;  %v1416_v47 = vpop.permute.xlu0 %1415  ;;  %v6146_v57 = vpop.permute.xlu1 %1645  ;;  %v1524_v33 = vmul.f32 %v8076_v17, %v8075_v21  ;;  %v1570_v29 = vstv %s6125_s6  ;;  %s3995_s26 = sld [smem:[#allocation8 + $0x101]] }
 0x27c   : > { %v6157_v10 = vpop.permute.xlu2 %1699  ;;  %v6165_v32 = vadd.f32 %v1608_v56, %v1562_v19  ;;  %v1933_v49 = vmul.f32 %v5708_v58, %v1932_v28  ;;  %v1961_v43 = vmul.f32 %v5876_v44, %v1960_v54  ;;  %v1618_v42 = vstv %s6131_s23  ;;  %s3994_s8 = sld [smem:[#allocation8 + $0xdd]] }
 0x27d   : > { %v1420_v31 = vadd.f32 %v1416_v47, %v1308_v23  ;;  %8072 = vst [vmem:[#allocation30_spill] sm:$0xff] %v6157_v10  ;;  %v6162_v16 = vadd.f32 %v1613_v51, %v1567_v55  ;;  %v1947_v40 = vmul.f32 %v5708_v58, %v1946_v35  ;;  %v1572_v34 = vmul.f32 %v5746_v12, %v1570_v29  ;;  %s3996_s6 = sld [smem:[#allocation8 + $0xe]] }
 0x27e   : > { %8074 = vst [vmem:[#allocation81_spill] sm:$0xff] %v6165_v32  ;;  %v1571_v60 = vmul.f32 %v5708_v58, %v1570_v29  ;;  %v1620_v22 = vmul.f32 %v5840_v61, %v1618_v42  ;;  %v1619_v28 = vmul.f32 %v5876_v44, %v1618_v42  ;;  %v1974_v25 = vstv %s6160_s0  ;;  %s6314_s23 = sld [smem:[#allocation8 + $0x56]] }
 0x27f   : > { %8073 = vst [vmem:[#allocation31_spill] sm:$0xff] %v6162_v16  ;;  %v1478_v24 = vadd.f32 %v1476_v53, %v1420_v31  ;;  %v1948_v2 = vmul.f32 %v5746_v12, %v1946_v35  ;;  %v1976_v38 = vmul.f32 %v5840_v61, %v1974_v25  ;;  %v1962_v63 = vmul.f32 %v5840_v61, %v1960_v54  ;;  %s3997_s0 = sld [smem:[#allocation8 + $0x32]] }
 0x280   : > { %v1573_v27 = vadd.f32 %v1571_v60, %v5979_v9  ;;  %v2002_v23 = vstv %s3983_s20  ;;  %v1988_v51 = vstv %s3982_s22  ;;  %v1975_v12 = vmul.f32 %v5876_v44, %v1974_v25  ;;  %s3999_s20 = sld [smem:[#allocation8 + $0x7a]] }
 0x281   : > { %v1526_v18 = vadd.f32 %v1524_v33, %v1478_v24  ;;  %1937 = vrot.lane.b32.xlu0 %v1933_v49, %s7912_s27  ;;  %v2003_v55 = vmul.f32 %v5876_v44, %v2002_v23  ;;  %v1989_v47 = vmul.f32 %v5876_v44, %v1988_v51  ;;  %v2016_v53 = vstv %s3984_s11  ;;  %s4001_s22 = sld [smem:[#allocation8 + $0xc2]] }
 0x282   : > { %1965 = vrot.lane.b32.xlu1 %v1961_v43, %s7912_s27  ;;  %1951 = vrot.lane.b32.xlu2 %v1947_v40, %s7912_s27  ;;  %v6192_v58 = vadd.f32 %v1619_v28, %v1573_v27  ;;  %v1990_v31 = vmul.f32 %v5840_v61, %v1988_v51  ;;  %v2018_v54 = vmul.f32 %v5840_v61, %v2016_v53  ;;  %v2044_v24 = vstv %s3986_s28  ;;  %s4000_s11 = sld [smem:[#allocation8 + $0x9e]] }
 0x283   : > { %v1574_v15 = vadd.f32 %v1572_v34, %v1526_v18  ;;  %v6181_v6 = vpop.permute.xlu0 %1643  ;;  %v6183_v20 = vpop.permute.xlu1 %1671  ;;  %v2004_v35 = vmul.f32 %v5840_v61, %v2002_v23  ;;  %v2030_v29 = vstv %s3985_s10  ;;  %v2017_v49 = vmul.f32 %v5876_v44, %v2016_v53  ;;  %s4002_s28 = sld [smem:[#allocation8 + $0xe6]] }
 0x284   : > { %v6187_v11 = vpop.permute.xlu2 %1715  ;;  %v2045_v43 = vmul.f32 %v5876_v44, %v2044_v24  ;;  %v2031_v42 = vmul.f32 %v5876_v44, %v2030_v29  ;;  %v2058_v60 = vstv %s3987_s7  ;;  %v2046_v28 = vmul.f32 %v5840_v61, %v2044_v24  ;;  %s6361_s10 = sld [smem:[#allocation8 + $0x17]] }
 0x285   : > { %v6190_v1 = vadd.f32 %v1620_v22, %v1574_v15  ;;  %v2032_v22 = vmul.f32 %v5840_v61, %v2030_v29  ;;  %v2060_v15 = vmul.f32 %v5840_v61, %v2058_v60  ;;  %v2059_v23 = vmul.f32 %v5876_v44, %v2058_v60  ;;  %s4003_s7 = sld [smem:[#allocation8 + $0x10a]] }
 0x286   : > { %v2100_v53 = vstv %s3990_s21  ;;  %s4006_s21 = sld [smem:[#allocation8 + $0x5f]]  ;;  %v1650_v50 = vadd.f32 %v6146_v57, %v6004_v39 }
 0x287   : > { %v2101_v60 = vmul.f32 %v6098_v36, %v2100_v53 }
 0x288   : > { %v2240_v14 = vstv %s4000_s11  ;;  %s4019_s11 = sld [smem:[#allocation8 + $0x11c]] }
 0x289   : > { %1953 = vrot.lane.b32.xlu0 %v1948_v2, %s7912_s27 }
 0x28a   : > { %1981 = vrot.lane.b32.xlu1 %v1976_v38, %s7912_s27  ;;  %1967 = vrot.lane.b32.xlu2 %v1962_v63, %s7912_s27  ;;  %v2086_v38 = vstv %s3989_s2  ;;  %v2072_v63 = vstv %s3988_s1  ;;  %s4005_s2 = sld [smem:[#allocation8 + $0x3b]] }
 0x28b   : > { %v6200_v9 = vpop.permute.xlu0 %1659  ;;  %v6202_v45 = vpop.permute.xlu1 %1687  ;;  %v2087_v51 = vmul.f32 %v6098_v36, %v2086_v38  ;;  %v2073_v61 = vmul.f32 %v6098_v36, %v2072_v63  ;;  %s4007_s1 = sld [smem:[#allocation8 + $0x83]] }
 0x28c   : > { %8077 = vst [vmem:[#allocation32_spill] sm:$0xff] %v6200_v9  ;;  %v6204_v0 = vpop.permute.xlu2 %1741 }
 0x291   : > { %1979 = vrot.lane.b32.xlu0 %v1975_v12, %s7912_s27  ;;  %v2338_v41 = vstv %s4007_s1  ;;  %s4063_s1 = sld [smem:[#allocation8 + $0x73]] }
 0x292   : > { %2007 = vrot.lane.b32.xlu1 %v2003_v55, %s7912_s27  ;;  %1993 = vrot.lane.b32.xlu2 %v1989_v47, %s7912_s27 }
 0x293   : > { %v6212_v56 = vpop.permute.xlu0 %1685  ;;  %v6214_v19 = vpop.permute.xlu1 %1713 }
 0x294   : > { %8078 = vst [vmem:[#allocation96_spill] sm:$0xff] %v6212_v56  ;;  %v6216_v8 = vpop.permute.xlu2 %1757 }
 0x295   : > { %8079 = vst [vmem:[#allocation41_spill] sm:$0xff] %v6214_v19 }
 0x299   : > { %1995 = vrot.lane.b32.xlu0 %v1990_v31, %s7912_s27  ;;  %v2074_v31 = vmul.f32 %v6152_v59, %v2072_v63 }
 0x29a   : > { %2023 = vrot.lane.b32.xlu1 %v2018_v54, %s7912_s27  ;;  %2009 = vrot.lane.b32.xlu2 %v2004_v35, %s7912_s27  ;;  %v2102_v54 = vmul.f32 %v6152_v59, %v2100_v53  ;;  %v2088_v35 = vmul.f32 %v6152_v59, %v2086_v38 }
 0x29b   : > { %v6224_v21 = vpop.permute.xlu0 %1701  ;;  %v6226_v17 = vpop.permute.xlu1 %1729 }
 0x29c   : > { %8080 = vst [vmem:[#allocation43_spill] sm:$0xff] %v6224_v21  ;;  %v6228_v33 = vpop.permute.xlu2 %1783 }
 0x2a1   : > { %2021 = vrot.lane.b32.xlu0 %v2017_v49, %s7912_s27 }
 0x2a2   : > { %2049 = vrot.lane.b32.xlu1 %v2045_v43, %s7912_s27  ;;  %2035 = vrot.lane.b32.xlu2 %v2031_v42, %s7912_s27  ;;  %v2128_v43 = vstv %s3992_s29  ;;  %v2114_v42 = vstv %s3991_s19  ;;  %s4008_s29 = sld [smem:[#allocation8 + $0xa7]] }
 0x2a3   : > { %v6236_v18 = vpop.permute.xlu0 %1727  ;;  %v6238_v40 = vpop.permute.xlu1 %1755  ;;  %v2130_v53 = vmul.f32 %v6152_v59, %v2128_v43  ;;  %s4010_s19 = sld [smem:[#allocation8 + $0xef]] }
 0x2a4   : > { %v6240_v34 = vpop.permute.xlu2 %1799 }
 0x2a9   : > { %2037 = vrot.lane.b32.xlu0 %v2032_v22, %s7912_s27  ;;  %v2129_v22 = vmul.f32 %v6098_v36, %v2128_v43 }
 0x2aa   : > { %2065 = vrot.lane.b32.xlu1 %v2060_v15, %s7912_s27  ;;  %2051 = vrot.lane.b32.xlu2 %v2046_v28, %s7912_s27  ;;  %v2115_v15 = vmul.f32 %v6098_v36, %v2114_v42 }
 0x2ab   : > { %v6248_v27 = vpop.permute.xlu0 %1743  ;;  %v6250_v25 = vpop.permute.xlu1 %1771 }
 0x2ac   : > { %8081 = vst [vmem:[#allocation23_spill] sm:$0xff] %v6248_v27  ;;  %v6252_v2 = vpop.permute.xlu2 %1825 }
 0x2ad   : > { %8082 = vst [vmem:[#allocation55_spill] sm:$0xff] %v6250_v25 }
 0x2ae   : > { %8083 = vst [vmem:[#allocation25_spill] sm:$0xff] %v6252_v2 }
 0x2b1   : > { %2063 = vrot.lane.b32.xlu0 %v2059_v23, %s7912_s27  ;;  %v2142_v23 = vstv %s3993_s30  ;;  %s4009_s30 = sld [smem:[#allocation8 + $0xcb]] }
 0x2b2   : > { %2091 = vrot.lane.b32.xlu1 %v2087_v51, %s8084_s4  ;;  %2077 = vrot.lane.b32.xlu2 %v2073_v61, %s8084_s4  ;;  %v2116_v51 = vmul.f32 %v6152_v59, %v2114_v42  ;;  %v2144_v61 = vmul.f32 %v6152_v59, %v2142_v23  ;;  %v2143_v42 = vmul.f32 %v6098_v36, %v2142_v23  ;;  %v2184_v23 = vstv %s3996_s6  ;;  %s4012_s6 = sld [smem:[#allocation8 + $0x20]] }
 0x2b3   : > { %v6260_v12 = vpop.permute.xlu0 %1769  ;;  %v6262_v55 = vpop.permute.xlu1 %1797 }
 0x2b4   : > { %8085 = vst [vmem:[#allocation51_spill] sm:$0xff] %v6260_v12  ;;  %v6264_v47 = vpop.permute.xlu2 %1841  ;;  %v6376_v12 = vld [vmem:[#allocation2 + $0x31] sm:$0xff] }
 0x2b5   : > { %8086 = vst [vmem:[#allocation62_spill] sm:$0xff] %v6262_v55  ;;  %v2282_v55 = vstv %s4003_s7  ;;  %s4062_s7 = sld [smem:[#allocation8 + $0x4f]] }
 0x2b9   : > { %2079 = vrot.lane.b32.xlu0 %v2074_v31, %s8084_s4 }
 0x2ba   : > { %2107 = vrot.lane.b32.xlu1 %v2102_v54, %s8084_s4  ;;  %2093 = vrot.lane.b32.xlu2 %v2088_v35, %s8084_s4 }
 0x2bb   : > { %v6272_v24 = vpop.permute.xlu0 %1785  ;;  %v6274_v29 = vpop.permute.xlu1 %1813 }
 0x2bc   : > { %8087 = vst [vmem:[#allocation26_spill] sm:$0xff] %v6272_v24  ;;  %v6276_v49 = vpop.permute.xlu2 %1867 }
 0x2bd   : > { %8088 = vst [vmem:[#allocation66_spill] sm:$0xff] %v6274_v29  ;;  %v4247_v29 = vld [vmem:[#allocation2 + $0x19] sm:$0xff] }
 0x2be   : > { %v2185_v24 = vmul.f32 %v4247_v29, %v2184_v23  ;;  %v2283_v56 = vmul.f32 %v4247_v29, %v2282_v55 }
 0x2c1   : > { %2105 = vrot.lane.b32.xlu0 %v2101_v60, %s8084_s4  ;;  %v2170_v60 = vstv %s3995_s26  ;;  %s4011_s26 = sld [smem:[#allocation8 + $0x113]] }
 0x2c2   : > { %2133 = vrot.lane.b32.xlu1 %v2129_v22, %s8084_s4  ;;  %2119 = vrot.lane.b32.xlu2 %v2115_v15, %s8084_s4  ;;  %v2156_v22 = vstv %s3994_s8  ;;  %v2171_v15 = vmul.f32 %v6098_v36, %v2170_v60  ;;  %s4013_s8 = sld [smem:[#allocation8 + $0x44]] }
 0x2c3   : > { %v6284_v28 = vpop.permute.xlu0 %1811  ;;  %v6286_v38 = vpop.permute.xlu1 %1839  ;;  %v2157_v43 = vmul.f32 %v6098_v36, %v2156_v22  ;;  %v6317_v36 = vld [vmem:[#allocation2 + $0x21] sm:$0xff] }
 0x2c4   : > { %8089 = vst [vmem:[#allocation73_spill] sm:$0xff] %v6284_v28  ;;  %v6288_v63 = vpop.permute.xlu2 %1883  ;;  %v2158_v28 = vmul.f32 %v6152_v59, %v2156_v22  ;;  %v2198_v22 = vstv %s3997_s0  ;;  %s4016_s0 = sld [smem:[#allocation8 + $0xb0]] }
 0x2c5   : > { %8090 = vst [vmem:[#allocation74_spill] sm:$0xff] %v6288_v63  ;;  %v2199_v32 = vmul.f32 %v4247_v29, %v2198_v22 }
 0x2c8   : > { %v2422_v27 = vstv %s4013_s8  ;;  %s6548_s8 = sld [smem:[#allocation8 + $0x34]] }
 0x2c9   : > { %2121 = vrot.lane.b32.xlu0 %v2116_v51, %s8084_s4 }
 0x2ca   : > { %2149 = vrot.lane.b32.xlu1 %v2144_v61, %s8084_s4  ;;  %2135 = vrot.lane.b32.xlu2 %v2130_v53, %s8084_s4 }
 0x2cb   : > { %v6296_v31 = vpop.permute.xlu0 %1827  ;;  %v6298_v54 = vpop.permute.xlu1 %1855 }
 0x2cc   : > { %8091 = vst [vmem:[#allocation33_spill] sm:$0xff] %v6298_v54  ;;  %v6300_v35 = vpop.permute.xlu2 %1909  ;;  %v2340_v54 = vmul.f32 %v4249_v46, %v2338_v41 }
 0x2cd   : > { %8092 = vst [vmem:[#allocation34_spill] sm:$0xff] %v6300_v35  ;;  %v2241_v35 = vmul.f32 %v4247_v29, %v2240_v14 }
 0x2d1   : > { %2147 = vrot.lane.b32.xlu0 %v2143_v42, %s8084_s4  ;;  %v2186_v42 = vmul.f32 %v6317_v36, %v2184_v23 }
 0x2d2   : > { %2175 = vrot.lane.b32.xlu1 %v2171_v15, %s8084_s4  ;;  %2161 = vrot.lane.b32.xlu2 %v2157_v43, %s8084_s4  ;;  %v2172_v15 = vmul.f32 %v6152_v59, %v2170_v60 }
 0x2d3   : > { %v6308_v51 = vpop.permute.xlu0 %1853 }
 0x2d4   : > { %v6310_v61 = vpop.permute.xlu1 %1881  ;;  %v6312_v53 = vpop.permute.xlu2 %1925 }
 0x2d5   : > { %8093 = vst [vmem:[#allocation75_spill] sm:$0xff] %v6310_v61  ;;  %v2296_v61 = vstv %s6361_s10  ;;  %s4060_s10 = sld [smem:[#allocation8 + $0x7]] }
 0x2d6   : > { %8094 = vst [vmem:[#allocation35_spill] sm:$0xff] %v6312_v53  ;;  %v2212_v53 = vstv %s6314_s23  ;;  %s4014_s23 = sld [smem:[#allocation8 + $0x68]] }
 0x2d7   : > { %v2213_v21 = vmul.f32 %v4247_v29, %v2212_v53 }
 0x2d9   : > { %2163 = vrot.lane.b32.xlu0 %v2158_v28, %s8084_s4 }
 0x2da   : > { %2191 = vrot.lane.b32.xlu1 %v2186_v42, %s8084_s4  ;;  %2177 = vrot.lane.b32.xlu2 %v2172_v15, %s8084_s4  ;;  %v2226_v42 = vstv %s3999_s20  ;;  %v2200_v15 = vmul.f32 %v6317_v36, %v2198_v22  ;;  %s4015_s20 = sld [smem:[#allocation8 + $0x8c]] }
 0x2db   : > { %v6324_v43 = vpop.permute.xlu0 %1869  ;;  %v2228_v23 = vmul.f32 %v6317_v36, %v2226_v42  ;;  %v2227_v22 = vmul.f32 %v4247_v29, %v2226_v42  ;;  %v2242_v42 = vmul.f32 %v6317_v36, %v2240_v14 }
 0x2dc   : > { %v6326_v10 = vpop.permute.xlu1 %1897  ;;  %v6328_v48 = vpop.permute.xlu2 %1951 }
 0x2dd   : > { %8095 = vst [vmem:[#allocation84_spill] sm:$0xff] %v6326_v10  ;;  %v2214_v10 = vmul.f32 %v6317_v36, %v2212_v53 }
 0x2e1   : > { %2189 = vrot.lane.b32.xlu0 %v2185_v24, %s8084_s4 }
 0x2e2   : > { %2217 = vrot.lane.b32.xlu1 %v2213_v21, %s8084_s4  ;;  %2203 = vrot.lane.b32.xlu2 %v2199_v32, %s8084_s4 }
 0x2e3   : > { %v6334_v59 = vpop.permute.xlu0 %1895 }
 0x2e4   : > { %v6336_v28 = vpop.permute.xlu1 %1923  ;;  %v6338_v60 = vpop.permute.xlu2 %1967 }
 0x2e5   : > { %8096 = vst [vmem:[#allocation86_spill] sm:$0xff] %v6336_v28  ;;  %v2254_v28 = vstv %s4001_s22  ;;  %s4017_s22 = sld [smem:[#allocation8 + $0xd4]] }
 0x2e6   : > { %8097 = vst [vmem:[#allocation46_spill] sm:$0xff] %v6338_v60  ;;  %v2255_v4 = vmul.f32 %v4247_v29, %v2254_v28  ;;  %v2324_v60 = vstv %s4006_s21  ;;  %s6514_s21 = sld [smem:[#allocation8 + $0xbb]] }
 0x2e9   : > { %2205 = vrot.lane.b32.xlu0 %v2200_v15, %s8084_s4 }
 0x2ea   : > { %2233 = vrot.lane.b32.xlu1 %v2228_v23, %s8084_s4  ;;  %2219 = vrot.lane.b32.xlu2 %v2214_v10, %s8084_s4  ;;  %v2268_v23 = vstv %s4002_s28  ;;  %s4018_s28 = sld [smem:[#allocation8 + $0xf8]] }
 0x2eb   : > { %v6346_v32 = vpop.permute.xlu0 %1911  ;;  %v2269_v14 = vmul.f32 %v4247_v29, %v2268_v23  ;;  %v2298_v29 = vmul.f32 %v4249_v46, %v2296_v61 }
 0x2ec   : > { %v6348_v21 = vpop.permute.xlu1 %1939  ;;  %v6350_v24 = vpop.permute.xlu2 %1993 }
 0x2ed   : > { %8098 = vst [vmem:[#allocation44_spill] sm:$0xff] %v6350_v24  ;;  %v2270_v24 = vmul.f32 %v6317_v36, %v2268_v23  ;;  %v2310_v23 = vstv %s4005_s2  ;;  %s4061_s2 = sld [smem:[#allocation8 + $0x2b]] }
 0x2ee   : > { %v2312_v3 = vmul.f32 %v4249_v46, %v2310_v23 }
 0x2f1   : > { %2231 = vrot.lane.b32.xlu0 %v2227_v22, %s8084_s4  ;;  %v2256_v22 = vmul.f32 %v6317_v36, %v2254_v28  ;;  %v2297_v28 = vmul.f32 %v6376_v12, %v2296_v61  ;;  %v2325_v61 = vmul.f32 %v6376_v12, %v2324_v60 }
 0x2f2   : > { %2259 = vrot.lane.b32.xlu1 %v2255_v4, %s8084_s4  ;;  %2245 = vrot.lane.b32.xlu2 %v2241_v35, %s8084_s4 }
 0x2f3   : > { %v6355_v53 = vpop.permute.xlu0 %1937 }
 0x2f4   : > { %8099 = vst [vmem:[#allocation95_spill] sm:$0xff] %v6355_v53  ;;  %v6357_v10 = vpop.permute.xlu1 %1965  ;;  %v6359_v15 = vpop.permute.xlu2 %2009 }
 0x2f5   : > { %8100 = vst [vmem:[#allocation54_spill] sm:$0xff] %v6359_v15 }
 0x2f9   : > { %2247 = vrot.lane.b32.xlu0 %v2242_v42, %s8084_s4 }
 0x2fa   : > { %2275 = vrot.lane.b32.xlu1 %v2270_v24, %s8084_s4  ;;  %2261 = vrot.lane.b32.xlu2 %v2256_v22, %s8084_s4 }
 0x2fb   : > { %v6369_v4 = vpop.permute.xlu0 %1953 }
 0x2fc   : > { %v6371_v35 = vpop.permute.xlu1 %1981  ;;  %v6373_v15 = vpop.permute.xlu2 %2035 }
 0x2fd   : > { %8101 = vst [vmem:[#allocation58_spill] sm:$0xff] %v6373_v15  ;;  %v2284_v15 = vmul.f32 %v6317_v36, %v2282_v55  ;;  %v2311_v55 = vmul.f32 %v6376_v12, %v2310_v23  ;;  %v2339_v36 = vmul.f32 %v6376_v12, %v2338_v41  ;;  %v2326_v23 = vmul.f32 %v4249_v46, %v2324_v60 }
 0x301   : > { %2273 = vrot.lane.b32.xlu0 %v2269_v14, %s8084_s4 }
 0x302   : > { %2301 = vrot.lane.b32.xlu1 %v2297_v28, %s8084_s4  ;;  %2287 = vrot.lane.b32.xlu2 %v2283_v56, %s8084_s4 }
 0x303   : > { %v6382_v24 = vpop.permute.xlu0 %1979 }
 0x304   : > { %8102 = vst [vmem:[#allocation65_spill] sm:$0xff] %v6382_v24  ;;  %v6384_v42 = vpop.permute.xlu1 %2007  ;;  %v6386_v22 = vpop.permute.xlu2 %2051  ;;  %v1762_v24 = vadd.f32 %v6216_v8, %v1650_v50 }
 0x309   : > { %2289 = vrot.lane.b32.xlu0 %v2284_v15, %s8084_s4 }
 0x30a   : > { %2317 = vrot.lane.b32.xlu1 %v2312_v3, %s8084_s4  ;;  %2303 = vrot.lane.b32.xlu2 %v2298_v29, %s8084_s4 }
 0x30b   : > { %v6392_v56 = vpop.permute.xlu0 %1995 }
 0x30c   : > { %8103 = vst [vmem:[#allocation37_spill] sm:$0xff] %v6392_v56  ;;  %v6394_v14 = vpop.permute.xlu1 %2023  ;;  %v6396_v28 = vpop.permute.xlu2 %2077  ;;  %v2352_v56 = vstv %s4008_s29  ;;  %s4064_s29 = sld [smem:[#allocation8 + $0x97]] }
 0x30d   : > { %8104 = vst [vmem:[#allocation68_spill] sm:$0xff] %v6394_v14  ;;  %v2354_v53 = vmul.f32 %v4249_v46, %v2352_v56  ;;  %v2353_v63 = vmul.f32 %v6376_v12, %v2352_v56 }
 0x311   : > { %2315 = vrot.lane.b32.xlu0 %v2311_v55, %s8084_s4 }
 0x312   : > { %2343 = vrot.lane.b32.xlu1 %v2339_v36, %s8084_s4  ;;  %2329 = vrot.lane.b32.xlu2 %v2325_v61, %s8084_s4 }
 0x313   : > { %v6404_v3 = vpop.permute.xlu0 %2021 }
 0x314   : > { %8105 = vst [vmem:[#allocation76_spill] sm:$0xff] %v6404_v3  ;;  %v6406_v15 = vpop.permute.xlu1 %2049  ;;  %v6408_v29 = vpop.permute.xlu2 %2093  ;;  %v2380_v3 = vstv %s4010_s19  ;;  %s6529_s19 = sld [smem:[#allocation8 + $0xdf]] }
 0x315   : > { %8106 = vst [vmem:[#allocation77_spill] sm:$0xff] %v6406_v15  ;;  %v2366_v15 = vstv %s4009_s30  ;;  %v2381_v60 = vmul.f32 %v6376_v12, %v2380_v3  ;;  %v2382_v25 = vmul.f32 %v4249_v46, %v2380_v3  ;;  %s6537_s30 = sld [smem:[#allocation8 + $0x10]] }
 0x316   : > { %v2367_v41 = vmul.f32 %v6376_v12, %v2366_v15  ;;  %v2368_v56 = vmul.f32 %v4249_v46, %v2366_v15  ;;  %v2423_v15 = vmul.f32 %v5876_v44, %v2422_v27 }
 0x319   : > { %2331 = vrot.lane.b32.xlu0 %v2326_v23, %s8084_s4 }
 0x31a   : > { %2359 = vrot.lane.b32.xlu1 %v2354_v53, %s8084_s4  ;;  %2345 = vrot.lane.b32.xlu2 %v2340_v54, %s8084_s4 }
 0x31b   : > { %v6413_v55 = vpop.permute.xlu0 %2037 }
 0x31c   : > { %8107 = vst [vmem:[#allocation36_spill] sm:$0xff] %v6413_v55  ;;  %v6415_v36 = vpop.permute.xlu1 %2065  ;;  %v6417_v61 = vpop.permute.xlu2 %2119  ;;  %v2394_v55 = vstv %s4011_s26  ;;  %s6543_s26 = sld [smem:[#allocation8 + $0x103]] }
 0x31d   : > { %v2396_v2 = vmul.f32 %v4249_v46, %v2394_v55  ;;  %v2395_v19 = vmul.f32 %v6376_v12, %v2394_v55  ;;  %v4250_v12 = vld [vmem:[#allocation2 + $0x51] sm:$0xff] }
 0x321   : > { %2357 = vrot.lane.b32.xlu0 %v2353_v63, %s8084_s4 }
 0x322   : > { %2385 = vrot.lane.b32.xlu1 %v2381_v60, %s8084_s4  ;;  %2371 = vrot.lane.b32.xlu2 %v2367_v41, %s8084_s4 }
 0x323   : > { %v6425_v54 = vpop.permute.xlu0 %2063 }
 0x324   : > { %8108 = vst [vmem:[#allocation47_spill] sm:$0xff] %v6425_v54  ;;  %v6427_v53 = vpop.permute.xlu1 %2091  ;;  %v6429_v23 = vpop.permute.xlu2 %2135 }
 0x325   : > { %8109 = vst [vmem:[#allocation78_spill] sm:$0xff] %v6427_v53 }
 0x326   : > { %8110 = vst [vmem:[#allocation87_spill] sm:$0xff] %v6429_v23  ;;  %v2408_v23 = vstv %s4012_s6  ;;  %s6550_s6 = sld [smem:[#allocation8 + $0x6]] }
 0x327   : > { %v2409_v46 = vmul.f32 %v5876_v44, %v2408_v23  ;;  %v2410_v55 = vmul.f32 %v4250_v12, %v2408_v23 }
 0x329   : > { %2373 = vrot.lane.b32.xlu0 %v2368_v56, %s8084_s4  ;;  %v2436_v56 = vstv %s4014_s23  ;;  %s6552_s23 = sld [smem:[#allocation8 + $0xf]] }
 0x32a   : > { %2401 = vrot.lane.b32.xlu1 %v2396_v2, %s8084_s4  ;;  %2387 = vrot.lane.b32.xlu2 %v2382_v25, %s8084_s4 }
 0x32b   : > { %v6434_v63 = vpop.permute.xlu0 %2079 }
 0x32c   : > { %8111 = vst [vmem:[#allocation89_spill] sm:$0xff] %v6434_v63  ;;  %v6436_v60 = vpop.permute.xlu1 %2107  ;;  %v6438_v41 = vpop.permute.xlu2 %2161  ;;  %v7785_v9 = vstv %s6550_s6 }
 0x32d   : > { %8112 = vst [vmem:[#allocation115_spill] sm:$0xff] %v6436_v60  ;;  %v2424_v60 = vmul.f32 %v4250_v12, %v2422_v27 }
 0x32e   : > { %8113 = vst [vmem:[#allocation116_spill] sm:$0xff] %v6438_v41  ;;  %v2438_v41 = vmul.f32 %v4250_v12, %v2436_v56 }
 0x331   : > { %2399 = vrot.lane.b32.xlu0 %v2395_v19, %s8084_s4 }
 0x332   : > { %2427 = vrot.lane.b32.xlu1 %v2423_v15, %s8084_s4  ;;  %2413 = vrot.lane.b32.xlu2 %v2409_v46, %s8084_s4  ;;  %v2464_v46 = vstv %s4016_s0  ;;  %s6556_s0 = sld [smem:[#allocation8 + $0x7c]] }
 0x333   : > { %v6446_v25 = vpop.permute.xlu0 %2105 }
 0x334   : > { %8114 = vst [vmem:[#allocation48_spill] sm:$0xff] %v6446_v25  ;;  %v6448_v2 = vpop.permute.xlu1 %2133  ;;  %v6450_v3 = vpop.permute.xlu2 %2177  ;;  %v4251_v25 = vld [vmem:[#allocation2 + $0x49] sm:$0xff] }
 0x335   : > { %8115 = vst [vmem:[#allocation102_spill] sm:$0xff] %v6448_v2  ;;  %v2450_v2 = vstv %s4015_s20  ;;  %v2437_v63 = vmul.f32 %v4251_v25, %v2436_v56  ;;  %v2465_v23 = vmul.f32 %v4251_v25, %v2464_v46  ;;  %v2466_v56 = vmul.f32 %v4250_v12, %v2464_v46  ;;  %v6486_v46 = vld [vmem:[#allocation2 + $0xa] sm:$0xff]  ;;  %s6559_s20 = sld [smem:[#allocation8 + $0x58]] }
 0x336   : > { %v2451_v16 = vmul.f32 %v4251_v25, %v2450_v2  ;;  %8125 = vst [vmem:[#allocation39_spill] sm:$0xff] %v6486_v46 }
 0x339   : > { %2415 = vrot.lane.b32.xlu0 %v2410_v55, %s8084_s4  ;;  %v2478_v55 = vstv %s4017_s22  ;;  %s6565_s22 = sld [smem:[#allocation8 + $0x2a]] }
 0x33a   : > { %2443 = vrot.lane.b32.xlu1 %v2438_v41, %s8084_s4  ;;  %2429 = vrot.lane.b32.xlu2 %v2424_v60, %s8084_s4 }
 0x33b   : > { %v6455_v44 = vpop.permute.xlu0 %2121 }
 0x33c   : > { %8116 = vst [vmem:[#allocation98_spill] sm:$0xff] %v6455_v44  ;;  %v6457_v19 = vpop.permute.xlu1 %2149  ;;  %v6459_v15 = vpop.permute.xlu2 %2203  ;;  %v2480_v44 = vmul.f32 %v4250_v12, %v2478_v55 }
 0x33d   : > { %8117 = vst [vmem:[#allocation57_spill] sm:$0xff] %v6457_v19  ;;  %v2452_v19 = vmul.f32 %v4250_v12, %v2450_v2 }
 0x33e   : > { %8118 = vst [vmem:[#allocation67_spill] sm:$0xff] %v6459_v15 }
 0x341   : > { %2441 = vrot.lane.b32.xlu0 %v2437_v63, %s8084_s4 }
 0x342   : > { %2469 = vrot.lane.b32.xlu1 %v2465_v23, %s8084_s4  ;;  %2455 = vrot.lane.b32.xlu2 %v2451_v16, %s8084_s4 }
 0x343   : > { %v6464_v27 = vpop.permute.xlu0 %2147 }
 0x344   : > { %8119 = vst [vmem:[#allocation106_spill] sm:$0xff] %v6464_v27  ;;  %v6466_v60 = vpop.permute.xlu1 %2175  ;;  %v6468_v41 = vpop.permute.xlu2 %2219  ;;  %v2506_v27 = vstv %s4019_s11  ;;  %s6568_s11 = sld [smem:[#allocation8 + $0x33]] }
 0x345   : > { %8120 = vst [vmem:[#allocation27_spill] sm:$0xff] %v6466_v60  ;;  %v2479_v60 = vmul.f32 %v4251_v25, %v2478_v55  ;;  %v2507_v15 = vmul.f32 %v4251_v25, %v2506_v27 }
 0x346   : > { %8121 = vst [vmem:[#allocation79_spill] sm:$0xff] %v6468_v41  ;;  %v2492_v41 = vstv %s4018_s28  ;;  %s6575_s28 = sld [smem:[#allocation8 + $0xa0]] }
 0x347   : > { %v2493_v2 = vmul.f32 %v4251_v25, %v2492_v41  ;;  %v2494_v55 = vmul.f32 %v4250_v12, %v2492_v41  ;;  %v2736_v41 = vstv %s4061_s2  ;;  %s6589_s2 = sld [smem:[#allocation8 + $0xe8]] }
 0x349   : > { %2457 = vrot.lane.b32.xlu0 %v2452_v19, %s8084_s4 }
 0x34a   : > { %2485 = vrot.lane.b32.xlu1 %v2480_v44, %s8084_s4  ;;  %2471 = vrot.lane.b32.xlu2 %v2466_v56, %s8084_s4  ;;  %v2584_v13 = vstv %s6568_s11  ;;  %s6765_s11 = sld [smem:[#allocation8 + $0x3c]] }
 0x34b   : > { %v6473_v63 = vpop.permute.xlu0 %2163 }
 0x34c   : > { %v6475_v16 = vpop.permute.xlu1 %2191  ;;  %v6477_v23 = vpop.permute.xlu2 %2245 }
 0x34d   : > { %8122 = vst [vmem:[#allocation80_spill] sm:$0xff] %v6475_v16  ;;  %v2508_v16 = vmul.f32 %v4250_v12, %v2506_v27 }
 0x34e   : > { %8123 = vst [vmem:[#allocation109_spill] sm:$0xff] %v6477_v23  ;;  %v2722_v23 = vstv %s4060_s10  ;;  %s6582_s10 = sld [smem:[#allocation8 + $0x72]] }
 0x34f   : > { %v2724_v25 = vmul.f32 %v6486_v46, %v2722_v23 }
 0x351   : > { %2483 = vrot.lane.b32.xlu0 %v2479_v60, %s8084_s4 }
 0x352   : > { %2511 = vrot.lane.b32.xlu1 %v2507_v15, %s8084_s4  ;;  %2497 = vrot.lane.b32.xlu2 %v2493_v2, %s8084_s4  ;;  %v6498_v2 = vld [vmem:[#allocation2 + $0x2] sm:$0xff] }
 0x353   : > { %v6482_v44 = vpop.permute.xlu0 %2189  ;;  %v2723_v53 = vmul.f32 %v6498_v2, %v2722_v23  ;;  %v2737_v27 = vmul.f32 %v6498_v2, %v2736_v41  ;;  %v2738_v23 = vmul.f32 %v6486_v46, %v2736_v41  ;;  %v2778_v41 = vstv %s4064_s29  ;;  %s6609_s29 = sld [smem:[#allocation8 + $0x4e]] }
 0x354   : > { %v6484_v19 = vpop.permute.xlu1 %2217  ;;  %v6488_v56 = vpop.permute.xlu2 %2261  ;;  %v6616_v5 = vmul.f32 %v6498_v2, %v7785_v9 }
 0x355   : > { %8124 = vst [vmem:[#allocation110_spill] sm:$0xff] %v6484_v19  ;;  %v2750_v19 = vstv %s4062_s7  ;;  %s6586_s7 = sld [smem:[#allocation8 + $0x7b]] }
 0x356   : > { %8126 = vst [vmem:[#allocation40_spill] sm:$0xff] %v6488_v56  ;;  %v2751_v12 = vmul.f32 %v6498_v2, %v2750_v19 }
 0x357   : > { %8138 = vst [vmem:[#allocation19_spill] sm:$0xff] %v6616_v5  ;;  %v7788_v5 = vstv %s6582_s10 }
 0x359   : > { %2499 = vrot.lane.b32.xlu0 %v2494_v55, %s8084_s4 }
 0x35a   : > { %2729 = vrot.lane.b32.xlu1 %v2724_v25, %s7912_s27  ;;  %2513 = vrot.lane.b32.xlu2 %v2508_v16, %s8084_s4 }
 0x35b   : > { %v6494_v15 = vpop.permute.xlu0 %2205 }
 0x35c   : > { %v6496_v60 = vpop.permute.xlu1 %2233  ;;  %v6500_v56 = vpop.permute.xlu2 %2287 }
 0x35d   : > { %8127 = vst [vmem:[#allocation111_spill] sm:$0xff] %v6496_v60  ;;  %v2764_v60 = vstv %s4063_s1  ;;  %s6596_s1 = sld [smem:[#allocation8 + $0xc4]] }
 0x35e   : > { %8128 = vst [vmem:[#allocation90_spill] sm:$0xff] %v6500_v56  ;;  %v2766_v56 = vmul.f32 %v6486_v46, %v2764_v60  ;;  %v2765_v54 = vmul.f32 %v6498_v2, %v2764_v60  ;;  %v2806_v60 = vstv %s6529_s19  ;;  %s6626_s19 = sld [smem:[#allocation8 + $0x9f]] }
 0x361   : > { %2727 = vrot.lane.b32.xlu0 %v2723_v53, %s7912_s27  ;;  %v2752_v53 = vmul.f32 %v6486_v46, %v2750_v19 }
 0x362   : > { %2755 = vrot.lane.b32.xlu1 %v2751_v12, %s7912_s27  ;;  %2741 = vrot.lane.b32.xlu2 %v2737_v27, %s7912_s27 }
 0x363   : > { %v6508_v16 = vpop.permute.xlu0 %2231  ;;  %v2904_v14 = vstv %s6596_s1  ;;  %s6884_s1 = sld [smem:[#allocation8 + $0x45]] }
 0x364   : > { %v6510_v55 = vpop.permute.xlu1 %2259  ;;  %v6512_v25 = vpop.permute.xlu2 %2303 }
 0x365   : > { %8129 = vst [vmem:[#allocation91_spill] sm:$0xff] %v6510_v55 }
 0x366   : > { %8130 = vst [vmem:[#allocation49_spill] sm:$0xff] %v6512_v25  ;;  %v2792_v25 = vstv %s6514_s21  ;;  %s6599_s21 = sld [smem:[#allocation8 + $0x96]] }
 0x367   : > { %v2793_v19 = vmul.f32 %v6498_v2, %v2792_v25 }
 0x369   : > { %2743 = vrot.lane.b32.xlu0 %v2738_v23, %s7912_s27  ;;  %v2779_v23 = vmul.f32 %v6498_v2, %v2778_v41 }
 0x36a   : > { %2771 = vrot.lane.b32.xlu1 %v2766_v56, %s7912_s27  ;;  %2757 = vrot.lane.b32.xlu2 %v2752_v53, %s7912_s27 }
 0x36b   : > { %v6522_v12 = vpop.permute.xlu0 %2247 }
 0x36c   : > { %8131 = vst [vmem:[#allocation50_spill] sm:$0xff] %v6522_v12  ;;  %v6524_v27 = vpop.permute.xlu1 %2275  ;;  %v6526_v55 = vpop.permute.xlu2 %2329  ;;  %v2554_v57 = vstv %s6599_s21  ;;  %s6921_s21 = sld [smem:[#allocation8 + $0x69]] }
 0x36d   : > { %8132 = vst [vmem:[#allocation100_spill] sm:$0xff] %v6526_v55 }
 0x371   : > { %2769 = vrot.lane.b32.xlu0 %v2765_v54, %s7912_s27  ;;  %v2780_v54 = vmul.f32 %v6486_v46, %v2778_v41 }
 0x372   : > { %2797 = vrot.lane.b32.xlu1 %v2793_v19, %s7912_s27  ;;  %2783 = vrot.lane.b32.xlu2 %v2779_v23, %s7912_s27  ;;  %v2808_v19 = vmul.f32 %v6486_v46, %v2806_v60  ;;  %v2794_v23 = vmul.f32 %v6486_v46, %v2792_v25 }
 0x373   : > { %v6539_v56 = vpop.permute.xlu0 %2273 }
 0x374   : > { %8133 = vst [vmem:[#allocation69_spill] sm:$0xff] %v6539_v56  ;;  %v6541_v53 = vpop.permute.xlu1 %2301  ;;  %v6545_v55 = vpop.permute.xlu2 %2345 }
 0x375   : > { %8134 = vst [vmem:[#allocation59_spill] sm:$0xff] %v6545_v55  ;;  %v1720_v55 = vadd.f32 %v6187_v11, %v6112_v37  ;;  %v6577_v37 = vld [vmem:[#allocation2 + $0x1a] sm:$0xff] }
 0x376   : > { %8135 = vst [vmem:[#allocation70_spill] sm:$0xff] %v6577_v37 }
 0x377   : > { %v1832_v41 = vadd.f32 %v6296_v31, %v1720_v55  ;;  %v2807_v31 = vmul.f32 %v6498_v2, %v2806_v60  ;;  %v1635_v55 = vadd.f32 %v6103_v26, %v5951_v7  ;;  %v2848_v26 = vstv %s6548_s8  ;;  %s6676_s8 = sld [smem:[#allocation8 + $0xba]] }
 0x379   : > { %2785 = vrot.lane.b32.xlu0 %v2780_v54, %s7912_s27  ;;  %v2834_v54 = vstv %s6537_s30  ;;  %v1747_v60 = vadd.f32 %v6204_v0, %v1635_v55  ;;  %v2862_v55 = vstv %s6559_s20  ;;  %s6638_s30 = sld [smem:[#allocation8 + $0x10c]] }
 0x37a   : > { %2813 = vrot.lane.b32.xlu1 %v2808_v19, %s7912_s27  ;;  %2799 = vrot.lane.b32.xlu2 %v2794_v23, %s7912_s27  ;;  %v1944_v19 = vadd.f32 %v6348_v21, %v1832_v41  ;;  %v2820_v23 = vstv %s6543_s26  ;;  %v6601_v41 = vld [vmem:[#allocation2 + $0x22] sm:$0xff]  ;;  %s6645_s26 = sld [smem:[#allocation8 + $0x57]] }
 0x37b   : > { %v6571_v25 = vpop.permute.xlu0 %2289  ;;  %v2821_v21 = vmul.f32 %v6498_v2, %v2820_v23  ;;  %8137 = vst [vmem:[#allocation101_spill] sm:$0xff] %v6601_v41  ;;  %v1859_v0 = vadd.f32 %v6308_v51, %v1747_v60  ;;  %v6635_v51 = vmul.f32 %v6577_v37, %v2848_v26  ;;  %s6715_s20 = sld [smem:[#allocation8 + $0x19]] }
 0x37c   : > { %v6573_v56 = vpop.permute.xlu1 %2317  ;;  %v6579_v11 = vpop.permute.xlu2 %2371  ;;  %v2056_v12 = vadd.f32 %v6386_v22, %v1944_v19  ;;  %v7786_v22 = vstv %s6552_s23  ;;  %v2822_v19 = vmul.f32 %v6486_v46, %v2820_v23 }
 0x37d   : > { %8136 = vst [vmem:[#allocation21_spill] sm:$0xff] %v6579_v11  ;;  %v2835_v11 = vmul.f32 %v6577_v37, %v2834_v54  ;;  %v6632_v9 = vmul.f32 %v6577_v37, %v7786_v22  ;;  %v1971_v60 = vadd.f32 %v6357_v10, %v1859_v0  ;;  %v2836_v22 = vmul.f32 %v6601_v41, %v2834_v54 }
 0x37e   : > { %v2168_v7 = vadd.f32 %v6473_v63, %v2056_v12  ;;  %v2890_v0 = vstv %s6575_s28  ;;  %v6662_v54 = vmul.f32 %v6498_v2, %v7788_v5  ;;  %v2602_v5 = vstv %s6626_s19  ;;  %s6780_s28 = sld [smem:[#allocation8 + $0xa9]] }
 0x37f   : > { %8140 = vst [vmem:[#allocation83_spill] sm:$0xff] %v6632_v9  ;;  %v2863_v9 = vmul.f32 %v6577_v37, %v2862_v55  ;;  %v2083_v10 = vadd.f32 %v6396_v28, %v1971_v60  ;;  %v2542_v28 = vstv %s6609_s29  ;;  %v6680_v60 = vmul.f32 %v6577_v37, %v2890_v0  ;;  %s6932_s29 = sld [smem:[#allocation8 + $0x21]] }
 0x380   : > { %v2280_v63 = vadd.f32 %v6524_v27, %v2168_v7  ;;  %v2536_v27 = vstv %s6565_s22  ;;  %8143 = vst [vmem:[#allocation42_spill] sm:$0xff] %v6662_v54  ;;  %v2932_v54 = vstv %s6638_s30  ;;  %s6724_s22 = sld [smem:[#allocation8 + $0xc3]] }
 0x381   : > { %2811 = vrot.lane.b32.xlu0 %v2807_v31, %s7912_s27  ;;  %v2876_v31 = vstv %s6556_s0  ;;  %v2195_v39 = vadd.f32 %v6482_v44, %v2083_v10  ;;  %v6686_v8 = vmul.f32 %v6498_v2, %v2536_v27  ;;  %v6689_v44 = vmul.f32 %v6577_v37, %v2584_v13  ;;  %s6701_s0 = sld [smem:[#allocation8 + $0x3d]] }
 0x382   : > { %2839 = vrot.lane.b32.xlu1 %v2835_v11, %s7912_s27  ;;  %2825 = vrot.lane.b32.xlu2 %v2821_v21, %s7912_s27  ;;  %v2850_v21 = vmul.f32 %v6601_v41, %v2848_v26  ;;  %v2877_v26 = vmul.f32 %v6577_v37, %v2876_v31  ;;  %s6972_s19 = sld [smem:[#allocation8 + $0x10b]] }
 0x383   : > { %v6620_v12 = vpop.permute.xlu0 %2315  ;;  %8145 = vst [vmem:[#allocation94_spill] sm:$0xff] %v6689_v44  ;;  %v2590_v44 = vstv %s6645_s26  ;;  %s7003_s30 = sld [smem:[#allocation8 + $0xb1]] }
 0x384   : > { %8139 = vst [vmem:[#allocation82_spill] sm:$0xff] %v6620_v12  ;;  %v6622_v11 = vpop.permute.xlu1 %2343  ;;  %v2388_v23 = vpop.permute.xlu2 %2387  ;;  %v7787_v12 = vstv %s6586_s7  ;;  %s7024_s26 = sld [smem:[#allocation8 + $0x85]] }
 0x385   : > { %v6641_v7 = vadd.f32 %v2388_v23, %v2280_v63  ;;  %v2918_v63 = vstv %s6589_s2  ;;  %v6657_v23 = vmul.f32 %v6486_v46, %v2536_v27  ;;  %s6870_s2 = sld [smem:[#allocation8 + $0x18]] }
 0x386   : > { %v6683_v50 = vmul.f32 %v6577_v37, %v2918_v63 }
 0x387   : > { %8141 = vst [vmem:[#allocation112_spill] sm:$0xff] %v6641_v7  ;;  %v6667_v7 = vmul.f32 %v6577_v37, %v7787_v12  ;;  %v6698_v12 = vmul.f32 %v6577_v37, %v2904_v14 }
 0x388   : > { %8142 = vst [vmem:[#allocation113_spill] sm:$0xff] %v6657_v23  ;;  %v8148_v23 = vstv %s6550_s6  ;;  %s6754_s6 = sld [smem:[#allocation8 + $0x61]] }
 0x389   : > { %8144 = vst [vmem:[#allocation92_spill] sm:$0xff] %v6667_v7  ;;  %2827 = vrot.lane.b32.xlu0 %v2822_v19, %s7912_s27  ;;  %v1874_v19 = vadd.f32 %v6324_v43, %v1762_v24  ;;  %v6704_v7 = vmul.f32 %v6486_v46, %v2554_v57  ;;  %v6710_v43 = vmul.f32 %v6486_v46, %v8148_v23 }
 0x38a   : > { %2855 = vrot.lane.b32.xlu1 %v2850_v21, %s7912_s27  ;;  %2841 = vrot.lane.b32.xlu2 %v2836_v22, %s7912_s27  ;;  %v2307_v21 = vadd.f32 %v6541_v53, %v2195_v39  ;;  %v6713_v24 = vmul.f32 %v6486_v46, %v2542_v28  ;;  %v2892_v23 = vmul.f32 %v6601_v41, %v2890_v0 }
 0x38b   : > { %v6693_v10 = vpop.permute.xlu0 %2331  ;;  %8147 = vst [vmem:[#allocation119_spill] sm:$0xff] %v6704_v7  ;;  %v1986_v53 = vadd.f32 %v6371_v35, %v1874_v19  ;;  %v2864_v7 = vmul.f32 %v6601_v41, %v2862_v55  ;;  %v1677_v35 = vadd.f32 %v6183_v20, %v6065_v52  ;;  %v6738_v19 = vmul.f32 %v6577_v37, %v2932_v54 }
 0x38c   : > { %8146 = vst [vmem:[#allocation118_spill] sm:$0xff] %v6693_v10  ;;  %v6695_v22 = vpop.permute.xlu1 %2359  ;;  %v2414_v27 = vpop.permute.xlu2 %2413  ;;  %v6721_v10 = vmul.f32 %v6601_v41, %v2584_v13  ;;  %v6741_v55 = vmul.f32 %v6498_v2, %v2554_v57  ;;  %v6746_v0 = vmul.f32 %v6601_v41, %v2602_v5  ;;  %v6752_v52 = vmul.f32 %v6601_v41, %v2932_v54 }
 0x38d   : > { %8149 = vst [vmem:[#allocation53_spill] sm:$0xff] %v6710_v43  ;;  %v6718_v39 = vadd.f32 %v2414_v27, %v2307_v21  ;;  %v6729_v43 = vmul.f32 %v6601_v41, %v2876_v31  ;;  %v2098_v13 = vadd.f32 %v6408_v29, %v1986_v53  ;;  %v1734_v31 = vadd.f32 %v6226_v17, %v6190_v1  ;;  %v6796_v27 = vld [vmem:[#allocation2 + $0x32] sm:$0xff] }
 0x38e   : > { %8150 = vst [vmem:[#allocation15_spill] sm:$0xff] %v6713_v24  ;;  %v6732_v24 = vmul.f32 %v6498_v2, %v2542_v28  ;;  %v6749_v28 = vmul.f32 %v6601_v41, %v2904_v14  ;;  %v1789_v20 = vadd.f32 %v6228_v33, %v1677_v35  ;;  %v6762_v1 = vmul.f32 %v6601_v41, %v2918_v63 }
 0x38f   : > { %8151 = vst [vmem:[#allocation16_spill] sm:$0xff] %v6746_v0  ;;  %v2210_v29 = vadd.f32 %v6494_v15, %v2098_v13  ;;  %v2560_v17 = vstv %s6676_s8  ;;  %v1846_v14 = vadd.f32 %v6264_v47, %v1734_v31  ;;  %v8152_v33 = vstv %s6552_s23  ;;  %v6804_v31 = vld [vmem:[#allocation2 + $0x3a] sm:$0xff]  ;;  %s6826_s23 = sld [smem:[#allocation8 + $0x60]] }
 0x390   : > { %v6772_v15 = vmul.f32 %v6601_v41, %v8152_v33  ;;  %v1901_v63 = vadd.f32 %v6334_v59, %v1789_v20  ;;  %v6789_v57 = vmul.f32 %v6577_v37, %v2602_v5  ;;  %v8153_v21 = vstv %s6582_s10  ;;  %s6837_s10 = sld [smem:[#allocation8 + $0xa8]] }
 0x391   : > { %2853 = vrot.lane.b32.xlu0 %v6635_v51, %s7912_s27  ;;  %v6775_v51 = vmul.f32 %v6601_v41, %v2590_v44  ;;  %v2322_v47 = vadd.f32 %v6573_v56, %v2210_v29  ;;  %v1958_v53 = vadd.f32 %v6369_v4, %v1846_v14  ;;  %v2960_v35 = vstv %s6701_s0  ;;  %s7041_s8 = sld [smem:[#allocation8 + $0xcc]] }
 0x392   : > { %2881 = vrot.lane.b32.xlu1 %v2877_v26, %s7912_s27  ;;  %2867 = vrot.lane.b32.xlu2 %v2863_v9, %s7912_s27  ;;  %v6778_v26 = vmul.f32 %v6577_v37, %v2590_v44  ;;  %v6794_v44 = vmul.f32 %v6486_v46, %v8153_v21  ;;  %v2946_v56 = vstv %s6715_s20  ;;  %v6802_v13 = vmul.f32 %v6486_v46, %v2560_v17  ;;  %s7051_s0 = sld [smem:[#allocation8 + $0x84]] }
 0x393   : > { %v6784_v54 = vpop.permute.xlu0 %2357  ;;  %v2013_v5 = vadd.f32 %v6384_v42, %v1901_v63  ;;  %v7792_v29 = vstv %s6724_s22  ;;  %v6811_v33 = vmul.f32 %v6498_v2, %v2560_v17  ;;  %v1649_v21 = vadd.f32 %v6181_v6, %v6014_v62  ;;  %s7057_s20 = sld [smem:[#allocation8 + $0xd5]] }
 0x394   : > { %v6786_v9 = vpop.permute.xlu1 %2385  ;;  %v2430_v59 = vpop.permute.xlu2 %2429  ;;  %v2070_v4 = vadd.f32 %v6415_v36, %v1958_v53  ;;  %v8155_v14 = vstv %s6586_s7  ;;  %v6824_v46 = vmul.f32 %v6601_v41, %v7792_v29  ;;  %v1692_v42 = vadd.f32 %v6202_v45, %v6114_v30  ;;  %s6850_s7 = sld [smem:[#allocation8 + $0x102]] }
 0x395   : > { %v6807_v20 = vadd.f32 %v2430_v59, %v2322_v47  ;;  %8154 = vst [vmem:[#allocation103_spill] sm:$0xff] %v6811_v33  ;;  %v6819_v0 = vmul.f32 %v6601_v41, %v8155_v14  ;;  %v2125_v17 = vadd.f32 %v6417_v61, %v2013_v5  ;;  %v6832_v62 = vmul.f32 %v6796_v27, %v2960_v35  ;;  %v8170_v33 = vld [vmem:[#allocation27_spill] sm:$0xff] }
 0x396   : > { %v6835_v6 = vmul.f32 %v6796_v27, %v2946_v56  ;;  %v1733_v36 = vadd.f32 %v6236_v18, %v6192_v58  ;;  %v1761_v63 = vadd.f32 %v6238_v40, %v1649_v21  ;;  %v2182_v47 = vadd.f32 %v6450_v3, %v2070_v4  ;;  %v8157_v21 = vld [vmem:[#allocation68_spill] sm:$0xff] }
 0x397   : > { %v6844_v30 = vmul.f32 %v6804_v31, %v2946_v56  ;;  %v1804_v45 = vadd.f32 %v6240_v34, %v1692_v42  ;;  %v2237_v61 = vadd.f32 %v6508_v16, %v2125_v17  ;;  %v2974_v53 = vstv %s6754_s6  ;;  %v8158_v42 = vld [vmem:[#allocation38_spill] sm:$0xff]  ;;  %v8159_v17 = vld [vmem:[#allocation52_spill] sm:$0xff]  ;;  %s7067_s6 = sld [smem:[#allocation8 + $0x8d]] }
 0x398   : > { %v7793_v59 = vstv %s6765_s11  ;;  %v1873_v58 = vadd.f32 %v6276_v49, %v1761_v63  ;;  %v1845_v18 = vadd.f32 %v6286_v38, %v1733_v36  ;;  %v2294_v40 = vadd.f32 %v6571_v25, %v2182_v47  ;;  %v8156_v25 = vld [vmem:[#allocation65_spill] sm:$0xff]  ;;  %v8160_v63 = vld [vmem:[#allocation71_spill] sm:$0xff]  ;;  %v8161_v47 = vld [vmem:[#allocation32_spill] sm:$0xff] }
 0x399   : > { %2869 = vrot.lane.b32.xlu0 %v2864_v7, %s7912_s27  ;;  %v7791_v34 = vstv %s6780_s28  ;;  %v1916_v3 = vadd.f32 %v6346_v32, %v1804_v45  ;;  %v2349_v16 = vadd.f32 %v6622_v11, %v2237_v61  ;;  %v6865_v56 = vmul.f32 %v6804_v31, %v2974_v53  ;;  %v8162_v61 = vld [vmem:[#allocation47_spill] sm:$0xff] }
 0x39a   : > { %2897 = vrot.lane.b32.xlu1 %v2892_v23, %s7912_s27  ;;  %2883 = vrot.lane.b32.xlu2 %v6729_v43, %s7912_s27  ;;  %v6868_v49 = vmul.f32 %v6804_v31, %v2960_v35  ;;  %v1957_v38 = vadd.f32 %v6328_v48, %v1845_v18  ;;  %v1985_v43 = vadd.f32 %v8156_v25, %v1873_v58  ;;  %v8163_v18 = vld [vmem:[#allocation78_spill] sm:$0xff] }
 0x39b   : > { %v6862_v7 = vpop.permute.xlu0 %2373  ;;  %v6879_v5 = vmul.f32 %v6796_v27, %v7793_v59  ;;  %v2028_v4 = vadd.f32 %v8157_v21, %v1916_v3  ;;  %v6887_v35 = vmul.f32 %v6796_v27, %v2974_v53  ;;  %v6892_v48 = vmul.f32 %v6796_v27, %v7791_v34  ;;  %v8164_v3 = vld [vmem:[#allocation31_spill] sm:$0xff] }
 0x39c   : > { %v2402_v23 = vpop.permute.xlu1 %2401  ;;  %v2456_v11 = vpop.permute.xlu2 %2455  ;;  %v1636_v36 = vadd.f32 %v8159_v17, %v8158_v42  ;;  %v1664_v45 = vadd.f32 %v8161_v47, %v8160_v63  ;;  %v2069_v58 = vadd.f32 %v8162_v61, %v1957_v38  ;;  %v7798_v21 = vstv %s6837_s10  ;;  %v8167_v34 = vld [vmem:[#allocation23_spill] sm:$0xff]  ;;  %v8171_v47 = vld [vmem:[#allocation25_spill] sm:$0xff]  ;;  %v8172_v38 = vld [vmem:[#allocation50_spill] sm:$0xff] }
 0x39d   : > { %v6874_v32 = vadd.f32 %v2402_v23, %v2294_v40  ;;  %v6882_v14 = vadd.f32 %v2456_v11, %v2349_v16  ;;  %v2097_v40 = vadd.f32 %v8163_v18, %v1985_v43  ;;  %v8165_v16 = vld [vmem:[#allocation41_spill] sm:$0xff]  ;;  %v8166_v23 = vld [vmem:[#allocation87_spill] sm:$0xff]  ;;  %v7799_v11 = vstv %s6826_s23  ;;  %v8175_v61 = vld [vmem:[#allocation90_spill] sm:$0xff] }
 0x39e   : > { %v1719_v53 = vadd.f32 %v8165_v16, %v8164_v3  ;;  %v2140_v25 = vadd.f32 %v8166_v23, %v2028_v4  ;;  %v1748_v29 = vadd.f32 %v8167_v34, %v1636_v36  ;;  %v8168_v59 = vld [vmem:[#allocation55_spill] sm:$0xff]  ;;  %v2181_v63 = vadd.f32 %v8170_v33, %v2069_v58  ;;  %v8173_v33 = vld [vmem:[#allocation74_spill] sm:$0xff]  ;;  %v8174_v36 = vld [vmem:[#allocation33_spill] sm:$0xff] }
 0x39f   : > { %v1776_v42 = vadd.f32 %v8168_v59, %v1664_v45  ;;  %v8169_v17 = vld [vmem:[#allocation67_spill] sm:$0xff]  ;;  %v6919_v59 = vmul.f32 %v6804_v31, %v7799_v11  ;;  %v8176_v18 = vld [vmem:[#allocation82_spill] sm:$0xff]  ;;  %v2626_v23 = vstv %s6870_s2  ;;  %s7074_s2 = sld [smem:[#allocation8 + $0xde]] }
 0x3a0   : > { %v2209_v41 = vadd.f32 %v8169_v17, %v2097_v40  ;;  %v1831_v37 = vadd.f32 %v8171_v47, %v1719_v53  ;;  %v2252_v43 = vadd.f32 %v8172_v38, %v2140_v25  ;;  %v1860_v45 = vadd.f32 %v8174_v36, %v1748_v29  ;;  %v8178_v25 = vld [vmem:[#allocation46_spill] sm:$0xff]  ;;  %v8181_v38 = vld [vmem:[#allocation63_spill] sm:$0xff] }
 0x3a1   : > { %2895 = vrot.lane.b32.xlu0 %v6680_v60, %s7912_s27  ;;  %v1888_v34 = vadd.f32 %v8173_v33, %v1776_v42  ;;  %v2293_v58 = vadd.f32 %v8175_v61, %v2181_v63  ;;  %v8177_v60 = vld [vmem:[#allocation95_spill] sm:$0xff]  ;;  %v6937_v29 = vmul.f32 %v6796_v27, %v7798_v21  ;;  %v7800_v61 = vstv %s6884_s1  ;;  %v8184_v21 = vld [vmem:[#allocation96_spill] sm:$0xff] }
 0x3a2   : > { %2923 = vrot.lane.b32.xlu1 %v6683_v50, %s7912_s27  ;;  %v2321_v40 = vadd.f32 %v8176_v18, %v2209_v41  ;;  %2909 = vrot.lane.b32.xlu2 %v6698_v12, %s7912_s27  ;;  %v1943_v50 = vadd.f32 %v8177_v60, %v1831_v37  ;;  %v2364_v3 = vadd.f32 %v6695_v22, %v2252_v43  ;;  %v8179_v41 = vld [vmem:[#allocation37_spill] sm:$0xff]  ;;  %v8183_v60 = vld [vmem:[#allocation72_spill] sm:$0xff] }
 0x3a3   : > { %v2400_v16 = vpop.permute.xlu0 %2399  ;;  %v1972_v42 = vadd.f32 %v8178_v25, %v1860_v45  ;;  %v2000_v17 = vadd.f32 %v8179_v41, %v1888_v34  ;;  %v8180_v37 = vld [vmem:[#allocation17_spill] sm:$0xff]  ;;  %v1691_v4 = vadd.f32 %v8184_v21, %v8183_v60  ;;  %v8186_v34 = vld [vmem:[#allocation115_spill] sm:$0xff]  ;;  %v8188_v41 = vld [vmem:[#allocation116_spill] sm:$0xff] }
 0x3a4   : > { %v2428_v53 = vpop.permute.xlu1 %2427  ;;  %v6941_v63 = vadd.f32 %v2400_v16, %v2293_v58  ;;  %v2472_v47 = vpop.permute.xlu2 %2471  ;;  %v1663_v22 = vadd.f32 %v8181_v38, %v8180_v37  ;;  %v8182_v43 = vld [vmem:[#allocation77_spill] sm:$0xff]  ;;  %v8187_v16 = vld [vmem:[#allocation51_spill] sm:$0xff]  ;;  %v8189_v37 = vld [vmem:[#allocation62_spill] sm:$0xff] }
 0x3a5   : > { %v2433_v12 = vadd.f32 %v2428_v53, %v2321_v40  ;;  %v2055_v33 = vadd.f32 %v8182_v43, %v1943_v50  ;;  %v6946_v36 = vadd.f32 %v2472_v47, %v2364_v3  ;;  %v6949_v18 = vld [vmem:[#allocation2 + $0x4a] sm:$0xff]  ;;  %v2112_v58 = vadd.f32 %v8186_v34, %v2000_v17  ;;  %v8190_v21 = vld [vmem:[#allocation79_spill] sm:$0xff] }
 0x3a6   : > { %v8185_v45 = vld [vmem:[#allocation89_spill] sm:$0xff]  ;;  %v1775_v53 = vadd.f32 %v8187_v16, %v1663_v22  ;;  %v2628_v3 = vmul.f32 %v6804_v31, %v2626_v23  ;;  %v6960_v47 = vmul.f32 %v6796_v27, %v2626_v23  ;;  %v1803_v38 = vadd.f32 %v8189_v37, %v1691_v4  ;;  %v8193_v34 = vld [vmem:[#allocation75_spill] sm:$0xff]  ;;  %v8197_v16 = vld [vmem:[#allocation118_spill] sm:$0xff] }
 0x3a7   : > { %v2084_v25 = vadd.f32 %v8185_v45, %v1972_v42  ;;  %v2539_v40 = vadd.f32 %v6686_v8, %v2433_v12  ;;  %v2167_v50 = vadd.f32 %v8188_v41, %v2055_v33  ;;  %v2224_v43 = vadd.f32 %v8190_v21, %v2112_v58  ;;  %v8191_v42 = vld [vmem:[#allocation80_spill] sm:$0xff]  ;;  %v8192_v45 = vld [vmem:[#allocation94_spill] sm:$0xff]  ;;  %v8194_v8 = vld [vmem:[#allocation69_spill] sm:$0xff] }
 0x3a8   : > { %v1887_v11 = vadd.f32 %v8193_v34, %v1775_v53  ;;  %v2681_v4 = vmul.f32 %v6949_v18, %v7800_v61  ;;  %v7801_v23 = vstv %s6921_s21  ;;  %v6978_v22 = vld [vmem:[#allocation2 + $0x52] sm:$0xff]  ;;  %v8200_v34 = vld [vmem:[#allocation76_spill] sm:$0xff] }
 0x3a9   : > { %v2196_v60 = vadd.f32 %v8191_v42, %v2084_v25  ;;  %v2587_v17 = vadd.f32 %v8192_v45, %v2539_v40  ;;  %v2279_v12 = vadd.f32 %v8194_v8, %v2167_v50  ;;  %2911 = vrot.lane.b32.xlu0 %v6749_v28, %s7912_s27  ;;  %v8195_v33 = vld [vmem:[#allocation34_spill] sm:$0xff]  ;;  %v8196_v58 = vld [vmem:[#allocation49_spill] sm:$0xff]  ;;  %v2336_v53 = vadd.f32 %v8197_v16, %v2224_v43  ;;  %v8199_v50 = vld [vmem:[#allocation19_spill] sm:$0xff] }
 0x3aa   : > { %2939 = vrot.lane.b32.xlu1 %v6752_v52, %s7912_s27  ;;  %v1915_v25 = vadd.f32 %v8195_v33, %v1803_v38  ;;  %2925 = vrot.lane.b32.xlu2 %v6762_v1, %s7912_s27  ;;  %v8198_v52 = vld [vmem:[#allocation44_spill] sm:$0xff]  ;;  %v2533_v37 = vadd.f32 %v8199_v50, %v6718_v39  ;;  %v2674_v38 = vstv %s6932_s29  ;;  %v2688_v39 = vmul.f32 %v6978_v22, %v7801_v23  ;;  %v8214_v23 = vld [vmem:[#allocation110_spill] sm:$0xff]  ;;  %s7149_s29 = sld [smem:[#allocation8 + $0x115]] }
 0x3ab   : > { %v2308_v40 = vadd.f32 %v8196_v58, %v2196_v60  ;;  %v2635_v28 = vadd.f32 %v6879_v5, %v2587_v17  ;;  %v1999_v41 = vadd.f32 %v8198_v52, %v1887_v11  ;;  %v2391_v21 = vadd.f32 %v6786_v9, %v2279_v12  ;;  %v2416_v42 = vpop.permute.xlu0 %2415  ;;  %v8201_v1 = vld [vmem:[#allocation60_spill] sm:$0xff]  ;;  %v8203_v17 = vld [vmem:[#allocation81_spill] sm:$0xff]  ;;  %v8204_v11 = vld [vmem:[#allocation43_spill] sm:$0xff] }
 0x3ac   : > { %v2444_v45 = vpop.permute.xlu1 %2443  ;;  %v2027_v60 = vadd.f32 %v8200_v34, %v1915_v25  ;;  %v2498_v33 = vpop.permute.xlu2 %2497  ;;  %v8202_v16 = vld [vmem:[#allocation24_spill] sm:$0xff]  ;;  %v1706_v52 = vadd.f32 %v8204_v11, %v8203_v17  ;;  %v8207_v25 = vld [vmem:[#allocation102_spill] sm:$0xff]  ;;  %v8213_v17 = vld [vmem:[#allocation109_spill] sm:$0xff] }
 0x3ad   : > { %v2420_v8 = vadd.f32 %v2416_v42, %v2308_v40  ;;  %v2448_v43 = vadd.f32 %v2444_v45, %v2336_v53  ;;  %v6992_v58 = vadd.f32 %v2681_v4, %v2635_v28  ;;  %v1678_v5 = vadd.f32 %v8202_v16, %v8201_v1  ;;  %v8206_v9 = vld [vmem:[#allocation48_spill] sm:$0xff]  ;;  %v8208_v4 = vld [vmem:[#allocation53_spill] sm:$0xff]  ;;  %v8209_v28 = vld [vmem:[#allocation15_spill] sm:$0xff] }
 0x3ae   : > { %v6998_v61 = vadd.f32 %v2498_v33, %v2391_v21  ;;  %v2111_v12 = vadd.f32 %v8206_v9, %v1999_v41  ;;  %v2139_v40 = vadd.f32 %v8207_v25, %v2027_v60  ;;  %v8210_v42 = vld [vmem:[#allocation26_spill] sm:$0xff]  ;;  %v8212_v21 = vld [vmem:[#allocation83_spill] sm:$0xff]  ;;  %v2676_v16 = vmul.f32 %v6978_v22, %v2674_v38  ;;  %v8216_v25 = vld [vmem:[#allocation84_spill] sm:$0xff] }
 0x3af   : > { %v2534_v53 = vadd.f32 %v8208_v4, %v2420_v8  ;;  %v2546_v50 = vadd.f32 %v8209_v28, %v2448_v43  ;;  %v1790_v45 = vadd.f32 %v8210_v42, %v1678_v5  ;;  %v8211_v34 = vld [vmem:[#allocation66_spill] sm:$0xff]  ;;  %v2581_v33 = vadd.f32 %v8212_v21, %v2533_v37  ;;  %v8215_v9 = vld [vmem:[#allocation35_spill] sm:$0xff]  ;;  %v8219_v4 = vld [vmem:[#allocation36_spill] sm:$0xff] }
 0x3b0   : > { %8205 = vst [vmem:[#allocation93_spill] sm:$0xff] %v6998_v61  ;;  %v1818_v1 = vadd.f32 %v8211_v34, %v1706_v52  ;;  %v2251_v11 = vadd.f32 %v8213_v17, %v2139_v40  ;;  %v2223_v61 = vadd.f32 %v8214_v23, %v2111_v12  ;;  %v2620_v37 = vstv %s6972_s19  ;;  %v8217_v23 = vld [vmem:[#allocation100_spill] sm:$0xff]  ;;  %v8222_v34 = vld [vmem:[#allocation30_spill] sm:$0xff]  ;;  %s7267_s19 = sld [smem:[#allocation8 + $0x8e]] }
 0x3b1   : > { %v2582_v41 = vadd.f32 %v6772_v15, %v2534_v53  ;;  %v2594_v60 = vadd.f32 %v6775_v51, %v2546_v50  ;;  %v1902_v43 = vadd.f32 %v8216_v25, %v1790_v45  ;;  %2937 = vrot.lane.b32.xlu0 %v6738_v19, %s7912_s27  ;;  %v2675_v5 = vmul.f32 %v6949_v18, %v2674_v38  ;;  %v8218_v19 = vld [vmem:[#allocation54_spill] sm:$0xff]  ;;  %v8220_v53 = vld [vmem:[#allocation113_spill] sm:$0xff] }
 0x3b2   : > { %v1930_v8 = vadd.f32 %v8215_v9, %v1818_v1  ;;  %2965 = vrot.lane.b32.xlu1 %v6832_v62, %s7912_s27  ;;  %v2335_v52 = vadd.f32 %v8217_v23, %v2223_v61  ;;  %v2363_v15 = vadd.f32 %v6784_v54, %v2251_v11  ;;  %2951 = vrot.lane.b32.xlu2 %v6835_v6, %s7912_s27  ;;  %v2698_v21 = vstv %s7003_s30  ;;  %s7281_s30 = sld [smem:[#allocation8 + $0xd6]] }
 0x3b3   : > { %v2642_v51 = vadd.f32 %v6919_v59, %v2594_v60  ;;  %v2630_v12 = vadd.f32 %v2628_v3, %v2582_v41  ;;  %v2014_v40 = vadd.f32 %v8218_v19, %v1902_v43  ;;  %v2540_v28 = vadd.f32 %v8220_v53, %v6807_v20  ;;  %v2442_v50 = vpop.permute.xlu0 %2441  ;;  %v8221_v3 = vld [vmem:[#allocation20_spill] sm:$0xff]  ;;  %v8225_v60 = vld [vmem:[#allocation73_spill] sm:$0xff] }
 0x3b4   : > { %v2042_v62 = vadd.f32 %v8219_v4, %v1930_v8  ;;  %v2470_v38 = vpop.permute.xlu1 %2469  ;;  %v2629_v61 = vadd.f32 %v6960_v47, %v2581_v33  ;;  %v2447_v42 = vadd.f32 %v2442_v50, %v2335_v52  ;;  %v2514_v45 = vpop.permute.xlu2 %2513  ;;  %v1705_v1 = vadd.f32 %v8222_v34, %v8221_v3  ;;  %v8223_v47 = vld [vmem:[#allocation98_spill] sm:$0xff]  ;;  %v8229_v52 = vld [vmem:[#allocation111_spill] sm:$0xff] }
 0x3b5   : > { %v2475_v54 = vadd.f32 %v2470_v38, %v2363_v15  ;;  %v7037_v6 = vadd.f32 %v2688_v39, %v2642_v51  ;;  %v7039_v59 = vadd.f32 %v2676_v16, %v2630_v12  ;;  %v7046_v20 = vadd.f32 %v2514_v45, %v6874_v32  ;;  %v8224_v39 = vld [vmem:[#allocation57_spill] sm:$0xff]  ;;  %v8230_v12 = vld [vmem:[#allocation86_spill] sm:$0xff] }
 0x3b6   : > { %v7049_v17 = vadd.f32 %v2675_v5, %v2629_v61  ;;  %v2126_v33 = vadd.f32 %v8223_v47, %v2014_v40  ;;  %v2154_v11 = vadd.f32 %v8224_v39, %v2042_v62  ;;  %v2545_v16 = vadd.f32 %v6732_v24, %v2447_v42  ;;  %v8228_v24 = vld [vmem:[#allocation40_spill] sm:$0xff]  ;;  %v8232_v62 = vld [vmem:[#allocation59_spill] sm:$0xff]  ;;  %v8234_v38 = vld [vmem:[#allocation42_spill] sm:$0xff] }
 0x3b7   : > { %v2557_v41 = vadd.f32 %v6741_v55, %v2475_v54  ;;  %v1817_v32 = vadd.f32 %v8225_v60, %v1705_v1  ;;  %v2588_v9 = vadd.f32 %v6721_v10, %v2540_v28  ;;  %v8226_v8 = vstv %s6826_s23  ;;  %s7114_s23 = sld [smem:[#allocation8 + $0xcd]] }
 0x3b8   : > { %v2639_v25 = vmul.f32 %v6796_v27, %v8226_v8  ;;  %v8227_v43 = vstv %s6765_s11  ;;  %v2266_v23 = vadd.f32 %v8228_v24, %v2154_v11  ;;  %v2238_v55 = vadd.f32 %v8229_v52, %v2126_v33  ;;  %s7109_s11 = sld [smem:[#allocation8 + $0x114]]  ;;  %v8237_v8 = vld [vmem:[#allocation92_spill] sm:$0xff]  ;;  %v8238_v24 = vld [vmem:[#allocation91_spill] sm:$0xff] }
 0x3b9   : > { %v2634_v5 = vmul.f32 %v6804_v31, %v8227_v43  ;;  %v2593_v15 = vadd.f32 %v6778_v26, %v2545_v16  ;;  %v2605_v51 = vadd.f32 %v6789_v57, %v2557_v41  ;;  %v1929_v19 = vadd.f32 %v8230_v12, %v1817_v32  ;;  %2953 = vrot.lane.b32.xlu0 %v6844_v30, %s7912_s27  ;;  %v8236_v16 = vld [vmem:[#allocation106_spill] sm:$0xff] }
 0x3ba   : > { %2981 = vrot.lane.b32.xlu1 %v6865_v56, %s7912_s27  ;;  %v2988_v10 = vstv %s7024_s26  ;;  %v2699_v40 = vmul.f32 %v6949_v18, %v2698_v21  ;;  %v8231_v4 = vstv %s6921_s21  ;;  %v2350_v57 = vadd.f32 %v8232_v62, %v2238_v55  ;;  %2967 = vrot.lane.b32.xlu2 %v6868_v49, %s7912_s27  ;;  %v8233_v56 = vld [vmem:[#allocation58_spill] sm:$0xff]  ;;  %s7130_s21 = sld [smem:[#allocation8 + $0xe7]] }
 0x3bb   : > { %v2687_v26 = vmul.f32 %v6949_v18, %v8231_v4  ;;  %v2378_v53 = vadd.f32 %v6862_v7, %v2266_v23  ;;  %v2653_v30 = vadd.f32 %v6937_v29, %v2605_v51  ;;  %v2641_v28 = vadd.f32 %v2639_v25, %v2593_v15  ;;  %v2458_v42 = vpop.permute.xlu0 %2457  ;;  %s7286_s26 = sld [smem:[#allocation8 + $0xb2]] }
 0x3bc   : > { %v2041_v50 = vadd.f32 %v8233_v56, %v1929_v19  ;;  %v2551_v61 = vadd.f32 %v8234_v38, %v6882_v14  ;;  %v2486_v54 = vpop.permute.xlu1 %2485  ;;  %v8235_v45 = vstv %s6884_s1  ;;  %v2636_v7 = vadd.f32 %v2634_v5, %v2588_v9  ;;  %v2742_v49 = vpop.permute.xlu2 %2741  ;;  %s7123_s1 = sld [smem:[#allocation8 + $0x11d]] }
 0x3bd   : > { %v2682_v3 = vmul.f32 %v6978_v22, %v8235_v45  ;;  %v2462_v34 = vadd.f32 %v2458_v42, %v2350_v57  ;;  %v2490_v1 = vadd.f32 %v2486_v54, %v2378_v53  ;;  %v7098_v29 = vadd.f32 %v2699_v40, %v2653_v30  ;;  %v8242_v57 = vld [vmem:[#allocation70_spill] sm:$0xff] }
 0x3be   : > { %v7100_v47 = vadd.f32 %v2687_v26, %v2641_v28  ;;  %v7103_v33 = vadd.f32 %v2742_v49, %v6992_v58  ;;  %v2656_v14 = vstv %s7041_s8  ;;  %v2644_v11 = vstv %s7051_s0  ;;  %s7163_s8 = sld [smem:[#allocation8 + $0xf1]] }
 0x3bf   : > { %v7106_v39 = vadd.f32 %v2682_v3, %v2636_v7  ;;  %v2153_v41 = vadd.f32 %v8236_v16, %v2041_v50  ;;  %v2552_v60 = vadd.f32 %v6794_v44, %v2462_v34  ;;  %v2564_v32 = vadd.f32 %v6802_v13, %v2490_v1  ;;  %s7181_s0 = sld [smem:[#allocation8 + $0xf9]] }
 0x3c0   : > { %v2704_v9 = vstv %s7057_s20  ;;  %v2599_v58 = vadd.f32 %v8237_v8, %v2551_v61  ;;  %v2989_v25 = vmul.f32 %v6796_v27, %v2988_v10  ;;  %v2658_v43 = vmul.f32 %v6804_v31, %v2656_v14  ;;  %s7298_s20 = sld [smem:[#allocation8 + $0xfa]] }
 0x3c1   : > { %v2692_v5 = vstv %s7067_s6  ;;  %v2265_v23 = vadd.f32 %v8238_v24, %v2153_v41  ;;  %v2600_v44 = vadd.f32 %v6819_v0, %v2552_v60  ;;  %v2612_v13 = vadd.f32 %v6824_v46, %v2564_v32  ;;  %2979 = vrot.lane.b32.xlu0 %v6887_v35, %s7912_s27  ;;  %v8240_v46 = vld [vmem:[#allocation21_spill] sm:$0xff]  ;;  %v8241_v35 = vld [vmem:[#allocation119_spill] sm:$0xff]  ;;  %v8245_v41 = vld [vmem:[#allocation16_spill] sm:$0xff]  ;;  %s7313_s6 = sld [smem:[#allocation8 + $0x8]] }
 0x3c2   : > { %v2646_v52 = vmul.f32 %v6804_v31, %v2644_v11  ;;  %v2566_v55 = vstv %s7074_s2  ;;  %3007 = vrot.lane.b32.xlu1 %v6892_v48, %s7912_s27  ;;  %v8239_v15 = vstv %s6850_s7  ;;  %v2706_v12 = vmul.f32 %v6978_v22, %v2704_v9  ;;  %2993 = vrot.lane.b32.xlu2 %v2989_v25, %s7912_s27  ;;  %s7317_s2 = sld [smem:[#allocation8 + $0x11e]] }
 0x3c3   : > { %v2573_v51 = vmul.f32 %v6498_v2, %v8239_v15  ;;  %v2645_v0 = vmul.f32 %v6796_v27, %v2644_v11  ;;  %v2377_v19 = vadd.f32 %v8240_v46, %v2265_v23  ;;  %v2660_v40 = vadd.f32 %v2658_v43, %v2612_v13  ;;  %v2484_v62 = vpop.permute.xlu0 %2483 }
 0x3c4   : > { %v2694_v4 = vmul.f32 %v6978_v22, %v2692_v5  ;;  %v2648_v26 = vadd.f32 %v2646_v52, %v2600_v44  ;;  %v2558_v48 = vadd.f32 %v8241_v35, %v6946_v36  ;;  %v2621_v53 = vmul.f32 %v8242_v57, %v2620_v37  ;;  %v2512_v30 = vpop.permute.xlu1 %2511  ;;  %v2758_v61 = vpop.permute.xlu2 %2757  ;;  %v8247_v44 = vld [vmem:[#allocation39_spill] sm:$0xff]  ;;  %v8250_v35 = vld [vmem:[#allocation112_spill] sm:$0xff] }
 0x3c5   : > { %v2693_v28 = vmul.f32 %v6949_v18, %v2692_v5  ;;  %v2647_v56 = vadd.f32 %v2645_v0, %v2599_v58  ;;  %v2489_v50 = vadd.f32 %v2484_v62, %v2377_v19  ;;  %v2517_v38 = vadd.f32 %v2512_v30, %v6941_v63  ;;  %v8244_v63 = vld [vmem:[#allocation103_spill] sm:$0xff]  ;;  %v8249_v0 = vld [vmem:[#allocation93_spill] sm:$0xff] }
 0x3c6   : > { %v7153_v42 = vadd.f32 %v2706_v12, %v2660_v40  ;;  %v7155_v36 = vadd.f32 %v2694_v4, %v2648_v26  ;;  %v8243_v54 = vstv %s6724_s22  ;;  %v7161_v3 = vadd.f32 %v2758_v61, %v7037_v6  ;;  %s7173_s22 = sld [smem:[#allocation8 + $0xf0]] }
 0x3c7   : > { %v2609_v45 = vmul.f32 %v8242_v57, %v8243_v54  ;;  %v2668_v7 = vstv %s7109_s11  ;;  %v7166_v34 = vadd.f32 %v2693_v28, %v2647_v56  ;;  %v2563_v1 = vadd.f32 %v8244_v63, %v2489_v50  ;;  %s7328_s11 = sld [smem:[#allocation8 + $0x2c]] }
 0x3c8   : > { %v2575_v49 = vadd.f32 %v2573_v51, %v2517_v38  ;;  %v2990_v11 = vmul.f32 %v6804_v31, %v2988_v10  ;;  %v3016_v16 = vstv %s7114_s23  ;;  %v2606_v6 = vadd.f32 %v8245_v41, %v2558_v48  ;;  %v8251_v38 = vld [vmem:[#allocation101_spill] sm:$0xff]  ;;  %s7343_s23 = sld [smem:[#allocation8 + $0x74]] }
 0x3c9   : > { %v3018_v60 = vmul.f32 %v6804_v31, %v3016_v16  ;;  %v8246_v32 = vstv %s6780_s28  ;;  %v2716_v58 = vstv %s7123_s1  ;;  %v2611_v25 = vadd.f32 %v2609_v45, %v2563_v1  ;;  %s7209_s28 = sld [smem:[#allocation8 + $0x22]] }
 0x3ca   : > { %v3004_v8 = vmul.f32 %v6804_v31, %v8246_v32  ;;  %v2623_v43 = vadd.f32 %v2621_v53, %v2575_v49  ;;  %v2669_v10 = vmul.f32 %v6796_v27, %v2668_v7  ;;  %v2657_v5 = vmul.f32 %v6796_v27, %v2656_v14  ;;  %2995 = vrot.lane.b32.xlu0 %v2990_v11, %s7912_s27  ;;  %s7347_s1 = sld [smem:[#allocation8 + $0x50]] }
 0x3cb   : > { %v2567_v24 = vmul.f32 %v6498_v2, %v2566_v55  ;;  %v2614_v23 = vstv %s7130_s21  ;;  %3023 = vrot.lane.b32.xlu1 %v3018_v60, %s7912_s27  ;;  %v2568_v13 = vmul.f32 %v8247_v44, %v2566_v55  ;;  %v8248_v52 = vstv %s6837_s10  ;;  %v2500_v19 = vpop.permute.xlu0 %2499  ;;  %s7242_s10 = sld [smem:[#allocation8 + $0x6a]] }
 0x3cc   : > { %v2652_v15 = vmul.f32 %v6804_v31, %v8248_v52  ;;  %3009 = vrot.lane.b32.xlu2 %v3004_v8, %s7912_s27  ;;  %v2717_v51 = vmul.f32 %v6949_v18, %v2716_v58  ;;  %v2671_v12 = vadd.f32 %v2669_v10, %v2623_v43  ;;  %v2705_v14 = vmul.f32 %v6949_v18, %v2704_v9  ;;  %v2730_v40 = vpop.permute.xlu1 %2729  ;;  %v2784_v53 = vpop.permute.xlu2 %2783  ;;  %s7356_s21 = sld [smem:[#allocation8 + $0x98]] }
 0x3cd   : > { %v2659_v2 = vadd.f32 %v2657_v5, %v2611_v25  ;;  %v2569_v46 = vadd.f32 %v2567_v24, %v8249_v0  ;;  %v3044_v4 = vstv %s7149_s29  ;;  %v2700_v55 = vmul.f32 %v6978_v22, %v2698_v21  ;;  %s7374_s29 = sld [smem:[#allocation8 + $0xbc]] }
 0x3ce   : > { %v2654_v26 = vadd.f32 %v2652_v15, %v2606_v6  ;;  %v2504_v48 = vadd.f32 %v2500_v19, %v8250_v35  ;;  %v7207_v62 = vadd.f32 %v2730_v40, %v7039_v59  ;;  %v2719_v9 = vadd.f32 %v2717_v51, %v2671_v12 }
 0x3cf   : > { %v7211_v30 = vadd.f32 %v2705_v14, %v2659_v2  ;;  %v2615_v28 = vmul.f32 %v8242_v57, %v2614_v23  ;;  %v7215_v56 = vadd.f32 %v2784_v53, %v7098_v29  ;;  %v3030_v21 = vstv %s7163_s8  ;;  %s7384_s8 = sld [smem:[#allocation8 + $0x104]] }
 0x3d0   : > { %v7218_v50 = vadd.f32 %v2700_v55, %v2654_v26  ;;  %v2616_v61 = vmul.f32 %v8251_v38, %v2614_v23  ;;  %v2570_v54 = vadd.f32 %v2568_v13, %v2504_v48  ;;  %v2662_v59 = vstv %s7173_s22  ;;  %s7399_s22 = sld [smem:[#allocation8 + $0x35]] }
 0x3d1   : > { %v2617_v45 = vadd.f32 %v2615_v28, %v2569_v46  ;;  %v3017_v63 = vmul.f32 %v6796_v27, %v3016_v16  ;;  %v3045_v1 = vmul.f32 %v6796_v27, %v3044_v4  ;;  %v2710_v49 = vstv %s7181_s0  ;;  %s7403_s0 = sld [smem:[#allocation8 + $0x11]] }
 0x3d2   : > { %v2618_v11 = vadd.f32 %v2616_v61, %v2570_v54  ;;  %v3031_v41 = vmul.f32 %v6796_v27, %v3030_v21  ;;  %v2664_v57 = vmul.f32 %v6804_v31, %v2662_v59  ;;  %v8252_v29 = vstv %s6850_s7  ;;  %s7250_s7 = sld [smem:[#allocation8 + $0x46]] }
 0x3d3   : > { %v2574_v6 = vmul.f32 %v8247_v44, %v8252_v29  ;;  %3021 = vrot.lane.b32.xlu0 %v3017_v63, %s7912_s27  ;;  %3049 = vrot.lane.b32.xlu1 %v3045_v1, %s7912_s27  ;;  %v2663_v60 = vmul.f32 %v6796_v27, %v2662_v59  ;;  %v2712_v16 = vmul.f32 %v6978_v22, %v2710_v49  ;;  %v2728_v25 = vpop.permute.xlu0 %2727  ;;  %v3058_v27 = vstv %s7209_s28  ;;  %s7415_s28 = sld [smem:[#allocation8 + $0x59]] }
 0x3d4   : > { %3035 = vrot.lane.b32.xlu2 %v3031_v41, %s7912_s27  ;;  %v2666_v32 = vadd.f32 %v2664_v57, %v2618_v11  ;;  %v2756_v43 = vpop.permute.xlu1 %2755  ;;  %v2711_v10 = vmul.f32 %v6949_v18, %v2710_v49  ;;  %v7238_v24 = vadd.f32 %v2728_v25, %v7049_v17  ;;  %v2800_v44 = vpop.permute.xlu2 %2799  ;;  %v3032_v51 = vmul.f32 %v6804_v31, %v3030_v21 }
 0x3d5   : > { %v2576_v8 = vadd.f32 %v2574_v6, %v7046_v20  ;;  %v2665_v5 = vadd.f32 %v2663_v60, %v2617_v45  ;;  %v2761_v23 = vadd.f32 %v2756_v43, %v7100_v47  ;;  %v2622_v20 = vmul.f32 %v8251_v38, %v2620_v37 }
 0x3d6   : > { %v2714_v13 = vadd.f32 %v2712_v16, %v2666_v32  ;;  %v7248_v52 = vadd.f32 %v2800_v44, %v7153_v42  ;;  %v3060_v47 = vmul.f32 %v6978_v22, %v3058_v27  ;;  %v3046_v12 = vmul.f32 %v6804_v31, %v3044_v4 }
 0x3d7   : > { %v2713_v15 = vadd.f32 %v2711_v10, %v2665_v5  ;;  %v2624_v17 = vadd.f32 %v2622_v20, %v2576_v8  ;;  %v2670_v37 = vmul.f32 %v6804_v31, %v2668_v7  ;;  %v2718_v2 = vmul.f32 %v6978_v22, %v2716_v58 }
 0x3d8   : > { %v3086_v4 = vstv %s7242_s10  ;;  %v3072_v31 = vstv %s7250_s7  ;;  %v3059_v26 = vmul.f32 %v6949_v18, %v3058_v27  ;;  %v3100_v28 = vstv %s7267_s19  ;;  %s7426_s10 = sld [smem:[#allocation8 + $0xa1]] }
 0x3d9   : > { %v2672_v0 = vadd.f32 %v2670_v37, %v2624_v17  ;;  %v3087_v35 = vmul.f32 %v6949_v18, %v3086_v4  ;;  %v3073_v58 = vmul.f32 %v6949_v18, %v3072_v31  ;;  %v3074_v38 = vmul.f32 %v6978_v22, %v3072_v31  ;;  %s7430_s7 = sld [smem:[#allocation8 + $0x7d]] }
 0x3da   : > { %v3102_v61 = vmul.f32 %v6978_v22, %v3100_v28  ;;  %v3088_v54 = vmul.f32 %v6978_v22, %v3086_v4  ;;  %v3128_v63 = vstv %s7281_s30  ;;  %v3114_v49 = vstv %s7286_s26  ;;  %s7447_s19 = sld [smem:[#allocation8 + $0xc5]] }
 0x3db   : > { %3037 = vrot.lane.b32.xlu0 %v3032_v51, %s7912_s27  ;;  %3065 = vrot.lane.b32.xlu1 %v3060_v47, %s7912_s27  ;;  %v2744_v42 = vpop.permute.xlu0 %2743  ;;  %v2720_v7 = vadd.f32 %v2718_v2, %v2672_v0  ;;  %v3101_v11 = vmul.f32 %v6949_v18, %v3100_v28  ;;  %v3129_v41 = vmul.f32 %v6949_v18, %v3128_v63  ;;  %v3142_v32 = vstv %s7298_s20  ;;  %v7334_v51 = vld [vmem:[#allocation2 + $0x2] sm:$0xff]  ;;  %s7459_s30 = sld [smem:[#allocation8 + $0x10d]] }
 0x3dc   : > { %3051 = vrot.lane.b32.xlu2 %v3046_v12, %s7912_s27  ;;  %v2772_v14 = vpop.permute.xlu1 %2771  ;;  %v2748_v46 = vadd.f32 %v2744_v42, %v7106_v39  ;;  %v2826_v40 = vpop.permute.xlu2 %2825  ;;  %v3115_v57 = vmul.f32 %v6949_v18, %v3114_v49  ;;  %v3116_v25 = vmul.f32 %v6978_v22, %v3114_v49  ;;  %v3144_v43 = vmul.f32 %v6978_v22, %v3142_v32  ;;  %s7463_s26 = sld [smem:[#allocation8 + $0xe9]] }
 0x3dd   : > { %v2776_v19 = vadd.f32 %v2772_v14, %v7155_v36  ;;  %v7269_v55 = vadd.f32 %v2826_v40, %v2719_v9  ;;  %v3130_v10 = vmul.f32 %v6978_v22, %v3128_v63  ;;  %v3143_v17 = vmul.f32 %v6949_v18, %v3142_v32  ;;  %v4253_v40 = vld [vmem:[#allocation2 + $0xa] sm:$0xff]  ;;  %s7480_s20 = sld [smem:[#allocation8 + $0x1a]] }
 0x3e3   : > { %3063 = vrot.lane.b32.xlu0 %v3059_v26, %s7912_s27  ;;  %3091 = vrot.lane.b32.xlu1 %v3087_v35, %s7912_s27  ;;  %v2770_v39 = vpop.permute.xlu0 %2769 }
 0x3e4   : > { %3077 = vrot.lane.b32.xlu2 %v3073_v58, %s7912_s27  ;;  %v2798_v36 = vpop.permute.xlu1 %2797  ;;  %v2775_v48 = vadd.f32 %v2770_v39, %v7166_v34  ;;  %v2842_v9 = vpop.permute.xlu2 %2841  ;;  %v3212_v39 = vstv %s7343_s23  ;;  %s7523_s23 = sld [smem:[#allocation8 + $0xce]] }
 0x3e5   : > { %v2803_v53 = vadd.f32 %v2798_v36, %v7211_v30  ;;  %v7284_v21 = vadd.f32 %v2842_v9, %v7207_v62  ;;  %v3198_v36 = vstv %s7347_s1  ;;  %s7527_s1 = sld [smem:[#allocation8 + $0xaa]] }
 0x3e6   : > { %v3199_v9 = vmul.f32 %v7334_v51, %v3198_v36 }
 0x3eb   : > { %3079 = vrot.lane.b32.xlu0 %v3074_v38, %s7912_s27  ;;  %3107 = vrot.lane.b32.xlu1 %v3102_v61, %s7912_s27  ;;  %v2786_v34 = vpop.permute.xlu0 %2785 }
 0x3ec   : > { %3093 = vrot.lane.b32.xlu2 %v3088_v54, %s7912_s27  ;;  %v2814_v30 = vpop.permute.xlu1 %2813  ;;  %v7295_v62 = vadd.f32 %v2786_v34, %v7218_v50  ;;  %v2868_v45 = vpop.permute.xlu2 %2867  ;;  %v3226_v34 = vstv %s7356_s21  ;;  %s7544_s21 = sld [smem:[#allocation8 + $0xf2]] }
 0x3ed   : > { %v2818_v59 = vadd.f32 %v2814_v30, %v2714_v13  ;;  %v7300_v1 = vadd.f32 %v2868_v45, %v2761_v23  ;;  %v3170_v13 = vstv %s7313_s6  ;;  %v3214_v45 = vmul.f32 %v4253_v40, %v3212_v39  ;;  %s7491_s6 = sld [smem:[#allocation8 + $0x62]] }
 0x3ee   : > { %v3171_v47 = vmul.f32 %v7334_v51, %v3170_v13  ;;  %v3172_v31 = vmul.f32 %v4253_v40, %v3170_v13 }
 0x3f3   : > { %3105 = vrot.lane.b32.xlu0 %v3101_v11, %s7912_s27  ;;  %3133 = vrot.lane.b32.xlu1 %v3129_v41, %s7912_s27  ;;  %v2812_v50 = vpop.permute.xlu0 %2811 }
 0x3f4   : > { %3119 = vrot.lane.b32.xlu2 %v3115_v57, %s7912_s27  ;;  %v2840_v29 = vpop.permute.xlu1 %2839  ;;  %v7309_v6 = vadd.f32 %v2812_v50, %v2713_v15  ;;  %v2884_v16 = vpop.permute.xlu2 %2883  ;;  %v3156_v15 = vstv %s7317_s2  ;;  %s7495_s2 = sld [smem:[#allocation8 + $0x3e]] }
 0x3f5   : > { %v2845_v60 = vadd.f32 %v2840_v29, %v7238_v24  ;;  %v7315_v8 = vadd.f32 %v2884_v16, %v2776_v19  ;;  %v3157_v12 = vmul.f32 %v6949_v18, %v3156_v15  ;;  %v3158_v18 = vmul.f32 %v6978_v22, %v3156_v15 }
 0x3f6   : > { %v3240_v29 = vstv %s7374_s29  ;;  %s7560_s29 = sld [smem:[#allocation8 + $0x116]] }
 0x3f7   : > { %v3241_v16 = vmul.f32 %v7334_v51, %v3240_v29 }
 0x3fb   : > { %3121 = vrot.lane.b32.xlu0 %v3116_v25, %s7912_s27  ;;  %3149 = vrot.lane.b32.xlu1 %v3144_v43, %s7912_s27  ;;  %v2828_v5 = vpop.permute.xlu0 %2827 }
 0x3fc   : > { %3135 = vrot.lane.b32.xlu2 %v3130_v10, %s7912_s27  ;;  %v2856_v24 = vpop.permute.xlu1 %2855  ;;  %v7325_v23 = vadd.f32 %v2828_v5, %v2720_v7  ;;  %v2910_v27 = vpop.permute.xlu2 %2909  ;;  %v3268_v5 = vstv %s7384_s8  ;;  %s7573_s8 = sld [smem:[#allocation8 + $0x47]] }
 0x3fd   : > { %v2860_v44 = vadd.f32 %v2856_v24, %v2748_v46  ;;  %v7330_v20 = vadd.f32 %v2910_v27, %v2803_v53  ;;  %v3184_v46 = vstv %s7328_s11  ;;  %v3213_v53 = vmul.f32 %v7334_v51, %v3212_v39  ;;  %s7511_s11 = sld [smem:[#allocation8 + $0x86]] }
 0x3fe   : > { %v3186_v4 = vmul.f32 %v4253_v40, %v3184_v46 }
 0x403   : > { %3147 = vrot.lane.b32.xlu0 %v3143_v17, %s7912_s27  ;;  %3175 = vrot.lane.b32.xlu1 %v3171_v47, %s8084_s4  ;;  %v2854_v37 = vpop.permute.xlu0 %2853 }
 0x404   : > { %3161 = vrot.lane.b32.xlu2 %v3157_v12, %s7912_s27  ;;  %v2882_v42 = vpop.permute.xlu1 %2881  ;;  %v2859_v14 = vadd.f32 %v2854_v37, %v7103_v33  ;;  %v2926_v0 = vpop.permute.xlu2 %2925  ;;  %v3296_v12 = vstv %s7399_s22  ;;  %s7588_s22 = sld [smem:[#allocation8 + $0x8f]] }
 0x405   : > { %v2887_v2 = vadd.f32 %v2882_v42, %v2775_v48  ;;  %v7345_v19 = vadd.f32 %v2926_v0, %v2818_v59  ;;  %v3185_v48 = vmul.f32 %v7334_v51, %v3184_v46  ;;  %v3228_v59 = vmul.f32 %v4253_v40, %v3226_v34 }
 0x406   : > { %v3282_v42 = vstv %s7403_s0  ;;  %s7592_s0 = sld [smem:[#allocation8 + $0x6b]] }
 0x40b   : > { %3163 = vrot.lane.b32.xlu0 %v3158_v18, %s7912_s27  ;;  %3191 = vrot.lane.b32.xlu1 %v3186_v4, %s8084_s4  ;;  %v2870_v33 = vpop.permute.xlu0 %2869  ;;  %s7370_s27 = sld [smem:[#allocation8 + $0xe0]] }
 0x40c   : > { %3177 = vrot.lane.b32.xlu2 %v3172_v31, %s8084_s4  ;;  %v2898_v7 = vpop.permute.xlu1 %2897  ;;  %v2874_v26 = vadd.f32 %v2870_v33, %v7161_v3  ;;  %v2952_v58 = vpop.permute.xlu2 %2951  ;;  %v3310_v33 = vstv %s7415_s28  ;;  %s7601_s28 = sld [smem:[#allocation8 + $0xb3]] }
 0x40d   : > { %v2902_v35 = vadd.f32 %v2898_v7, %v7295_v62  ;;  %v7358_v22 = vadd.f32 %v2952_v58, %v2845_v60  ;;  %v3200_v62 = vmul.f32 %v4253_v40, %v3198_v36  ;;  %v7433_v7 = vld [vmem:[#allocation2 + $0x22] sm:$0xff] }
 0x40e   : > { %v3298_v58 = vmul.f32 %v7433_v7, %v3296_v12 }
 0x411   : > { %v3254_v57 = vstv %s7370_s27  ;;  %s7556_s27 = sld [smem:[#allocation8 + $0x23]] }
 0x412   : > { %v3255_v60 = vmul.f32 %v7334_v51, %v3254_v57  ;;  %v3256_v27 = vmul.f32 %v4253_v40, %v3254_v57 }
 0x413   : > { %3189 = vrot.lane.b32.xlu0 %v3185_v48, %s8084_s4  ;;  %3217 = vrot.lane.b32.xlu1 %v3213_v53, %s8084_s4  ;;  %v2896_v3 = vpop.permute.xlu0 %2895 }
 0x414   : > { %3203 = vrot.lane.b32.xlu2 %v3199_v9, %s8084_s4  ;;  %v2924_v28 = vpop.permute.xlu1 %2923  ;;  %v2901_v38 = vadd.f32 %v2896_v3, %v7215_v56  ;;  %v2968_v54 = vpop.permute.xlu2 %2967  ;;  %v3338_v9 = vstv %s7426_s10  ;;  %s7615_s10 = sld [smem:[#allocation8 + $0xfb]] }
 0x415   : > { %v2929_v61 = vadd.f32 %v2924_v28, %v7309_v6  ;;  %v7372_v30 = vadd.f32 %v2968_v54, %v2860_v44  ;;  %v3227_v6 = vmul.f32 %v7334_v51, %v3226_v34  ;;  %v3270_v44 = vmul.f32 %v4253_v40, %v3268_v5 }
 0x416   : > { %v3324_v28 = vstv %s7430_s7  ;;  %s4121_s7 = sld [smem:[#allocation8 + $0xd7]] }
 0x41b   : > { %3205 = vrot.lane.b32.xlu0 %v3200_v62, %s8084_s4  ;;  %3233 = vrot.lane.b32.xlu1 %v3228_v59, %s8084_s4  ;;  %v2912_v56 = vpop.permute.xlu0 %2911 }
 0x41c   : > { %3219 = vrot.lane.b32.xlu2 %v3214_v45, %s8084_s4  ;;  %v2940_v63 = vpop.permute.xlu1 %2939  ;;  %v7380_v49 = vadd.f32 %v2912_v56, %v7248_v52  ;;  %v2994_v41 = vpop.permute.xlu2 %2993 }
 0x41d   : > { %v2944_v11 = vadd.f32 %v2940_v63, %v7325_v23  ;;  %v7386_v50 = vadd.f32 %v2994_v41, %v2887_v2  ;;  %v3242_v23 = vmul.f32 %v4253_v40, %v3240_v29  ;;  %v7418_v2 = vld [vmem:[#allocation2 + $0x1a] sm:$0xff]  ;;  %v3352_v63 = vstv %s7447_s19  ;;  %s4123_s19 = sld [smem:[#allocation8 + $0x11f]] }
 0x41e   : > { %v3297_v0 = vmul.f32 %v7418_v2, %v3296_v12  ;;  %v3283_v46 = vmul.f32 %v7418_v2, %v3282_v42  ;;  %v3325_v54 = vmul.f32 %v7418_v2, %v3324_v28  ;;  %v3340_v41 = vmul.f32 %v7433_v7, %v3338_v9 }
 0x423   : > { %3231 = vrot.lane.b32.xlu0 %v3227_v6, %s8084_s4  ;;  %3259 = vrot.lane.b32.xlu1 %v3255_v60, %s8084_s4  ;;  %v2938_v52 = vpop.permute.xlu0 %2937 }
 0x424   : > { %3245 = vrot.lane.b32.xlu2 %v3241_v16, %s8084_s4  ;;  %v2966_v32 = vpop.permute.xlu1 %2965  ;;  %v7396_v25 = vadd.f32 %v2938_v52, %v7269_v55  ;;  %v3380_v16 = vstv %s7459_s30  ;;  %s3820_s30 = sshll.u32 %s4546_s18, 7 }
 0x425   : > { %v2971_v43 = vadd.f32 %v2966_v32, %v2859_v14  ;;  %v3269_v14 = vmul.f32 %v7334_v51, %v3268_v5  ;;  %v3366_v32 = vstv %s7463_s26  ;;  %s7662_s26 = sld [smem:[#allocation9 + $0x2]] }
 0x426   : > { %v3010_v10 = vpop.permute.xlu2 %3009 }
 0x427   : > { %v7401_v24 = vadd.f32 %v3010_v10, %v2902_v35  ;;  %v3312_v35 = vmul.f32 %v7433_v7, %v3310_v33  ;;  %v3367_v10 = vmul.f32 %v7418_v2, %v3366_v32 }
 0x42b   : > { %3247 = vrot.lane.b32.xlu0 %v3242_v23, %s8084_s4  ;;  %3275 = vrot.lane.b32.xlu1 %v3270_v44, %s8084_s4  ;;  %v2954_v55 = vpop.permute.xlu0 %2953 }
 0x42c   : > { %3261 = vrot.lane.b32.xlu2 %v3256_v27, %s8084_s4  ;;  %v2982_v13 = vpop.permute.xlu1 %2981  ;;  %v7409_v15 = vadd.f32 %v2954_v55, %v7284_v21 }
 0x42d   : > { %v2986_v17 = vadd.f32 %v2982_v13, %v2874_v26  ;;  %v3284_v26 = vmul.f32 %v7433_v7, %v3282_v42  ;;  %v3394_v13 = vstv %s7480_s20  ;;  %s7665_s20 = scalar_lea.vmem [#allocation10], %s3820_s30  ;;  %s4340_s30 = scalar_lea.hbm %s7769_s3, 256 }
 0x42e   : > { %v3036_v47 = vpop.permute.xlu2 %3035 }
 0x42f   : > { %v7412_v37 = vadd.f32 %v3036_v47, %v2929_v61  ;;  %v3339_v61 = vmul.f32 %v7418_v2, %v3338_v9 }
 0x433   : > { %3273 = vrot.lane.b32.xlu0 %v3269_v14, %s8084_s4  ;;  %3301 = vrot.lane.b32.xlu1 %v3297_v0, %s8084_s4  ;;  %v2980_v21 = vpop.permute.xlu0 %2979 }
 0x434   : > { %3287 = vrot.lane.b32.xlu2 %v3283_v46, %s8084_s4  ;;  %v3008_v18 = vpop.permute.xlu1 %3007  ;;  %v2985_v40 = vadd.f32 %v2980_v21, %v7300_v1  ;;  %v3422_v46 = vstv %s7491_s6  ;;  %s7670_s6 = sld [smem:[#allocation9 + $0x3]] }
 0x435   : > { %v3013_v4 = vadd.f32 %v3008_v18, %v2901_v38  ;;  %v3311_v38 = vmul.f32 %v7418_v2, %v3310_v33  ;;  %v3408_v18 = vstv %s7495_s2  ;;  %s7676_s2 = sld [smem:[#allocation9 + $0x1]] }
 0x436   : > { %v3052_v31 = vpop.permute.xlu2 %3051 }
 0x437   : > { %v7428_v51 = vadd.f32 %v3052_v31, %v2944_v11  ;;  %v3354_v11 = vmul.f32 %v7433_v7, %v3352_v63 }
 0x43b   : > { %3289 = vrot.lane.b32.xlu0 %v3284_v26, %s8084_s4  ;;  %3317 = vrot.lane.b32.xlu1 %v3312_v35, %s8084_s4 }
 0x43c   : > { %3303 = vrot.lane.b32.xlu2 %v3298_v58, %s8084_s4  ;;  %v2996_v1 = vpop.permute.xlu0 %2995 }
 0x43d   : > { %v3024_v39 = vpop.permute.xlu1 %3023  ;;  %v3000_v36 = vadd.f32 %v2996_v1, %v7315_v8 }
 0x43e   : > { %v3028_v48 = vadd.f32 %v3024_v39, %v7380_v49  ;;  %v3078_v53 = vpop.permute.xlu2 %3077  ;;  %v3326_v49 = vmul.f32 %v7433_v7, %v3324_v28  ;;  %v3436_v39 = vstv %s7511_s11  ;;  %s7679_s11 = sld [smem:[#allocation9 + $0x5]] }
 0x43f   : > { %v7444_v3 = vadd.f32 %v3078_v53, %v2971_v43  ;;  %v3381_v43 = vmul.f32 %v7418_v2, %v3380_v16 }
 0x443   : > { %3315 = vrot.lane.b32.xlu0 %v3311_v38, %s8084_s4  ;;  %3343 = vrot.lane.b32.xlu1 %v3339_v61, %s8084_s4 }
 0x444   : > { %3329 = vrot.lane.b32.xlu2 %v3325_v54, %s8084_s4  ;;  %v3464_v54 = vstv %s7523_s23  ;;  %s7689_s23 = sld [smem:[#allocation9 + $0x6]] }
 0x445   : > { %v3022_v8 = vpop.permute.xlu0 %3021  ;;  %v3050_v34 = vpop.permute.xlu1 %3049 }
 0x446   : > { %v7456_v62 = vadd.f32 %v3022_v8, %v7330_v20  ;;  %v3055_v59 = vadd.f32 %v3050_v34, %v7396_v25  ;;  %v3094_v45 = vpop.permute.xlu2 %3093  ;;  %v3353_v25 = vmul.f32 %v7418_v2, %v3352_v63  ;;  %v3450_v34 = vstv %s7527_s1  ;;  %s4133_s1 = sld [smem:[#allocation9 + $0x4]] }
 0x447   : > { %v7461_v56 = vadd.f32 %v3094_v45, %v2986_v17  ;;  %v7499_v17 = vld [vmem:[#allocation2 + $0x3a] sm:$0xff] }
 0x448   : > { %v3396_v47 = vmul.f32 %v7499_v17, %v3394_v13  ;;  %v3424_v53 = vmul.f32 %v7499_v17, %v3422_v46 }
 0x44b   : > { %3331 = vrot.lane.b32.xlu0 %v3326_v49, %s8084_s4  ;;  %3359 = vrot.lane.b32.xlu1 %v3354_v11, %s8084_s4 }
 0x44c   : > { %3345 = vrot.lane.b32.xlu2 %v3340_v41, %s8084_s4 }
 0x44d   : > { %v3038_v20 = vpop.permute.xlu0 %3037  ;;  %v3066_v57 = vpop.permute.xlu1 %3065 }
 0x44e   : > { %v7473_v29 = vadd.f32 %v3038_v20, %v7345_v19  ;;  %v3070_v6 = vadd.f32 %v3066_v57, %v7409_v15  ;;  %v3120_v60 = vpop.permute.xlu2 %3119  ;;  %v3368_v15 = vmul.f32 %v7433_v7, %v3366_v32  ;;  %v3478_v57 = vstv %s7544_s21  ;;  %s4142_s21 = sld [smem:[#allocation9 + $0x7]] }
 0x44f   : > { %v7477_v52 = vadd.f32 %v3120_v60, %v3013_v4  ;;  %v3466_v60 = vmul.f32 %v7499_v17, %v3464_v54 }
 0x453   : > { %3357 = vrot.lane.b32.xlu0 %v3353_v25, %s8084_s4  ;;  %3385 = vrot.lane.b32.xlu1 %v3381_v43, %s8084_s4 }
 0x454   : > { %3371 = vrot.lane.b32.xlu2 %v3367_v10, %s8084_s4  ;;  %v3506_v10 = vstv %s7556_s27  ;;  %s4151_s27 = sshll.u32 %s4402_s15, 7  ;;  %s3674_s15 = scalar_lea.sflag [#allocation5], %s4546_s18 }
 0x455   : > { %v3064_v19 = vpop.permute.xlu0 %3063  ;;  %v3092_v5 = vpop.permute.xlu1 %3091 }
 0x456   : > { %v7489_v23 = vadd.f32 %v3064_v19, %v7358_v22  ;;  %v3097_v44 = vadd.f32 %v3092_v5, %v2985_v40  ;;  %v3136_v27 = vpop.permute.xlu2 %3135  ;;  %v3382_v22 = vmul.f32 %v7433_v7, %v3380_v16  ;;  %v7513_v40 = vld [vmem:[#allocation2 + $0x32] sm:$0xff]  ;;  %v3492_v5 = vstv %s7560_s29 }
 0x457   : > { %v7493_v55 = vadd.f32 %v3136_v27, %v3028_v48  ;;  %v3395_v4 = vmul.f32 %v7513_v40, %v3394_v13  ;;  %v3423_v31 = vmul.f32 %v7513_v40, %v3422_v46  ;;  %v3409_v33 = vmul.f32 %v7513_v40, %v3408_v18 }
 0x458   : > { %v3438_v48 = vmul.f32 %v7499_v17, %v3436_v39  ;;  %v3451_v45 = vmul.f32 %v7513_v40, %v3450_v34  ;;  %v3493_v13 = vmul.f32 %v7513_v40, %v3492_v5 }
 0x45b   : > { %3373 = vrot.lane.b32.xlu0 %v3368_v15, %s8084_s4  ;;  %3401 = vrot.lane.b32.xlu1 %v3396_v47, %s8084_s4 }
 0x45c   : > { %3387 = vrot.lane.b32.xlu2 %v3382_v22, %s8084_s4 }
 0x45d   : > { %v3080_v12 = vpop.permute.xlu0 %3079  ;;  %v3108_v42 = vpop.permute.xlu1 %3107 }
 0x45e   : > { %v3084_v14 = vadd.f32 %v3080_v12, %v7372_v30  ;;  %v3112_v2 = vadd.f32 %v3108_v42, %v3000_v36  ;;  %v3162_v0 = vpop.permute.xlu2 %3161  ;;  %v3410_v36 = vmul.f32 %v7499_v17, %v3408_v18  ;;  %v3520_v42 = vstv %s7573_s8 }
 0x45f   : > { %v7508_v21 = vadd.f32 %v3162_v0, %v3055_v59  ;;  %v3465_v59 = vmul.f32 %v7513_v40, %v3464_v54  ;;  %v4259_v0 = vld [vmem:[#allocation2 + $0x52] sm:$0xff] }
 0x460   : > { %v3522_v46 = vmul.f32 %v4259_v0, %v3520_v42  ;;  %v3508_v18 = vmul.f32 %v4259_v0, %v3506_v10 }
 0x463   : > { %3399 = vrot.lane.b32.xlu0 %v3395_v4, %s8084_s4  ;;  %3427 = vrot.lane.b32.xlu1 %v3423_v31, %s8084_s4 }
 0x464   : > { %3413 = vrot.lane.b32.xlu2 %v3409_v33, %s8084_s4 }
 0x465   : > { %v3106_v30 = vpop.permute.xlu0 %3105  ;;  %v3134_v7 = vpop.permute.xlu1 %3133 }
 0x466   : > { %v3111_v26 = vadd.f32 %v3106_v30, %v7386_v50  ;;  %v3139_v35 = vadd.f32 %v3134_v7, %v7456_v62  ;;  %v3178_v58 = vpop.permute.xlu2 %3177  ;;  %v3437_v62 = vmul.f32 %v7513_v40, %v3436_v39  ;;  %v3548_v30 = vstv %s7588_s22  ;;  %s3687_s22 = scalar_lea.hbm %s7769_s3, %s4151_s27 }
 0x467   : > { %v7525_v1 = vadd.f32 %v3178_v58, %v3070_v6  ;;  %v3480_v6 = vmul.f32 %v7499_v17, %v3478_v57  ;;  %v3534_v7 = vstv %s7592_s0  ;;  %s3688_s0 = sshll.u32 %s7665_s20, 4  ;;  %s3689_s0 = int_to_ptr.vmem [resolvable:$true] %s3688_s0 }
 0x46b   : > { %3415 = vrot.lane.b32.xlu0 %v3410_v36, %s8084_s4  ;;  %3443 = vrot.lane.b32.xlu1 %v3438_v48, %s8084_s4 }
 0x46c   : > { %3429 = vrot.lane.b32.xlu2 %v3424_v53, %s8084_s4 }
 0x46d   : > { %v3122_v50 = vpop.permute.xlu0 %3121  ;;  %v3150_v9 = vpop.permute.xlu1 %3149 }
 0x46e   : > { %v7537_v28 = vadd.f32 %v3122_v50, %v7401_v24  ;;  %v3154_v38 = vadd.f32 %v3150_v9, %v7473_v29  ;;  %v3204_v61 = vpop.permute.xlu2 %3203  ;;  %v3452_v29 = vmul.f32 %v7499_v17, %v3450_v34  ;;  %v3562_v50 = vstv %s7601_s28  ;;  %s3690_s28 = sshll.u32 %s3687_s22, 4  ;;  %s3691_s28 = int_to_ptr.hbm [resolvable:$true] %s3690_s28 }
 0x46f   : > { %v7541_v8 = vadd.f32 %v3204_v61, %v3097_v44  ;;  %v7579_v44 = vld [vmem:[#allocation2 + $0x4a] sm:$0xff]  ;;  %v3550_v61 = vmul.f32 %v4259_v0, %v3548_v30 }
 0x470   : > { %v3507_v27 = vmul.f32 %v7579_v44, %v3506_v10  ;;  %v3535_v58 = vmul.f32 %v7579_v44, %v3534_v7 }
 0x473   : > { %3441 = vrot.lane.b32.xlu0 %v3437_v62, %s8084_s4  ;;  %3469 = vrot.lane.b32.xlu1 %v3465_v59, %s8084_s4 }
 0x474   : > { %3455 = vrot.lane.b32.xlu2 %v3451_v45, %s8084_s4  ;;  %v3590_v45 = vstv %s7615_s10  ;;  %s4334_s10 = sshra.s32 %s3691_s28, 4  ;;  %s4335_s10 = int_to_ptr.hbm [resolvable:$true] %s4334_s10 }
 0x475   : > { %v3148_v24 = vpop.permute.xlu0 %3147  ;;  %v3176_v63 = vpop.permute.xlu1 %3175  ;;  %p4341_p11 = scmp.lt.s32.totalorder %s4335_s10, %s7769_s3 }
 0x476   : > { %v7553_v49 = vadd.f32 %v3148_v24, %v7412_v37  ;;  %v3181_v11 = vadd.f32 %v3176_v63, %v7489_v23  ;;  %v3220_v41 = vpop.permute.xlu2 %3219  ;;  %v3479_v23 = vmul.f32 %v7513_v40, %v3478_v57  ;;  %v3576_v63 = vstv %s4121_s7  ;;  %s4336_s7 = scalar_lea.hbm %s4335_s10, 128 }
 0x477   : > { %v7558_v20 = vadd.f32 %v3220_v41, %v3112_v2  ;;  %v3494_v2 = vmul.f32 %v7499_v17, %v3492_v5  ;;  %v3577_v41 = vmul.f32 %v7579_v44, %v3576_v63  ;;  %p4337_p3 = scmp.ne.s32.totalorder %s4335_s10, %s4336_s7  ;;  %p4342_p12 = scmp.lt.s32.totalorder %s4340_s30, %s4336_s7 }
 0x479   : > { %p4338_p7 = pnand %p4337_p3, %p4494_p8  ;;  %p4343_p0 = por %p4342_p12, %p4341_p11 }
 0x47b   : > { %3457 = vrot.lane.b32.xlu0 %v3452_v29, %s8084_s4  ;;  %3485 = vrot.lane.b32.xlu1 %v3480_v6, %s8084_s4  ;;  %p4339_p10 = pneg %p4338_p7 }
 0x47c   : > { %3471 = vrot.lane.b32.xlu2 %v3466_v60, %s8084_s4 }
 0x47d   : > { %v3164_v37 = vpop.permute.xlu0 %3163  ;;  %v3192_v16 = vpop.permute.xlu1 %3191  ;;  %p4344_p1 = pnand %p4343_p0, %p4339_p10 }
 0x47e   : > { %v7570_v32 = vadd.f32 %v3164_v37, %v7428_v51  ;;  %v3196_v25 = vadd.f32 %v3192_v16, %v3084_v14  ;;  %v3246_v43 = vpop.permute.xlu2 %3245  ;;  %v3604_v37 = vstv %s4123_s19 }
 0x47f   : > { %v7575_v19 = vadd.f32 %v3246_v43, %v3139_v35  ;;  %v3549_v35 = vmul.f32 %v7579_v44, %v3548_v30  ;;  %v3592_v43 = vmul.f32 %v4259_v0, %v3590_v45 }
 0x483   : > { %3483 = vrot.lane.b32.xlu0 %v3479_v23, %s8084_s4  ;;  %3511 = vrot.lane.b32.xlu1 %v3507_v27, %s8084_s4 }
 0x484   : > { %3497 = vrot.lane.b32.xlu2 %v3493_v13, %s8084_s4 }
 0x485   : > { %v3190_v51 = vpop.permute.xlu0 %3189  ;;  %v3218_v15 = vpop.permute.xlu1 %3217 }
 0x486   : > { %v3195_v47 = vadd.f32 %v3190_v51, %v7444_v3  ;;  %v3223_v22 = vadd.f32 %v3218_v15, %v3111_v26  ;;  %v3262_v12 = vpop.permute.xlu2 %3261  ;;  %v3521_v26 = vmul.f32 %v7579_v44, %v3520_v42 }
 0x487   : > { %v7590_v14 = vadd.f32 %v3262_v12, %v3154_v38  ;;  %v3564_v38 = vmul.f32 %v4259_v0, %v3562_v50 }
 0x48b   : > { %3499 = vrot.lane.b32.xlu0 %v3494_v2, %s8084_s4  ;;  %3527 = vrot.lane.b32.xlu1 %v3522_v46, %s8084_s4 }
 0x48c   : > { %3513 = vrot.lane.b32.xlu2 %v3508_v18, %s8084_s4 }
 0x48d   : > { %v3206_v3 = vpop.permute.xlu0 %3205  ;;  %v3234_v40 = vpop.permute.xlu1 %3233 }
 0x48e   : > { %v3210_v4 = vadd.f32 %v3206_v3, %v7461_v56  ;;  %v3238_v31 = vadd.f32 %v3234_v40, %v7537_v28  ;;  %v3288_v33 = vpop.permute.xlu2 %3287  ;;  %v3536_v28 = vmul.f32 %v4259_v0, %v3534_v7 }
 0x48f   : > { %v7603_v17 = vadd.f32 %v3288_v33, %v3181_v11  ;;  %v3591_v11 = vmul.f32 %v7579_v44, %v3590_v45 }
 0x493   : > { %3525 = vrot.lane.b32.xlu0 %v3521_v26, %s8084_s4  ;;  %3553 = vrot.lane.b32.xlu1 %v3549_v35, %s8084_s4 }
 0x494   : > { %3539 = vrot.lane.b32.xlu2 %v3535_v58, %s8084_s4 }
 0x495   : > { %v3232_v56 = vpop.permute.xlu0 %3231  ;;  %v3260_v39 = vpop.permute.xlu1 %3259 }
 0x496   : > { %v3237_v36 = vadd.f32 %v3232_v56, %v7477_v52  ;;  %v3265_v48 = vadd.f32 %v3260_v39, %v7553_v49  ;;  %v3304_v53 = vpop.permute.xlu2 %3303  ;;  %v3563_v49 = vmul.f32 %v7579_v44, %v3562_v50 }
 0x497   : > { %v7617_v9 = vadd.f32 %v3304_v53, %v3196_v25  ;;  %v3606_v25 = vmul.f32 %v4259_v0, %v3604_v37 }
 0x49b   : > { %3541 = vrot.lane.b32.xlu0 %v3536_v28, %s8084_s4  ;;  %3569 = vrot.lane.b32.xlu1 %v3564_v38, %s8084_s4 }
 0x49c   : > { %3555 = vrot.lane.b32.xlu2 %v3550_v61, %s8084_s4 }
 0x49d   : > { %v3248_v52 = vpop.permute.xlu0 %3247  ;;  %v3276_v54 = vpop.permute.xlu1 %3275 }
 0x49e   : > { %v3252_v34 = vadd.f32 %v3248_v52, %v7493_v55  ;;  %v3280_v62 = vadd.f32 %v3276_v54, %v7570_v32  ;;  %v3330_v59 = vpop.permute.xlu2 %3329  ;;  %v3578_v32 = vmul.f32 %v4259_v0, %v3576_v63 }
 0x49f   : > { %v7625_v24 = vadd.f32 %v3330_v59, %v3223_v22 }
 0x4a3   : > { %3567 = vrot.lane.b32.xlu0 %v3563_v49, %s8084_s4  ;;  %3595 = vrot.lane.b32.xlu1 %v3591_v11, %s8084_s4  ;;  %v3632_v11 = vstv %s7662_s26 }
 0x4a4   : > { %3581 = vrot.lane.b32.xlu2 %v3577_v41, %s8084_s4 }
 0x4a5   : > { %v3274_v55 = vpop.permute.xlu0 %3273  ;;  %v3302_v57 = vpop.permute.xlu1 %3301 }
 0x4a6   : > { %v3279_v29 = vadd.f32 %v3274_v55, %v7508_v21  ;;  %v3307_v6 = vadd.f32 %v3302_v57, %v3195_v47  ;;  %v3346_v60 = vpop.permute.xlu2 %3345  ;;  %v3605_v21 = vmul.f32 %v7579_v44, %v3604_v37 }
 0x4a7   : > { %v7634_v16 = vadd.f32 %v3346_v60, %v3238_v31 }
 0x4ab   : > { %3583 = vrot.lane.b32.xlu0 %v3578_v32, %s8084_s4  ;;  %3611 = vrot.lane.b32.xlu1 %v3606_v25, %s8084_s4  ;;  %v3639_v25 = vstv %s7670_s6 }
 0x4ac   : > { %3597 = vrot.lane.b32.xlu2 %v3592_v43, %s8084_s4 }
 0x4ad   : > { %v3290_v10 = vpop.permute.xlu0 %3289  ;;  %v3318_v5 = vpop.permute.xlu1 %3317 }
 0x4ae   : > { %v3322_v23 = vadd.f32 %v3318_v5, %v3210_v4  ;;  %v3372_v27 = vpop.permute.xlu2 %3371  ;;  %v3294_v28 = vadd.f32 %v3290_v10, %v7525_v1 }
 0x4af   : > { %v7639_v13 = vadd.f32 %v3372_v27, %v3265_v48 }
 0x4b3   : > { %3609 = vrot.lane.b32.xlu0 %v3605_v21, %s8084_s4  ;;  %s7655_s4 = sld [smem:[#allocation9]] }
 0x4b5   : > { %v3316_v51 = vpop.permute.xlu0 %3315  ;;  %v3344_v15 = vpop.permute.xlu1 %3343 }
 0x4b6   : > { %v3349_v47 = vadd.f32 %v3344_v15, %v3237_v36  ;;  %v3388_v22 = vpop.permute.xlu2 %3387  ;;  %v3321_v45 = vadd.f32 %v3316_v51, %v7541_v8  ;;  %v3625_v51 = vstv %s7676_s2 }
 0x4b7   : > { %v7643_v12 = vadd.f32 %v3388_v22, %v3280_v62  ;;  %v3653_v22 = vstv %s7679_s11 }
 0x4b9   : > { %v3618_v54 = vstv %s7655_s4 }
 0x4bd   : > { %v3332_v42 = vpop.permute.xlu0 %3331  ;;  %v3360_v2 = vpop.permute.xlu1 %3359 }
 0x4be   : > { %v3364_v0 = vadd.f32 %v3360_v2, %v3252_v34  ;;  %v3414_v46 = vpop.permute.xlu2 %3413 }
 0x4bf   : > { %v7645_v18 = vadd.f32 %v3414_v46, %v3307_v6 }
 0x4c5   : > { %v3358_v3 = vpop.permute.xlu0 %3357  ;;  %v3386_v40 = vpop.permute.xlu1 %3385 }
 0x4c6   : > { %v3391_v4 = vadd.f32 %v3386_v40, %v3279_v29  ;;  %v3430_v31 = vpop.permute.xlu2 %3429  ;;  %v3336_v29 = vadd.f32 %v3332_v42, %v7558_v20 }
 0x4c7   : > { %v7647_v33 = vadd.f32 %v3430_v31, %v3322_v23 }
 0x4cd   : > { %v7649_v44 = vpop.permute.xlu0 %3373  ;;  %v3402_v30 = vpop.permute.xlu1 %3401 }
 0x4ce   : > { %v3456_v7 = vpop.permute.xlu2 %3455  ;;  %v3406_v38 = vadd.f32 %v3402_v30, %v3294_v28 }
 0x4cf   : > { %v7651_v26 = vadd.f32 %v3456_v7, %v3349_v47  ;;  %v3660_v7 = vstv %s7689_s23 }
 0x4d5   : > { %v3400_v35 = vpop.permute.xlu0 %3399  ;;  %v3428_v58 = vpop.permute.xlu1 %3427 }
 0x4d6   : > { %v3472_v56 = vpop.permute.xlu2 %3471  ;;  %v3433_v1 = vadd.f32 %v3428_v58, %v3321_v45  ;;  %v3405_v8 = vadd.f32 %v3400_v35, %v7603_v17  ;;  %v3363_v17 = vadd.f32 %v3358_v3, %v7575_v19  ;;  %v3378_v19 = vadd.f32 %v7649_v44, %v7590_v14 }
 0x4d7   : > { %v7653_v39 = vadd.f32 %v3472_v56, %v3364_v0 }
 0x4dd   : > { %v3416_v36 = vpop.permute.xlu0 %3415  ;;  %v3444_v48 = vpop.permute.xlu1 %3443 }
 0x4de   : > { %v3498_v53 = vpop.permute.xlu2 %3497  ;;  %v3448_v6 = vadd.f32 %v3444_v48, %v3336_v29  ;;  %v3420_v23 = vadd.f32 %v3416_v36, %v7617_v9  ;;  %v3646_v48 = vstv %s4133_s1 }
 0x4df   : > { %v7657_v50 = vadd.f32 %v3498_v53, %v3391_v4 }
 0x4e5   : > { %v3442_v61 = vpop.permute.xlu0 %3441  ;;  %v3470_v52 = vpop.permute.xlu1 %3469 }
 0x4e6   : > { %v3514_v34 = vpop.permute.xlu2 %3513  ;;  %v3475_v27 = vadd.f32 %v3470_v52, %v3363_v17  ;;  %v3447_v9 = vadd.f32 %v3442_v61, %v7625_v24 }
 0x4e7   : > { %v3518_v62 = vadd.f32 %v3514_v34, %v3406_v38 }
 0x4e9   : > { %v3620_v59 = vadd.f32 %v3618_v54, %v3518_v62 }
 0x4eb   : > { %3623 = vst.msk [vmem:[%s7665_s20 + $0x8] sm:$0xff] %vm3621_vm6, %v3620_v59 }
 0x4ed   : > { %v3458_v63 = vpop.permute.xlu0 %3457  ;;  %v3486_v49 = vpop.permute.xlu1 %3485 }
 0x4ee   : > { %v3540_v41 = vpop.permute.xlu2 %3539  ;;  %v3490_v3 = vadd.f32 %v3486_v49, %v3378_v19  ;;  %v3462_v24 = vadd.f32 %v3458_v63, %v7634_v16 }
 0x4ef   : > { %v3545_v55 = vadd.f32 %v3540_v41, %v3433_v1 }
 0x4f1   : > { %v3633_v57 = vadd.f32 %v3632_v11, %v3545_v55 }
 0x4f3   : > { %4128 = vst.msk [vmem:[%s7665_s20 + $0x20] sm:$0xff] %vm3621_vm6, %v3633_v57 }
 0x4f5   : > { %v3484_v60 = vpop.permute.xlu0 %3483  ;;  %v3512_v37 = vpop.permute.xlu1 %3511 }
 0x4f6   : > { %v3517_v32 = vadd.f32 %v3512_v37, %v3405_v8  ;;  %v3556_v43 = vpop.permute.xlu2 %3555  ;;  %v3489_v52 = vadd.f32 %v3484_v60, %v7639_v13  ;;  %v3667_v13 = vstv %s4142_s21 }
 0x4f7   : > { %v3560_v10 = vadd.f32 %v3556_v43, %v3448_v6 }
 0x4f8   : > { %v3619_v5 = vadd.f32 %v3618_v54, %v3517_v32 }
 0x4f9   : > { %v3641_v20 = vadd.f32 %v3639_v25, %v3560_v10 }
 0x4fa   : > { %3622 = vst.msk [vmem:[%s7665_s20] sm:$0xff] %vm3621_vm6, %v3619_v5 }
 0x4fb   : > { %4132 = vst.msk [vmem:[%s7665_s20 + $0x38] sm:$0xff] %vm3621_vm6, %v3641_v20 }
 0x4fd   : > { %v3500_v21 = vpop.permute.xlu0 %3499  ;;  %v3528_v15 = vpop.permute.xlu1 %3527 }
 0x4fe   : > { %v3532_v47 = vadd.f32 %v3528_v15, %v3420_v23  ;;  %v3582_v42 = vpop.permute.xlu2 %3581  ;;  %v3504_v45 = vadd.f32 %v3500_v21, %v7643_v12 }
 0x4ff   : > { %v3587_v2 = vadd.f32 %v3582_v42, %v3475_v27 }
 0x500   : > { %v3627_v0 = vadd.f32 %v3625_v51, %v3532_v47 }
 0x501   : > { %v3654_v46 = vadd.f32 %v3653_v22, %v3587_v2 }
 0x502   : > { %4126 = vst.msk [vmem:[%s7665_s20 + $0x18] sm:$0xff] %vm3621_vm6, %v3627_v0 }
 0x503   : > { %4137 = vst.msk [vmem:[%s7665_s20 + $0x50] sm:$0xff] %vm3621_vm6, %v3654_v46 }
 0x505   : > { %v3526_v40 = vpop.permute.xlu0 %3525  ;;  %v3554_v4 = vpop.permute.xlu1 %3553 }
 0x506   : > { %v3531_v31 = vadd.f32 %v3526_v40, %v7645_v18  ;;  %v3559_v30 = vadd.f32 %v3554_v4, %v3447_v9  ;;  %v3598_v35 = vpop.permute.xlu2 %3597 }
 0x507   : > { %v3602_v58 = vadd.f32 %v3598_v35, %v3490_v3 }
 0x508   : > { %v3626_v56 = vadd.f32 %v3625_v51, %v3531_v31  ;;  %v3640_v14 = vadd.f32 %v3639_v25, %v3559_v30 }
 0x509   : > { %v3662_v44 = vadd.f32 %v3660_v7, %v3602_v58 }
 0x50a   : > { %4125 = vst.msk [vmem:[%s7665_s20 + $0x10] sm:$0xff] %vm3621_vm6, %v3626_v56 }
 0x50b   : > { %4131 = vst.msk [vmem:[%s7665_s20 + $0x30] sm:$0xff] %vm3621_vm6, %v3640_v14 }
 0x50c   : > { %4141 = vst.msk [vmem:[%s7665_s20 + $0x68] sm:$0xff] %vm3621_vm6, %v3662_v44 }
 0x50d   : > { %v3542_v36 = vpop.permute.xlu0 %3541  ;;  %v3570_v18 = vpop.permute.xlu1 %3569 }
 0x50e   : > { %v3546_v53 = vadd.f32 %v3542_v36, %v7647_v33  ;;  %v3574_v28 = vadd.f32 %v3570_v18, %v3462_v24 }
 0x510   : > { %v3634_v38 = vadd.f32 %v3632_v11, %v3546_v53  ;;  %v3648_v61 = vadd.f32 %v3646_v48, %v3574_v28 }
 0x512   : > { %4129 = vst.msk [vmem:[%s7665_s20 + $0x28] sm:$0xff] %vm3621_vm6, %v3634_v38 }
 0x513   : > { %4135 = vst.msk [vmem:[%s7665_s20 + $0x48] sm:$0xff] %vm3621_vm6, %v3648_v61 }
 0x515   : > { %v3568_v16 = vpop.permute.xlu0 %3567  ;;  %v3596_v54 = vpop.permute.xlu1 %3595 }
 0x516   : > { %v3573_v34 = vadd.f32 %v3568_v16, %v7651_v26  ;;  %v3601_v62 = vadd.f32 %v3596_v54, %v3489_v52 }
 0x518   : > { %v3647_v59 = vadd.f32 %v3646_v48, %v3573_v34  ;;  %v3661_v33 = vadd.f32 %v3660_v7, %v3601_v62 }
 0x51a   : > { %4134 = vst.msk [vmem:[%s7665_s20 + $0x40] sm:$0xff] %vm3621_vm6, %v3647_v59 }
 0x51b   : > { %4140 = vst.msk [vmem:[%s7665_s20 + $0x60] sm:$0xff] %vm3621_vm6, %v3661_v33 }
 0x51d   : > { %v3584_v1 = vpop.permute.xlu0 %3583  ;;  %v3612_v63 = vpop.permute.xlu1 %3611 }
 0x51e   : > { %v3588_v49 = vadd.f32 %v3584_v1, %v7653_v39  ;;  %v3616_v26 = vadd.f32 %v3612_v63, %v3504_v45 }
 0x520   : > { %v3655_v11 = vadd.f32 %v3653_v22, %v3588_v49  ;;  %v3669_v41 = vadd.f32 %v3667_v13, %v3616_v26 }
 0x522   : > { %4138 = vst.msk [vmem:[%s7665_s20 + $0x58] sm:$0xff] %vm3621_vm6, %v3655_v11 }
 0x523   : > { %4144 = vst.msk [vmem:[%s7665_s20 + $0x78] sm:$0xff] %vm3621_vm6, %v3669_v41 }
 0x525   : > { %v3610_v12 = vpop.permute.xlu0 %3609 }
 0x526   : > { %v3615_v55 = vadd.f32 %v3610_v12, %v7657_v50 }
 0x528   : > { %v3668_v39 = vadd.f32 %v3667_v13, %v3615_v55 }
 0x52a   : > { %4143 = vst.msk [vmem:[%s7665_s20 + $0x70] sm:$0xff] %vm3621_vm6, %v3668_v39 }
 0x52b   : > { %4347 = shalt.err (!%p4344_p1)
}
 0x52c   : > { %s4420_s18 = smov 128   ;;  %s4421_s20 = smov 8  }
 0x52d   : > { %4162 = dma.vmem_to_hbm [thread:$0]  (%p4494_p8), %s3689_s0, 2048, %s3691_s28, %s3674_s15, %s4420_s18, %s4420_s18, %s4421_s20  }
 0x52e PF: > { %s3705_s2 = sand.u32 1, %s4390_s12   ;;  %p4176_p2 = pnand %p3812_p13, %p4498_p9 }
 0x52f   : > { %s3706_s11 = scalar_lea.sflag [#allocation5], %s3705_s2 }
 0x530   : > { %p4177_p4 = pneg %p4176_p2 }
 0x532   : > { %4385 = dma.done.wait (%p4177_p4), %s3706_s11, 2048  }
 0x533   : > { %4387 = vsyncadd (%p4177_p4), %s3706_s11, 4294965248  ;;  %s21_s17 = sadd.s32 1, %s4410_s17   ;;  %s8253_s12 = smov %s4394_s13 }
 0x534   : > { %p18_p6 = scmp.ge.s32.totalorder %s21_s17, 4   ;;  %s8254_s13 = smov %s4398_s14 }
 0x535   : > { %s8255_s14 = smov %s4539_s5  ;;  %s8256_s15 = smov %s4406_s16 }
 0x536   : > { %s8257_s16 = smov %s8259_s9  ;;  %20 = sbr.rel (!%p18_p6) target bundleno = 12 (0xc), region = 101 }
 0x53b   :  { %3712 = vsyncpa [#allocation4], 1 }
 0x53c   :  { %3714 = vsyncpa [#allocation4 + $0x1], 1 }
 0x53d   :  { %3715 = vsyncpa [#allocation5], 1 }
 0x53e   :  { %3717 = vsyncpa [#allocation5 + $0x1], 1 }
 0x53f   :  { %3718 = vsyncpa [#allocation6], 1 }
 0x540   :  { %3720 = vsyncpa [#allocation6 + $0x1], 1 }
 0x541   :  { %3721 = vsyncpa [#allocation7], 1 }
 0x542   :  { %3723 = vsyncpa [#allocation7 + $0x1], 1 }

</bundles_post_ra>
